<compile_context>
chip_gen: v6e
topology: v6e:2x2x1
jax: 0.10.0
libtpu: 0.0.40
codegen_flags: <defaults>
</compile_context>

<pallas_src>
import functools
import math

import jax
import jax.numpy as jnp
from jax.experimental import pallas as pl
from jax.experimental.pallas import tpu as pltpu

EPS = 1e-5                      # nn.BatchNorm1d default eps
LANE = 128                      # TPU lane width -> min padded channel count
VMEM_LIMIT = 32 * 1024 * 1024   # explicit scoped-VMEM budget (safe on v5e/v6e/v7x)


def _cparams(n_grid):
    return pltpu.CompilerParams(
        dimension_semantics=("parallel",) * n_grid,
        vmem_limit_bytes=VMEM_LIMIT,
    )


# --------------------------------------------------------------------------
# Pallas kernels
# --------------------------------------------------------------------------
def _conv_stats_kernel(*refs, stride):
    """Direct 1-D conv for one batch item: y = sum_j x_shift_j @ W_j (bf16 in,
    f32 MXU accumulation), plus per-batch BN partial sum / sum-of-squares."""
    if stride == 1:
        x_ref, w_ref, y_ref, s_ref, ss_ref = refs
        planes = (x_ref, x_ref)
    else:
        xe_ref, xo_ref, w_ref, y_ref, s_ref, ss_ref = refs
        planes = (xe_ref, xo_ref)

    k = w_ref.shape[0]
    lout = y_ref.shape[1]
    cout = y_ref.shape[2]

    acc = jnp.zeros((lout, cout), jnp.float32)
    for j in range(k):                       # static unroll, k in {1, 3, 7}
        if stride == 1:
            src, start = planes[0], j
        else:
            src, start = planes[j % 2], j // 2
        xj = src[0, start:start + lout, :]   # contiguous static slice (bf16)
        acc = acc + jnp.dot(xj, w_ref[j], preferred_element_type=jnp.float32)

    y_ref[0] = acc                                             # f32 intermediate
    s_ref[0] = jnp.sum(acc, axis=0, keepdims=True)             # f32 stats
    ss_ref[0] = jnp.sum(acc * acc, axis=0, keepdims=True)


def _bn_act_kernel(*refs, relu, has_res):
    """Fused BatchNorm apply (+ residual add) (+ ReLU), bf16 output."""
    if has_res:
        y_ref, sc_ref, sh_ref, r_ref, o_ref = refs
    else:
        y_ref, sc_ref, sh_ref, o_ref = refs
    h = y_ref[0] * sc_ref[...] + sh_ref[...]
    if has_res:
        h = h + r_ref[0].astype(jnp.float32)
    if relu:
        h = jnp.maximum(h, 0.0)
    o_ref[0] = h.astype(o_ref.dtype)


def _maxpool_kernel(xe_ref, xo_ref, o_ref):
    """MaxPool1d(kernel=3, stride=2, pad=1) from even/odd planes of the
    -inf-padded input: 3 contiguous in-VMEM slices, elementwise max."""
    lout = o_ref.shape[1]
    a = xe_ref[0, 0:lout, :]      # tap 0  (even plane, start 0)
    b = xo_ref[0, 0:lout, :]      # tap 1  (odd  plane, start 0)
    c = xe_ref[0, 1:1 + lout, :]  # tap 2  (even plane, start 1)
    o_ref[0] = jnp.maximum(jnp.maximum(a, b), c)


def _head_kernel(x_ref, w_ref, b_ref, o_ref):
    """AdaptiveAvgPool over length (mean) + Linear(512, num_classes)."""
    feat = jnp.mean(x_ref[...].astype(jnp.float32), axis=1)       # (B, 512)
    o_ref[...] = (
        jnp.dot(feat, w_ref[...], preferred_element_type=jnp.float32) + b_ref[...]
    )


# --------------------------------------------------------------------------
# Wrappers
# --------------------------------------------------------------------------
def conv_bn_act(x, w, gamma, beta, *, stride, pad, relu, residual=None):
    """x: (B, L, Cin) bf16 channels-last, w: (k, Cin, Cout) bf16.
    Conv1d (no bias) -> BatchNorm1d (training-mode batch stats) [-> +residual]
    [-> ReLU], returns (B, Lout, Cout) bf16."""
    B, L, _ = x.shape
    k, _, cout = w.shape

    # 1x1 stride-2 downsample conv == subsample then 1x1 stride-1 conv.
    if k == 1 and stride == 2:
        x = x[:, ::2, :]
        B, L, _ = x.shape
        stride = 1

    lout = (L + 2 * pad - k) // stride + 1

    if stride == 1:
        xp = jnp.pad(x, ((0, 0), (pad, pad), (0, 0)))
        planes = (xp,)
    else:
        lp2 = max(L + 2 * pad, 2 * ((k - 1) // 2 + lout))
        lp2 += lp2 % 2
        xp = jnp.pad(x, ((0, 0), (pad, lp2 - L - pad), (0, 0)))
        planes = (xp[:, 0::2, :], xp[:, 1::2, :])

    plane_specs = [
        pl.BlockSpec((1,) + p.shape[1:], lambda b: (b, 0, 0)) for p in planes
    ]

    y, psum, psumsq = pl.pallas_call(
        functools.partial(_conv_stats_kernel, stride=stride),
        grid=(B,),
        in_specs=plane_specs + [pl.BlockSpec(w.shape, lambda b: (0, 0, 0))],
        out_specs=(
            pl.BlockSpec((1, lout, cout), lambda b: (b, 0, 0)),
            pl.BlockSpec((1, 1, cout), lambda b: (b, 0, 0)),
            pl.BlockSpec((1, 1, cout), lambda b: (b, 0, 0)),
        ),
        out_shape=(
            jax.ShapeDtypeStruct((B, lout, cout), jnp.float32),
            jax.ShapeDtypeStruct((B, 1, cout), jnp.float32),
            jax.ShapeDtypeStruct((B, 1, cout), jnp.float32),
        ),
        compiler_params=_cparams(1),
    )(*planes, w)

    # BatchNorm1d training-mode statistics over (batch, length).
    # Tiny (C,)-vector finalize in XLA (equivalent to a separate reduction
    # kernel; negligible work).
    n = float(B * lout)
    mean = jnp.sum(psum, axis=(0, 1)) / n
    var = jnp.maximum(jnp.sum(psumsq, axis=(0, 1)) / n - mean * mean, 0.0)
    inv = jax.lax.rsqrt(var + EPS)
    scale = (gamma * inv).reshape(1, cout).astype(jnp.float32)
    shift = (beta - mean * gamma * inv).reshape(1, cout).astype(jnp.float32)

    args = [y, scale, shift]
    in_specs = [
        pl.BlockSpec((1, lout, cout), lambda b: (b, 0, 0)),
        pl.BlockSpec((1, cout), lambda b: (0, 0)),
        pl.BlockSpec((1, cout), lambda b: (0, 0)),
    ]
    if residual is not None:
        args.append(residual)
        in_specs.append(pl.BlockSpec((1, lout, cout), lambda b: (b, 0, 0)))

    return pl.pallas_call(
        functools.partial(_bn_act_kernel, relu=relu, has_res=residual is not None),
        grid=(B,),
        in_specs=in_specs,
        out_specs=pl.BlockSpec((1, lout, cout), lambda b: (b, 0, 0)),
        out_shape=jax.ShapeDtypeStruct((B, lout, cout), jnp.bfloat16),
        compiler_params=_cparams(1),
    )(*args)


def maxpool_k3_s2_p1(x):
    B, L, C = x.shape
    lout = (L + 2 - 3) // 2 + 1
    lp2 = max(L + 2, 2 * (1 + lout))
    lp2 += lp2 % 2
    xp = jnp.pad(x, ((0, 0), (1, lp2 - L - 1), (0, 0)), constant_values=-jnp.inf)
    xe, xo = xp[:, 0::2, :], xp[:, 1::2, :]
    return pl.pallas_call(
        _maxpool_kernel,
        grid=(B,),
        in_specs=[
            pl.BlockSpec((1,) + xe.shape[1:], lambda b: (b, 0, 0)),
            pl.BlockSpec((1,) + xo.shape[1:], lambda b: (b, 0, 0)),
        ],
        out_specs=pl.BlockSpec((1, lout, C), lambda b: (b, 0, 0)),
        out_shape=jax.ShapeDtypeStruct((B, lout, C), jnp.bfloat16),
        compiler_params=_cparams(1),
    )(xe, xo)


def avgpool_fc(x, w_fc, b_fc):
    B = x.shape[0]
    n_cls = w_fc.shape[1]
    return pl.pallas_call(
        _head_kernel,
        in_specs=[pl.BlockSpec(memory_space=pltpu.MemorySpace.VMEM)] * 3,
        out_specs=pl.BlockSpec(memory_space=pltpu.MemorySpace.VMEM),
        out_shape=jax.ShapeDtypeStruct((B, n_cls), jnp.float32),
        compiler_params=pltpu.CompilerParams(vmem_limit_bytes=VMEM_LIMIT),
    )(x, w_fc, b_fc.reshape(1, n_cls))


# --------------------------------------------------------------------------
# Parameters (deterministic, mirrors the PyTorch __init__ init; channel-padded)
# --------------------------------------------------------------------------
def _pad_ch(c):
    return max(c, LANE)


def _conv_weight(key, cout, cin, k, cin_pad=None):
    cin_pad = _pad_ch(cin) if cin_pad is None else cin_pad
    cout_pad = _pad_ch(cout)
    std = math.sqrt(2.0 / (k * cout))     # m.weight.data.normal_(0, sqrt(2/n))
    w = std * jax.random.normal(key, (cout, cin, k), jnp.float32)
    wp = jnp.zeros((k, cin_pad, cout_pad), jnp.float32)
    wp = wp.at[:, :cin, :cout].set(jnp.transpose(w, (2, 1, 0)))
    return wp.astype(jnp.bfloat16)


def _bn_params(c):
    cp = _pad_ch(c)
    gamma = jnp.zeros((cp,), jnp.float32).at[:c].set(1.0)  # pad gamma = 0 -> pad chans stay 0
    beta = jnp.zeros((cp,), jnp.float32)
    return gamma, beta


def build_params(key, layers, num_classes):
    keys = iter(jax.random.split(key, 64))
    params = {
        "conv1_w": _conv_weight(next(keys), 64, 2, 7, cin_pad=8),
        "bn1": _bn_params(64),
    }
    inplanes = 64
    for li, (planes, nblocks, stride) in enumerate(
        zip([64, 128, 256, 512], layers, [1, 2, 2, 2])
    ):
        blocks = []
        for bi in range(nblocks):
            s = stride if bi == 0 else 1
            blk = {
                "w1": _conv_weight(next(keys), planes, inplanes, 3),
                "bn1": _bn_params(planes),
                "w2": _conv_weight(next(keys), planes, planes, 3),
                "bn2": _bn_params(planes),
            }
            if s != 1 or inplanes != planes:     # downsample 1x1 conv + BN
                blk["ds_w"] = _conv_weight(next(keys), planes, inplanes, 1)
                blk["ds_bn"] = _bn_params(planes)
            blocks.append(blk)
            inplanes = planes
        params[f"layer{li + 1}"] = blocks
    bound = 1.0 / math.sqrt(512.0)               # nn.Linear default init
    params["fc_w"] = jax.random.uniform(
        next(keys), (512, num_classes), jnp.float32, -bound, bound
    )
    params["fc_b"] = jax.random.uniform(
        next(keys), (num_classes,), jnp.float32, -bound, bound
    )
    return params


# --------------------------------------------------------------------------
# Forward pass
# --------------------------------------------------------------------------
def basic_block(x, blk, stride):
    if "ds_w" in blk:
        residual = conv_bn_act(
            x, blk["ds_w"], *blk["ds_bn"], stride=stride, pad=0, relu=False
        )
    else:
        residual = x
    h = conv_bn_act(x, blk["w1"], *blk["bn1"], stride=stride, pad=1, relu=True)
    return conv_bn_act(
        h, blk["w2"], *blk["bn2"], stride=1, pad=1, relu=True, residual=residual
    )


def resnet_forward(params, x_ncl):
    # x_ncl: (B, 2, L) -- PyTorch (N, C, L) convention.
    x = jnp.transpose(x_ncl, (0, 2, 1)).astype(jnp.float32)        # (B, L, 2)
    x = jnp.pad(x, ((0, 0), (0, 0), (0, max(0, 8 - x.shape[-1]))))  # stem Cin -> 8
    x = x.astype(jnp.bfloat16)
    x = conv_bn_act(x, params["conv1_w"], *params["bn1"], stride=2, pad=3, relu=True)
    x = maxpool_k3_s2_p1(x)
    for li in range(1, 5):
        for bi, blk in enumerate(params[f"layer{li}"]):
            stride = 2 if (li >= 2 and bi == 0) else 1
            x = basic_block(x, blk, stride)
    return avgpool_fc(x, params["fc_w"], params["fc_b"])            # (B, num_classes)


# --------------------------------------------------------------------------
if __name__ == "__main__":
    key = jax.random.PRNGKey(0)
    k_param, k_data = jax.random.split(key)

    layers = [1, 1, 1, 1]           # one BasicBlock (expansion=1) per stage
    num_classes = 10
    batch, in_ch, length = 2, 2, 64

    params = build_params(k_param, layers, num_classes)
    x = jax.random.normal(k_data, (batch, in_ch, length), jnp.float32)

    fwd = jax.jit(resnet_forward)
    out = fwd(params, x)
    out = jax.block_until_ready(out)
    assert out.shape == (batch, num_classes), out.shape
    assert bool(jnp.all(jnp.isfinite(out)))
    print("KERNEL_OK")
</pallas_src>

<mosaic_0001>
module attributes {stable_mosaic.version = 11 : i64} {
  func.func @_bn_act_kernel(%arg0: i32, %arg1: memref<1x32x128xf32, #tpu.memory_space<vmem>>, %arg2: memref<1x128xf32, #tpu.memory_space<vmem>>, %arg3: memref<1x128xf32, #tpu.memory_space<vmem>>, %arg4: memref<1x32x128xbf16, #tpu.memory_space<vmem>>) attributes {dimension_semantics = [#tpu.dimension_semantics<parallel>], iteration_bounds = array<i64: 2>, scalar_prefetch = 0 : i64, scratch_operands = 0 : i64, tpu.core_type = #tpu.core_type<tc>, window_params = [{transform_indices = @transform_0, window_bounds = array<i64: 1, 32, 128>}, {pipeline_mode = #tpu.pipeline_mode<synchronous>, transform_indices = @transform_1, window_bounds = array<i64: 1, 128>}, {pipeline_mode = #tpu.pipeline_mode<synchronous>, transform_indices = @transform_2, window_bounds = array<i64: 1, 128>}, {transform_indices = @transform_3, window_bounds = array<i64: 1, 32, 128>}]} {
    %c0 = arith.constant 0 : index
    %c0_0 = arith.constant 0 : index
    %c0_1 = arith.constant 0 : index
    %0 = vector.load %arg1[%c0, %c0_0, %c0_1] : memref<1x32x128xf32, #tpu.memory_space<vmem>>, vector<1x32x128xf32>
    %1 = vector.shape_cast %0 : vector<1x32x128xf32> to vector<32x128xf32>
    %c0_2 = arith.constant 0 : index
    %c0_3 = arith.constant 0 : index
    %2 = vector.load %arg2[%c0_2, %c0_3] : memref<1x128xf32, #tpu.memory_space<vmem>>, vector<1x128xf32>
    %3 = vector.broadcast %2 : vector<1x128xf32> to vector<32x128xf32>
    %4 = arith.mulf %1, %3 : vector<32x128xf32>
    %c0_4 = arith.constant 0 : index
    %c0_5 = arith.constant 0 : index
    %5 = vector.load %arg3[%c0_4, %c0_5] : memref<1x128xf32, #tpu.memory_space<vmem>>, vector<1x128xf32>
    %6 = vector.broadcast %5 : vector<1x128xf32> to vector<32x128xf32>
    %7 = arith.addf %4, %6 : vector<32x128xf32>
    %cst = arith.constant 0.000000e+00 : f32
    %8 = vector.broadcast %cst : f32 to vector<32x128xf32>
    %9 = arith.maximumf %7, %8 : vector<32x128xf32>
    %10 = arith.truncf %9 : vector<32x128xf32> to vector<32x128xbf16>
    %c0_6 = arith.constant 0 : index
    %c0_7 = arith.constant 0 : index
    %c0_8 = arith.constant 0 : index
    %11 = vector.load %arg4[%c0_6, %c0_7, %c0_8] : memref<1x32x128xbf16, #tpu.memory_space<vmem>>, vector<1x32x128xbf16>
    %12 = vector.shape_cast %11 : vector<1x32x128xbf16> to vector<32x128xbf16>
    %13 = vector.shape_cast %10 : vector<32x128xbf16> to vector<1x32x128xbf16>
    tpu.vector_store %arg4[%c0_6, %c0_7, %c0_8], %13 {strides = array<i32>} : memref<1x32x128xbf16, #tpu.memory_space<vmem>>, vector<1x32x128xbf16>,
    return
  }
  func.func @transform_0(%arg0: i32) -> (i32, i32, i32) {
    %c0_i32 = arith.constant 0 : i32
    %c0_i32_0 = arith.constant 0 : i32
    %c0_i32_1 = arith.constant 0 : i32
    return %arg0, %c0_i32, %c0_i32_0 : i32, i32, i32
  }
  func.func @transform_1(%arg0: i32) -> (i32, i32) {
    %c0_i32 = arith.constant 0 : i32
    %c0_i32_0 = arith.constant 0 : i32
    %c0_i32_1 = arith.constant 0 : i32
    return %c0_i32, %c0_i32_0 : i32, i32
  }
  func.func @transform_2(%arg0: i32) -> (i32, i32) {
    %c0_i32 = arith.constant 0 : i32
    %c0_i32_0 = arith.constant 0 : i32
    %c0_i32_1 = arith.constant 0 : i32
    return %c0_i32, %c0_i32_0 : i32, i32
  }
  func.func @transform_3(%arg0: i32) -> (i32, i32, i32) {
    %c0_i32 = arith.constant 0 : i32
    %c0_i32_0 = arith.constant 0 : i32
    %c0_i32_1 = arith.constant 0 : i32
    return %arg0, %c0_i32, %c0_i32_0 : i32, i32, i32
  }
}

module attributes {stable_mosaic.version = 11 : i64} {
  func.func @_conv_stats_kernel(%arg0: i32, %arg1: memref<1x35x8xbf16, #tpu.memory_space<vmem>>, %arg2: memref<1x35x8xbf16, #tpu.memory_space<vmem>>, %arg3: memref<7x8x128xbf16, #tpu.memory_space<vmem>>, %arg4: memref<1x32x128xf32, #tpu.memory_space<vmem>>, %arg5: memref<1x1x128xf32, #tpu.memory_space<vmem>>, %arg6: memref<1x1x128xf32, #tpu.memory_space<vmem>>) attributes {dimension_semantics = [#tpu.dimension_semantics<parallel>], iteration_bounds = array<i64: 2>, scalar_prefetch = 0 : i64, scratch_operands = 0 : i64, tpu.core_type = #tpu.core_type<tc>, window_params = [{transform_indices = @transform_0, window_bounds = array<i64: 1, 35, 8>}, {transform_indices = @transform_1, window_bounds = array<i64: 1, 35, 8>}, {pipeline_mode = #tpu.pipeline_mode<synchronous>, transform_indices = @transform_2, window_bounds = array<i64: 7, 8, 128>}, {transform_indices = @transform_3, window_bounds = array<i64: 1, 32, 128>}, {transform_indices = @transform_4, window_bounds = array<i64: 1, 1, 128>}, {transform_indices = @transform_5, window_bounds = array<i64: 1, 1, 128>}]} {
    %cst = arith.constant 0.000000e+00 : f32
    %0 = vector.broadcast %cst : f32 to vector<32x128xf32>
    %c0 = arith.constant 0 : index
    %c0_0 = arith.constant 0 : index
    %c0_1 = arith.constant 0 : index
    %1 = vector.load %arg1[%c0, %c0_0, %c0_1] : memref<1x35x8xbf16, #tpu.memory_space<vmem>>, vector<1x32x8xbf16>
    %2 = vector.shape_cast %1 : vector<1x32x8xbf16> to vector<32x8xbf16>
    %c0_2 = arith.constant 0 : index
    %c0_3 = arith.constant 0 : index
    %c0_4 = arith.constant 0 : index
    %3 = vector.load %arg3[%c0_2, %c0_3, %c0_4] : memref<7x8x128xbf16, #tpu.memory_space<vmem>>, vector<1x8x128xbf16>
    %4 = vector.shape_cast %3 : vector<1x8x128xbf16> to vector<8x128xbf16>
    %cst_5 = arith.constant dense<0.000000e+00> : vector<32x128xf32>
    %5 = tpu.matmul %2, %4, %cst_5 {dimension_numbers = #tpu.dot_dimension_numbers<[1], [0], [0], [1], [0, 0, 1, 1], [], []>} : vector<32x8xbf16>, vector<8x128xbf16>, vector<32x128xf32> -> vector<32x128xf32>
    %6 = arith.addf %0, %5 : vector<32x128xf32>
    %c0_6 = arith.constant 0 : index
    %c0_7 = arith.constant 0 : index
    %c0_8 = arith.constant 0 : index
    %7 = vector.load %arg2[%c0_6, %c0_7, %c0_8] : memref<1x35x8xbf16, #tpu.memory_space<vmem>>, vector<1x32x8xbf16>
    %8 = vector.shape_cast %7 : vector<1x32x8xbf16> to vector<32x8xbf16>
    %c1 = arith.constant 1 : index
    %c0_9 = arith.constant 0 : index
    %c0_10 = arith.constant 0 : index
    %9 = vector.load %arg3[%c1, %c0_9, %c0_10] : memref<7x8x128xbf16, #tpu.memory_space<vmem>>, vector<1x8x128xbf16>
    %10 = vector.shape_cast %9 : vector<1x8x128xbf16> to vector<8x128xbf16>
    %cst_11 = arith.constant dense<0.000000e+00> : vector<32x128xf32>
    %11 = tpu.matmul %8, %10, %cst_11 {dimension_numbers = #tpu.dot_dimension_numbers<[1], [0], [0], [1], [0, 0, 1, 1], [], []>} : vector<32x8xbf16>, vector<8x128xbf16>, vector<32x128xf32> -> vector<32x128xf32>
    %12 = arith.addf %6, %11 : vector<32x128xf32>
    %c0_12 = arith.constant 0 : index
    %c1_13 = arith.constant 1 : index
    %c0_14 = arith.constant 0 : index
    %13 = vector.load %arg1[%c0_12, %c1_13, %c0_14] : memref<1x35x8xbf16, #tpu.memory_space<vmem>>, vector<1x32x8xbf16>
    %14 = vector.shape_cast %13 : vector<1x32x8xbf16> to vector<32x8xbf16>
    %c2 = arith.constant 2 : index
    %c0_15 = arith.constant 0 : index
    %c0_16 = arith.constant 0 : index
    %15 = vector.load %arg3[%c2, %c0_15, %c0_16] : memref<7x8x128xbf16, #tpu.memory_space<vmem>>, vector<1x8x128xbf16>
    %16 = vector.shape_cast %15 : vector<1x8x128xbf16> to vector<8x128xbf16>
    %cst_17 = arith.constant dense<0.000000e+00> : vector<32x128xf32>
    %17 = tpu.matmul %14, %16, %cst_17 {dimension_numbers = #tpu.dot_dimension_numbers<[1], [0], [0], [1], [0, 0, 1, 1], [], []>} : vector<32x8xbf16>, vector<8x128xbf16>, vector<32x128xf32> -> vector<32x128xf32>
    %18 = arith.addf %12, %17 : vector<32x128xf32>
    %c0_18 = arith.constant 0 : index
    %c1_19 = arith.constant 1 : index
    %c0_20 = arith.constant 0 : index
    %19 = vector.load %arg2[%c0_18, %c1_19, %c0_20] : memref<1x35x8xbf16, #tpu.memory_space<vmem>>, vector<1x32x8xbf16>
    %20 = vector.shape_cast %19 : vector<1x32x8xbf16> to vector<32x8xbf16>
    %c3 = arith.constant 3 : index
    %c0_21 = arith.constant 0 : index
    %c0_22 = arith.constant 0 : index
    %21 = vector.load %arg3[%c3, %c0_21, %c0_22] : memref<7x8x128xbf16, #tpu.memory_space<vmem>>, vector<1x8x128xbf16>
    %22 = vector.shape_cast %21 : vector<1x8x128xbf16> to vector<8x128xbf16>
    %cst_23 = arith.constant dense<0.000000e+00> : vector<32x128xf32>
    %23 = tpu.matmul %20, %22, %cst_23 {dimension_numbers = #tpu.dot_dimension_numbers<[1], [0], [0], [1], [0, 0, 1, 1], [], []>} : vector<32x8xbf16>, vector<8x128xbf16>, vector<32x128xf32> -> vector<32x128xf32>
    %24 = arith.addf %18, %23 : vector<32x128xf32>
    %c0_24 = arith.constant 0 : index
    %c2_25 = arith.constant 2 : index
    %c0_26 = arith.constant 0 : index
    %25 = vector.load %arg1[%c0_24, %c2_25, %c0_26] : memref<1x35x8xbf16, #tpu.memory_space<vmem>>, vector<1x32x8xbf16>
    %26 = vector.shape_cast %25 : vector<1x32x8xbf16> to vector<32x8xbf16>
    %c4 = arith.constant 4 : index
    %c0_27 = arith.constant 0 : index
    %c0_28 = arith.constant 0 : index
    %27 = vector.load %arg3[%c4, %c0_27, %c0_28] : memref<7x8x128xbf16, #tpu.memory_space<vmem>>, vector<1x8x128xbf16>
    %28 = vector.shape_cast %27 : vector<1x8x128xbf16> to vector<8x128xbf16>
    %cst_29 = arith.constant dense<0.000000e+00> : vector<32x128xf32>
    %29 = tpu.matmul %26, %28, %cst_29 {dimension_numbers = #tpu.dot_dimension_numbers<[1], [0], [0], [1], [0, 0, 1, 1], [], []>} : vector<32x8xbf16>, vector<8x128xbf16>, vector<32x128xf32> -> vector<32x128xf32>
    %30 = arith.addf %24, %29 : vector<32x128xf32>
    %c0_30 = arith.constant 0 : index
    %c2_31 = arith.constant 2 : index
    %c0_32 = arith.constant 0 : index
    %31 = vector.load %arg2[%c0_30, %c2_31, %c0_32] : memref<1x35x8xbf16, #tpu.memory_space<vmem>>, vector<1x32x8xbf16>
    %32 = vector.shape_cast %31 : vector<1x32x8xbf16> to vector<32x8xbf16>
    %c5 = arith.constant 5 : index
    %c0_33 = arith.constant 0 : index
    %c0_34 = arith.constant 0 : index
    %33 = vector.load %arg3[%c5, %c0_33, %c0_34] : memref<7x8x128xbf16, #tpu.memory_space<vmem>>, vector<1x8x128xbf16>
    %34 = vector.shape_cast %33 : vector<1x8x128xbf16> to vector<8x128xbf16>
    %cst_35 = arith.constant dense<0.000000e+00> : vector<32x128xf32>
    %35 = tpu.matmul %32, %34, %cst_35 {dimension_numbers = #tpu.dot_dimension_numbers<[1], [0], [0], [1], [0, 0, 1, 1], [], []>} : vector<32x8xbf16>, vector<8x128xbf16>, vector<32x128xf32> -> vector<32x128xf32>
    %36 = arith.addf %30, %35 : vector<32x128xf32>
    %c0_36 = arith.constant 0 : index
    %c3_37 = arith.constant 3 : index
    %c0_38 = arith.constant 0 : index
    %37 = vector.load %arg1[%c0_36, %c3_37, %c0_38] : memref<1x35x8xbf16, #tpu.memory_space<vmem>>, vector<1x32x8xbf16>
    %38 = vector.shape_cast %37 : vector<1x32x8xbf16> to vector<32x8xbf16>
    %c6 = arith.constant 6 : index
    %c0_39 = arith.constant 0 : index
    %c0_40 = arith.constant 0 : index
    %39 = vector.load %arg3[%c6, %c0_39, %c0_40] : memref<7x8x128xbf16, #tpu.memory_space<vmem>>, vector<1x8x128xbf16>
    %40 = vector.shape_cast %39 : vector<1x8x128xbf16> to vector<8x128xbf16>
    %cst_41 = arith.constant dense<0.000000e+00> : vector<32x128xf32>
    %41 = tpu.matmul %38, %40, %cst_41 {dimension_numbers = #tpu.dot_dimension_numbers<[1], [0], [0], [1], [0, 0, 1, 1], [], []>} : vector<32x8xbf16>, vector<8x128xbf16>, vector<32x128xf32> -> vector<32x128xf32>
    %42 = arith.addf %36, %41 : vector<32x128xf32>
    %c0_42 = arith.constant 0 : index
    %c0_43 = arith.constant 0 : index
    %c0_44 = arith.constant 0 : index
    %43 = vector.load %arg4[%c0_42, %c0_43, %c0_44] : memref<1x32x128xf32, #tpu.memory_space<vmem>>, vector<1x32x128xf32>
    %44 = vector.shape_cast %43 : vector<1x32x128xf32> to vector<32x128xf32>
    %45 = vector.shape_cast %42 : vector<32x128xf32> to vector<1x32x128xf32>
    tpu.vector_store %arg4[%c0_42, %c0_43, %c0_44], %45 {strides = array<i32>} : memref<1x32x128xf32, #tpu.memory_space<vmem>>, vector<1x32x128xf32>,
    %cst_45 = arith.constant dense<0.000000e+00> : vector<128xf32>
    %46 = vector.multi_reduction <add>, %42, %cst_45 [0] : vector<32x128xf32> to vector<128xf32>
    %47 = vector.shape_cast %46 : vector<128xf32> to vector<1x128xf32>
    %c0_46 = arith.constant 0 : index
    %c0_47 = arith.constant 0 : index
    %c0_48 = arith.constant 0 : index
    %48 = vector.load %arg5[%c0_46, %c0_47, %c0_48] : memref<1x1x128xf32, #tpu.memory_space<vmem>>, vector<1x1x128xf32>
    %49 = vector.shape_cast %48 : vector<1x1x128xf32> to vector<1x128xf32>
    %50 = vector.shape_cast %47 : vector<1x128xf32> to vector<1x1x128xf32>
    tpu.vector_store %arg5[%c0_46, %c0_47, %c0_48], %50 {strides = array<i32>} : memref<1x1x128xf32, #tpu.memory_space<vmem>>, vector<1x1x128xf32>,
    %51 = arith.mulf %42, %42 : vector<32x128xf32>
    %cst_49 = arith.constant dense<0.000000e+00> : vector<128xf32>
    %52 = vector.multi_reduction <add>, %51, %cst_49 [0] : vector<32x128xf32> to vector<128xf32>
    %53 = vector.shape_cast %52 : vector<128xf32> to vector<1x128xf32>
    %c0_50 = arith.constant 0 : index
    %c0_51 = arith.constant 0 : index
    %c0_52 = arith.constant 0 : index
    %54 = vector.load %arg6[%c0_50, %c0_51, %c0_52] : memref<1x1x128xf32, #tpu.memory_space<vmem>>, vector<1x1x128xf32>
    %55 = vector.shape_cast %54 : vector<1x1x128xf32> to vector<1x128xf32>
    %56 = vector.shape_cast %53 : vector<1x128xf32> to vector<1x1x128xf32>
    tpu.vector_store %arg6[%c0_50, %c0_51, %c0_52], %56 {strides = array<i32>} : memref<1x1x128xf32, #tpu.memory_space<vmem>>, vector<1x1x128xf32>,
    return
  }
  func.func @transform_0(%arg0: i32) -> (i32, i32, i32) {
    %c0_i32 = arith.constant 0 : i32
    %c0_i32_0 = arith.constant 0 : i32
    %c0_i32_1 = arith.constant 0 : i32
    return %arg0, %c0_i32, %c0_i32_0 : i32, i32, i32
  }
  func.func @transform_1(%arg0: i32) -> (i32, i32, i32) {
    %c0_i32 = arith.constant 0 : i32
    %c0_i32_0 = arith.constant 0 : i32
    %c0_i32_1 = arith.constant 0 : i32
    return %arg0, %c0_i32, %c0_i32_0 : i32, i32, i32
  }
  func.func @transform_2(%arg0: i32) -> (i32, i32, i32) {
    %c0_i32 = arith.constant 0 : i32
    %c0_i32_0 = arith.constant 0 : i32
    %c0_i32_1 = arith.constant 0 : i32
    %c0_i32_2 = arith.constant 0 : i32
    return %c0_i32, %c0_i32_0, %c0_i32_1 : i32, i32, i32
  }
  func.func @transform_3(%arg0: i32) -> (i32, i32, i32) {
    %c0_i32 = arith.constant 0 : i32
    %c0_i32_0 = arith.constant 0 : i32
    %c0_i32_1 = arith.constant 0 : i32
    return %arg0, %c0_i32, %c0_i32_0 : i32, i32, i32
  }
  func.func @transform_4(%arg0: i32) -> (i32, i32, i32) {
    %c0_i32 = arith.constant 0 : i32
    %c0_i32_0 = arith.constant 0 : i32
    %c0_i32_1 = arith.constant 0 : i32
    return %arg0, %c0_i32, %c0_i32_0 : i32, i32, i32
  }
  func.func @transform_5(%arg0: i32) -> (i32, i32, i32) {
    %c0_i32 = arith.constant 0 : i32
    %c0_i32_0 = arith.constant 0 : i32
    %c0_i32_1 = arith.constant 0 : i32
    return %arg0, %c0_i32, %c0_i32_0 : i32, i32, i32
  }
}

module attributes {stable_mosaic.version = 11 : i64} {
  func.func @_maxpool_kernel(%arg0: i32, %arg1: memref<1x17x128xbf16, #tpu.memory_space<vmem>>, %arg2: memref<1x17x128xbf16, #tpu.memory_space<vmem>>, %arg3: memref<1x16x128xbf16, #tpu.memory_space<vmem>>) attributes {dimension_semantics = [#tpu.dimension_semantics<parallel>], iteration_bounds = array<i64: 2>, scalar_prefetch = 0 : i64, scratch_operands = 0 : i64, tpu.core_type = #tpu.core_type<tc>, window_params = [{transform_indices = @transform_0, window_bounds = array<i64: 1, 17, 128>}, {transform_indices = @transform_1, window_bounds = array<i64: 1, 17, 128>}, {transform_indices = @transform_2, window_bounds = array<i64: 1, 16, 128>}]} {
    %c0 = arith.constant 0 : index
    %c0_0 = arith.constant 0 : index
    %c0_1 = arith.constant 0 : index
    %0 = vector.load %arg1[%c0, %c0_0, %c0_1] : memref<1x17x128xbf16, #tpu.memory_space<vmem>>, vector<1x16x128xbf16>
    %1 = vector.shape_cast %0 : vector<1x16x128xbf16> to vector<16x128xbf16>
    %c0_2 = arith.constant 0 : index
    %c0_3 = arith.constant 0 : index
    %c0_4 = arith.constant 0 : index
    %2 = vector.load %arg2[%c0_2, %c0_3, %c0_4] : memref<1x17x128xbf16, #tpu.memory_space<vmem>>, vector<1x16x128xbf16>
    %3 = vector.shape_cast %2 : vector<1x16x128xbf16> to vector<16x128xbf16>
    %c0_5 = arith.constant 0 : index
    %c1 = arith.constant 1 : index
    %c0_6 = arith.constant 0 : index
    %4 = vector.load %arg1[%c0_5, %c1, %c0_6] : memref<1x17x128xbf16, #tpu.memory_space<vmem>>, vector<1x16x128xbf16>
    %5 = vector.shape_cast %4 : vector<1x16x128xbf16> to vector<16x128xbf16>
    %6 = arith.maximumf %1, %3 : vector<16x128xbf16>
    %7 = arith.maximumf %6, %5 : vector<16x128xbf16>
    %c0_7 = arith.constant 0 : index
    %c0_8 = arith.constant 0 : index
    %c0_9 = arith.constant 0 : index
    %8 = vector.load %arg3[%c0_7, %c0_8, %c0_9] : memref<1x16x128xbf16, #tpu.memory_space<vmem>>, vector<1x16x128xbf16>
    %9 = vector.shape_cast %8 : vector<1x16x128xbf16> to vector<16x128xbf16>
    %10 = vector.shape_cast %7 : vector<16x128xbf16> to vector<1x16x128xbf16>
    tpu.vector_store %arg3[%c0_7, %c0_8, %c0_9], %10 {strides = array<i32>} : memref<1x16x128xbf16, #tpu.memory_space<vmem>>, vector<1x16x128xbf16>,
    return
  }
  func.func @transform_0(%arg0: i32) -> (i32, i32, i32) {
    %c0_i32 = arith.constant 0 : i32
    %c0_i32_0 = arith.constant 0 : i32
    %c0_i32_1 = arith.constant 0 : i32
    return %arg0, %c0_i32, %c0_i32_0 : i32, i32, i32
  }
  func.func @transform_1(%arg0: i32) -> (i32, i32, i32) {
    %c0_i32 = arith.constant 0 : i32
    %c0_i32_0 = arith.constant 0 : i32
    %c0_i32_1 = arith.constant 0 : i32
    return %arg0, %c0_i32, %c0_i32_0 : i32, i32, i32
  }
  func.func @transform_2(%arg0: i32) -> (i32, i32, i32) {
    %c0_i32 = arith.constant 0 : i32
    %c0_i32_0 = arith.constant 0 : i32
    %c0_i32_1 = arith.constant 0 : i32
    return %arg0, %c0_i32, %c0_i32_0 : i32, i32, i32
  }
}

module attributes {stable_mosaic.version = 11 : i64} {
  func.func @_conv_stats_kernel(%arg0: i32, %arg1: memref<1x18x128xbf16, #tpu.memory_space<vmem>>, %arg2: memref<3x128x128xbf16, #tpu.memory_space<vmem>>, %arg3: memref<1x16x128xf32, #tpu.memory_space<vmem>>, %arg4: memref<1x1x128xf32, #tpu.memory_space<vmem>>, %arg5: memref<1x1x128xf32, #tpu.memory_space<vmem>>) attributes {dimension_semantics = [#tpu.dimension_semantics<parallel>], iteration_bounds = array<i64: 2>, scalar_prefetch = 0 : i64, scratch_operands = 0 : i64, tpu.core_type = #tpu.core_type<tc>, window_params = [{transform_indices = @transform_0, window_bounds = array<i64: 1, 18, 128>}, {pipeline_mode = #tpu.pipeline_mode<synchronous>, transform_indices = @transform_1, window_bounds = array<i64: 3, 128, 128>}, {transform_indices = @transform_2, window_bounds = array<i64: 1, 16, 128>}, {transform_indices = @transform_3, window_bounds = array<i64: 1, 1, 128>}, {transform_indices = @transform_4, window_bounds = array<i64: 1, 1, 128>}]} {
    %cst = arith.constant 0.000000e+00 : f32
    %0 = vector.broadcast %cst : f32 to vector<16x128xf32>
    %c0 = arith.constant 0 : index
    %c0_0 = arith.constant 0 : index
    %c0_1 = arith.constant 0 : index
    %1 = vector.load %arg1[%c0, %c0_0, %c0_1] : memref<1x18x128xbf16, #tpu.memory_space<vmem>>, vector<1x16x128xbf16>
    %2 = vector.shape_cast %1 : vector<1x16x128xbf16> to vector<16x128xbf16>
    %c0_2 = arith.constant 0 : index
    %c0_3 = arith.constant 0 : index
    %c0_4 = arith.constant 0 : index
    %3 = vector.load %arg2[%c0_2, %c0_3, %c0_4] : memref<3x128x128xbf16, #tpu.memory_space<vmem>>, vector<1x128x128xbf16>
    %4 = vector.shape_cast %3 : vector<1x128x128xbf16> to vector<128x128xbf16>
    %cst_5 = arith.constant dense<0.000000e+00> : vector<16x128xf32>
    %5 = tpu.matmul %2, %4, %cst_5 {dimension_numbers = #tpu.dot_dimension_numbers<[1], [0], [0], [1], [0, 0, 1, 1], [], []>} : vector<16x128xbf16>, vector<128x128xbf16>, vector<16x128xf32> -> vector<16x128xf32>
    %6 = arith.addf %0, %5 : vector<16x128xf32>
    %c0_6 = arith.constant 0 : index
    %c1 = arith.constant 1 : index
    %c0_7 = arith.constant 0 : index
    %7 = vector.load %arg1[%c0_6, %c1, %c0_7] : memref<1x18x128xbf16, #tpu.memory_space<vmem>>, vector<1x16x128xbf16>
    %8 = vector.shape_cast %7 : vector<1x16x128xbf16> to vector<16x128xbf16>
    %c1_8 = arith.constant 1 : index
    %c0_9 = arith.constant 0 : index
    %c0_10 = arith.constant 0 : index
    %9 = vector.load %arg2[%c1_8, %c0_9, %c0_10] : memref<3x128x128xbf16, #tpu.memory_space<vmem>>, vector<1x128x128xbf16>
    %10 = vector.shape_cast %9 : vector<1x128x128xbf16> to vector<128x128xbf16>
    %cst_11 = arith.constant dense<0.000000e+00> : vector<16x128xf32>
    %11 = tpu.matmul %8, %10, %cst_11 {dimension_numbers = #tpu.dot_dimension_numbers<[1], [0], [0], [1], [0, 0, 1, 1], [], []>} : vector<16x128xbf16>, vector<128x128xbf16>, vector<16x128xf32> -> vector<16x128xf32>
    %12 = arith.addf %6, %11 : vector<16x128xf32>
    %c0_12 = arith.constant 0 : index
    %c2 = arith.constant 2 : index
    %c0_13 = arith.constant 0 : index
    %13 = vector.load %arg1[%c0_12, %c2, %c0_13] : memref<1x18x128xbf16, #tpu.memory_space<vmem>>, vector<1x16x128xbf16>
    %14 = vector.shape_cast %13 : vector<1x16x128xbf16> to vector<16x128xbf16>
    %c2_14 = arith.constant 2 : index
    %c0_15 = arith.constant 0 : index
    %c0_16 = arith.constant 0 : index
    %15 = vector.load %arg2[%c2_14, %c0_15, %c0_16] : memref<3x128x128xbf16, #tpu.memory_space<vmem>>, vector<1x128x128xbf16>
    %16 = vector.shape_cast %15 : vector<1x128x128xbf16> to vector<128x128xbf16>
    %cst_17 = arith.constant dense<0.000000e+00> : vector<16x128xf32>
    %17 = tpu.matmul %14, %16, %cst_17 {dimension_numbers = #tpu.dot_dimension_numbers<[1], [0], [0], [1], [0, 0, 1, 1], [], []>} : vector<16x128xbf16>, vector<128x128xbf16>, vector<16x128xf32> -> vector<16x128xf32>
    %18 = arith.addf %12, %17 : vector<16x128xf32>
    %c0_18 = arith.constant 0 : index
    %c0_19 = arith.constant 0 : index
    %c0_20 = arith.constant 0 : index
    %19 = vector.load %arg3[%c0_18, %c0_19, %c0_20] : memref<1x16x128xf32, #tpu.memory_space<vmem>>, vector<1x16x128xf32>
    %20 = vector.shape_cast %19 : vector<1x16x128xf32> to vector<16x128xf32>
    %21 = vector.shape_cast %18 : vector<16x128xf32> to vector<1x16x128xf32>
    tpu.vector_store %arg3[%c0_18, %c0_19, %c0_20], %21 {strides = array<i32>} : memref<1x16x128xf32, #tpu.memory_space<vmem>>, vector<1x16x128xf32>,
    %cst_21 = arith.constant dense<0.000000e+00> : vector<128xf32>
    %22 = vector.multi_reduction <add>, %18, %cst_21 [0] : vector<16x128xf32> to vector<128xf32>
    %23 = vector.shape_cast %22 : vector<128xf32> to vector<1x128xf32>
    %c0_22 = arith.constant 0 : index
    %c0_23 = arith.constant 0 : index
    %c0_24 = arith.constant 0 : index
    %24 = vector.load %arg4[%c0_22, %c0_23, %c0_24] : memref<1x1x128xf32, #tpu.memory_space<vmem>>, vector<1x1x128xf32>
    %25 = vector.shape_cast %24 : vector<1x1x128xf32> to vector<1x128xf32>
    %26 = vector.shape_cast %23 : vector<1x128xf32> to vector<1x1x128xf32>
    tpu.vector_store %arg4[%c0_22, %c0_23, %c0_24], %26 {strides = array<i32>} : memref<1x1x128xf32, #tpu.memory_space<vmem>>, vector<1x1x128xf32>,
    %27 = arith.mulf %18, %18 : vector<16x128xf32>
    %cst_25 = arith.constant dense<0.000000e+00> : vector<128xf32>
    %28 = vector.multi_reduction <add>, %27, %cst_25 [0] : vector<16x128xf32> to vector<128xf32>
    %29 = vector.shape_cast %28 : vector<128xf32> to vector<1x128xf32>
    %c0_26 = arith.constant 0 : index
    %c0_27 = arith.constant 0 : index
    %c0_28 = arith.constant 0 : index
    %30 = vector.load %arg5[%c0_26, %c0_27, %c0_28] : memref<1x1x128xf32, #tpu.memory_space<vmem>>, vector<1x1x128xf32>
    %31 = vector.shape_cast %30 : vector<1x1x128xf32> to vector<1x128xf32>
    %32 = vector.shape_cast %29 : vector<1x128xf32> to vector<1x1x128xf32>
    tpu.vector_store %arg5[%c0_26, %c0_27, %c0_28], %32 {strides = array<i32>} : memref<1x1x128xf32, #tpu.memory_space<vmem>>, vector<1x1x128xf32>,
    return
  }
  func.func @transform_0(%arg0: i32) -> (i32, i32, i32) {
    %c0_i32 = arith.constant 0 : i32
    %c0_i32_0 = arith.constant 0 : i32
    %c0_i32_1 = arith.constant 0 : i32
    return %arg0, %c0_i32, %c0_i32_0 : i32, i32, i32
  }
  func.func @transform_1(%arg0: i32) -> (i32, i32, i32) {
    %c0_i32 = arith.constant 0 : i32
    %c0_i32_0 = arith.constant 0 : i32
    %c0_i32_1 = arith.constant 0 : i32
    %c0_i32_2 = arith.constant 0 : i32
    return %c0_i32, %c0_i32_0, %c0_i32_1 : i32, i32, i32
  }
  func.func @transform_2(%arg0: i32) -> (i32, i32, i32) {
    %c0_i32 = arith.constant 0 : i32
    %c0_i32_0 = arith.constant 0 : i32
    %c0_i32_1 = arith.constant 0 : i32
    return %arg0, %c0_i32, %c0_i32_0 : i32, i32, i32
  }
  func.func @transform_3(%arg0: i32) -> (i32, i32, i32) {
    %c0_i32 = arith.constant 0 : i32
    %c0_i32_0 = arith.constant 0 : i32
    %c0_i32_1 = arith.constant 0 : i32
    return %arg0, %c0_i32, %c0_i32_0 : i32, i32, i32
  }
  func.func @transform_4(%arg0: i32) -> (i32, i32, i32) {
    %c0_i32 = arith.constant 0 : i32
    %c0_i32_0 = arith.constant 0 : i32
    %c0_i32_1 = arith.constant 0 : i32
    return %arg0, %c0_i32, %c0_i32_0 : i32, i32, i32
  }
}

module attributes {stable_mosaic.version = 11 : i64} {
  func.func @_bn_act_kernel(%arg0: i32, %arg1: memref<1x16x128xf32, #tpu.memory_space<vmem>>, %arg2: memref<1x128xf32, #tpu.memory_space<vmem>>, %arg3: memref<1x128xf32, #tpu.memory_space<vmem>>, %arg4: memref<1x16x128xbf16, #tpu.memory_space<vmem>>) attributes {dimension_semantics = [#tpu.dimension_semantics<parallel>], iteration_bounds = array<i64: 2>, scalar_prefetch = 0 : i64, scratch_operands = 0 : i64, tpu.core_type = #tpu.core_type<tc>, window_params = [{transform_indices = @transform_0, window_bounds = array<i64: 1, 16, 128>}, {pipeline_mode = #tpu.pipeline_mode<synchronous>, transform_indices = @transform_1, window_bounds = array<i64: 1, 128>}, {pipeline_mode = #tpu.pipeline_mode<synchronous>, transform_indices = @transform_2, window_bounds = array<i64: 1, 128>}, {transform_indices = @transform_3, window_bounds = array<i64: 1, 16, 128>}]} {
    %c0 = arith.constant 0 : index
    %c0_0 = arith.constant 0 : index
    %c0_1 = arith.constant 0 : index
    %0 = vector.load %arg1[%c0, %c0_0, %c0_1] : memref<1x16x128xf32, #tpu.memory_space<vmem>>, vector<1x16x128xf32>
    %1 = vector.shape_cast %0 : vector<1x16x128xf32> to vector<16x128xf32>
    %c0_2 = arith.constant 0 : index
    %c0_3 = arith.constant 0 : index
    %2 = vector.load %arg2[%c0_2, %c0_3] : memref<1x128xf32, #tpu.memory_space<vmem>>, vector<1x128xf32>
    %3 = vector.broadcast %2 : vector<1x128xf32> to vector<16x128xf32>
    %4 = arith.mulf %1, %3 : vector<16x128xf32>
    %c0_4 = arith.constant 0 : index
    %c0_5 = arith.constant 0 : index
    %5 = vector.load %arg3[%c0_4, %c0_5] : memref<1x128xf32, #tpu.memory_space<vmem>>, vector<1x128xf32>
    %6 = vector.broadcast %5 : vector<1x128xf32> to vector<16x128xf32>
    %7 = arith.addf %4, %6 : vector<16x128xf32>
    %cst = arith.constant 0.000000e+00 : f32
    %8 = vector.broadcast %cst : f32 to vector<16x128xf32>
    %9 = arith.maximumf %7, %8 : vector<16x128xf32>
    %10 = arith.truncf %9 : vector<16x128xf32> to vector<16x128xbf16>
    %c0_6 = arith.constant 0 : index
    %c0_7 = arith.constant 0 : index
    %c0_8 = arith.constant 0 : index
    %11 = vector.load %arg4[%c0_6, %c0_7, %c0_8] : memref<1x16x128xbf16, #tpu.memory_space<vmem>>, vector<1x16x128xbf16>
    %12 = vector.shape_cast %11 : vector<1x16x128xbf16> to vector<16x128xbf16>
    %13 = vector.shape_cast %10 : vector<16x128xbf16> to vector<1x16x128xbf16>
    tpu.vector_store %arg4[%c0_6, %c0_7, %c0_8], %13 {strides = array<i32>} : memref<1x16x128xbf16, #tpu.memory_space<vmem>>, vector<1x16x128xbf16>,
    return
  }
  func.func @transform_0(%arg0: i32) -> (i32, i32, i32) {
    %c0_i32 = arith.constant 0 : i32
    %c0_i32_0 = arith.constant 0 : i32
    %c0_i32_1 = arith.constant 0 : i32
    return %arg0, %c0_i32, %c0_i32_0 : i32, i32, i32
  }
  func.func @transform_1(%arg0: i32) -> (i32, i32) {
    %c0_i32 = arith.constant 0 : i32
    %c0_i32_0 = arith.constant 0 : i32
    %c0_i32_1 = arith.constant 0 : i32
    return %c0_i32, %c0_i32_0 : i32, i32
  }
  func.func @transform_2(%arg0: i32) -> (i32, i32) {
    %c0_i32 = arith.constant 0 : i32
    %c0_i32_0 = arith.constant 0 : i32
    %c0_i32_1 = arith.constant 0 : i32
    return %c0_i32, %c0_i32_0 : i32, i32
  }
  func.func @transform_3(%arg0: i32) -> (i32, i32, i32) {
    %c0_i32 = arith.constant 0 : i32
    %c0_i32_0 = arith.constant 0 : i32
    %c0_i32_1 = arith.constant 0 : i32
    return %arg0, %c0_i32, %c0_i32_0 : i32, i32, i32
  }
}

module attributes {stable_mosaic.version = 11 : i64} {
  func.func @_bn_act_kernel(%arg0: i32, %arg1: memref<1x16x128xf32, #tpu.memory_space<vmem>>, %arg2: memref<1x128xf32, #tpu.memory_space<vmem>>, %arg3: memref<1x128xf32, #tpu.memory_space<vmem>>, %arg4: memref<1x16x128xbf16, #tpu.memory_space<vmem>>, %arg5: memref<1x16x128xbf16, #tpu.memory_space<vmem>>) attributes {dimension_semantics = [#tpu.dimension_semantics<parallel>], iteration_bounds = array<i64: 2>, scalar_prefetch = 0 : i64, scratch_operands = 0 : i64, tpu.core_type = #tpu.core_type<tc>, window_params = [{transform_indices = @transform_0, window_bounds = array<i64: 1, 16, 128>}, {pipeline_mode = #tpu.pipeline_mode<synchronous>, transform_indices = @transform_1, window_bounds = array<i64: 1, 128>}, {pipeline_mode = #tpu.pipeline_mode<synchronous>, transform_indices = @transform_2, window_bounds = array<i64: 1, 128>}, {transform_indices = @transform_3, window_bounds = array<i64: 1, 16, 128>}, {transform_indices = @transform_4, window_bounds = array<i64: 1, 16, 128>}]} {
    %c0 = arith.constant 0 : index
    %c0_0 = arith.constant 0 : index
    %c0_1 = arith.constant 0 : index
    %0 = vector.load %arg1[%c0, %c0_0, %c0_1] : memref<1x16x128xf32, #tpu.memory_space<vmem>>, vector<1x16x128xf32>
    %1 = vector.shape_cast %0 : vector<1x16x128xf32> to vector<16x128xf32>
    %c0_2 = arith.constant 0 : index
    %c0_3 = arith.constant 0 : index
    %2 = vector.load %arg2[%c0_2, %c0_3] : memref<1x128xf32, #tpu.memory_space<vmem>>, vector<1x128xf32>
    %3 = vector.broadcast %2 : vector<1x128xf32> to vector<16x128xf32>
    %4 = arith.mulf %1, %3 : vector<16x128xf32>
    %c0_4 = arith.constant 0 : index
    %c0_5 = arith.constant 0 : index
    %5 = vector.load %arg3[%c0_4, %c0_5] : memref<1x128xf32, #tpu.memory_space<vmem>>, vector<1x128xf32>
    %6 = vector.broadcast %5 : vector<1x128xf32> to vector<16x128xf32>
    %7 = arith.addf %4, %6 : vector<16x128xf32>
    %c0_6 = arith.constant 0 : index
    %c0_7 = arith.constant 0 : index
    %c0_8 = arith.constant 0 : index
    %8 = vector.load %arg4[%c0_6, %c0_7, %c0_8] : memref<1x16x128xbf16, #tpu.memory_space<vmem>>, vector<1x16x128xbf16>
    %9 = vector.shape_cast %8 : vector<1x16x128xbf16> to vector<16x128xbf16>
    %10 = arith.extf %9 : vector<16x128xbf16> to vector<16x128xf32>
    %11 = arith.addf %7, %10 : vector<16x128xf32>
    %cst = arith.constant 0.000000e+00 : f32
    %12 = vector.broadcast %cst : f32 to vector<16x128xf32>
    %13 = arith.maximumf %11, %12 : vector<16x128xf32>
    %14 = arith.truncf %13 : vector<16x128xf32> to vector<16x128xbf16>
    %c0_9 = arith.constant 0 : index
    %c0_10 = arith.constant 0 : index
    %c0_11 = arith.constant 0 : index
    %15 = vector.load %arg5[%c0_9, %c0_10, %c0_11] : memref<1x16x128xbf16, #tpu.memory_space<vmem>>, vector<1x16x128xbf16>
    %16 = vector.shape_cast %15 : vector<1x16x128xbf16> to vector<16x128xbf16>
    %17 = vector.shape_cast %14 : vector<16x128xbf16> to vector<1x16x128xbf16>
    tpu.vector_store %arg5[%c0_9, %c0_10, %c0_11], %17 {strides = array<i32>} : memref<1x16x128xbf16, #tpu.memory_space<vmem>>, vector<1x16x128xbf16>,
    return
  }
  func.func @transform_0(%arg0: i32) -> (i32, i32, i32) {
    %c0_i32 = arith.constant 0 : i32
    %c0_i32_0 = arith.constant 0 : i32
    %c0_i32_1 = arith.constant 0 : i32
    return %arg0, %c0_i32, %c0_i32_0 : i32, i32, i32
  }
  func.func @transform_1(%arg0: i32) -> (i32, i32) {
    %c0_i32 = arith.constant 0 : i32
    %c0_i32_0 = arith.constant 0 : i32
    %c0_i32_1 = arith.constant 0 : i32
    return %c0_i32, %c0_i32_0 : i32, i32
  }
  func.func @transform_2(%arg0: i32) -> (i32, i32) {
    %c0_i32 = arith.constant 0 : i32
    %c0_i32_0 = arith.constant 0 : i32
    %c0_i32_1 = arith.constant 0 : i32
    return %c0_i32, %c0_i32_0 : i32, i32
  }
  func.func @transform_3(%arg0: i32) -> (i32, i32, i32) {
    %c0_i32 = arith.constant 0 : i32
    %c0_i32_0 = arith.constant 0 : i32
    %c0_i32_1 = arith.constant 0 : i32
    return %arg0, %c0_i32, %c0_i32_0 : i32, i32, i32
  }
  func.func @transform_4(%arg0: i32) -> (i32, i32, i32) {
    %c0_i32 = arith.constant 0 : i32
    %c0_i32_0 = arith.constant 0 : i32
    %c0_i32_1 = arith.constant 0 : i32
    return %arg0, %c0_i32, %c0_i32_0 : i32, i32, i32
  }
}

module attributes {stable_mosaic.version = 11 : i64} {
  func.func @_conv_stats_kernel(%arg0: i32, %arg1: memref<1x8x128xbf16, #tpu.memory_space<vmem>>, %arg2: memref<1x128x128xbf16, #tpu.memory_space<vmem>>, %arg3: memref<1x8x128xf32, #tpu.memory_space<vmem>>, %arg4: memref<1x1x128xf32, #tpu.memory_space<vmem>>, %arg5: memref<1x1x128xf32, #tpu.memory_space<vmem>>) attributes {dimension_semantics = [#tpu.dimension_semantics<parallel>], iteration_bounds = array<i64: 2>, scalar_prefetch = 0 : i64, scratch_operands = 0 : i64, tpu.core_type = #tpu.core_type<tc>, window_params = [{transform_indices = @transform_0, window_bounds = array<i64: 1, 8, 128>}, {pipeline_mode = #tpu.pipeline_mode<synchronous>, transform_indices = @transform_1, window_bounds = array<i64: 1, 128, 128>}, {transform_indices = @transform_2, window_bounds = array<i64: 1, 8, 128>}, {transform_indices = @transform_3, window_bounds = array<i64: 1, 1, 128>}, {transform_indices = @transform_4, window_bounds = array<i64: 1, 1, 128>}]} {
    %cst = arith.constant 0.000000e+00 : f32
    %0 = vector.broadcast %cst : f32 to vector<8x128xf32>
    %c0 = arith.constant 0 : index
    %c0_0 = arith.constant 0 : index
    %c0_1 = arith.constant 0 : index
    %1 = vector.load %arg1[%c0, %c0_0, %c0_1] : memref<1x8x128xbf16, #tpu.memory_space<vmem>>, vector<1x8x128xbf16>
    %2 = vector.shape_cast %1 : vector<1x8x128xbf16> to vector<8x128xbf16>
    %c0_2 = arith.constant 0 : index
    %c0_3 = arith.constant 0 : index
    %c0_4 = arith.constant 0 : index
    %3 = vector.load %arg2[%c0_2, %c0_3, %c0_4] : memref<1x128x128xbf16, #tpu.memory_space<vmem>>, vector<1x128x128xbf16>
    %4 = vector.shape_cast %3 : vector<1x128x128xbf16> to vector<128x128xbf16>
    %cst_5 = arith.constant dense<0.000000e+00> : vector<8x128xf32>
    %5 = tpu.matmul %2, %4, %cst_5 {dimension_numbers = #tpu.dot_dimension_numbers<[1], [0], [0], [1], [0, 0, 1, 1], [], []>} : vector<8x128xbf16>, vector<128x128xbf16>, vector<8x128xf32> -> vector<8x128xf32>
    %6 = arith.addf %0, %5 : vector<8x128xf32>
    %c0_6 = arith.constant 0 : index
    %c0_7 = arith.constant 0 : index
    %c0_8 = arith.constant 0 : index
    %7 = vector.load %arg3[%c0_6, %c0_7, %c0_8] : memref<1x8x128xf32, #tpu.memory_space<vmem>>, vector<1x8x128xf32>
    %8 = vector.shape_cast %7 : vector<1x8x128xf32> to vector<8x128xf32>
    %9 = vector.shape_cast %6 : vector<8x128xf32> to vector<1x8x128xf32>
    tpu.vector_store %arg3[%c0_6, %c0_7, %c0_8], %9 {strides = array<i32>} : memref<1x8x128xf32, #tpu.memory_space<vmem>>, vector<1x8x128xf32>,
    %cst_9 = arith.constant dense<0.000000e+00> : vector<128xf32>
    %10 = vector.multi_reduction <add>, %6, %cst_9 [0] : vector<8x128xf32> to vector<128xf32>
    %11 = vector.shape_cast %10 : vector<128xf32> to vector<1x128xf32>
    %c0_10 = arith.constant 0 : index
    %c0_11 = arith.constant 0 : index
    %c0_12 = arith.constant 0 : index
    %12 = vector.load %arg4[%c0_10, %c0_11, %c0_12] : memref<1x1x128xf32, #tpu.memory_space<vmem>>, vector<1x1x128xf32>
    %13 = vector.shape_cast %12 : vector<1x1x128xf32> to vector<1x128xf32>
    %14 = vector.shape_cast %11 : vector<1x128xf32> to vector<1x1x128xf32>
    tpu.vector_store %arg4[%c0_10, %c0_11, %c0_12], %14 {strides = array<i32>} : memref<1x1x128xf32, #tpu.memory_space<vmem>>, vector<1x1x128xf32>,
    %15 = arith.mulf %6, %6 : vector<8x128xf32>
    %cst_13 = arith.constant dense<0.000000e+00> : vector<128xf32>
    %16 = vector.multi_reduction <add>, %15, %cst_13 [0] : vector<8x128xf32> to vector<128xf32>
    %17 = vector.shape_cast %16 : vector<128xf32> to vector<1x128xf32>
    %c0_14 = arith.constant 0 : index
    %c0_15 = arith.constant 0 : index
    %c0_16 = arith.constant 0 : index
    %18 = vector.load %arg5[%c0_14, %c0_15, %c0_16] : memref<1x1x128xf32, #tpu.memory_space<vmem>>, vector<1x1x128xf32>
    %19 = vector.shape_cast %18 : vector<1x1x128xf32> to vector<1x128xf32>
    %20 = vector.shape_cast %17 : vector<1x128xf32> to vector<1x1x128xf32>
    tpu.vector_store %arg5[%c0_14, %c0_15, %c0_16], %20 {strides = array<i32>} : memref<1x1x128xf32, #tpu.memory_space<vmem>>, vector<1x1x128xf32>,
    return
  }
  func.func @transform_0(%arg0: i32) -> (i32, i32, i32) {
    %c0_i32 = arith.constant 0 : i32
    %c0_i32_0 = arith.constant 0 : i32
    %c0_i32_1 = arith.constant 0 : i32
    return %arg0, %c0_i32, %c0_i32_0 : i32, i32, i32
  }
  func.func @transform_1(%arg0: i32) -> (i32, i32, i32) {
    %c0_i32 = arith.constant 0 : i32
    %c0_i32_0 = arith.constant 0 : i32
    %c0_i32_1 = arith.constant 0 : i32
    %c0_i32_2 = arith.constant 0 : i32
    return %c0_i32, %c0_i32_0, %c0_i32_1 : i32, i32, i32
  }
  func.func @transform_2(%arg0: i32) -> (i32, i32, i32) {
    %c0_i32 = arith.constant 0 : i32
    %c0_i32_0 = arith.constant 0 : i32
    %c0_i32_1 = arith.constant 0 : i32
    return %arg0, %c0_i32, %c0_i32_0 : i32, i32, i32
  }
  func.func @transform_3(%arg0: i32) -> (i32, i32, i32) {
    %c0_i32 = arith.constant 0 : i32
    %c0_i32_0 = arith.constant 0 : i32
    %c0_i32_1 = arith.constant 0 : i32
    return %arg0, %c0_i32, %c0_i32_0 : i32, i32, i32
  }
  func.func @transform_4(%arg0: i32) -> (i32, i32, i32) {
    %c0_i32 = arith.constant 0 : i32
    %c0_i32_0 = arith.constant 0 : i32
    %c0_i32_1 = arith.constant 0 : i32
    return %arg0, %c0_i32, %c0_i32_0 : i32, i32, i32
  }
}

module attributes {stable_mosaic.version = 11 : i64} {
  func.func @_bn_act_kernel(%arg0: i32, %arg1: memref<1x8x128xf32, #tpu.memory_space<vmem>>, %arg2: memref<1x128xf32, #tpu.memory_space<vmem>>, %arg3: memref<1x128xf32, #tpu.memory_space<vmem>>, %arg4: memref<1x8x128xbf16, #tpu.memory_space<vmem>>) attributes {dimension_semantics = [#tpu.dimension_semantics<parallel>], iteration_bounds = array<i64: 2>, scalar_prefetch = 0 : i64, scratch_operands = 0 : i64, tpu.core_type = #tpu.core_type<tc>, window_params = [{transform_indices = @transform_0, window_bounds = array<i64: 1, 8, 128>}, {pipeline_mode = #tpu.pipeline_mode<synchronous>, transform_indices = @transform_1, window_bounds = array<i64: 1, 128>}, {pipeline_mode = #tpu.pipeline_mode<synchronous>, transform_indices = @transform_2, window_bounds = array<i64: 1, 128>}, {transform_indices = @transform_3, window_bounds = array<i64: 1, 8, 128>}]} {
    %c0 = arith.constant 0 : index
    %c0_0 = arith.constant 0 : index
    %c0_1 = arith.constant 0 : index
    %0 = vector.load %arg1[%c0, %c0_0, %c0_1] : memref<1x8x128xf32, #tpu.memory_space<vmem>>, vector<1x8x128xf32>
    %1 = vector.shape_cast %0 : vector<1x8x128xf32> to vector<8x128xf32>
    %c0_2 = arith.constant 0 : index
    %c0_3 = arith.constant 0 : index
    %2 = vector.load %arg2[%c0_2, %c0_3] : memref<1x128xf32, #tpu.memory_space<vmem>>, vector<1x128xf32>
    %3 = vector.broadcast %2 : vector<1x128xf32> to vector<8x128xf32>
    %4 = arith.mulf %1, %3 : vector<8x128xf32>
    %c0_4 = arith.constant 0 : index
    %c0_5 = arith.constant 0 : index
    %5 = vector.load %arg3[%c0_4, %c0_5] : memref<1x128xf32, #tpu.memory_space<vmem>>, vector<1x128xf32>
    %6 = vector.broadcast %5 : vector<1x128xf32> to vector<8x128xf32>
    %7 = arith.addf %4, %6 : vector<8x128xf32>
    %8 = arith.truncf %7 : vector<8x128xf32> to vector<8x128xbf16>
    %c0_6 = arith.constant 0 : index
    %c0_7 = arith.constant 0 : index
    %c0_8 = arith.constant 0 : index
    %9 = vector.load %arg4[%c0_6, %c0_7, %c0_8] : memref<1x8x128xbf16, #tpu.memory_space<vmem>>, vector<1x8x128xbf16>
    %10 = vector.shape_cast %9 : vector<1x8x128xbf16> to vector<8x128xbf16>
    %11 = vector.shape_cast %8 : vector<8x128xbf16> to vector<1x8x128xbf16>
    tpu.vector_store %arg4[%c0_6, %c0_7, %c0_8], %11 {strides = array<i32>} : memref<1x8x128xbf16, #tpu.memory_space<vmem>>, vector<1x8x128xbf16>,
    return
  }
  func.func @transform_0(%arg0: i32) -> (i32, i32, i32) {
    %c0_i32 = arith.constant 0 : i32
    %c0_i32_0 = arith.constant 0 : i32
    %c0_i32_1 = arith.constant 0 : i32
    return %arg0, %c0_i32, %c0_i32_0 : i32, i32, i32
  }
  func.func @transform_1(%arg0: i32) -> (i32, i32) {
    %c0_i32 = arith.constant 0 : i32
    %c0_i32_0 = arith.constant 0 : i32
    %c0_i32_1 = arith.constant 0 : i32
    return %c0_i32, %c0_i32_0 : i32, i32
  }
  func.func @transform_2(%arg0: i32) -> (i32, i32) {
    %c0_i32 = arith.constant 0 : i32
    %c0_i32_0 = arith.constant 0 : i32
    %c0_i32_1 = arith.constant 0 : i32
    return %c0_i32, %c0_i32_0 : i32, i32
  }
  func.func @transform_3(%arg0: i32) -> (i32, i32, i32) {
    %c0_i32 = arith.constant 0 : i32
    %c0_i32_0 = arith.constant 0 : i32
    %c0_i32_1 = arith.constant 0 : i32
    return %arg0, %c0_i32, %c0_i32_0 : i32, i32, i32
  }
}

module attributes {stable_mosaic.version = 11 : i64} {
  func.func @_conv_stats_kernel(%arg0: i32, %arg1: memref<1x9x128xbf16, #tpu.memory_space<vmem>>, %arg2: memref<1x9x128xbf16, #tpu.memory_space<vmem>>, %arg3: memref<3x128x128xbf16, #tpu.memory_space<vmem>>, %arg4: memref<1x8x128xf32, #tpu.memory_space<vmem>>, %arg5: memref<1x1x128xf32, #tpu.memory_space<vmem>>, %arg6: memref<1x1x128xf32, #tpu.memory_space<vmem>>) attributes {dimension_semantics = [#tpu.dimension_semantics<parallel>], iteration_bounds = array<i64: 2>, scalar_prefetch = 0 : i64, scratch_operands = 0 : i64, tpu.core_type = #tpu.core_type<tc>, window_params = [{transform_indices = @transform_0, window_bounds = array<i64: 1, 9, 128>}, {transform_indices = @transform_1, window_bounds = array<i64: 1, 9, 128>}, {pipeline_mode = #tpu.pipeline_mode<synchronous>, transform_indices = @transform_2, window_bounds = array<i64: 3, 128, 128>}, {transform_indices = @transform_3, window_bounds = array<i64: 1, 8, 128>}, {transform_indices = @transform_4, window_bounds = array<i64: 1, 1, 128>}, {transform_indices = @transform_5, window_bounds = array<i64: 1, 1, 128>}]} {
    %cst = arith.constant 0.000000e+00 : f32
    %0 = vector.broadcast %cst : f32 to vector<8x128xf32>
    %c0 = arith.constant 0 : index
    %c0_0 = arith.constant 0 : index
    %c0_1 = arith.constant 0 : index
    %1 = vector.load %arg1[%c0, %c0_0, %c0_1] : memref<1x9x128xbf16, #tpu.memory_space<vmem>>, vector<1x8x128xbf16>
    %2 = vector.shape_cast %1 : vector<1x8x128xbf16> to vector<8x128xbf16>
    %c0_2 = arith.constant 0 : index
    %c0_3 = arith.constant 0 : index
    %c0_4 = arith.constant 0 : index
    %3 = vector.load %arg3[%c0_2, %c0_3, %c0_4] : memref<3x128x128xbf16, #tpu.memory_space<vmem>>, vector<1x128x128xbf16>
    %4 = vector.shape_cast %3 : vector<1x128x128xbf16> to vector<128x128xbf16>
    %cst_5 = arith.constant dense<0.000000e+00> : vector<8x128xf32>
    %5 = tpu.matmul %2, %4, %cst_5 {dimension_numbers = #tpu.dot_dimension_numbers<[1], [0], [0], [1], [0, 0, 1, 1], [], []>} : vector<8x128xbf16>, vector<128x128xbf16>, vector<8x128xf32> -> vector<8x128xf32>
    %6 = arith.addf %0, %5 : vector<8x128xf32>
    %c0_6 = arith.constant 0 : index
    %c0_7 = arith.constant 0 : index
    %c0_8 = arith.constant 0 : index
    %7 = vector.load %arg2[%c0_6, %c0_7, %c0_8] : memref<1x9x128xbf16, #tpu.memory_space<vmem>>, vector<1x8x128xbf16>
    %8 = vector.shape_cast %7 : vector<1x8x128xbf16> to vector<8x128xbf16>
    %c1 = arith.constant 1 : index
    %c0_9 = arith.constant 0 : index
    %c0_10 = arith.constant 0 : index
    %9 = vector.load %arg3[%c1, %c0_9, %c0_10] : memref<3x128x128xbf16, #tpu.memory_space<vmem>>, vector<1x128x128xbf16>
    %10 = vector.shape_cast %9 : vector<1x128x128xbf16> to vector<128x128xbf16>
    %cst_11 = arith.constant dense<0.000000e+00> : vector<8x128xf32>
    %11 = tpu.matmul %8, %10, %cst_11 {dimension_numbers = #tpu.dot_dimension_numbers<[1], [0], [0], [1], [0, 0, 1, 1], [], []>} : vector<8x128xbf16>, vector<128x128xbf16>, vector<8x128xf32> -> vector<8x128xf32>
    %12 = arith.addf %6, %11 : vector<8x128xf32>
    %c0_12 = arith.constant 0 : index
    %c1_13 = arith.constant 1 : index
    %c0_14 = arith.constant 0 : index
    %13 = vector.load %arg1[%c0_12, %c1_13, %c0_14] : memref<1x9x128xbf16, #tpu.memory_space<vmem>>, vector<1x8x128xbf16>
    %14 = vector.shape_cast %13 : vector<1x8x128xbf16> to vector<8x128xbf16>
    %c2 = arith.constant 2 : index
    %c0_15 = arith.constant 0 : index
    %c0_16 = arith.constant 0 : index
    %15 = vector.load %arg3[%c2, %c0_15, %c0_16] : memref<3x128x128xbf16, #tpu.memory_space<vmem>>, vector<1x128x128xbf16>
    %16 = vector.shape_cast %15 : vector<1x128x128xbf16> to vector<128x128xbf16>
    %cst_17 = arith.constant dense<0.000000e+00> : vector<8x128xf32>
    %17 = tpu.matmul %14, %16, %cst_17 {dimension_numbers = #tpu.dot_dimension_numbers<[1], [0], [0], [1], [0, 0, 1, 1], [], []>} : vector<8x128xbf16>, vector<128x128xbf16>, vector<8x128xf32> -> vector<8x128xf32>
    %18 = arith.addf %12, %17 : vector<8x128xf32>
    %c0_18 = arith.constant 0 : index
    %c0_19 = arith.constant 0 : index
    %c0_20 = arith.constant 0 : index
    %19 = vector.load %arg4[%c0_18, %c0_19, %c0_20] : memref<1x8x128xf32, #tpu.memory_space<vmem>>, vector<1x8x128xf32>
    %20 = vector.shape_cast %19 : vector<1x8x128xf32> to vector<8x128xf32>
    %21 = vector.shape_cast %18 : vector<8x128xf32> to vector<1x8x128xf32>
    tpu.vector_store %arg4[%c0_18, %c0_19, %c0_20], %21 {strides = array<i32>} : memref<1x8x128xf32, #tpu.memory_space<vmem>>, vector<1x8x128xf32>,
    %cst_21 = arith.constant dense<0.000000e+00> : vector<128xf32>
    %22 = vector.multi_reduction <add>, %18, %cst_21 [0] : vector<8x128xf32> to vector<128xf32>
    %23 = vector.shape_cast %22 : vector<128xf32> to vector<1x128xf32>
    %c0_22 = arith.constant 0 : index
    %c0_23 = arith.constant 0 : index
    %c0_24 = arith.constant 0 : index
    %24 = vector.load %arg5[%c0_22, %c0_23, %c0_24] : memref<1x1x128xf32, #tpu.memory_space<vmem>>, vector<1x1x128xf32>
    %25 = vector.shape_cast %24 : vector<1x1x128xf32> to vector<1x128xf32>
    %26 = vector.shape_cast %23 : vector<1x128xf32> to vector<1x1x128xf32>
    tpu.vector_store %arg5[%c0_22, %c0_23, %c0_24], %26 {strides = array<i32>} : memref<1x1x128xf32, #tpu.memory_space<vmem>>, vector<1x1x128xf32>,
    %27 = arith.mulf %18, %18 : vector<8x128xf32>
    %cst_25 = arith.constant dense<0.000000e+00> : vector<128xf32>
    %28 = vector.multi_reduction <add>, %27, %cst_25 [0] : vector<8x128xf32> to vector<128xf32>
    %29 = vector.shape_cast %28 : vector<128xf32> to vector<1x128xf32>
    %c0_26 = arith.constant 0 : index
    %c0_27 = arith.constant 0 : index
    %c0_28 = arith.constant 0 : index
    %30 = vector.load %arg6[%c0_26, %c0_27, %c0_28] : memref<1x1x128xf32, #tpu.memory_space<vmem>>, vector<1x1x128xf32>
    %31 = vector.shape_cast %30 : vector<1x1x128xf32> to vector<1x128xf32>
    %32 = vector.shape_cast %29 : vector<1x128xf32> to vector<1x1x128xf32>
    tpu.vector_store %arg6[%c0_26, %c0_27, %c0_28], %32 {strides = array<i32>} : memref<1x1x128xf32, #tpu.memory_space<vmem>>, vector<1x1x128xf32>,
    return
  }
  func.func @transform_0(%arg0: i32) -> (i32, i32, i32) {
    %c0_i32 = arith.constant 0 : i32
    %c0_i32_0 = arith.constant 0 : i32
    %c0_i32_1 = arith.constant 0 : i32
    return %arg0, %c0_i32, %c0_i32_0 : i32, i32, i32
  }
  func.func @transform_1(%arg0: i32) -> (i32, i32, i32) {
    %c0_i32 = arith.constant 0 : i32
    %c0_i32_0 = arith.constant 0 : i32
    %c0_i32_1 = arith.constant 0 : i32
    return %arg0, %c0_i32, %c0_i32_0 : i32, i32, i32
  }
  func.func @transform_2(%arg0: i32) -> (i32, i32, i32) {
    %c0_i32 = arith.constant 0 : i32
    %c0_i32_0 = arith.constant 0 : i32
    %c0_i32_1 = arith.constant 0 : i32
    %c0_i32_2 = arith.constant 0 : i32
    return %c0_i32, %c0_i32_0, %c0_i32_1 : i32, i32, i32
  }
  func.func @transform_3(%arg0: i32) -> (i32, i32, i32) {
    %c0_i32 = arith.constant 0 : i32
    %c0_i32_0 = arith.constant 0 : i32
    %c0_i32_1 = arith.constant 0 : i32
    return %arg0, %c0_i32, %c0_i32_0 : i32, i32, i32
  }
  func.func @transform_4(%arg0: i32) -> (i32, i32, i32) {
    %c0_i32 = arith.constant 0 : i32
    %c0_i32_0 = arith.constant 0 : i32
    %c0_i32_1 = arith.constant 0 : i32
    return %arg0, %c0_i32, %c0_i32_0 : i32, i32, i32
  }
  func.func @transform_5(%arg0: i32) -> (i32, i32, i32) {
    %c0_i32 = arith.constant 0 : i32
    %c0_i32_0 = arith.constant 0 : i32
    %c0_i32_1 = arith.constant 0 : i32
    return %arg0, %c0_i32, %c0_i32_0 : i32, i32, i32
  }
}

module attributes {stable_mosaic.version = 11 : i64} {
  func.func @_bn_act_kernel(%arg0: i32, %arg1: memref<1x8x128xf32, #tpu.memory_space<vmem>>, %arg2: memref<1x128xf32, #tpu.memory_space<vmem>>, %arg3: memref<1x128xf32, #tpu.memory_space<vmem>>, %arg4: memref<1x8x128xbf16, #tpu.memory_space<vmem>>) attributes {dimension_semantics = [#tpu.dimension_semantics<parallel>], iteration_bounds = array<i64: 2>, scalar_prefetch = 0 : i64, scratch_operands = 0 : i64, tpu.core_type = #tpu.core_type<tc>, window_params = [{transform_indices = @transform_0, window_bounds = array<i64: 1, 8, 128>}, {pipeline_mode = #tpu.pipeline_mode<synchronous>, transform_indices = @transform_1, window_bounds = array<i64: 1, 128>}, {pipeline_mode = #tpu.pipeline_mode<synchronous>, transform_indices = @transform_2, window_bounds = array<i64: 1, 128>}, {transform_indices = @transform_3, window_bounds = array<i64: 1, 8, 128>}]} {
    %c0 = arith.constant 0 : index
    %c0_0 = arith.constant 0 : index
    %c0_1 = arith.constant 0 : index
    %0 = vector.load %arg1[%c0, %c0_0, %c0_1] : memref<1x8x128xf32, #tpu.memory_space<vmem>>, vector<1x8x128xf32>
    %1 = vector.shape_cast %0 : vector<1x8x128xf32> to vector<8x128xf32>
    %c0_2 = arith.constant 0 : index
    %c0_3 = arith.constant 0 : index
    %2 = vector.load %arg2[%c0_2, %c0_3] : memref<1x128xf32, #tpu.memory_space<vmem>>, vector<1x128xf32>
    %3 = vector.broadcast %2 : vector<1x128xf32> to vector<8x128xf32>
    %4 = arith.mulf %1, %3 : vector<8x128xf32>
    %c0_4 = arith.constant 0 : index
    %c0_5 = arith.constant 0 : index
    %5 = vector.load %arg3[%c0_4, %c0_5] : memref<1x128xf32, #tpu.memory_space<vmem>>, vector<1x128xf32>
    %6 = vector.broadcast %5 : vector<1x128xf32> to vector<8x128xf32>
    %7 = arith.addf %4, %6 : vector<8x128xf32>
    %cst = arith.constant 0.000000e+00 : f32
    %8 = vector.broadcast %cst : f32 to vector<8x128xf32>
    %9 = arith.maximumf %7, %8 : vector<8x128xf32>
    %10 = arith.truncf %9 : vector<8x128xf32> to vector<8x128xbf16>
    %c0_6 = arith.constant 0 : index
    %c0_7 = arith.constant 0 : index
    %c0_8 = arith.constant 0 : index
    %11 = vector.load %arg4[%c0_6, %c0_7, %c0_8] : memref<1x8x128xbf16, #tpu.memory_space<vmem>>, vector<1x8x128xbf16>
    %12 = vector.shape_cast %11 : vector<1x8x128xbf16> to vector<8x128xbf16>
    %13 = vector.shape_cast %10 : vector<8x128xbf16> to vector<1x8x128xbf16>
    tpu.vector_store %arg4[%c0_6, %c0_7, %c0_8], %13 {strides = array<i32>} : memref<1x8x128xbf16, #tpu.memory_space<vmem>>, vector<1x8x128xbf16>,
    return
  }
  func.func @transform_0(%arg0: i32) -> (i32, i32, i32) {
    %c0_i32 = arith.constant 0 : i32
    %c0_i32_0 = arith.constant 0 : i32
    %c0_i32_1 = arith.constant 0 : i32
    return %arg0, %c0_i32, %c0_i32_0 : i32, i32, i32
  }
  func.func @transform_1(%arg0: i32) -> (i32, i32) {
    %c0_i32 = arith.constant 0 : i32
    %c0_i32_0 = arith.constant 0 : i32
    %c0_i32_1 = arith.constant 0 : i32
    return %c0_i32, %c0_i32_0 : i32, i32
  }
  func.func @transform_2(%arg0: i32) -> (i32, i32) {
    %c0_i32 = arith.constant 0 : i32
    %c0_i32_0 = arith.constant 0 : i32
    %c0_i32_1 = arith.constant 0 : i32
    return %c0_i32, %c0_i32_0 : i32, i32
  }
  func.func @transform_3(%arg0: i32) -> (i32, i32, i32) {
    %c0_i32 = arith.constant 0 : i32
    %c0_i32_0 = arith.constant 0 : i32
    %c0_i32_1 = arith.constant 0 : i32
    return %arg0, %c0_i32, %c0_i32_0 : i32, i32, i32
  }
}

module attributes {stable_mosaic.version = 11 : i64} {
  func.func @_conv_stats_kernel(%arg0: i32, %arg1: memref<1x10x128xbf16, #tpu.memory_space<vmem>>, %arg2: memref<3x128x128xbf16, #tpu.memory_space<vmem>>, %arg3: memref<1x8x128xf32, #tpu.memory_space<vmem>>, %arg4: memref<1x1x128xf32, #tpu.memory_space<vmem>>, %arg5: memref<1x1x128xf32, #tpu.memory_space<vmem>>) attributes {dimension_semantics = [#tpu.dimension_semantics<parallel>], iteration_bounds = array<i64: 2>, scalar_prefetch = 0 : i64, scratch_operands = 0 : i64, tpu.core_type = #tpu.core_type<tc>, window_params = [{transform_indices = @transform_0, window_bounds = array<i64: 1, 10, 128>}, {pipeline_mode = #tpu.pipeline_mode<synchronous>, transform_indices = @transform_1, window_bounds = array<i64: 3, 128, 128>}, {transform_indices = @transform_2, window_bounds = array<i64: 1, 8, 128>}, {transform_indices = @transform_3, window_bounds = array<i64: 1, 1, 128>}, {transform_indices = @transform_4, window_bounds = array<i64: 1, 1, 128>}]} {
    %cst = arith.constant 0.000000e+00 : f32
    %0 = vector.broadcast %cst : f32 to vector<8x128xf32>
    %c0 = arith.constant 0 : index
    %c0_0 = arith.constant 0 : index
    %c0_1 = arith.constant 0 : index
    %1 = vector.load %arg1[%c0, %c0_0, %c0_1] : memref<1x10x128xbf16, #tpu.memory_space<vmem>>, vector<1x8x128xbf16>
    %2 = vector.shape_cast %1 : vector<1x8x128xbf16> to vector<8x128xbf16>
    %c0_2 = arith.constant 0 : index
    %c0_3 = arith.constant 0 : index
    %c0_4 = arith.constant 0 : index
    %3 = vector.load %arg2[%c0_2, %c0_3, %c0_4] : memref<3x128x128xbf16, #tpu.memory_space<vmem>>, vector<1x128x128xbf16>
    %4 = vector.shape_cast %3 : vector<1x128x128xbf16> to vector<128x128xbf16>
    %cst_5 = arith.constant dense<0.000000e+00> : vector<8x128xf32>
    %5 = tpu.matmul %2, %4, %cst_5 {dimension_numbers = #tpu.dot_dimension_numbers<[1], [0], [0], [1], [0, 0, 1, 1], [], []>} : vector<8x128xbf16>, vector<128x128xbf16>, vector<8x128xf32> -> vector<8x128xf32>
    %6 = arith.addf %0, %5 : vector<8x128xf32>
    %c0_6 = arith.constant 0 : index
    %c1 = arith.constant 1 : index
    %c0_7 = arith.constant 0 : index
    %7 = vector.load %arg1[%c0_6, %c1, %c0_7] : memref<1x10x128xbf16, #tpu.memory_space<vmem>>, vector<1x8x128xbf16>
    %8 = vector.shape_cast %7 : vector<1x8x128xbf16> to vector<8x128xbf16>
    %c1_8 = arith.constant 1 : index
    %c0_9 = arith.constant 0 : index
    %c0_10 = arith.constant 0 : index
    %9 = vector.load %arg2[%c1_8, %c0_9, %c0_10] : memref<3x128x128xbf16, #tpu.memory_space<vmem>>, vector<1x128x128xbf16>
    %10 = vector.shape_cast %9 : vector<1x128x128xbf16> to vector<128x128xbf16>
    %cst_11 = arith.constant dense<0.000000e+00> : vector<8x128xf32>
    %11 = tpu.matmul %8, %10, %cst_11 {dimension_numbers = #tpu.dot_dimension_numbers<[1], [0], [0], [1], [0, 0, 1, 1], [], []>} : vector<8x128xbf16>, vector<128x128xbf16>, vector<8x128xf32> -> vector<8x128xf32>
    %12 = arith.addf %6, %11 : vector<8x128xf32>
    %c0_12 = arith.constant 0 : index
    %c2 = arith.constant 2 : index
    %c0_13 = arith.constant 0 : index
    %13 = vector.load %arg1[%c0_12, %c2, %c0_13] : memref<1x10x128xbf16, #tpu.memory_space<vmem>>, vector<1x8x128xbf16>
    %14 = vector.shape_cast %13 : vector<1x8x128xbf16> to vector<8x128xbf16>
    %c2_14 = arith.constant 2 : index
    %c0_15 = arith.constant 0 : index
    %c0_16 = arith.constant 0 : index
    %15 = vector.load %arg2[%c2_14, %c0_15, %c0_16] : memref<3x128x128xbf16, #tpu.memory_space<vmem>>, vector<1x128x128xbf16>
    %16 = vector.shape_cast %15 : vector<1x128x128xbf16> to vector<128x128xbf16>
    %cst_17 = arith.constant dense<0.000000e+00> : vector<8x128xf32>
    %17 = tpu.matmul %14, %16, %cst_17 {dimension_numbers = #tpu.dot_dimension_numbers<[1], [0], [0], [1], [0, 0, 1, 1], [], []>} : vector<8x128xbf16>, vector<128x128xbf16>, vector<8x128xf32> -> vector<8x128xf32>
    %18 = arith.addf %12, %17 : vector<8x128xf32>
    %c0_18 = arith.constant 0 : index
    %c0_19 = arith.constant 0 : index
    %c0_20 = arith.constant 0 : index
    %19 = vector.load %arg3[%c0_18, %c0_19, %c0_20] : memref<1x8x128xf32, #tpu.memory_space<vmem>>, vector<1x8x128xf32>
    %20 = vector.shape_cast %19 : vector<1x8x128xf32> to vector<8x128xf32>
    %21 = vector.shape_cast %18 : vector<8x128xf32> to vector<1x8x128xf32>
    tpu.vector_store %arg3[%c0_18, %c0_19, %c0_20], %21 {strides = array<i32>} : memref<1x8x128xf32, #tpu.memory_space<vmem>>, vector<1x8x128xf32>,
    %cst_21 = arith.constant dense<0.000000e+00> : vector<128xf32>
    %22 = vector.multi_reduction <add>, %18, %cst_21 [0] : vector<8x128xf32> to vector<128xf32>
    %23 = vector.shape_cast %22 : vector<128xf32> to vector<1x128xf32>
    %c0_22 = arith.constant 0 : index
    %c0_23 = arith.constant 0 : index
    %c0_24 = arith.constant 0 : index
    %24 = vector.load %arg4[%c0_22, %c0_23, %c0_24] : memref<1x1x128xf32, #tpu.memory_space<vmem>>, vector<1x1x128xf32>
    %25 = vector.shape_cast %24 : vector<1x1x128xf32> to vector<1x128xf32>
    %26 = vector.shape_cast %23 : vector<1x128xf32> to vector<1x1x128xf32>
    tpu.vector_store %arg4[%c0_22, %c0_23, %c0_24], %26 {strides = array<i32>} : memref<1x1x128xf32, #tpu.memory_space<vmem>>, vector<1x1x128xf32>,
    %27 = arith.mulf %18, %18 : vector<8x128xf32>
    %cst_25 = arith.constant dense<0.000000e+00> : vector<128xf32>
    %28 = vector.multi_reduction <add>, %27, %cst_25 [0] : vector<8x128xf32> to vector<128xf32>
    %29 = vector.shape_cast %28 : vector<128xf32> to vector<1x128xf32>
    %c0_26 = arith.constant 0 : index
    %c0_27 = arith.constant 0 : index
    %c0_28 = arith.constant 0 : index
    %30 = vector.load %arg5[%c0_26, %c0_27, %c0_28] : memref<1x1x128xf32, #tpu.memory_space<vmem>>, vector<1x1x128xf32>
    %31 = vector.shape_cast %30 : vector<1x1x128xf32> to vector<1x128xf32>
    %32 = vector.shape_cast %29 : vector<1x128xf32> to vector<1x1x128xf32>
    tpu.vector_store %arg5[%c0_26, %c0_27, %c0_28], %32 {strides = array<i32>} : memref<1x1x128xf32, #tpu.memory_space<vmem>>, vector<1x1x128xf32>,
    return
  }
  func.func @transform_0(%arg0: i32) -> (i32, i32, i32) {
    %c0_i32 = arith.constant 0 : i32
    %c0_i32_0 = arith.constant 0 : i32
    %c0_i32_1 = arith.constant 0 : i32
    return %arg0, %c0_i32, %c0_i32_0 : i32, i32, i32
  }
  func.func @transform_1(%arg0: i32) -> (i32, i32, i32) {
    %c0_i32 = arith.constant 0 : i32
    %c0_i32_0 = arith.constant 0 : i32
    %c0_i32_1 = arith.constant 0 : i32
    %c0_i32_2 = arith.constant 0 : i32
    return %c0_i32, %c0_i32_0, %c0_i32_1 : i32, i32, i32
  }
  func.func @transform_2(%arg0: i32) -> (i32, i32, i32) {
    %c0_i32 = arith.constant 0 : i32
    %c0_i32_0 = arith.constant 0 : i32
    %c0_i32_1 = arith.constant 0 : i32
    return %arg0, %c0_i32, %c0_i32_0 : i32, i32, i32
  }
  func.func @transform_3(%arg0: i32) -> (i32, i32, i32) {
    %c0_i32 = arith.constant 0 : i32
    %c0_i32_0 = arith.constant 0 : i32
    %c0_i32_1 = arith.constant 0 : i32
    return %arg0, %c0_i32, %c0_i32_0 : i32, i32, i32
  }
  func.func @transform_4(%arg0: i32) -> (i32, i32, i32) {
    %c0_i32 = arith.constant 0 : i32
    %c0_i32_0 = arith.constant 0 : i32
    %c0_i32_1 = arith.constant 0 : i32
    return %arg0, %c0_i32, %c0_i32_0 : i32, i32, i32
  }
}

module attributes {stable_mosaic.version = 11 : i64} {
  func.func @_bn_act_kernel(%arg0: i32, %arg1: memref<1x8x128xf32, #tpu.memory_space<vmem>>, %arg2: memref<1x128xf32, #tpu.memory_space<vmem>>, %arg3: memref<1x128xf32, #tpu.memory_space<vmem>>, %arg4: memref<1x8x128xbf16, #tpu.memory_space<vmem>>, %arg5: memref<1x8x128xbf16, #tpu.memory_space<vmem>>) attributes {dimension_semantics = [#tpu.dimension_semantics<parallel>], iteration_bounds = array<i64: 2>, scalar_prefetch = 0 : i64, scratch_operands = 0 : i64, tpu.core_type = #tpu.core_type<tc>, window_params = [{transform_indices = @transform_0, window_bounds = array<i64: 1, 8, 128>}, {pipeline_mode = #tpu.pipeline_mode<synchronous>, transform_indices = @transform_1, window_bounds = array<i64: 1, 128>}, {pipeline_mode = #tpu.pipeline_mode<synchronous>, transform_indices = @transform_2, window_bounds = array<i64: 1, 128>}, {transform_indices = @transform_3, window_bounds = array<i64: 1, 8, 128>}, {transform_indices = @transform_4, window_bounds = array<i64: 1, 8, 128>}]} {
    %c0 = arith.constant 0 : index
    %c0_0 = arith.constant 0 : index
    %c0_1 = arith.constant 0 : index
    %0 = vector.load %arg1[%c0, %c0_0, %c0_1] : memref<1x8x128xf32, #tpu.memory_space<vmem>>, vector<1x8x128xf32>
    %1 = vector.shape_cast %0 : vector<1x8x128xf32> to vector<8x128xf32>
    %c0_2 = arith.constant 0 : index
    %c0_3 = arith.constant 0 : index
    %2 = vector.load %arg2[%c0_2, %c0_3] : memref<1x128xf32, #tpu.memory_space<vmem>>, vector<1x128xf32>
    %3 = vector.broadcast %2 : vector<1x128xf32> to vector<8x128xf32>
    %4 = arith.mulf %1, %3 : vector<8x128xf32>
    %c0_4 = arith.constant 0 : index
    %c0_5 = arith.constant 0 : index
    %5 = vector.load %arg3[%c0_4, %c0_5] : memref<1x128xf32, #tpu.memory_space<vmem>>, vector<1x128xf32>
    %6 = vector.broadcast %5 : vector<1x128xf32> to vector<8x128xf32>
    %7 = arith.addf %4, %6 : vector<8x128xf32>
    %c0_6 = arith.constant 0 : index
    %c0_7 = arith.constant 0 : index
    %c0_8 = arith.constant 0 : index
    %8 = vector.load %arg4[%c0_6, %c0_7, %c0_8] : memref<1x8x128xbf16, #tpu.memory_space<vmem>>, vector<1x8x128xbf16>
    %9 = vector.shape_cast %8 : vector<1x8x128xbf16> to vector<8x128xbf16>
    %10 = arith.extf %9 : vector<8x128xbf16> to vector<8x128xf32>
    %11 = arith.addf %7, %10 : vector<8x128xf32>
    %cst = arith.constant 0.000000e+00 : f32
    %12 = vector.broadcast %cst : f32 to vector<8x128xf32>
    %13 = arith.maximumf %11, %12 : vector<8x128xf32>
    %14 = arith.truncf %13 : vector<8x128xf32> to vector<8x128xbf16>
    %c0_9 = arith.constant 0 : index
    %c0_10 = arith.constant 0 : index
    %c0_11 = arith.constant 0 : index
    %15 = vector.load %arg5[%c0_9, %c0_10, %c0_11] : memref<1x8x128xbf16, #tpu.memory_space<vmem>>, vector<1x8x128xbf16>
    %16 = vector.shape_cast %15 : vector<1x8x128xbf16> to vector<8x128xbf16>
    %17 = vector.shape_cast %14 : vector<8x128xbf16> to vector<1x8x128xbf16>
    tpu.vector_store %arg5[%c0_9, %c0_10, %c0_11], %17 {strides = array<i32>} : memref<1x8x128xbf16, #tpu.memory_space<vmem>>, vector<1x8x128xbf16>,
    return
  }
  func.func @transform_0(%arg0: i32) -> (i32, i32, i32) {
    %c0_i32 = arith.constant 0 : i32
    %c0_i32_0 = arith.constant 0 : i32
    %c0_i32_1 = arith.constant 0 : i32
    return %arg0, %c0_i32, %c0_i32_0 : i32, i32, i32
  }
  func.func @transform_1(%arg0: i32) -> (i32, i32) {
    %c0_i32 = arith.constant 0 : i32
    %c0_i32_0 = arith.constant 0 : i32
    %c0_i32_1 = arith.constant 0 : i32
    return %c0_i32, %c0_i32_0 : i32, i32
  }
  func.func @transform_2(%arg0: i32) -> (i32, i32) {
    %c0_i32 = arith.constant 0 : i32
    %c0_i32_0 = arith.constant 0 : i32
    %c0_i32_1 = arith.constant 0 : i32
    return %c0_i32, %c0_i32_0 : i32, i32
  }
  func.func @transform_3(%arg0: i32) -> (i32, i32, i32) {
    %c0_i32 = arith.constant 0 : i32
    %c0_i32_0 = arith.constant 0 : i32
    %c0_i32_1 = arith.constant 0 : i32
    return %arg0, %c0_i32, %c0_i32_0 : i32, i32, i32
  }
  func.func @transform_4(%arg0: i32) -> (i32, i32, i32) {
    %c0_i32 = arith.constant 0 : i32
    %c0_i32_0 = arith.constant 0 : i32
    %c0_i32_1 = arith.constant 0 : i32
    return %arg0, %c0_i32, %c0_i32_0 : i32, i32, i32
  }
}

module attributes {stable_mosaic.version = 11 : i64} {
  func.func @_conv_stats_kernel(%arg0: i32, %arg1: memref<1x5x128xbf16, #tpu.memory_space<vmem>>, %arg2: memref<1x5x128xbf16, #tpu.memory_space<vmem>>, %arg3: memref<3x128x256xbf16, #tpu.memory_space<vmem>>, %arg4: memref<1x4x256xf32, #tpu.memory_space<vmem>>, %arg5: memref<1x1x256xf32, #tpu.memory_space<vmem>>, %arg6: memref<1x1x256xf32, #tpu.memory_space<vmem>>) attributes {dimension_semantics = [#tpu.dimension_semantics<parallel>], iteration_bounds = array<i64: 2>, scalar_prefetch = 0 : i64, scratch_operands = 0 : i64, tpu.core_type = #tpu.core_type<tc>, window_params = [{transform_indices = @transform_0, window_bounds = array<i64: 1, 5, 128>}, {transform_indices = @transform_1, window_bounds = array<i64: 1, 5, 128>}, {pipeline_mode = #tpu.pipeline_mode<synchronous>, transform_indices = @transform_2, window_bounds = array<i64: 3, 128, 256>}, {transform_indices = @transform_3, window_bounds = array<i64: 1, 4, 256>}, {transform_indices = @transform_4, window_bounds = array<i64: 1, 1, 256>}, {transform_indices = @transform_5, window_bounds = array<i64: 1, 1, 256>}]} {
    %cst = arith.constant 0.000000e+00 : f32
    %0 = vector.broadcast %cst : f32 to vector<4x256xf32>
    %c0 = arith.constant 0 : index
    %c0_0 = arith.constant 0 : index
    %c0_1 = arith.constant 0 : index
    %1 = vector.load %arg1[%c0, %c0_0, %c0_1] : memref<1x5x128xbf16, #tpu.memory_space<vmem>>, vector<1x4x128xbf16>
    %2 = vector.shape_cast %1 : vector<1x4x128xbf16> to vector<4x128xbf16>
    %c0_2 = arith.constant 0 : index
    %c0_3 = arith.constant 0 : index
    %c0_4 = arith.constant 0 : index
    %3 = vector.load %arg3[%c0_2, %c0_3, %c0_4] : memref<3x128x256xbf16, #tpu.memory_space<vmem>>, vector<1x128x256xbf16>
    %4 = vector.shape_cast %3 : vector<1x128x256xbf16> to vector<128x256xbf16>
    %cst_5 = arith.constant dense<0.000000e+00> : vector<4x256xf32>
    %5 = tpu.matmul %2, %4, %cst_5 {dimension_numbers = #tpu.dot_dimension_numbers<[1], [0], [0], [1], [0, 0, 1, 1], [], []>} : vector<4x128xbf16>, vector<128x256xbf16>, vector<4x256xf32> -> vector<4x256xf32>
    %6 = arith.addf %0, %5 : vector<4x256xf32>
    %c0_6 = arith.constant 0 : index
    %c0_7 = arith.constant 0 : index
    %c0_8 = arith.constant 0 : index
    %7 = vector.load %arg2[%c0_6, %c0_7, %c0_8] : memref<1x5x128xbf16, #tpu.memory_space<vmem>>, vector<1x4x128xbf16>
    %8 = vector.shape_cast %7 : vector<1x4x128xbf16> to vector<4x128xbf16>
    %c1 = arith.constant 1 : index
    %c0_9 = arith.constant 0 : index
    %c0_10 = arith.constant 0 : index
    %9 = vector.load %arg3[%c1, %c0_9, %c0_10] : memref<3x128x256xbf16, #tpu.memory_space<vmem>>, vector<1x128x256xbf16>
    %10 = vector.shape_cast %9 : vector<1x128x256xbf16> to vector<128x256xbf16>
    %cst_11 = arith.constant dense<0.000000e+00> : vector<4x256xf32>
    %11 = tpu.matmul %8, %10, %cst_11 {dimension_numbers = #tpu.dot_dimension_numbers<[1], [0], [0], [1], [0, 0, 1, 1], [], []>} : vector<4x128xbf16>, vector<128x256xbf16>, vector<4x256xf32> -> vector<4x256xf32>
    %12 = arith.addf %6, %11 : vector<4x256xf32>
    %c0_12 = arith.constant 0 : index
    %c1_13 = arith.constant 1 : index
    %c0_14 = arith.constant 0 : index
    %13 = vector.load %arg1[%c0_12, %c1_13, %c0_14] : memref<1x5x128xbf16, #tpu.memory_space<vmem>>, vector<1x4x128xbf16>
    %14 = vector.shape_cast %13 : vector<1x4x128xbf16> to vector<4x128xbf16>
    %c2 = arith.constant 2 : index
    %c0_15 = arith.constant 0 : index
    %c0_16 = arith.constant 0 : index
    %15 = vector.load %arg3[%c2, %c0_15, %c0_16] : memref<3x128x256xbf16, #tpu.memory_space<vmem>>, vector<1x128x256xbf16>
    %16 = vector.shape_cast %15 : vector<1x128x256xbf16> to vector<128x256xbf16>
    %cst_17 = arith.constant dense<0.000000e+00> : vector<4x256xf32>
    %17 = tpu.matmul %14, %16, %cst_17 {dimension_numbers = #tpu.dot_dimension_numbers<[1], [0], [0], [1], [0, 0, 1, 1], [], []>} : vector<4x128xbf16>, vector<128x256xbf16>, vector<4x256xf32> -> vector<4x256xf32>
    %18 = arith.addf %12, %17 : vector<4x256xf32>
    %c0_18 = arith.constant 0 : index
    %c0_19 = arith.constant 0 : index
    %c0_20 = arith.constant 0 : index
    %19 = vector.load %arg4[%c0_18, %c0_19, %c0_20] : memref<1x4x256xf32, #tpu.memory_space<vmem>>, vector<1x4x256xf32>
    %20 = vector.shape_cast %19 : vector<1x4x256xf32> to vector<4x256xf32>
    %21 = vector.shape_cast %18 : vector<4x256xf32> to vector<1x4x256xf32>
    tpu.vector_store %arg4[%c0_18, %c0_19, %c0_20], %21 {strides = array<i32>} : memref<1x4x256xf32, #tpu.memory_space<vmem>>, vector<1x4x256xf32>,
    %cst_21 = arith.constant dense<0.000000e+00> : vector<256xf32>
    %22 = vector.multi_reduction <add>, %18, %cst_21 [0] : vector<4x256xf32> to vector<256xf32>
    %23 = vector.shape_cast %22 : vector<256xf32> to vector<1x256xf32>
    %c0_22 = arith.constant 0 : index
    %c0_23 = arith.constant 0 : index
    %c0_24 = arith.constant 0 : index
    %24 = vector.load %arg5[%c0_22, %c0_23, %c0_24] : memref<1x1x256xf32, #tpu.memory_space<vmem>>, vector<1x1x256xf32>
    %25 = vector.shape_cast %24 : vector<1x1x256xf32> to vector<1x256xf32>
    %26 = vector.shape_cast %23 : vector<1x256xf32> to vector<1x1x256xf32>
    tpu.vector_store %arg5[%c0_22, %c0_23, %c0_24], %26 {strides = array<i32>} : memref<1x1x256xf32, #tpu.memory_space<vmem>>, vector<1x1x256xf32>,
    %27 = arith.mulf %18, %18 : vector<4x256xf32>
    %cst_25 = arith.constant dense<0.000000e+00> : vector<256xf32>
    %28 = vector.multi_reduction <add>, %27, %cst_25 [0] : vector<4x256xf32> to vector<256xf32>
    %29 = vector.shape_cast %28 : vector<256xf32> to vector<1x256xf32>
    %c0_26 = arith.constant 0 : index
    %c0_27 = arith.constant 0 : index
    %c0_28 = arith.constant 0 : index
    %30 = vector.load %arg6[%c0_26, %c0_27, %c0_28] : memref<1x1x256xf32, #tpu.memory_space<vmem>>, vector<1x1x256xf32>
    %31 = vector.shape_cast %30 : vector<1x1x256xf32> to vector<1x256xf32>
    %32 = vector.shape_cast %29 : vector<1x256xf32> to vector<1x1x256xf32>
    tpu.vector_store %arg6[%c0_26, %c0_27, %c0_28], %32 {strides = array<i32>} : memref<1x1x256xf32, #tpu.memory_space<vmem>>, vector<1x1x256xf32>,
    return
  }
  func.func @transform_0(%arg0: i32) -> (i32, i32, i32) {
    %c0_i32 = arith.constant 0 : i32
    %c0_i32_0 = arith.constant 0 : i32
    %c0_i32_1 = arith.constant 0 : i32
    return %arg0, %c0_i32, %c0_i32_0 : i32, i32, i32
  }
  func.func @transform_1(%arg0: i32) -> (i32, i32, i32) {
    %c0_i32 = arith.constant 0 : i32
    %c0_i32_0 = arith.constant 0 : i32
    %c0_i32_1 = arith.constant 0 : i32
    return %arg0, %c0_i32, %c0_i32_0 : i32, i32, i32
  }
  func.func @transform_2(%arg0: i32) -> (i32, i32, i32) {
    %c0_i32 = arith.constant 0 : i32
    %c0_i32_0 = arith.constant 0 : i32
    %c0_i32_1 = arith.constant 0 : i32
    %c0_i32_2 = arith.constant 0 : i32
    return %c0_i32, %c0_i32_0, %c0_i32_1 : i32, i32, i32
  }
  func.func @transform_3(%arg0: i32) -> (i32, i32, i32) {
    %c0_i32 = arith.constant 0 : i32
    %c0_i32_0 = arith.constant 0 : i32
    %c0_i32_1 = arith.constant 0 : i32
    return %arg0, %c0_i32, %c0_i32_0 : i32, i32, i32
  }
  func.func @transform_4(%arg0: i32) -> (i32, i32, i32) {
    %c0_i32 = arith.constant 0 : i32
    %c0_i32_0 = arith.constant 0 : i32
    %c0_i32_1 = arith.constant 0 : i32
    return %arg0, %c0_i32, %c0_i32_0 : i32, i32, i32
  }
  func.func @transform_5(%arg0: i32) -> (i32, i32, i32) {
    %c0_i32 = arith.constant 0 : i32
    %c0_i32_0 = arith.constant 0 : i32
    %c0_i32_1 = arith.constant 0 : i32
    return %arg0, %c0_i32, %c0_i32_0 : i32, i32, i32
  }
}

module attributes {stable_mosaic.version = 11 : i64} {
  func.func @_conv_stats_kernel(%arg0: i32, %arg1: memref<1x6x256xbf16, #tpu.memory_space<vmem>>, %arg2: memref<3x256x256xbf16, #tpu.memory_space<vmem>>, %arg3: memref<1x4x256xf32, #tpu.memory_space<vmem>>, %arg4: memref<1x1x256xf32, #tpu.memory_space<vmem>>, %arg5: memref<1x1x256xf32, #tpu.memory_space<vmem>>) attributes {dimension_semantics = [#tpu.dimension_semantics<parallel>], iteration_bounds = array<i64: 2>, scalar_prefetch = 0 : i64, scratch_operands = 0 : i64, tpu.core_type = #tpu.core_type<tc>, window_params = [{transform_indices = @transform_0, window_bounds = array<i64: 1, 6, 256>}, {pipeline_mode = #tpu.pipeline_mode<synchronous>, transform_indices = @transform_1, window_bounds = array<i64: 3, 256, 256>}, {transform_indices = @transform_2, window_bounds = array<i64: 1, 4, 256>}, {transform_indices = @transform_3, window_bounds = array<i64: 1, 1, 256>}, {transform_indices = @transform_4, window_bounds = array<i64: 1, 1, 256>}]} {
    %cst = arith.constant 0.000000e+00 : f32
    %0 = vector.broadcast %cst : f32 to vector<4x256xf32>
    %c0 = arith.constant 0 : index
    %c0_0 = arith.constant 0 : index
    %c0_1 = arith.constant 0 : index
    %1 = vector.load %arg1[%c0, %c0_0, %c0_1] : memref<1x6x256xbf16, #tpu.memory_space<vmem>>, vector<1x4x256xbf16>
    %2 = vector.shape_cast %1 : vector<1x4x256xbf16> to vector<4x256xbf16>
    %c0_2 = arith.constant 0 : index
    %c0_3 = arith.constant 0 : index
    %c0_4 = arith.constant 0 : index
    %3 = vector.load %arg2[%c0_2, %c0_3, %c0_4] : memref<3x256x256xbf16, #tpu.memory_space<vmem>>, vector<1x256x256xbf16>
    %4 = vector.shape_cast %3 : vector<1x256x256xbf16> to vector<256x256xbf16>
    %cst_5 = arith.constant dense<0.000000e+00> : vector<4x256xf32>
    %5 = tpu.matmul %2, %4, %cst_5 {dimension_numbers = #tpu.dot_dimension_numbers<[1], [0], [0], [1], [0, 0, 1, 1], [], []>} : vector<4x256xbf16>, vector<256x256xbf16>, vector<4x256xf32> -> vector<4x256xf32>
    %6 = arith.addf %0, %5 : vector<4x256xf32>
    %c0_6 = arith.constant 0 : index
    %c1 = arith.constant 1 : index
    %c0_7 = arith.constant 0 : index
    %7 = vector.load %arg1[%c0_6, %c1, %c0_7] : memref<1x6x256xbf16, #tpu.memory_space<vmem>>, vector<1x4x256xbf16>
    %8 = vector.shape_cast %7 : vector<1x4x256xbf16> to vector<4x256xbf16>
    %c1_8 = arith.constant 1 : index
    %c0_9 = arith.constant 0 : index
    %c0_10 = arith.constant 0 : index
    %9 = vector.load %arg2[%c1_8, %c0_9, %c0_10] : memref<3x256x256xbf16, #tpu.memory_space<vmem>>, vector<1x256x256xbf16>
    %10 = vector.shape_cast %9 : vector<1x256x256xbf16> to vector<256x256xbf16>
    %cst_11 = arith.constant dense<0.000000e+00> : vector<4x256xf32>
    %11 = tpu.matmul %8, %10, %cst_11 {dimension_numbers = #tpu.dot_dimension_numbers<[1], [0], [0], [1], [0, 0, 1, 1], [], []>} : vector<4x256xbf16>, vector<256x256xbf16>, vector<4x256xf32> -> vector<4x256xf32>
    %12 = arith.addf %6, %11 : vector<4x256xf32>
    %c0_12 = arith.constant 0 : index
    %c2 = arith.constant 2 : index
    %c0_13 = arith.constant 0 : index
    %13 = vector.load %arg1[%c0_12, %c2, %c0_13] : memref<1x6x256xbf16, #tpu.memory_space<vmem>>, vector<1x4x256xbf16>
    %14 = vector.shape_cast %13 : vector<1x4x256xbf16> to vector<4x256xbf16>
    %c2_14 = arith.constant 2 : index
    %c0_15 = arith.constant 0 : index
    %c0_16 = arith.constant 0 : index
    %15 = vector.load %arg2[%c2_14, %c0_15, %c0_16] : memref<3x256x256xbf16, #tpu.memory_space<vmem>>, vector<1x256x256xbf16>
    %16 = vector.shape_cast %15 : vector<1x256x256xbf16> to vector<256x256xbf16>
    %cst_17 = arith.constant dense<0.000000e+00> : vector<4x256xf32>
    %17 = tpu.matmul %14, %16, %cst_17 {dimension_numbers = #tpu.dot_dimension_numbers<[1], [0], [0], [1], [0, 0, 1, 1], [], []>} : vector<4x256xbf16>, vector<256x256xbf16>, vector<4x256xf32> -> vector<4x256xf32>
    %18 = arith.addf %12, %17 : vector<4x256xf32>
    %c0_18 = arith.constant 0 : index
    %c0_19 = arith.constant 0 : index
    %c0_20 = arith.constant 0 : index
    %19 = vector.load %arg3[%c0_18, %c0_19, %c0_20] : memref<1x4x256xf32, #tpu.memory_space<vmem>>, vector<1x4x256xf32>
    %20 = vector.shape_cast %19 : vector<1x4x256xf32> to vector<4x256xf32>
    %21 = vector.shape_cast %18 : vector<4x256xf32> to vector<1x4x256xf32>
    tpu.vector_store %arg3[%c0_18, %c0_19, %c0_20], %21 {strides = array<i32>} : memref<1x4x256xf32, #tpu.memory_space<vmem>>, vector<1x4x256xf32>,
    %cst_21 = arith.constant dense<0.000000e+00> : vector<256xf32>
    %22 = vector.multi_reduction <add>, %18, %cst_21 [0] : vector<4x256xf32> to vector<256xf32>
    %23 = vector.shape_cast %22 : vector<256xf32> to vector<1x256xf32>
    %c0_22 = arith.constant 0 : index
    %c0_23 = arith.constant 0 : index
    %c0_24 = arith.constant 0 : index
    %24 = vector.load %arg4[%c0_22, %c0_23, %c0_24] : memref<1x1x256xf32, #tpu.memory_space<vmem>>, vector<1x1x256xf32>
    %25 = vector.shape_cast %24 : vector<1x1x256xf32> to vector<1x256xf32>
    %26 = vector.shape_cast %23 : vector<1x256xf32> to vector<1x1x256xf32>
    tpu.vector_store %arg4[%c0_22, %c0_23, %c0_24], %26 {strides = array<i32>} : memref<1x1x256xf32, #tpu.memory_space<vmem>>, vector<1x1x256xf32>,
    %27 = arith.mulf %18, %18 : vector<4x256xf32>
    %cst_25 = arith.constant dense<0.000000e+00> : vector<256xf32>
    %28 = vector.multi_reduction <add>, %27, %cst_25 [0] : vector<4x256xf32> to vector<256xf32>
    %29 = vector.shape_cast %28 : vector<256xf32> to vector<1x256xf32>
    %c0_26 = arith.constant 0 : index
    %c0_27 = arith.constant 0 : index
    %c0_28 = arith.constant 0 : index
    %30 = vector.load %arg5[%c0_26, %c0_27, %c0_28] : memref<1x1x256xf32, #tpu.memory_space<vmem>>, vector<1x1x256xf32>
    %31 = vector.shape_cast %30 : vector<1x1x256xf32> to vector<1x256xf32>
    %32 = vector.shape_cast %29 : vector<1x256xf32> to vector<1x1x256xf32>
    tpu.vector_store %arg5[%c0_26, %c0_27, %c0_28], %32 {strides = array<i32>} : memref<1x1x256xf32, #tpu.memory_space<vmem>>, vector<1x1x256xf32>,
    return
  }
  func.func @transform_0(%arg0: i32) -> (i32, i32, i32) {
    %c0_i32 = arith.constant 0 : i32
    %c0_i32_0 = arith.constant 0 : i32
    %c0_i32_1 = arith.constant 0 : i32
    return %arg0, %c0_i32, %c0_i32_0 : i32, i32, i32
  }
  func.func @transform_1(%arg0: i32) -> (i32, i32, i32) {
    %c0_i32 = arith.constant 0 : i32
    %c0_i32_0 = arith.constant 0 : i32
    %c0_i32_1 = arith.constant 0 : i32
    %c0_i32_2 = arith.constant 0 : i32
    return %c0_i32, %c0_i32_0, %c0_i32_1 : i32, i32, i32
  }
  func.func @transform_2(%arg0: i32) -> (i32, i32, i32) {
    %c0_i32 = arith.constant 0 : i32
    %c0_i32_0 = arith.constant 0 : i32
    %c0_i32_1 = arith.constant 0 : i32
    return %arg0, %c0_i32, %c0_i32_0 : i32, i32, i32
  }
  func.func @transform_3(%arg0: i32) -> (i32, i32, i32) {
    %c0_i32 = arith.constant 0 : i32
    %c0_i32_0 = arith.constant 0 : i32
    %c0_i32_1 = arith.constant 0 : i32
    return %arg0, %c0_i32, %c0_i32_0 : i32, i32, i32
  }
  func.func @transform_4(%arg0: i32) -> (i32, i32, i32) {
    %c0_i32 = arith.constant 0 : i32
    %c0_i32_0 = arith.constant 0 : i32
    %c0_i32_1 = arith.constant 0 : i32
    return %arg0, %c0_i32, %c0_i32_0 : i32, i32, i32
  }
}

module attributes {stable_mosaic.version = 11 : i64} {
  func.func @_conv_stats_kernel(%arg0: i32, %arg1: memref<1x4x128xbf16, #tpu.memory_space<vmem>>, %arg2: memref<1x128x256xbf16, #tpu.memory_space<vmem>>, %arg3: memref<1x4x256xf32, #tpu.memory_space<vmem>>, %arg4: memref<1x1x256xf32, #tpu.memory_space<vmem>>, %arg5: memref<1x1x256xf32, #tpu.memory_space<vmem>>) attributes {dimension_semantics = [#tpu.dimension_semantics<parallel>], iteration_bounds = array<i64: 2>, scalar_prefetch = 0 : i64, scratch_operands = 0 : i64, tpu.core_type = #tpu.core_type<tc>, window_params = [{transform_indices = @transform_0, window_bounds = array<i64: 1, 4, 128>}, {pipeline_mode = #tpu.pipeline_mode<synchronous>, transform_indices = @transform_1, window_bounds = array<i64: 1, 128, 256>}, {transform_indices = @transform_2, window_bounds = array<i64: 1, 4, 256>}, {transform_indices = @transform_3, window_bounds = array<i64: 1, 1, 256>}, {transform_indices = @transform_4, window_bounds = array<i64: 1, 1, 256>}]} {
    %cst = arith.constant 0.000000e+00 : f32
    %0 = vector.broadcast %cst : f32 to vector<4x256xf32>
    %c0 = arith.constant 0 : index
    %c0_0 = arith.constant 0 : index
    %c0_1 = arith.constant 0 : index
    %1 = vector.load %arg1[%c0, %c0_0, %c0_1] : memref<1x4x128xbf16, #tpu.memory_space<vmem>>, vector<1x4x128xbf16>
    %2 = vector.shape_cast %1 : vector<1x4x128xbf16> to vector<4x128xbf16>
    %c0_2 = arith.constant 0 : index
    %c0_3 = arith.constant 0 : index
    %c0_4 = arith.constant 0 : index
    %3 = vector.load %arg2[%c0_2, %c0_3, %c0_4] : memref<1x128x256xbf16, #tpu.memory_space<vmem>>, vector<1x128x256xbf16>
    %4 = vector.shape_cast %3 : vector<1x128x256xbf16> to vector<128x256xbf16>
    %cst_5 = arith.constant dense<0.000000e+00> : vector<4x256xf32>
    %5 = tpu.matmul %2, %4, %cst_5 {dimension_numbers = #tpu.dot_dimension_numbers<[1], [0], [0], [1], [0, 0, 1, 1], [], []>} : vector<4x128xbf16>, vector<128x256xbf16>, vector<4x256xf32> -> vector<4x256xf32>
    %6 = arith.addf %0, %5 : vector<4x256xf32>
    %c0_6 = arith.constant 0 : index
    %c0_7 = arith.constant 0 : index
    %c0_8 = arith.constant 0 : index
    %7 = vector.load %arg3[%c0_6, %c0_7, %c0_8] : memref<1x4x256xf32, #tpu.memory_space<vmem>>, vector<1x4x256xf32>
    %8 = vector.shape_cast %7 : vector<1x4x256xf32> to vector<4x256xf32>
    %9 = vector.shape_cast %6 : vector<4x256xf32> to vector<1x4x256xf32>
    tpu.vector_store %arg3[%c0_6, %c0_7, %c0_8], %9 {strides = array<i32>} : memref<1x4x256xf32, #tpu.memory_space<vmem>>, vector<1x4x256xf32>,
    %cst_9 = arith.constant dense<0.000000e+00> : vector<256xf32>
    %10 = vector.multi_reduction <add>, %6, %cst_9 [0] : vector<4x256xf32> to vector<256xf32>
    %11 = vector.shape_cast %10 : vector<256xf32> to vector<1x256xf32>
    %c0_10 = arith.constant 0 : index
    %c0_11 = arith.constant 0 : index
    %c0_12 = arith.constant 0 : index
    %12 = vector.load %arg4[%c0_10, %c0_11, %c0_12] : memref<1x1x256xf32, #tpu.memory_space<vmem>>, vector<1x1x256xf32>
    %13 = vector.shape_cast %12 : vector<1x1x256xf32> to vector<1x256xf32>
    %14 = vector.shape_cast %11 : vector<1x256xf32> to vector<1x1x256xf32>
    tpu.vector_store %arg4[%c0_10, %c0_11, %c0_12], %14 {strides = array<i32>} : memref<1x1x256xf32, #tpu.memory_space<vmem>>, vector<1x1x256xf32>,
    %15 = arith.mulf %6, %6 : vector<4x256xf32>
    %cst_13 = arith.constant dense<0.000000e+00> : vector<256xf32>
    %16 = vector.multi_reduction <add>, %15, %cst_13 [0] : vector<4x256xf32> to vector<256xf32>
    %17 = vector.shape_cast %16 : vector<256xf32> to vector<1x256xf32>
    %c0_14 = arith.constant 0 : index
    %c0_15 = arith.constant 0 : index
    %c0_16 = arith.constant 0 : index
    %18 = vector.load %arg5[%c0_14, %c0_15, %c0_16] : memref<1x1x256xf32, #tpu.memory_space<vmem>>, vector<1x1x256xf32>
    %19 = vector.shape_cast %18 : vector<1x1x256xf32> to vector<1x256xf32>
    %20 = vector.shape_cast %17 : vector<1x256xf32> to vector<1x1x256xf32>
    tpu.vector_store %arg5[%c0_14, %c0_15, %c0_16], %20 {strides = array<i32>} : memref<1x1x256xf32, #tpu.memory_space<vmem>>, vector<1x1x256xf32>,
    return
  }
  func.func @transform_0(%arg0: i32) -> (i32, i32, i32) {
    %c0_i32 = arith.constant 0 : i32
    %c0_i32_0 = arith.constant 0 : i32
    %c0_i32_1 = arith.constant 0 : i32
    return %arg0, %c0_i32, %c0_i32_0 : i32, i32, i32
  }
  func.func @transform_1(%arg0: i32) -> (i32, i32, i32) {
    %c0_i32 = arith.constant 0 : i32
    %c0_i32_0 = arith.constant 0 : i32
    %c0_i32_1 = arith.constant 0 : i32
    %c0_i32_2 = arith.constant 0 : i32
    return %c0_i32, %c0_i32_0, %c0_i32_1 : i32, i32, i32
  }
  func.func @transform_2(%arg0: i32) -> (i32, i32, i32) {
    %c0_i32 = arith.constant 0 : i32
    %c0_i32_0 = arith.constant 0 : i32
    %c0_i32_1 = arith.constant 0 : i32
    return %arg0, %c0_i32, %c0_i32_0 : i32, i32, i32
  }
  func.func @transform_3(%arg0: i32) -> (i32, i32, i32) {
    %c0_i32 = arith.constant 0 : i32
    %c0_i32_0 = arith.constant 0 : i32
    %c0_i32_1 = arith.constant 0 : i32
    return %arg0, %c0_i32, %c0_i32_0 : i32, i32, i32
  }
  func.func @transform_4(%arg0: i32) -> (i32, i32, i32) {
    %c0_i32 = arith.constant 0 : i32
    %c0_i32_0 = arith.constant 0 : i32
    %c0_i32_1 = arith.constant 0 : i32
    return %arg0, %c0_i32, %c0_i32_0 : i32, i32, i32
  }
}

module attributes {stable_mosaic.version = 11 : i64} {
  func.func @_bn_act_kernel(%arg0: i32, %arg1: memref<1x4x256xf32, #tpu.memory_space<vmem>>, %arg2: memref<1x256xf32, #tpu.memory_space<vmem>>, %arg3: memref<1x256xf32, #tpu.memory_space<vmem>>, %arg4: memref<1x4x256xbf16, #tpu.memory_space<vmem>>) attributes {dimension_semantics = [#tpu.dimension_semantics<parallel>], iteration_bounds = array<i64: 2>, scalar_prefetch = 0 : i64, scratch_operands = 0 : i64, tpu.core_type = #tpu.core_type<tc>, window_params = [{transform_indices = @transform_0, window_bounds = array<i64: 1, 4, 256>}, {pipeline_mode = #tpu.pipeline_mode<synchronous>, transform_indices = @transform_1, window_bounds = array<i64: 1, 256>}, {pipeline_mode = #tpu.pipeline_mode<synchronous>, transform_indices = @transform_2, window_bounds = array<i64: 1, 256>}, {transform_indices = @transform_3, window_bounds = array<i64: 1, 4, 256>}]} {
    %c0 = arith.constant 0 : index
    %c0_0 = arith.constant 0 : index
    %c0_1 = arith.constant 0 : index
    %0 = vector.load %arg1[%c0, %c0_0, %c0_1] : memref<1x4x256xf32, #tpu.memory_space<vmem>>, vector<1x4x256xf32>
    %1 = vector.shape_cast %0 : vector<1x4x256xf32> to vector<4x256xf32>
    %c0_2 = arith.constant 0 : index
    %c0_3 = arith.constant 0 : index
    %2 = vector.load %arg2[%c0_2, %c0_3] : memref<1x256xf32, #tpu.memory_space<vmem>>, vector<1x256xf32>
    %3 = vector.broadcast %2 : vector<1x256xf32> to vector<4x256xf32>
    %4 = arith.mulf %1, %3 : vector<4x256xf32>
    %c0_4 = arith.constant 0 : index
    %c0_5 = arith.constant 0 : index
    %5 = vector.load %arg3[%c0_4, %c0_5] : memref<1x256xf32, #tpu.memory_space<vmem>>, vector<1x256xf32>
    %6 = vector.broadcast %5 : vector<1x256xf32> to vector<4x256xf32>
    %7 = arith.addf %4, %6 : vector<4x256xf32>
    %cst = arith.constant 0.000000e+00 : f32
    %8 = vector.broadcast %cst : f32 to vector<4x256xf32>
    %9 = arith.maximumf %7, %8 : vector<4x256xf32>
    %10 = arith.truncf %9 : vector<4x256xf32> to vector<4x256xbf16>
    %c0_6 = arith.constant 0 : index
    %c0_7 = arith.constant 0 : index
    %c0_8 = arith.constant 0 : index
    %11 = vector.load %arg4[%c0_6, %c0_7, %c0_8] : memref<1x4x256xbf16, #tpu.memory_space<vmem>>, vector<1x4x256xbf16>
    %12 = vector.shape_cast %11 : vector<1x4x256xbf16> to vector<4x256xbf16>
    %13 = vector.shape_cast %10 : vector<4x256xbf16> to vector<1x4x256xbf16>
    tpu.vector_store %arg4[%c0_6, %c0_7, %c0_8], %13 {strides = array<i32>} : memref<1x4x256xbf16, #tpu.memory_space<vmem>>, vector<1x4x256xbf16>,
    return
  }
  func.func @transform_0(%arg0: i32) -> (i32, i32, i32) {
    %c0_i32 = arith.constant 0 : i32
    %c0_i32_0 = arith.constant 0 : i32
    %c0_i32_1 = arith.constant 0 : i32
    return %arg0, %c0_i32, %c0_i32_0 : i32, i32, i32
  }
  func.func @transform_1(%arg0: i32) -> (i32, i32) {
    %c0_i32 = arith.constant 0 : i32
    %c0_i32_0 = arith.constant 0 : i32
    %c0_i32_1 = arith.constant 0 : i32
    return %c0_i32, %c0_i32_0 : i32, i32
  }
  func.func @transform_2(%arg0: i32) -> (i32, i32) {
    %c0_i32 = arith.constant 0 : i32
    %c0_i32_0 = arith.constant 0 : i32
    %c0_i32_1 = arith.constant 0 : i32
    return %c0_i32, %c0_i32_0 : i32, i32
  }
  func.func @transform_3(%arg0: i32) -> (i32, i32, i32) {
    %c0_i32 = arith.constant 0 : i32
    %c0_i32_0 = arith.constant 0 : i32
    %c0_i32_1 = arith.constant 0 : i32
    return %arg0, %c0_i32, %c0_i32_0 : i32, i32, i32
  }
}

module attributes {stable_mosaic.version = 11 : i64} {
  func.func @_bn_act_kernel(%arg0: i32, %arg1: memref<1x4x256xf32, #tpu.memory_space<vmem>>, %arg2: memref<1x256xf32, #tpu.memory_space<vmem>>, %arg3: memref<1x256xf32, #tpu.memory_space<vmem>>, %arg4: memref<1x4x256xbf16, #tpu.memory_space<vmem>>) attributes {dimension_semantics = [#tpu.dimension_semantics<parallel>], iteration_bounds = array<i64: 2>, scalar_prefetch = 0 : i64, scratch_operands = 0 : i64, tpu.core_type = #tpu.core_type<tc>, window_params = [{transform_indices = @transform_0, window_bounds = array<i64: 1, 4, 256>}, {pipeline_mode = #tpu.pipeline_mode<synchronous>, transform_indices = @transform_1, window_bounds = array<i64: 1, 256>}, {pipeline_mode = #tpu.pipeline_mode<synchronous>, transform_indices = @transform_2, window_bounds = array<i64: 1, 256>}, {transform_indices = @transform_3, window_bounds = array<i64: 1, 4, 256>}]} {
    %c0 = arith.constant 0 : index
    %c0_0 = arith.constant 0 : index
    %c0_1 = arith.constant 0 : index
    %0 = vector.load %arg1[%c0, %c0_0, %c0_1] : memref<1x4x256xf32, #tpu.memory_space<vmem>>, vector<1x4x256xf32>
    %1 = vector.shape_cast %0 : vector<1x4x256xf32> to vector<4x256xf32>
    %c0_2 = arith.constant 0 : index
    %c0_3 = arith.constant 0 : index
    %2 = vector.load %arg2[%c0_2, %c0_3] : memref<1x256xf32, #tpu.memory_space<vmem>>, vector<1x256xf32>
    %3 = vector.broadcast %2 : vector<1x256xf32> to vector<4x256xf32>
    %4 = arith.mulf %1, %3 : vector<4x256xf32>
    %c0_4 = arith.constant 0 : index
    %c0_5 = arith.constant 0 : index
    %5 = vector.load %arg3[%c0_4, %c0_5] : memref<1x256xf32, #tpu.memory_space<vmem>>, vector<1x256xf32>
    %6 = vector.broadcast %5 : vector<1x256xf32> to vector<4x256xf32>
    %7 = arith.addf %4, %6 : vector<4x256xf32>
    %8 = arith.truncf %7 : vector<4x256xf32> to vector<4x256xbf16>
    %c0_6 = arith.constant 0 : index
    %c0_7 = arith.constant 0 : index
    %c0_8 = arith.constant 0 : index
    %9 = vector.load %arg4[%c0_6, %c0_7, %c0_8] : memref<1x4x256xbf16, #tpu.memory_space<vmem>>, vector<1x4x256xbf16>
    %10 = vector.shape_cast %9 : vector<1x4x256xbf16> to vector<4x256xbf16>
    %11 = vector.shape_cast %8 : vector<4x256xbf16> to vector<1x4x256xbf16>
    tpu.vector_store %arg4[%c0_6, %c0_7, %c0_8], %11 {strides = array<i32>} : memref<1x4x256xbf16, #tpu.memory_space<vmem>>, vector<1x4x256xbf16>,
    return
  }
  func.func @transform_0(%arg0: i32) -> (i32, i32, i32) {
    %c0_i32 = arith.constant 0 : i32
    %c0_i32_0 = arith.constant 0 : i32
    %c0_i32_1 = arith.constant 0 : i32
    return %arg0, %c0_i32, %c0_i32_0 : i32, i32, i32
  }
  func.func @transform_1(%arg0: i32) -> (i32, i32) {
    %c0_i32 = arith.constant 0 : i32
    %c0_i32_0 = arith.constant 0 : i32
    %c0_i32_1 = arith.constant 0 : i32
    return %c0_i32, %c0_i32_0 : i32, i32
  }
  func.func @transform_2(%arg0: i32) -> (i32, i32) {
    %c0_i32 = arith.constant 0 : i32
    %c0_i32_0 = arith.constant 0 : i32
    %c0_i32_1 = arith.constant 0 : i32
    return %c0_i32, %c0_i32_0 : i32, i32
  }
  func.func @transform_3(%arg0: i32) -> (i32, i32, i32) {
    %c0_i32 = arith.constant 0 : i32
    %c0_i32_0 = arith.constant 0 : i32
    %c0_i32_1 = arith.constant 0 : i32
    return %arg0, %c0_i32, %c0_i32_0 : i32, i32, i32
  }
}

module attributes {stable_mosaic.version = 11 : i64} {
  func.func @_bn_act_kernel(%arg0: i32, %arg1: memref<1x4x256xf32, #tpu.memory_space<vmem>>, %arg2: memref<1x256xf32, #tpu.memory_space<vmem>>, %arg3: memref<1x256xf32, #tpu.memory_space<vmem>>, %arg4: memref<1x4x256xbf16, #tpu.memory_space<vmem>>, %arg5: memref<1x4x256xbf16, #tpu.memory_space<vmem>>) attributes {dimension_semantics = [#tpu.dimension_semantics<parallel>], iteration_bounds = array<i64: 2>, scalar_prefetch = 0 : i64, scratch_operands = 0 : i64, tpu.core_type = #tpu.core_type<tc>, window_params = [{transform_indices = @transform_0, window_bounds = array<i64: 1, 4, 256>}, {pipeline_mode = #tpu.pipeline_mode<synchronous>, transform_indices = @transform_1, window_bounds = array<i64: 1, 256>}, {pipeline_mode = #tpu.pipeline_mode<synchronous>, transform_indices = @transform_2, window_bounds = array<i64: 1, 256>}, {transform_indices = @transform_3, window_bounds = array<i64: 1, 4, 256>}, {transform_indices = @transform_4, window_bounds = array<i64: 1, 4, 256>}]} {
    %c0 = arith.constant 0 : index
    %c0_0 = arith.constant 0 : index
    %c0_1 = arith.constant 0 : index
    %0 = vector.load %arg1[%c0, %c0_0, %c0_1] : memref<1x4x256xf32, #tpu.memory_space<vmem>>, vector<1x4x256xf32>
    %1 = vector.shape_cast %0 : vector<1x4x256xf32> to vector<4x256xf32>
    %c0_2 = arith.constant 0 : index
    %c0_3 = arith.constant 0 : index
    %2 = vector.load %arg2[%c0_2, %c0_3] : memref<1x256xf32, #tpu.memory_space<vmem>>, vector<1x256xf32>
    %3 = vector.broadcast %2 : vector<1x256xf32> to vector<4x256xf32>
    %4 = arith.mulf %1, %3 : vector<4x256xf32>
    %c0_4 = arith.constant 0 : index
    %c0_5 = arith.constant 0 : index
    %5 = vector.load %arg3[%c0_4, %c0_5] : memref<1x256xf32, #tpu.memory_space<vmem>>, vector<1x256xf32>
    %6 = vector.broadcast %5 : vector<1x256xf32> to vector<4x256xf32>
    %7 = arith.addf %4, %6 : vector<4x256xf32>
    %c0_6 = arith.constant 0 : index
    %c0_7 = arith.constant 0 : index
    %c0_8 = arith.constant 0 : index
    %8 = vector.load %arg4[%c0_6, %c0_7, %c0_8] : memref<1x4x256xbf16, #tpu.memory_space<vmem>>, vector<1x4x256xbf16>
    %9 = vector.shape_cast %8 : vector<1x4x256xbf16> to vector<4x256xbf16>
    %10 = arith.extf %9 : vector<4x256xbf16> to vector<4x256xf32>
    %11 = arith.addf %7, %10 : vector<4x256xf32>
    %cst = arith.constant 0.000000e+00 : f32
    %12 = vector.broadcast %cst : f32 to vector<4x256xf32>
    %13 = arith.maximumf %11, %12 : vector<4x256xf32>
    %14 = arith.truncf %13 : vector<4x256xf32> to vector<4x256xbf16>
    %c0_9 = arith.constant 0 : index
    %c0_10 = arith.constant 0 : index
    %c0_11 = arith.constant 0 : index
    %15 = vector.load %arg5[%c0_9, %c0_10, %c0_11] : memref<1x4x256xbf16, #tpu.memory_space<vmem>>, vector<1x4x256xbf16>
    %16 = vector.shape_cast %15 : vector<1x4x256xbf16> to vector<4x256xbf16>
    %17 = vector.shape_cast %14 : vector<4x256xbf16> to vector<1x4x256xbf16>
    tpu.vector_store %arg5[%c0_9, %c0_10, %c0_11], %17 {strides = array<i32>} : memref<1x4x256xbf16, #tpu.memory_space<vmem>>, vector<1x4x256xbf16>,
    return
  }
  func.func @transform_0(%arg0: i32) -> (i32, i32, i32) {
    %c0_i32 = arith.constant 0 : i32
    %c0_i32_0 = arith.constant 0 : i32
    %c0_i32_1 = arith.constant 0 : i32
    return %arg0, %c0_i32, %c0_i32_0 : i32, i32, i32
  }
  func.func @transform_1(%arg0: i32) -> (i32, i32) {
    %c0_i32 = arith.constant 0 : i32
    %c0_i32_0 = arith.constant 0 : i32
    %c0_i32_1 = arith.constant 0 : i32
    return %c0_i32, %c0_i32_0 : i32, i32
  }
  func.func @transform_2(%arg0: i32) -> (i32, i32) {
    %c0_i32 = arith.constant 0 : i32
    %c0_i32_0 = arith.constant 0 : i32
    %c0_i32_1 = arith.constant 0 : i32
    return %c0_i32, %c0_i32_0 : i32, i32
  }
  func.func @transform_3(%arg0: i32) -> (i32, i32, i32) {
    %c0_i32 = arith.constant 0 : i32
    %c0_i32_0 = arith.constant 0 : i32
    %c0_i32_1 = arith.constant 0 : i32
    return %arg0, %c0_i32, %c0_i32_0 : i32, i32, i32
  }
  func.func @transform_4(%arg0: i32) -> (i32, i32, i32) {
    %c0_i32 = arith.constant 0 : i32
    %c0_i32_0 = arith.constant 0 : i32
    %c0_i32_1 = arith.constant 0 : i32
    return %arg0, %c0_i32, %c0_i32_0 : i32, i32, i32
  }
}

module attributes {stable_mosaic.version = 11 : i64} {
  func.func @_conv_stats_kernel(%arg0: i32, %arg1: memref<1x3x256xbf16, #tpu.memory_space<vmem>>, %arg2: memref<1x3x256xbf16, #tpu.memory_space<vmem>>, %arg3: memref<3x256x512xbf16, #tpu.memory_space<vmem>>, %arg4: memref<1x2x512xf32, #tpu.memory_space<vmem>>, %arg5: memref<1x1x512xf32, #tpu.memory_space<vmem>>, %arg6: memref<1x1x512xf32, #tpu.memory_space<vmem>>) attributes {dimension_semantics = [#tpu.dimension_semantics<parallel>], iteration_bounds = array<i64: 2>, scalar_prefetch = 0 : i64, scratch_operands = 0 : i64, tpu.core_type = #tpu.core_type<tc>, window_params = [{transform_indices = @transform_0, window_bounds = array<i64: 1, 3, 256>}, {transform_indices = @transform_1, window_bounds = array<i64: 1, 3, 256>}, {pipeline_mode = #tpu.pipeline_mode<synchronous>, transform_indices = @transform_2, window_bounds = array<i64: 3, 256, 512>}, {transform_indices = @transform_3, window_bounds = array<i64: 1, 2, 512>}, {transform_indices = @transform_4, window_bounds = array<i64: 1, 1, 512>}, {transform_indices = @transform_5, window_bounds = array<i64: 1, 1, 512>}]} {
    %cst = arith.constant 0.000000e+00 : f32
    %0 = vector.broadcast %cst : f32 to vector<2x512xf32>
    %c0 = arith.constant 0 : index
    %c0_0 = arith.constant 0 : index
    %c0_1 = arith.constant 0 : index
    %1 = vector.load %arg1[%c0, %c0_0, %c0_1] : memref<1x3x256xbf16, #tpu.memory_space<vmem>>, vector<1x2x256xbf16>
    %2 = vector.shape_cast %1 : vector<1x2x256xbf16> to vector<2x256xbf16>
    %c0_2 = arith.constant 0 : index
    %c0_3 = arith.constant 0 : index
    %c0_4 = arith.constant 0 : index
    %3 = vector.load %arg3[%c0_2, %c0_3, %c0_4] : memref<3x256x512xbf16, #tpu.memory_space<vmem>>, vector<1x256x512xbf16>
    %4 = vector.shape_cast %3 : vector<1x256x512xbf16> to vector<256x512xbf16>
    %cst_5 = arith.constant dense<0.000000e+00> : vector<2x512xf32>
    %5 = tpu.matmul %2, %4, %cst_5 {dimension_numbers = #tpu.dot_dimension_numbers<[1], [0], [0], [1], [0, 0, 1, 1], [], []>} : vector<2x256xbf16>, vector<256x512xbf16>, vector<2x512xf32> -> vector<2x512xf32>
    %6 = arith.addf %0, %5 : vector<2x512xf32>
    %c0_6 = arith.constant 0 : index
    %c0_7 = arith.constant 0 : index
    %c0_8 = arith.constant 0 : index
    %7 = vector.load %arg2[%c0_6, %c0_7, %c0_8] : memref<1x3x256xbf16, #tpu.memory_space<vmem>>, vector<1x2x256xbf16>
    %8 = vector.shape_cast %7 : vector<1x2x256xbf16> to vector<2x256xbf16>
    %c1 = arith.constant 1 : index
    %c0_9 = arith.constant 0 : index
    %c0_10 = arith.constant 0 : index
    %9 = vector.load %arg3[%c1, %c0_9, %c0_10] : memref<3x256x512xbf16, #tpu.memory_space<vmem>>, vector<1x256x512xbf16>
    %10 = vector.shape_cast %9 : vector<1x256x512xbf16> to vector<256x512xbf16>
    %cst_11 = arith.constant dense<0.000000e+00> : vector<2x512xf32>
    %11 = tpu.matmul %8, %10, %cst_11 {dimension_numbers = #tpu.dot_dimension_numbers<[1], [0], [0], [1], [0, 0, 1, 1], [], []>} : vector<2x256xbf16>, vector<256x512xbf16>, vector<2x512xf32> -> vector<2x512xf32>
    %12 = arith.addf %6, %11 : vector<2x512xf32>
    %c0_12 = arith.constant 0 : index
    %c1_13 = arith.constant 1 : index
    %c0_14 = arith.constant 0 : index
    %13 = vector.load %arg1[%c0_12, %c1_13, %c0_14] : memref<1x3x256xbf16, #tpu.memory_space<vmem>>, vector<1x2x256xbf16>
    %14 = vector.shape_cast %13 : vector<1x2x256xbf16> to vector<2x256xbf16>
    %c2 = arith.constant 2 : index
    %c0_15 = arith.constant 0 : index
    %c0_16 = arith.constant 0 : index
    %15 = vector.load %arg3[%c2, %c0_15, %c0_16] : memref<3x256x512xbf16, #tpu.memory_space<vmem>>, vector<1x256x512xbf16>
    %16 = vector.shape_cast %15 : vector<1x256x512xbf16> to vector<256x512xbf16>
    %cst_17 = arith.constant dense<0.000000e+00> : vector<2x512xf32>
    %17 = tpu.matmul %14, %16, %cst_17 {dimension_numbers = #tpu.dot_dimension_numbers<[1], [0], [0], [1], [0, 0, 1, 1], [], []>} : vector<2x256xbf16>, vector<256x512xbf16>, vector<2x512xf32> -> vector<2x512xf32>
    %18 = arith.addf %12, %17 : vector<2x512xf32>
    %c0_18 = arith.constant 0 : index
    %c0_19 = arith.constant 0 : index
    %c0_20 = arith.constant 0 : index
    %19 = vector.load %arg4[%c0_18, %c0_19, %c0_20] : memref<1x2x512xf32, #tpu.memory_space<vmem>>, vector<1x2x512xf32>
    %20 = vector.shape_cast %19 : vector<1x2x512xf32> to vector<2x512xf32>
    %21 = vector.shape_cast %18 : vector<2x512xf32> to vector<1x2x512xf32>
    tpu.vector_store %arg4[%c0_18, %c0_19, %c0_20], %21 {strides = array<i32>} : memref<1x2x512xf32, #tpu.memory_space<vmem>>, vector<1x2x512xf32>,
    %cst_21 = arith.constant dense<0.000000e+00> : vector<512xf32>
    %22 = vector.multi_reduction <add>, %18, %cst_21 [0] : vector<2x512xf32> to vector<512xf32>
    %23 = vector.shape_cast %22 : vector<512xf32> to vector<1x512xf32>
    %c0_22 = arith.constant 0 : index
    %c0_23 = arith.constant 0 : index
    %c0_24 = arith.constant 0 : index
    %24 = vector.load %arg5[%c0_22, %c0_23, %c0_24] : memref<1x1x512xf32, #tpu.memory_space<vmem>>, vector<1x1x512xf32>
    %25 = vector.shape_cast %24 : vector<1x1x512xf32> to vector<1x512xf32>
    %26 = vector.shape_cast %23 : vector<1x512xf32> to vector<1x1x512xf32>
    tpu.vector_store %arg5[%c0_22, %c0_23, %c0_24], %26 {strides = array<i32>} : memref<1x1x512xf32, #tpu.memory_space<vmem>>, vector<1x1x512xf32>,
    %27 = arith.mulf %18, %18 : vector<2x512xf32>
    %cst_25 = arith.constant dense<0.000000e+00> : vector<512xf32>
    %28 = vector.multi_reduction <add>, %27, %cst_25 [0] : vector<2x512xf32> to vector<512xf32>
    %29 = vector.shape_cast %28 : vector<512xf32> to vector<1x512xf32>
    %c0_26 = arith.constant 0 : index
    %c0_27 = arith.constant 0 : index
    %c0_28 = arith.constant 0 : index
    %30 = vector.load %arg6[%c0_26, %c0_27, %c0_28] : memref<1x1x512xf32, #tpu.memory_space<vmem>>, vector<1x1x512xf32>
    %31 = vector.shape_cast %30 : vector<1x1x512xf32> to vector<1x512xf32>
    %32 = vector.shape_cast %29 : vector<1x512xf32> to vector<1x1x512xf32>
    tpu.vector_store %arg6[%c0_26, %c0_27, %c0_28], %32 {strides = array<i32>} : memref<1x1x512xf32, #tpu.memory_space<vmem>>, vector<1x1x512xf32>,
    return
  }
  func.func @transform_0(%arg0: i32) -> (i32, i32, i32) {
    %c0_i32 = arith.constant 0 : i32
    %c0_i32_0 = arith.constant 0 : i32
    %c0_i32_1 = arith.constant 0 : i32
    return %arg0, %c0_i32, %c0_i32_0 : i32, i32, i32
  }
  func.func @transform_1(%arg0: i32) -> (i32, i32, i32) {
    %c0_i32 = arith.constant 0 : i32
    %c0_i32_0 = arith.constant 0 : i32
    %c0_i32_1 = arith.constant 0 : i32
    return %arg0, %c0_i32, %c0_i32_0 : i32, i32, i32
  }
  func.func @transform_2(%arg0: i32) -> (i32, i32, i32) {
    %c0_i32 = arith.constant 0 : i32
    %c0_i32_0 = arith.constant 0 : i32
    %c0_i32_1 = arith.constant 0 : i32
    %c0_i32_2 = arith.constant 0 : i32
    return %c0_i32, %c0_i32_0, %c0_i32_1 : i32, i32, i32
  }
  func.func @transform_3(%arg0: i32) -> (i32, i32, i32) {
    %c0_i32 = arith.constant 0 : i32
    %c0_i32_0 = arith.constant 0 : i32
    %c0_i32_1 = arith.constant 0 : i32
    return %arg0, %c0_i32, %c0_i32_0 : i32, i32, i32
  }
  func.func @transform_4(%arg0: i32) -> (i32, i32, i32) {
    %c0_i32 = arith.constant 0 : i32
    %c0_i32_0 = arith.constant 0 : i32
    %c0_i32_1 = arith.constant 0 : i32
    return %arg0, %c0_i32, %c0_i32_0 : i32, i32, i32
  }
  func.func @transform_5(%arg0: i32) -> (i32, i32, i32) {
    %c0_i32 = arith.constant 0 : i32
    %c0_i32_0 = arith.constant 0 : i32
    %c0_i32_1 = arith.constant 0 : i32
    return %arg0, %c0_i32, %c0_i32_0 : i32, i32, i32
  }
}

module attributes {stable_mosaic.version = 11 : i64} {
  func.func @_bn_act_kernel(%arg0: i32, %arg1: memref<1x2x512xf32, #tpu.memory_space<vmem>>, %arg2: memref<1x512xf32, #tpu.memory_space<vmem>>, %arg3: memref<1x512xf32, #tpu.memory_space<vmem>>, %arg4: memref<1x2x512xbf16, #tpu.memory_space<vmem>>) attributes {dimension_semantics = [#tpu.dimension_semantics<parallel>], iteration_bounds = array<i64: 2>, scalar_prefetch = 0 : i64, scratch_operands = 0 : i64, tpu.core_type = #tpu.core_type<tc>, window_params = [{transform_indices = @transform_0, window_bounds = array<i64: 1, 2, 512>}, {pipeline_mode = #tpu.pipeline_mode<synchronous>, transform_indices = @transform_1, window_bounds = array<i64: 1, 512>}, {pipeline_mode = #tpu.pipeline_mode<synchronous>, transform_indices = @transform_2, window_bounds = array<i64: 1, 512>}, {transform_indices = @transform_3, window_bounds = array<i64: 1, 2, 512>}]} {
    %c0 = arith.constant 0 : index
    %c0_0 = arith.constant 0 : index
    %c0_1 = arith.constant 0 : index
    %0 = vector.load %arg1[%c0, %c0_0, %c0_1] : memref<1x2x512xf32, #tpu.memory_space<vmem>>, vector<1x2x512xf32>
    %1 = vector.shape_cast %0 : vector<1x2x512xf32> to vector<2x512xf32>
    %c0_2 = arith.constant 0 : index
    %c0_3 = arith.constant 0 : index
    %2 = vector.load %arg2[%c0_2, %c0_3] : memref<1x512xf32, #tpu.memory_space<vmem>>, vector<1x512xf32>
    %3 = vector.broadcast %2 : vector<1x512xf32> to vector<2x512xf32>
    %4 = arith.mulf %1, %3 : vector<2x512xf32>
    %c0_4 = arith.constant 0 : index
    %c0_5 = arith.constant 0 : index
    %5 = vector.load %arg3[%c0_4, %c0_5] : memref<1x512xf32, #tpu.memory_space<vmem>>, vector<1x512xf32>
    %6 = vector.broadcast %5 : vector<1x512xf32> to vector<2x512xf32>
    %7 = arith.addf %4, %6 : vector<2x512xf32>
    %cst = arith.constant 0.000000e+00 : f32
    %8 = vector.broadcast %cst : f32 to vector<2x512xf32>
    %9 = arith.maximumf %7, %8 : vector<2x512xf32>
    %10 = arith.truncf %9 : vector<2x512xf32> to vector<2x512xbf16>
    %c0_6 = arith.constant 0 : index
    %c0_7 = arith.constant 0 : index
    %c0_8 = arith.constant 0 : index
    %11 = vector.load %arg4[%c0_6, %c0_7, %c0_8] : memref<1x2x512xbf16, #tpu.memory_space<vmem>>, vector<1x2x512xbf16>
    %12 = vector.shape_cast %11 : vector<1x2x512xbf16> to vector<2x512xbf16>
    %13 = vector.shape_cast %10 : vector<2x512xbf16> to vector<1x2x512xbf16>
    tpu.vector_store %arg4[%c0_6, %c0_7, %c0_8], %13 {strides = array<i32>} : memref<1x2x512xbf16, #tpu.memory_space<vmem>>, vector<1x2x512xbf16>,
    return
  }
  func.func @transform_0(%arg0: i32) -> (i32, i32, i32) {
    %c0_i32 = arith.constant 0 : i32
    %c0_i32_0 = arith.constant 0 : i32
    %c0_i32_1 = arith.constant 0 : i32
    return %arg0, %c0_i32, %c0_i32_0 : i32, i32, i32
  }
  func.func @transform_1(%arg0: i32) -> (i32, i32) {
    %c0_i32 = arith.constant 0 : i32
    %c0_i32_0 = arith.constant 0 : i32
    %c0_i32_1 = arith.constant 0 : i32
    return %c0_i32, %c0_i32_0 : i32, i32
  }
  func.func @transform_2(%arg0: i32) -> (i32, i32) {
    %c0_i32 = arith.constant 0 : i32
    %c0_i32_0 = arith.constant 0 : i32
    %c0_i32_1 = arith.constant 0 : i32
    return %c0_i32, %c0_i32_0 : i32, i32
  }
  func.func @transform_3(%arg0: i32) -> (i32, i32, i32) {
    %c0_i32 = arith.constant 0 : i32
    %c0_i32_0 = arith.constant 0 : i32
    %c0_i32_1 = arith.constant 0 : i32
    return %arg0, %c0_i32, %c0_i32_0 : i32, i32, i32
  }
}

module attributes {stable_mosaic.version = 11 : i64} {
  func.func @_conv_stats_kernel(%arg0: i32, %arg1: memref<1x4x512xbf16, #tpu.memory_space<vmem>>, %arg2: memref<3x512x512xbf16, #tpu.memory_space<vmem>>, %arg3: memref<1x2x512xf32, #tpu.memory_space<vmem>>, %arg4: memref<1x1x512xf32, #tpu.memory_space<vmem>>, %arg5: memref<1x1x512xf32, #tpu.memory_space<vmem>>) attributes {dimension_semantics = [#tpu.dimension_semantics<parallel>], iteration_bounds = array<i64: 2>, scalar_prefetch = 0 : i64, scratch_operands = 0 : i64, tpu.core_type = #tpu.core_type<tc>, window_params = [{transform_indices = @transform_0, window_bounds = array<i64: 1, 4, 512>}, {pipeline_mode = #tpu.pipeline_mode<synchronous>, transform_indices = @transform_1, window_bounds = array<i64: 3, 512, 512>}, {transform_indices = @transform_2, window_bounds = array<i64: 1, 2, 512>}, {transform_indices = @transform_3, window_bounds = array<i64: 1, 1, 512>}, {transform_indices = @transform_4, window_bounds = array<i64: 1, 1, 512>}]} {
    %cst = arith.constant 0.000000e+00 : f32
    %0 = vector.broadcast %cst : f32 to vector<2x512xf32>
    %c0 = arith.constant 0 : index
    %c0_0 = arith.constant 0 : index
    %c0_1 = arith.constant 0 : index
    %1 = vector.load %arg1[%c0, %c0_0, %c0_1] : memref<1x4x512xbf16, #tpu.memory_space<vmem>>, vector<1x2x512xbf16>
    %2 = vector.shape_cast %1 : vector<1x2x512xbf16> to vector<2x512xbf16>
    %c0_2 = arith.constant 0 : index
    %c0_3 = arith.constant 0 : index
    %c0_4 = arith.constant 0 : index
    %3 = vector.load %arg2[%c0_2, %c0_3, %c0_4] : memref<3x512x512xbf16, #tpu.memory_space<vmem>>, vector<1x512x512xbf16>
    %4 = vector.shape_cast %3 : vector<1x512x512xbf16> to vector<512x512xbf16>
    %cst_5 = arith.constant dense<0.000000e+00> : vector<2x512xf32>
    %5 = tpu.matmul %2, %4, %cst_5 {dimension_numbers = #tpu.dot_dimension_numbers<[1], [0], [0], [1], [0, 0, 1, 1], [], []>} : vector<2x512xbf16>, vector<512x512xbf16>, vector<2x512xf32> -> vector<2x512xf32>
    %6 = arith.addf %0, %5 : vector<2x512xf32>
    %c0_6 = arith.constant 0 : index
    %c1 = arith.constant 1 : index
    %c0_7 = arith.constant 0 : index
    %7 = vector.load %arg1[%c0_6, %c1, %c0_7] : memref<1x4x512xbf16, #tpu.memory_space<vmem>>, vector<1x2x512xbf16>
    %8 = vector.shape_cast %7 : vector<1x2x512xbf16> to vector<2x512xbf16>
    %c1_8 = arith.constant 1 : index
    %c0_9 = arith.constant 0 : index
    %c0_10 = arith.constant 0 : index
    %9 = vector.load %arg2[%c1_8, %c0_9, %c0_10] : memref<3x512x512xbf16, #tpu.memory_space<vmem>>, vector<1x512x512xbf16>
    %10 = vector.shape_cast %9 : vector<1x512x512xbf16> to vector<512x512xbf16>
    %cst_11 = arith.constant dense<0.000000e+00> : vector<2x512xf32>
    %11 = tpu.matmul %8, %10, %cst_11 {dimension_numbers = #tpu.dot_dimension_numbers<[1], [0], [0], [1], [0, 0, 1, 1], [], []>} : vector<2x512xbf16>, vector<512x512xbf16>, vector<2x512xf32> -> vector<2x512xf32>
    %12 = arith.addf %6, %11 : vector<2x512xf32>
    %c0_12 = arith.constant 0 : index
    %c2 = arith.constant 2 : index
    %c0_13 = arith.constant 0 : index
    %13 = vector.load %arg1[%c0_12, %c2, %c0_13] : memref<1x4x512xbf16, #tpu.memory_space<vmem>>, vector<1x2x512xbf16>
    %14 = vector.shape_cast %13 : vector<1x2x512xbf16> to vector<2x512xbf16>
    %c2_14 = arith.constant 2 : index
    %c0_15 = arith.constant 0 : index
    %c0_16 = arith.constant 0 : index
    %15 = vector.load %arg2[%c2_14, %c0_15, %c0_16] : memref<3x512x512xbf16, #tpu.memory_space<vmem>>, vector<1x512x512xbf16>
    %16 = vector.shape_cast %15 : vector<1x512x512xbf16> to vector<512x512xbf16>
    %cst_17 = arith.constant dense<0.000000e+00> : vector<2x512xf32>
    %17 = tpu.matmul %14, %16, %cst_17 {dimension_numbers = #tpu.dot_dimension_numbers<[1], [0], [0], [1], [0, 0, 1, 1], [], []>} : vector<2x512xbf16>, vector<512x512xbf16>, vector<2x512xf32> -> vector<2x512xf32>
    %18 = arith.addf %12, %17 : vector<2x512xf32>
    %c0_18 = arith.constant 0 : index
    %c0_19 = arith.constant 0 : index
    %c0_20 = arith.constant 0 : index
    %19 = vector.load %arg3[%c0_18, %c0_19, %c0_20] : memref<1x2x512xf32, #tpu.memory_space<vmem>>, vector<1x2x512xf32>
    %20 = vector.shape_cast %19 : vector<1x2x512xf32> to vector<2x512xf32>
    %21 = vector.shape_cast %18 : vector<2x512xf32> to vector<1x2x512xf32>
    tpu.vector_store %arg3[%c0_18, %c0_19, %c0_20], %21 {strides = array<i32>} : memref<1x2x512xf32, #tpu.memory_space<vmem>>, vector<1x2x512xf32>,
    %cst_21 = arith.constant dense<0.000000e+00> : vector<512xf32>
    %22 = vector.multi_reduction <add>, %18, %cst_21 [0] : vector<2x512xf32> to vector<512xf32>
    %23 = vector.shape_cast %22 : vector<512xf32> to vector<1x512xf32>
    %c0_22 = arith.constant 0 : index
    %c0_23 = arith.constant 0 : index
    %c0_24 = arith.constant 0 : index
    %24 = vector.load %arg4[%c0_22, %c0_23, %c0_24] : memref<1x1x512xf32, #tpu.memory_space<vmem>>, vector<1x1x512xf32>
    %25 = vector.shape_cast %24 : vector<1x1x512xf32> to vector<1x512xf32>
    %26 = vector.shape_cast %23 : vector<1x512xf32> to vector<1x1x512xf32>
    tpu.vector_store %arg4[%c0_22, %c0_23, %c0_24], %26 {strides = array<i32>} : memref<1x1x512xf32, #tpu.memory_space<vmem>>, vector<1x1x512xf32>,
    %27 = arith.mulf %18, %18 : vector<2x512xf32>
    %cst_25 = arith.constant dense<0.000000e+00> : vector<512xf32>
    %28 = vector.multi_reduction <add>, %27, %cst_25 [0] : vector<2x512xf32> to vector<512xf32>
    %29 = vector.shape_cast %28 : vector<512xf32> to vector<1x512xf32>
    %c0_26 = arith.constant 0 : index
    %c0_27 = arith.constant 0 : index
    %c0_28 = arith.constant 0 : index
    %30 = vector.load %arg5[%c0_26, %c0_27, %c0_28] : memref<1x1x512xf32, #tpu.memory_space<vmem>>, vector<1x1x512xf32>
    %31 = vector.shape_cast %30 : vector<1x1x512xf32> to vector<1x512xf32>
    %32 = vector.shape_cast %29 : vector<1x512xf32> to vector<1x1x512xf32>
    tpu.vector_store %arg5[%c0_26, %c0_27, %c0_28], %32 {strides = array<i32>} : memref<1x1x512xf32, #tpu.memory_space<vmem>>, vector<1x1x512xf32>,
    return
  }
  func.func @transform_0(%arg0: i32) -> (i32, i32, i32) {
    %c0_i32 = arith.constant 0 : i32
    %c0_i32_0 = arith.constant 0 : i32
    %c0_i32_1 = arith.constant 0 : i32
    return %arg0, %c0_i32, %c0_i32_0 : i32, i32, i32
  }
  func.func @transform_1(%arg0: i32) -> (i32, i32, i32) {
    %c0_i32 = arith.constant 0 : i32
    %c0_i32_0 = arith.constant 0 : i32
    %c0_i32_1 = arith.constant 0 : i32
    %c0_i32_2 = arith.constant 0 : i32
    return %c0_i32, %c0_i32_0, %c0_i32_1 : i32, i32, i32
  }
  func.func @transform_2(%arg0: i32) -> (i32, i32, i32) {
    %c0_i32 = arith.constant 0 : i32
    %c0_i32_0 = arith.constant 0 : i32
    %c0_i32_1 = arith.constant 0 : i32
    return %arg0, %c0_i32, %c0_i32_0 : i32, i32, i32
  }
  func.func @transform_3(%arg0: i32) -> (i32, i32, i32) {
    %c0_i32 = arith.constant 0 : i32
    %c0_i32_0 = arith.constant 0 : i32
    %c0_i32_1 = arith.constant 0 : i32
    return %arg0, %c0_i32, %c0_i32_0 : i32, i32, i32
  }
  func.func @transform_4(%arg0: i32) -> (i32, i32, i32) {
    %c0_i32 = arith.constant 0 : i32
    %c0_i32_0 = arith.constant 0 : i32
    %c0_i32_1 = arith.constant 0 : i32
    return %arg0, %c0_i32, %c0_i32_0 : i32, i32, i32
  }
}

module attributes {stable_mosaic.version = 11 : i64} {
  func.func @_conv_stats_kernel(%arg0: i32, %arg1: memref<1x2x256xbf16, #tpu.memory_space<vmem>>, %arg2: memref<1x256x512xbf16, #tpu.memory_space<vmem>>, %arg3: memref<1x2x512xf32, #tpu.memory_space<vmem>>, %arg4: memref<1x1x512xf32, #tpu.memory_space<vmem>>, %arg5: memref<1x1x512xf32, #tpu.memory_space<vmem>>) attributes {dimension_semantics = [#tpu.dimension_semantics<parallel>], iteration_bounds = array<i64: 2>, scalar_prefetch = 0 : i64, scratch_operands = 0 : i64, tpu.core_type = #tpu.core_type<tc>, window_params = [{transform_indices = @transform_0, window_bounds = array<i64: 1, 2, 256>}, {pipeline_mode = #tpu.pipeline_mode<synchronous>, transform_indices = @transform_1, window_bounds = array<i64: 1, 256, 512>}, {transform_indices = @transform_2, window_bounds = array<i64: 1, 2, 512>}, {transform_indices = @transform_3, window_bounds = array<i64: 1, 1, 512>}, {transform_indices = @transform_4, window_bounds = array<i64: 1, 1, 512>}]} {
    %cst = arith.constant 0.000000e+00 : f32
    %0 = vector.broadcast %cst : f32 to vector<2x512xf32>
    %c0 = arith.constant 0 : index
    %c0_0 = arith.constant 0 : index
    %c0_1 = arith.constant 0 : index
    %1 = vector.load %arg1[%c0, %c0_0, %c0_1] : memref<1x2x256xbf16, #tpu.memory_space<vmem>>, vector<1x2x256xbf16>
    %2 = vector.shape_cast %1 : vector<1x2x256xbf16> to vector<2x256xbf16>
    %c0_2 = arith.constant 0 : index
    %c0_3 = arith.constant 0 : index
    %c0_4 = arith.constant 0 : index
    %3 = vector.load %arg2[%c0_2, %c0_3, %c0_4] : memref<1x256x512xbf16, #tpu.memory_space<vmem>>, vector<1x256x512xbf16>
    %4 = vector.shape_cast %3 : vector<1x256x512xbf16> to vector<256x512xbf16>
    %cst_5 = arith.constant dense<0.000000e+00> : vector<2x512xf32>
    %5 = tpu.matmul %2, %4, %cst_5 {dimension_numbers = #tpu.dot_dimension_numbers<[1], [0], [0], [1], [0, 0, 1, 1], [], []>} : vector<2x256xbf16>, vector<256x512xbf16>, vector<2x512xf32> -> vector<2x512xf32>
    %6 = arith.addf %0, %5 : vector<2x512xf32>
    %c0_6 = arith.constant 0 : index
    %c0_7 = arith.constant 0 : index
    %c0_8 = arith.constant 0 : index
    %7 = vector.load %arg3[%c0_6, %c0_7, %c0_8] : memref<1x2x512xf32, #tpu.memory_space<vmem>>, vector<1x2x512xf32>
    %8 = vector.shape_cast %7 : vector<1x2x512xf32> to vector<2x512xf32>
    %9 = vector.shape_cast %6 : vector<2x512xf32> to vector<1x2x512xf32>
    tpu.vector_store %arg3[%c0_6, %c0_7, %c0_8], %9 {strides = array<i32>} : memref<1x2x512xf32, #tpu.memory_space<vmem>>, vector<1x2x512xf32>,
    %cst_9 = arith.constant dense<0.000000e+00> : vector<512xf32>
    %10 = vector.multi_reduction <add>, %6, %cst_9 [0] : vector<2x512xf32> to vector<512xf32>
    %11 = vector.shape_cast %10 : vector<512xf32> to vector<1x512xf32>
    %c0_10 = arith.constant 0 : index
    %c0_11 = arith.constant 0 : index
    %c0_12 = arith.constant 0 : index
    %12 = vector.load %arg4[%c0_10, %c0_11, %c0_12] : memref<1x1x512xf32, #tpu.memory_space<vmem>>, vector<1x1x512xf32>
    %13 = vector.shape_cast %12 : vector<1x1x512xf32> to vector<1x512xf32>
    %14 = vector.shape_cast %11 : vector<1x512xf32> to vector<1x1x512xf32>
    tpu.vector_store %arg4[%c0_10, %c0_11, %c0_12], %14 {strides = array<i32>} : memref<1x1x512xf32, #tpu.memory_space<vmem>>, vector<1x1x512xf32>,
    %15 = arith.mulf %6, %6 : vector<2x512xf32>
    %cst_13 = arith.constant dense<0.000000e+00> : vector<512xf32>
    %16 = vector.multi_reduction <add>, %15, %cst_13 [0] : vector<2x512xf32> to vector<512xf32>
    %17 = vector.shape_cast %16 : vector<512xf32> to vector<1x512xf32>
    %c0_14 = arith.constant 0 : index
    %c0_15 = arith.constant 0 : index
    %c0_16 = arith.constant 0 : index
    %18 = vector.load %arg5[%c0_14, %c0_15, %c0_16] : memref<1x1x512xf32, #tpu.memory_space<vmem>>, vector<1x1x512xf32>
    %19 = vector.shape_cast %18 : vector<1x1x512xf32> to vector<1x512xf32>
    %20 = vector.shape_cast %17 : vector<1x512xf32> to vector<1x1x512xf32>
    tpu.vector_store %arg5[%c0_14, %c0_15, %c0_16], %20 {strides = array<i32>} : memref<1x1x512xf32, #tpu.memory_space<vmem>>, vector<1x1x512xf32>,
    return
  }
  func.func @transform_0(%arg0: i32) -> (i32, i32, i32) {
    %c0_i32 = arith.constant 0 : i32
    %c0_i32_0 = arith.constant 0 : i32
    %c0_i32_1 = arith.constant 0 : i32
    return %arg0, %c0_i32, %c0_i32_0 : i32, i32, i32
  }
  func.func @transform_1(%arg0: i32) -> (i32, i32, i32) {
    %c0_i32 = arith.constant 0 : i32
    %c0_i32_0 = arith.constant 0 : i32
    %c0_i32_1 = arith.constant 0 : i32
    %c0_i32_2 = arith.constant 0 : i32
    return %c0_i32, %c0_i32_0, %c0_i32_1 : i32, i32, i32
  }
  func.func @transform_2(%arg0: i32) -> (i32, i32, i32) {
    %c0_i32 = arith.constant 0 : i32
    %c0_i32_0 = arith.constant 0 : i32
    %c0_i32_1 = arith.constant 0 : i32
    return %arg0, %c0_i32, %c0_i32_0 : i32, i32, i32
  }
  func.func @transform_3(%arg0: i32) -> (i32, i32, i32) {
    %c0_i32 = arith.constant 0 : i32
    %c0_i32_0 = arith.constant 0 : i32
    %c0_i32_1 = arith.constant 0 : i32
    return %arg0, %c0_i32, %c0_i32_0 : i32, i32, i32
  }
  func.func @transform_4(%arg0: i32) -> (i32, i32, i32) {
    %c0_i32 = arith.constant 0 : i32
    %c0_i32_0 = arith.constant 0 : i32
    %c0_i32_1 = arith.constant 0 : i32
    return %arg0, %c0_i32, %c0_i32_0 : i32, i32, i32
  }
}

module attributes {stable_mosaic.version = 11 : i64} {
  func.func @_bn_act_kernel(%arg0: i32, %arg1: memref<1x2x512xf32, #tpu.memory_space<vmem>>, %arg2: memref<1x512xf32, #tpu.memory_space<vmem>>, %arg3: memref<1x512xf32, #tpu.memory_space<vmem>>, %arg4: memref<1x2x512xbf16, #tpu.memory_space<vmem>>) attributes {dimension_semantics = [#tpu.dimension_semantics<parallel>], iteration_bounds = array<i64: 2>, scalar_prefetch = 0 : i64, scratch_operands = 0 : i64, tpu.core_type = #tpu.core_type<tc>, window_params = [{transform_indices = @transform_0, window_bounds = array<i64: 1, 2, 512>}, {pipeline_mode = #tpu.pipeline_mode<synchronous>, transform_indices = @transform_1, window_bounds = array<i64: 1, 512>}, {pipeline_mode = #tpu.pipeline_mode<synchronous>, transform_indices = @transform_2, window_bounds = array<i64: 1, 512>}, {transform_indices = @transform_3, window_bounds = array<i64: 1, 2, 512>}]} {
    %c0 = arith.constant 0 : index
    %c0_0 = arith.constant 0 : index
    %c0_1 = arith.constant 0 : index
    %0 = vector.load %arg1[%c0, %c0_0, %c0_1] : memref<1x2x512xf32, #tpu.memory_space<vmem>>, vector<1x2x512xf32>
    %1 = vector.shape_cast %0 : vector<1x2x512xf32> to vector<2x512xf32>
    %c0_2 = arith.constant 0 : index
    %c0_3 = arith.constant 0 : index
    %2 = vector.load %arg2[%c0_2, %c0_3] : memref<1x512xf32, #tpu.memory_space<vmem>>, vector<1x512xf32>
    %3 = vector.broadcast %2 : vector<1x512xf32> to vector<2x512xf32>
    %4 = arith.mulf %1, %3 : vector<2x512xf32>
    %c0_4 = arith.constant 0 : index
    %c0_5 = arith.constant 0 : index
    %5 = vector.load %arg3[%c0_4, %c0_5] : memref<1x512xf32, #tpu.memory_space<vmem>>, vector<1x512xf32>
    %6 = vector.broadcast %5 : vector<1x512xf32> to vector<2x512xf32>
    %7 = arith.addf %4, %6 : vector<2x512xf32>
    %8 = arith.truncf %7 : vector<2x512xf32> to vector<2x512xbf16>
    %c0_6 = arith.constant 0 : index
    %c0_7 = arith.constant 0 : index
    %c0_8 = arith.constant 0 : index
    %9 = vector.load %arg4[%c0_6, %c0_7, %c0_8] : memref<1x2x512xbf16, #tpu.memory_space<vmem>>, vector<1x2x512xbf16>
    %10 = vector.shape_cast %9 : vector<1x2x512xbf16> to vector<2x512xbf16>
    %11 = vector.shape_cast %8 : vector<2x512xbf16> to vector<1x2x512xbf16>
    tpu.vector_store %arg4[%c0_6, %c0_7, %c0_8], %11 {strides = array<i32>} : memref<1x2x512xbf16, #tpu.memory_space<vmem>>, vector<1x2x512xbf16>,
    return
  }
  func.func @transform_0(%arg0: i32) -> (i32, i32, i32) {
    %c0_i32 = arith.constant 0 : i32
    %c0_i32_0 = arith.constant 0 : i32
    %c0_i32_1 = arith.constant 0 : i32
    return %arg0, %c0_i32, %c0_i32_0 : i32, i32, i32
  }
  func.func @transform_1(%arg0: i32) -> (i32, i32) {
    %c0_i32 = arith.constant 0 : i32
    %c0_i32_0 = arith.constant 0 : i32
    %c0_i32_1 = arith.constant 0 : i32
    return %c0_i32, %c0_i32_0 : i32, i32
  }
  func.func @transform_2(%arg0: i32) -> (i32, i32) {
    %c0_i32 = arith.constant 0 : i32
    %c0_i32_0 = arith.constant 0 : i32
    %c0_i32_1 = arith.constant 0 : i32
    return %c0_i32, %c0_i32_0 : i32, i32
  }
  func.func @transform_3(%arg0: i32) -> (i32, i32, i32) {
    %c0_i32 = arith.constant 0 : i32
    %c0_i32_0 = arith.constant 0 : i32
    %c0_i32_1 = arith.constant 0 : i32
    return %arg0, %c0_i32, %c0_i32_0 : i32, i32, i32
  }
}

module attributes {stable_mosaic.version = 11 : i64} {
  func.func @_bn_act_kernel(%arg0: i32, %arg1: memref<1x2x512xf32, #tpu.memory_space<vmem>>, %arg2: memref<1x512xf32, #tpu.memory_space<vmem>>, %arg3: memref<1x512xf32, #tpu.memory_space<vmem>>, %arg4: memref<1x2x512xbf16, #tpu.memory_space<vmem>>, %arg5: memref<1x2x512xbf16, #tpu.memory_space<vmem>>) attributes {dimension_semantics = [#tpu.dimension_semantics<parallel>], iteration_bounds = array<i64: 2>, scalar_prefetch = 0 : i64, scratch_operands = 0 : i64, tpu.core_type = #tpu.core_type<tc>, window_params = [{transform_indices = @transform_0, window_bounds = array<i64: 1, 2, 512>}, {pipeline_mode = #tpu.pipeline_mode<synchronous>, transform_indices = @transform_1, window_bounds = array<i64: 1, 512>}, {pipeline_mode = #tpu.pipeline_mode<synchronous>, transform_indices = @transform_2, window_bounds = array<i64: 1, 512>}, {transform_indices = @transform_3, window_bounds = array<i64: 1, 2, 512>}, {transform_indices = @transform_4, window_bounds = array<i64: 1, 2, 512>}]} {
    %c0 = arith.constant 0 : index
    %c0_0 = arith.constant 0 : index
    %c0_1 = arith.constant 0 : index
    %0 = vector.load %arg1[%c0, %c0_0, %c0_1] : memref<1x2x512xf32, #tpu.memory_space<vmem>>, vector<1x2x512xf32>
    %1 = vector.shape_cast %0 : vector<1x2x512xf32> to vector<2x512xf32>
    %c0_2 = arith.constant 0 : index
    %c0_3 = arith.constant 0 : index
    %2 = vector.load %arg2[%c0_2, %c0_3] : memref<1x512xf32, #tpu.memory_space<vmem>>, vector<1x512xf32>
    %3 = vector.broadcast %2 : vector<1x512xf32> to vector<2x512xf32>
    %4 = arith.mulf %1, %3 : vector<2x512xf32>
    %c0_4 = arith.constant 0 : index
    %c0_5 = arith.constant 0 : index
    %5 = vector.load %arg3[%c0_4, %c0_5] : memref<1x512xf32, #tpu.memory_space<vmem>>, vector<1x512xf32>
    %6 = vector.broadcast %5 : vector<1x512xf32> to vector<2x512xf32>
    %7 = arith.addf %4, %6 : vector<2x512xf32>
    %c0_6 = arith.constant 0 : index
    %c0_7 = arith.constant 0 : index
    %c0_8 = arith.constant 0 : index
    %8 = vector.load %arg4[%c0_6, %c0_7, %c0_8] : memref<1x2x512xbf16, #tpu.memory_space<vmem>>, vector<1x2x512xbf16>
    %9 = vector.shape_cast %8 : vector<1x2x512xbf16> to vector<2x512xbf16>
    %10 = arith.extf %9 : vector<2x512xbf16> to vector<2x512xf32>
    %11 = arith.addf %7, %10 : vector<2x512xf32>
    %cst = arith.constant 0.000000e+00 : f32
    %12 = vector.broadcast %cst : f32 to vector<2x512xf32>
    %13 = arith.maximumf %11, %12 : vector<2x512xf32>
    %14 = arith.truncf %13 : vector<2x512xf32> to vector<2x512xbf16>
    %c0_9 = arith.constant 0 : index
    %c0_10 = arith.constant 0 : index
    %c0_11 = arith.constant 0 : index
    %15 = vector.load %arg5[%c0_9, %c0_10, %c0_11] : memref<1x2x512xbf16, #tpu.memory_space<vmem>>, vector<1x2x512xbf16>
    %16 = vector.shape_cast %15 : vector<1x2x512xbf16> to vector<2x512xbf16>
    %17 = vector.shape_cast %14 : vector<2x512xbf16> to vector<1x2x512xbf16>
    tpu.vector_store %arg5[%c0_9, %c0_10, %c0_11], %17 {strides = array<i32>} : memref<1x2x512xbf16, #tpu.memory_space<vmem>>, vector<1x2x512xbf16>,
    return
  }
  func.func @transform_0(%arg0: i32) -> (i32, i32, i32) {
    %c0_i32 = arith.constant 0 : i32
    %c0_i32_0 = arith.constant 0 : i32
    %c0_i32_1 = arith.constant 0 : i32
    return %arg0, %c0_i32, %c0_i32_0 : i32, i32, i32
  }
  func.func @transform_1(%arg0: i32) -> (i32, i32) {
    %c0_i32 = arith.constant 0 : i32
    %c0_i32_0 = arith.constant 0 : i32
    %c0_i32_1 = arith.constant 0 : i32
    return %c0_i32, %c0_i32_0 : i32, i32
  }
  func.func @transform_2(%arg0: i32) -> (i32, i32) {
    %c0_i32 = arith.constant 0 : i32
    %c0_i32_0 = arith.constant 0 : i32
    %c0_i32_1 = arith.constant 0 : i32
    return %c0_i32, %c0_i32_0 : i32, i32
  }
  func.func @transform_3(%arg0: i32) -> (i32, i32, i32) {
    %c0_i32 = arith.constant 0 : i32
    %c0_i32_0 = arith.constant 0 : i32
    %c0_i32_1 = arith.constant 0 : i32
    return %arg0, %c0_i32, %c0_i32_0 : i32, i32, i32
  }
  func.func @transform_4(%arg0: i32) -> (i32, i32, i32) {
    %c0_i32 = arith.constant 0 : i32
    %c0_i32_0 = arith.constant 0 : i32
    %c0_i32_1 = arith.constant 0 : i32
    return %arg0, %c0_i32, %c0_i32_0 : i32, i32, i32
  }
}

module attributes {stable_mosaic.version = 11 : i64} {
  func.func @_head_kernel(%arg0: memref<2x2x512xbf16, #tpu.memory_space<vmem>>, %arg1: memref<512x10xf32, #tpu.memory_space<vmem>>, %arg2: memref<1x10xf32, #tpu.memory_space<vmem>>, %arg3: memref<2x10xf32, #tpu.memory_space<vmem>>) attributes {dimension_semantics = [], scalar_prefetch = 0 : i64, scratch_operands = 0 : i64, tpu.core_type = #tpu.core_type<tc>} {
    %c0 = arith.constant 0 : index
    %c0_0 = arith.constant 0 : index
    %c0_1 = arith.constant 0 : index
    %0 = vector.load %arg0[%c0, %c0_0, %c0_1] : memref<2x2x512xbf16, #tpu.memory_space<vmem>>, vector<2x2x512xbf16>
    %1 = arith.extf %0 : vector<2x2x512xbf16> to vector<2x2x512xf32>
    %cst = arith.constant dense<0.000000e+00> : vector<2x512xf32>
    %2 = vector.multi_reduction <add>, %1, %cst [1] : vector<2x2x512xf32> to vector<2x512xf32>
    %cst_2 = arith.constant 2.000000e+00 : f32
    %3 = vector.broadcast %cst_2 : f32 to vector<2x512xf32>
    %4 = arith.divf %2, %3 : vector<2x512xf32>
    %c0_3 = arith.constant 0 : index
    %c0_4 = arith.constant 0 : index
    %5 = vector.load %arg1[%c0_3, %c0_4] : memref<512x10xf32, #tpu.memory_space<vmem>>, vector<512x10xf32>
    %cst_5 = arith.constant dense<0.000000e+00> : vector<2x10xf32>
    %6 = tpu.matmul %4, %5, %cst_5 {dimension_numbers = #tpu.dot_dimension_numbers<[1], [0], [0], [1], [0, 0, 1, 1], [], []>} : vector<2x512xf32>, vector<512x10xf32>, vector<2x10xf32> -> vector<2x10xf32>
    %c0_6 = arith.constant 0 : index
    %c0_7 = arith.constant 0 : index
    %7 = vector.load %arg2[%c0_6, %c0_7] : memref<1x10xf32, #tpu.memory_space<vmem>>, vector<1x10xf32>
    %8 = vector.broadcast %7 : vector<1x10xf32> to vector<2x10xf32>
    %9 = arith.addf %6, %8 : vector<2x10xf32>
    %c0_8 = arith.constant 0 : index
    %c0_9 = arith.constant 0 : index
    %10 = vector.load %arg3[%c0_8, %c0_9] : memref<2x10xf32, #tpu.memory_space<vmem>>, vector<2x10xf32>
    tpu.vector_store %arg3[%c0_8, %c0_9], %9 {strides = array<i32>} : memref<2x10xf32, #tpu.memory_space<vmem>>, vector<2x10xf32>,
    return
  }
}

</mosaic_0001>

<bundles_post_ra>
// kernel: resnet_forward.27
= control target key start
LH: loop header
LB: loop body
LE: loop exit
PB: predicated region body
PF: predicated region fallthrough
CT: control target
= control target key end

     0   :  { %s346_s12 = smov 0   ;;  %s369_s0 = inlined_call_operand.vmem [shape: f32[2,32,128], index: 0, kind: input, shape index: {}]   ;;  %s370_s1 = inlined_call_operand.vmem [shape: f32[1,128], index: 1, kind: input, shape index: {}]   ;;  %s371_s2 = inlined_call_operand.vmem [shape: f32[1,128], index: 2, kind: input, shape index: {}]   ;;  %s372_s3 = inlined_call_operand.vmem [shape: bf16[2,32,128], index: 3, kind: output, shape index: {}]  }
   0x1 LB: > { %s276_s13 = sadd.s32 4294967295, %s324_s12   ;;  %p280_p0 = scmp.ge.s32.totalorder %s324_s12, 1  ;;  %s324_s12 = sphi %s346_s12, %s13_s12  }
   0x2   : > { %p137_p1 = scmp.lt.s32.totalorder %s324_s12, 3 }
   0x4   : > { %p138_p2 = pnand %p280_p0, %p137_p1 }
   0x5   : > { %p161_p3 = scmp.lt.s32.totalorder (!%p138_p2), %s276_s13, 1 }
   0x6   : > { %141 = sbr.rel (%p138_p2) target bundleno = 25 (0x19), region = 32 }
   0xb   : > { %s374_s13 = smov (!%p161_p3, %s276_s13), 1  ;;  %v285_v0 = vld [vmem:[%s370_s1] ss:$0 sm:$0xff] }
   0xc   : > { %s293_s14 = sshll.u32 %s374_s13, 5  ;;  %v286_v1 = vld [vmem:[%s371_s2] ss:$0 sm:$0xff]  ;;  %s294_s22 = sshll.u32 %s374_s13, 4 }
   0xd   : > { %s165_s19 = scalar_lea.vmem %s369_s0, %s293_s14  ;;  %s170_s25 = scalar_lea.vmem %s372_s3, %s294_s22 }
   0xe   : > { %v171_v2 = vld [vmem:[%s165_s19] sm:$0xff]  ;;  %v172_v3 = vld [vmem:[%s165_s19 + $0x8] sm:$0xff]  ;;  %v173_v4 = vld [vmem:[%s165_s19 + $0x10] sm:$0xff] }
   0xf   : > { %v182_v5 = vmul.f32 %v285_v0, %v171_v2  ;;  %v183_v6 = vmul.f32 %v285_v0, %v172_v3  ;;  %v174_v7 = vld [vmem:[%s165_s19 + $0x18] sm:$0xff]  ;;  %v184_v8 = vmul.f32 %v285_v0, %v173_v4 }
  0x10   : > { %v185_v9 = vmul.f32 %v285_v0, %v174_v7 }
  0x11   : > { %v193_v10 = vadd.f32 %v286_v1, %v182_v5  ;;  %v194_v11 = vadd.f32 %v286_v1, %v183_v6  ;;  %v195_v12 = vadd.f32 %v286_v1, %v184_v8 }
  0x12   : > { %v196_v13 = vadd.f32 %v286_v1, %v185_v9 }
  0x13   : > { %v197_v14 = vmax.f32 %v193_v10, 0.0  ;;  %v198_v15 = vmax.f32 %v194_v11, 0.0  ;;  %v199_v16 = vmax.f32 %v195_v12, 0.0 }
  0x14   : > { %v200_v17 = vmax.f32 %v196_v13, 0.0 }
  0x15   : > { %v302_v18 = vpack.c.bf16 %v198_v15, %v197_v14 }
  0x16   : > { %v307_v19 = vpack.c.bf16 %v200_v17, %v199_v16 }
  0x17   : > { %303 = vst [vmem:[%s170_s25] sm:$0xff] %v302_v18  }
  0x18   : > { %309 = vst [vmem:[%s170_s25 + $0x8] sm:$0xff] %v307_v19  }
  0x19 PF: > { %s13_s12 = sadd.s32 1, %s324_s12  }
  0x1a   : > { %p10_p4 = scmp.ge.s32.totalorder %s13_s12, 4  }
  0x1c   :  { %12 = sbr.rel (!%p10_p4) target bundleno = 1 (0x1), region = 62 }

// kernel: resnet_forward.28
= control target key start
LH: loop header
LB: loop body
LE: loop exit
PB: predicated region body
PF: predicated region fallthrough
CT: control target
= control target key end

     0   :  { %s321_s9 = smov 0   ;;  %s345_s0 = inlined_call_operand.vmem [shape: bf16[2,17,128], index: 0, kind: input, shape index: {}]   ;;  %s346_s1 = inlined_call_operand.vmem [shape: bf16[2,17,128], index: 1, kind: input, shape index: {}]   ;;  %s347_s2 = inlined_call_operand.vmem [shape: bf16[2,16,128], index: 2, kind: output, shape index: {}]  }
   0x1 LB: > { %s271_s10 = sadd.s32 4294967295, %s304_s9   ;;  %p275_p0 = scmp.ge.s32.totalorder %s304_s9, 1  ;;  %s304_s9 = sphi %s321_s9, %s12_s9  }
   0x2   : > { %p122_p1 = scmp.lt.s32.totalorder %s304_s9, 3 }
   0x4   : > { %p123_p2 = pnand %p275_p0, %p122_p1 }
   0x5   : > { %p149_p3 = scmp.lt.s32.totalorder (!%p123_p2), %s271_s10, 1 }
   0x6   : > { %126 = sbr.rel (%p123_p2) target bundleno = 30 (0x1e), region = 28 }
   0xb   : > { %s349_s10 = smov (!%p149_p3, %s271_s10), 1  ;;  %vm171_vm0 = vsmask.f32 3328  ;;  %vm172_vm1 = vsmask.f32 7440 }
   0xc   : > { %s289_s11 = smul.u32 12, %s349_s10  ;;  %vm173_vm2 = vmor %vm171_vm0, %vm172_vm1  ;;  %s282_s18 = sshll.u32 %s349_s10, 3 }
   0xd   : > { %s163_s21 = scalar_lea.vmem %s347_s2, %s282_s18 }
   0xe   : > { %s153_s14 = scalar_lea.vmem %s345_s0, %s289_s11  ;;  %s158_s17 = scalar_lea.vmem %s346_s1, %s289_s11 }
   0xf   : > { %v164_v0 = vld [vmem:[%s153_s14] sm:$0xf]  ;;  %v165_v1 = vld [vmem:[%s153_s14 + $0x4] sm:$0xf]  ;;  %v168_v2 = vld [vmem:[%s153_s14 + $0x8] sm:$0x1] }
  0x10   : > { %v175_v3 = vshrl.u32 %v164_v0, 16  ;;  %v178_v4 = vshll.u32 %v164_v0, 16  ;;  %v184_v5 = vshll.u32 %v165_v1, 16  ;;  %v188_v6 = vshrl.u32 %v165_v1, 16  ;;  %v166_v8 = vld [vmem:[%s158_s17] sm:$0xf] }
  0x11   : > { %v194_v7 = vshll.u32 %v168_v2, 16  ;;  %v167_v11 = vld [vmem:[%s158_s17 + $0x4] sm:$0xf]  ;;  %v169_v15 = vmax.bf16 %v166_v8, %v164_v0 }
  0x12   : > { %v177_v9 = vrot.slane %v175_v3, 4  ;;  %v180_v10 = vrot.slane %v178_v4, 5  ;;  %v186_v12 = vrot.slane %v184_v5, 5  ;;  %v190_v13 = vrot.slane %v188_v6, 4 }
  0x13   : > { %v196_v17 = vrot.slane %v194_v7, 5  ;;  %v170_v18 = vmax.bf16 %v167_v11, %v165_v1 }
  0x14   : > { %v181_v14 = vor.u32 %v180_v10, %v177_v9  ;;  %v191_v16 = vor.u32 %v190_v13, %v186_v12 }
  0x16   : > { %v182_v19 = vrot.slane %v181_v14, 4  ;;  %v192_v20 = vrot.slane %v191_v16, 4 }
  0x18   : > { %v187_v21 = vsel %vm173_vm2, %v182_v19, %v186_v12  ;;  %v197_v22 = vsel %vm173_vm2, %v192_v20, %v196_v17 }
  0x19   : > { %v200_v23 = vmax.bf16 %v187_v21, %v169_v15  ;;  %v201_v24 = vmax.bf16 %v197_v22, %v170_v18 }
  0x1b   : > { %v288_v25 = vcombine.low %v200_v23, %v201_v24 }
  0x1d   : > { %287 = vst [vmem:[%s163_s21] sm:$0xff] %v288_v25  }
  0x1e PF: > { %s12_s9 = sadd.s32 1, %s304_s9  }
  0x1f   : > { %p9_p4 = scmp.ge.s32.totalorder %s12_s9, 4  }
  0x21   :  { %11 = sbr.rel (!%p9_p4) target bundleno = 1 (0x1), region = 61 }

// kernel: resnet_forward.26
= control target key start
LH: loop header
LB: loop body
LE: loop exit
PB: predicated region body
PF: predicated region fallthrough
CT: control target
= control target key end

     0   :  { %11 = vsyncpa [#allocation3], 0  ;;  %s1243_s18 = smov 0   ;;  %s1358_s0 = inlined_call_operand.vmem [shape: bf16[2,35,8], index: 0, kind: input, shape index: {}]   ;;  %s1359_s1 = inlined_call_operand.vmem [shape: bf16[2,35,8], index: 1, kind: input, shape index: {}]   ;;  %s1360_s2 = inlined_call_operand.hbm [shape: bf16[7,8,128], index: 2, kind: input, shape index: {}]   ;;  %s1361_s3 = inlined_call_operand.vmem [shape: f32[2,32,128], index: 3, kind: output, shape index: {0}]   ;;  %s1362_s4 = inlined_call_operand.vmem [shape: f32[2,1,128], index: 4, kind: output, shape index: {1}]   ;;  %s1363_s5 = inlined_call_operand.vmem [shape: f32[2,1,128], index: 5, kind: output, shape index: {2}]  }
   0x1 LB: > { %s1026_s19 = sadd.s32 4294967295, %s1208_s18   ;;  %p1028_p0 = scmp.ge.s32.totalorder %s1208_s18, 1  ;;  %s1208_s18 = sphi %s1243_s18, %s17_s18  }
   0x2   : > { %p173_p1 = scmp.lt.s32.totalorder %s1208_s18, 3  ;;  %s1210_s20 = smov [#allocation2]  }
   0x3   : > { %s185_s21 = sshll.u32 %s1210_s20, 4  ;;  %p1146_p3 = scmp.eq.s32.totalorder %s1026_s19, 0  ;;  %s186_s21 = int_to_ptr.vmem [resolvable:$true] %s185_s21 }
   0x4   : > { %p1251_p2 = pnand %p1028_p0, %p173_p1  ;;  %s1183_s23 = scalar_lea.vmem %s186_s21, 448 }
   0x5   : > { %p1184_p7 = scmp.ne.s32.totalorder %s186_s21, %s1183_s23  ;;  %p1191_p10 = scmp.lt.s32.totalorder %s186_s21, %s186_s21 }
   0x6   : > { %p1142_p4 = pneg %p1251_p2  ;;  %p1192_p11 = scmp.lt.s32.totalorder %s1183_s23, %s1183_s23 }
   0x8   : > { %p1143_p5 = pnand %p1146_p3, %p1142_p4  ;;  %p1193_p12 = por %p1192_p11, %p1191_p10 }
   0xa   : > { %p1174_p6 = pneg %p1143_p5 }
   0xc   : > { %p1186_p8 = pnand %p1184_p7, %p1174_p6 }
   0xe   : > { %p1187_p9 = pneg %p1186_p8 }
  0x10   : > { %p1194_p13 = pnand %p1193_p12, %p1187_p9 }
  0x12   : > { %1197 = shalt.err (!%p1194_p13)
}
  0x13   : > { %s1211_s24 = smov 64   ;;  %s1212_s25 = smov 4  }
  0x14   : > { %1145 = dma.hbm_to_vmem [thread:$0]  (!%p1143_p5), %s1360_s2, 448, %s186_s21, [#allocation3], %s1211_s24, %s1211_s24, %s1212_s25  }
  0x15   : > { %217 = sbr.rel (%p1251_p2) target bundleno = 284 (0x11c), region = 32 }
  0x1a   : > { %1203 = dma.done.wait (%p1146_p3), [#allocation3], 448  }
  0x1b   : > { %1205 = vsyncadd (%p1146_p3), [#allocation3], 4294966848  ;;  %p256_p0 = scmp.lt.s32.totalorder %s1026_s19, 1  ;;  %vm306_vm0 = vcmask 1043456   ;;  %vm299_vm1 = vcmask 64512   ;;  %vm638_vm3 = vcmask 1046528  }
  0x1c   : > { %v288_v0 = vld [vmem:[#allocation2 + $0x4] sm:$0xf]  ;;  %v282_v1 = vld [vmem:[#allocation2] sm:$0xf]  ;;  %vm447_vm2 = vsmask.f32 7424 }
  0x1d   : > { %s1366_s19 = smov (!%p256_p0, %s1026_s19), 1  ;;  %1130 = vmatprep.subr.msk.bf16.mxu0 %vm306_vm0, %v288_v0  ;;  %1131 = vmatprep.subr.msk.bf16.mxu1 %vm306_vm0, %v282_v1  ;;  %v308_v2 = vsel %vm306_vm0, %v288_v0, 0  ;;  %v376_v3 = vsel %vm306_vm0, %v282_v1, 0  ;;  %v433_v8 = vld [vmem:[#allocation2 + $0x8] sm:$0xf] }
  0x1e   : > { %s1137_s28 = smul.u32 20, %s1366_s19  ;;  %1089 = vmatpush3.bf16.msra.mxu0 %v308_v2  ;;  %1095 = vmatpush3.bf16.msra.mxu1 %v376_v3  ;;  %v475_v9 = vsel %vm306_vm0, %v433_v8, 0  ;;  %v536_v10 = vld [vmem:[#allocation2 + $0xc] sm:$0xf]  ;;  %v634_v32 = vld [vmem:[#allocation2 + $0x10] sm:$0xf]  ;;  %s273_s16 = scalar_lea.vmem %s1362_s4, %s1366_s19 }
  0x1f   : > { %1132 = vmatprep.subr.msk.bf16.mxu0 %vm306_vm0, %v433_v8  ;;  %v577_v13 = vsel %vm306_vm0, %v536_v10, 0  ;;  %1133 = vmatprep.subr.msk.bf16.mxu1 %vm306_vm0, %v536_v10  ;;  %v708_v38 = vld [vmem:[#allocation2 + $0x14] sm:$0xf]  ;;  %v651_v47 = vsel %vm306_vm0, %v634_v32, 0  ;;  %v781_v50 = vld [vmem:[#allocation2 + $0x18] sm:$0xf]  ;;  %s276_s21 = scalar_lea.vmem %s1363_s5, %s1366_s19 }
  0x20   : > { %s1271_s6 = scalar_lea.vmem %s1358_s0, %s1137_s28  ;;  %s1276_s9 = scalar_lea.vmem %s1359_s1, %s1137_s28  ;;  %v724_v61 = vsel %vm306_vm0, %v708_v38, 0  ;;  %vm785_vm4 = vsmask.f32 6400 }
  0x21   : > { %v1159_v4 = vld [vmem:[%s1276_s9] sm:$0xff]   ;;  %v1161_v6 = vld [vmem:[%s1276_s9 + $0x8] sm:$0xff]   ;;  %v1305_v19 = vld [vmem:[%s1271_s6 + $0x10] ss:$0 sps:$4 sm:$0x11]   ;;  %s1066_s10 = sshll.u32 %s1366_s19, 5 }
  0x22   : > { %v1160_v5 = vld [vmem:[%s1271_s6] sm:$0xff]   ;;  %1090 = vmatprep.mubr.msk.bf16.mxu0 %vm299_vm1, %v1159_v4  ;;  %v1162_v7 = vld [vmem:[%s1271_s6 + $0x8] sm:$0xff]   ;;  %v464_v27 = vshll.u32 %v1305_v19, 16  ;;  %v1168_v36 = vld [vmem:[%s1276_s9 + $0x10] ss:$0 sps:$4 sm:$0x11]   ;;  %s270_s13 = scalar_lea.vmem %s1361_s3, %s1066_s10 }
  0x23   : > { %1096 = vmatprep.mubr.msk.bf16.mxu1 %vm299_vm1, %v1160_v5  ;;  %1091 = vmatmul.mubr.msk.bf16.vlgmr.msra.gmra.mxu0 %vm299_vm1, %v1161_v6  ;;  %v427_v11 = vld [vmem:[%s1271_s6] sm:$0xf]  ;;  %v1293_v12 = vld [vmem:[%s1271_s6 + $0x8] sm:$0xff]   ;;  %v428_v14 = vld [vmem:[%s1271_s6 + $0x4] sm:$0xf]  ;;  %v566_v44 = vshll.u32 %v1168_v36, 16 }
  0x24   : > { %1097 = vmatmul.mubr.msk.bf16.vlgmr.msra.gmra.mxu1 %vm299_vm1, %v1162_v7  ;;  %1101 = vmatpush3.bf16.msra.mxu0 %v475_v9  ;;  %v1299_v15 = vld [vmem:[%s1276_s9 + $0x8] sm:$0xff]   ;;  %v1045_v16 = vcombine.low %v427_v11, %v428_v14  ;;  %v456_v17 = vshll.u32 %v1293_v12, 16  ;;  %v460_v18 = vshrl.u32 %v1293_v12, 16  ;;  %v530_v20 = vld [vmem:[%s1276_s9] sm:$0xf]  ;;  %v466_v33 = vrot.slane %v464_v27, 1 }
  0x25   : > { %1107 = vmatpush3.bf16.msra.mxu1 %v577_v13  ;;  %v558_v21 = vshll.u32 %v1299_v15, 16  ;;  %v531_v25 = vld [vmem:[%s1276_s9 + $0x4] sm:$0xf]  ;;  %v562_v26 = vshrl.u32 %v1299_v15, 16  ;;  %1134 = vmatprep.subr.msk.bf16.mxu0 %vm306_vm0, %v634_v32  ;;  %v632_v39 = vld [vmem:[%s1271_s6] sm:$0xe] }
  0x26   : > { %v449_v22 = vshrl.u32 %v1045_v16, 16  ;;  %v451_v23 = vshll.u32 %v1045_v16, 16  ;;  %v458_v24 = vrot.slane %v456_v17, 1  ;;  %v1050_v28 = vcombine.low %v530_v20, %v531_v25  ;;  %1135 = vmatprep.subr.msk.bf16.mxu1 %vm306_vm0, %v708_v38  ;;  %v706_v45 = vld [vmem:[%s1276_s9] sm:$0xe] }
  0x27   : > { %v560_v29 = vrot.slane %v558_v21, 1  ;;  %v640_v40 = vrot.slane %v1293_v12, 1  ;;  %v1055_v48 = vcombine.low %v632_v39, %v428_v14  ;;  %v1058_v49 = vcombine.low %v706_v45, %v531_v25  ;;  %v1171_v54 = vld [vmem:[%s1271_s6 + $0x10] ss:$0 sps:$4 sm:$0x33]  }
  0x28   : > { %v453_v30 = vrot.slane %v451_v23, 1  ;;  %v462_v31 = vor.u32 %v460_v18, %v458_v24  ;;  %v551_v34 = vshrl.u32 %v1050_v28, 16  ;;  %v553_v35 = vshll.u32 %v1050_v28, 16 }
  0x29   : > { %v564_v43 = vor.u32 %v562_v26, %v560_v29  ;;  %v568_v52 = vrot.slane %v566_v44, 1  ;;  %v713_v53 = vrot.slane %v1299_v15, 1  ;;  %v639_v55 = vrot.slane %v1055_v48, 1 }
  0x2a   : > { %v454_v37 = vor.u32 %v453_v30, %v449_v22  ;;  %v467_v41 = vsel %vm447_vm2, %v462_v31, %v466_v33  ;;  %v555_v42 = vrot.slane %v553_v35, 1  ;;  %v642_v56 = vrot.slane %v1305_v19, 1 }
  0x2b   : > { %v712_v57 = vrot.slane %v1058_v49, 1  ;;  %v787_v58 = vshrl.u32 %v1055_v48, 16  ;;  %v569_v60 = vsel %vm447_vm2, %v564_v43, %v568_v52  ;;  %v790_v62 = vshll.u32 %v1055_v48, 16 }
  0x2c   : > { %v459_v46 = vsel %vm447_vm2, %v454_v37, %v458_v24  ;;  %v556_v51 = vor.u32 %v555_v42, %v551_v34  ;;  %v641_v63 = vsel %vm638_vm3, %v639_v55, %v640_v40  ;;  %v794_v2 = vrot.slane %v460_v18, 1 }
  0x2d   : > { %1102 = vmatprep.mubr.msk.bf16.mxu0 %vm299_vm1, %v459_v46  ;;  %v714_v0 = vsel %vm638_vm3, %v712_v57, %v713_v53  ;;  %v789_v1 = vrot.slane %v787_v58, 1  ;;  %v792_v3 = vrot.slane %v790_v62, 2  ;;  %v795_v4 = vrot.slane %v456_v17, 2 }
  0x2e   : > { %1103 = vmatmul.mubr.msk.bf16.vlgmr.msra.gmra.mxu0 %vm299_vm1, %v467_v41  ;;  %v561_v59 = vsel %vm447_vm2, %v556_v51, %v560_v29  ;;  %v799_v5 = vshrl.u32 %v1171_v54, 16  ;;  %v802_v6 = vshll.u32 %v1171_v54, 16  ;;  %v643_v7 = vsel %vm638_vm3, %v640_v40, %v642_v56 }
  0x2f   : > { %1113 = vmatpush3.bf16.msra.mxu0 %v651_v47  ;;  %1108 = vmatprep.mubr.msk.bf16.mxu1 %vm299_vm1, %v561_v59  ;;  %v715_v8 = vrot.slane %v1168_v36, 1  ;;  %v793_v9 = vor.u32 %v792_v3, %v789_v1  ;;  %v796_v10 = vor.u32 %v795_v4, %v794_v2  ;;  %v814_v13 = vsel %vm306_vm0, %v781_v50, 0 }
  0x30   : > { %1136 = vmatprep.subr.msk.bf16.mxu0 %vm306_vm0, %v781_v50  ;;  %1109 = vmatmul.mubr.msk.bf16.vlgmr.msra.gmra.mxu1 %vm299_vm1, %v569_v60  ;;  %v801_v11 = vrot.slane %v799_v5, 1  ;;  %v804_v12 = vrot.slane %v802_v6, 2 }
  0x31   : > { %1114 = vmatprep.mubr.msk.bf16.mxu0 %vm299_vm1, %v641_v63  ;;  %1119 = vmatpush3.bf16.msra.mxu1 %v724_v61  ;;  %v797_v14 = vsel %vm785_vm4, %v793_v9, %v796_v10  ;;  %v716_v15 = vsel %vm638_vm3, %v713_v53, %v715_v8 }
  0x32   : > { %1120 = vmatprep.mubr.msk.bf16.mxu1 %vm299_vm1, %v714_v0  ;;  %v805_v16 = vor.u32 %v804_v12, %v801_v11 }
  0x34   : > { %v806_v17 = vsel %vm785_vm4, %v796_v10, %v805_v16 }
  0x36   : > { %1115 = vmatmul.mubr.msk.bf16.vlgmr.msra.gmra.mxu0 %vm299_vm1, %v643_v7 }
  0x37   : > { %1125 = vmatpush3.bf16.msra.mxu0 %v814_v13  ;;  %1126 = vmatprep.mubr.msk.bf16.mxu0 %vm299_vm1, %v797_v14 }
  0x38   : > { %1121 = vmatmul.mubr.msk.bf16.vlgmr.msra.gmra.mxu1 %vm299_vm1, %v716_v15 }
  0x3e   : > { %1127 = vmatmul.mubr.msk.bf16.vlgmr.msra.gmra.mxu0 %vm299_vm1, %v806_v17 }
  0xe3   : > { %v1092_v18 = vpop.f32.mrf.mxu0 }
  0xe4   : > { %v1098_v19 = vpop.f32.mrf.mxu1 }
  0xe5   : > { %v344_v20 = vpop.f32.mrf.mxu0  ;;  %v421_v28 = vadd.f32 %v1098_v19, %v1092_v18 }
  0xe6   : > { %v412_v21 = vpop.f32.mrf.mxu1 }
  0xe7   : > { %v1093_v22 = vpop.f32.mrf.mxu0  ;;  %v413_v31 = vadd.f32 %v412_v21, %v344_v20 }
  0xe8   : > { %v1099_v23 = vpop.f32.mrf.mxu1 }
  0xe9   : > { %v347_v24 = vpop.f32.mrf.mxu0  ;;  %v424_v35 = vadd.f32 %v1099_v23, %v1093_v22 }
  0xea   : > { %v415_v25 = vpop.f32.mrf.mxu1 }
  0xeb   : > { %v416_v39 = vadd.f32 %v415_v25, %v347_v24 }
  0xee   : > { %v1104_v26 = vpop.f32.mrf.mxu0 }
  0xef   : > { %v528_v32 = vadd.f32 %v1104_v26, %v421_v28 }
  0xf0   : > { %v511_v27 = vpop.f32.mrf.mxu0  ;;  %v1110_v29 = vpop.f32.mrf.mxu1 }
  0xf1   : > { %v526_v36 = vadd.f32 %v511_v27, %v413_v31  ;;  %v630_v40 = vadd.f32 %v1110_v29, %v528_v32 }
  0xf2   : > { %v1105_v30 = vpop.f32.mrf.mxu0  ;;  %v613_v33 = vpop.f32.mrf.mxu1 }
  0xf3   : > { %v529_v41 = vadd.f32 %v1105_v30, %v424_v35  ;;  %v628_v44 = vadd.f32 %v613_v33, %v526_v36 }
  0xf4   : > { %v514_v34 = vpop.f32.mrf.mxu0  ;;  %v1111_v37 = vpop.f32.mrf.mxu1 }
  0xf5   : > { %v527_v45 = vadd.f32 %v514_v34, %v416_v39  ;;  %v631_v49 = vadd.f32 %v1111_v37, %v529_v41 }
  0xf6   : > { %v1116_v38 = vpop.f32.mrf.mxu0  ;;  %v616_v42 = vpop.f32.mrf.mxu1 }
  0xf7   : > { %v704_v46 = vadd.f32 %v1116_v38, %v630_v40  ;;  %v629_v53 = vadd.f32 %v616_v42, %v527_v45 }
  0xf8   : > { %v687_v43 = vpop.f32.mrf.mxu0  ;;  %v1122_v47 = vpop.f32.mrf.mxu1 }
  0xf9   : > { %v702_v50 = vadd.f32 %v687_v43, %v628_v44  ;;  %v777_v54 = vadd.f32 %v1122_v47, %v704_v46 }
  0xfa   : > { %v1117_v48 = vpop.f32.mrf.mxu0  ;;  %v760_v51 = vpop.f32.mrf.mxu1 }
  0xfb   : > { %v705_v55 = vadd.f32 %v1117_v48, %v631_v49  ;;  %v775_v58 = vadd.f32 %v760_v51, %v702_v50 }
  0xfc   : > { %v690_v52 = vpop.f32.mrf.mxu0  ;;  %v1123_v56 = vpop.f32.mrf.mxu1 }
  0xfd   : > { %v703_v59 = vadd.f32 %v690_v52, %v629_v53  ;;  %v778_v62 = vadd.f32 %v1123_v56, %v705_v55 }
  0xfe   : > { %v1128_v57 = vpop.f32.mrf.mxu0  ;;  %v763_v0 = vpop.f32.mrf.mxu1 }
  0xff   : > { %v867_v60 = vadd.f32 %v1128_v57, %v777_v54  ;;  %v776_v2 = vadd.f32 %v763_v0, %v703_v59 }
 0x100   : > { %v850_v61 = vpop.f32.mrf.mxu0 }
 0x101   : > { %871 = vst [vmem:[%s270_s13 + $0x10] sm:$0xff] %v867_v60  ;;  %v865_v63 = vadd.f32 %v850_v61, %v775_v58  ;;  %v885_v9 = vmul.f32 %v867_v60, %v867_v60 }
 0x102   : > { %v1129_v1 = vpop.f32.mrf.mxu0 }
 0x103   : > { %869 = vst [vmem:[%s270_s13] sm:$0xff] %v865_v63  ;;  %v868_v3 = vadd.f32 %v1129_v1, %v778_v62  ;;  %v883_v6 = vmul.f32 %v865_v63, %v865_v63 }
 0x104   : > { %v853_v4 = vpop.f32.mrf.mxu0 }
 0x105   : > { %872 = vst [vmem:[%s270_s13 + $0x18] sm:$0xff] %v868_v3  ;;  %v866_v5 = vadd.f32 %v853_v4, %v776_v2  ;;  %v886_v12 = vmul.f32 %v868_v3, %v868_v3 }
 0x107   : > { %870 = vst [vmem:[%s270_s13 + $0x8] sm:$0xff] %v866_v5  ;;  %v873_v7 = vadd.f32 %v866_v5, %v865_v63  ;;  %v884_v8 = vmul.f32 %v866_v5, %v866_v5 }
 0x109   : > { %v874_v10 = vadd.f32 %v873_v7, %v867_v60  ;;  %v887_v11 = vadd.f32 %v884_v8, %v883_v6 }
 0x10b   : > { %v875_v13 = vadd.f32 %v874_v10, %v868_v3  ;;  %v888_v14 = vadd.f32 %v887_v11, %v885_v9 }
 0x10d   : > { %v876_v15 = vrot.slane %v875_v13, 4  ;;  %v889_v16 = vadd.f32 %v888_v14, %v886_v12 }
 0x10f   : > { %v877_v17 = vadd.f32 %v876_v15, %v875_v13  ;;  %v890_v18 = vrot.slane %v889_v16, 4 }
 0x111   : > { %v878_v19 = vrot.slane %v877_v17, 2  ;;  %v891_v20 = vadd.f32 %v890_v18, %v889_v16 }
 0x113   : > { %v879_v21 = vadd.f32 %v878_v19, %v877_v17  ;;  %v892_v22 = vrot.slane %v891_v20, 2 }
 0x115   : > { %v880_v23 = vrot.slane %v879_v21, 1  ;;  %v893_v24 = vadd.f32 %v892_v22, %v891_v20 }
 0x117   : > { %v881_v25 = vadd.f32 %v880_v23, %v879_v21  ;;  %v894_v26 = vrot.slane %v893_v24, 1 }
 0x119   : > { %882 = vst [vmem:[%s273_s16] sm:$0x1] %v881_v25  ;;  %v895_v27 = vadd.f32 %v894_v26, %v893_v24 }
 0x11b   : > { %896 = vst [vmem:[%s276_s21] sm:$0x1] %v895_v27 }
 0x11c PF: > { %s17_s18 = sadd.s32 1, %s1208_s18  }
 0x11d   : > { %p14_p1 = scmp.ge.s32.totalorder %s17_s18, 4  }
 0x11f   :  { %16 = sbr.rel (!%p14_p1) target bundleno = 1 (0x1), region = 100 }
 0x124   :  { %942 = vsyncpa [#allocation3], 1 }
 0x125   :  { %944 = vsyncpa [#allocation3 + $0x1], 1 }

// kernel: resnet_forward.29
= control target key start
LH: loop header
LB: loop body
LE: loop exit
PB: predicated region body
PF: predicated region fallthrough
CT: control target
= control target key end

     0   :  { %10 = vsyncpa [#allocation3], 0  ;;  %s968_s15 = smov 0   ;;  %s1055_s0 = inlined_call_operand.vmem [shape: bf16[2,18,128], index: 0, kind: input, shape index: {}]   ;;  %s1056_s1 = inlined_call_operand.hbm [shape: bf16[3,128,128], index: 1, kind: input, shape index: {}]   ;;  %s1057_s2 = inlined_call_operand.vmem [shape: f32[2,16,128], index: 2, kind: output, shape index: {0}]   ;;  %s1058_s3 = inlined_call_operand.vmem [shape: f32[2,1,128], index: 3, kind: output, shape index: {1}]   ;;  %s1059_s4 = inlined_call_operand.vmem [shape: f32[2,1,128], index: 4, kind: output, shape index: {2}]  }
   0x1 LB: > { %s974_s16 = sadd.s32 4294967295, %s936_s15   ;;  %p724_p0 = scmp.ge.s32.totalorder %s936_s15, 1  ;;  %s936_s15 = sphi %s968_s15, %s16_s15  }
   0x2   : > { %p146_p1 = scmp.lt.s32.totalorder %s936_s15, 3  ;;  %s938_s17 = smov [#allocation2]  }
   0x3   : > { %s158_s18 = sshll.u32 %s938_s17, 4  ;;  %p858_p3 = scmp.eq.s32.totalorder %s974_s16, 0  ;;  %s159_s18 = int_to_ptr.vmem [resolvable:$true] %s158_s18 }
   0x4   : > { %p978_p2 = pnand %p724_p0, %p146_p1  ;;  %s911_s20 = scalar_lea.vmem %s159_s18, 3072 }
   0x5   : > { %p912_p7 = scmp.ne.s32.totalorder %s159_s18, %s911_s20  ;;  %p919_p10 = scmp.lt.s32.totalorder %s159_s18, %s159_s18 }
   0x6   : > { %p854_p4 = pneg %p978_p2  ;;  %p920_p11 = scmp.lt.s32.totalorder %s911_s20, %s911_s20 }
   0x8   : > { %p855_p5 = pnand %p858_p3, %p854_p4  ;;  %p921_p12 = por %p920_p11, %p919_p10 }
   0xa   : > { %p902_p6 = pneg %p855_p5 }
   0xc   : > { %p914_p8 = pnand %p912_p7, %p902_p6 }
   0xe   : > { %p915_p9 = pneg %p914_p8 }
  0x10   : > { %p922_p13 = pnand %p921_p12, %p915_p9 }
  0x12   : > { %925 = shalt.err (!%p922_p13)
}
  0x13   : > { %s939_s21 = smov 64   ;;  %s940_s22 = smov 4  }
  0x14   : > { %857 = dma.hbm_to_vmem [thread:$0]  (!%p855_p5), %s1056_s1, 3072, %s159_s18, [#allocation3], %s939_s21, %s939_s21, %s940_s22  }
  0x15   : > { %182 = sbr.rel (%p978_p2) target bundleno = 309 (0x135), region = 28 }
  0x1a   : > { %931 = dma.done.wait (%p858_p3), [#allocation3], 3072  }
  0x1b   : > { %933 = vsyncadd (%p858_p3), [#allocation3], 4294964224  ;;  %v941_v0 = vmov 0.0   ;;  %vm942_vm0 = vmmov 0   ;;  %v873_v1 = vld [vmem:[#allocation2 + $0x78] sm:$0xff]   ;;  %p214_p0 = scmp.lt.s32.totalorder %s974_s16, 1 }
  0x1c   : > { %789 = vmatprep.subr.bf16.mxu0 %v941_v0  ;;  %809 = vmatprep.subr.bf16.mxu1 %v941_v0  ;;  %v874_v2 = vld [vmem:[#allocation2 + $0x38] sm:$0xff]   ;;  %v875_v3 = vld [vmem:[#allocation2 + $0x70] sm:$0xff]   ;;  %v877_v5 = vld [vmem:[#allocation2 + $0x68] sm:$0xff]   ;;  %vm275_vm1 = vsmask.f32 7424  ;;  %vm489_vm2 = vcmask 1046528  }
  0x1d   : > { %805 = vmatprep.mubr.msk.bf16.mxu0 %vm942_vm0, %v941_v0  ;;  %825 = vmatprep.mubr.msk.bf16.mxu1 %vm942_vm0, %v941_v0  ;;  %v876_v4 = vld [vmem:[#allocation2 + $0x30] sm:$0xff]   ;;  %s1062_s16 = smov (!%p214_p0, %s974_s16), 1  ;;  %v878_v6 = vld [vmem:[#allocation2 + $0x28] sm:$0xff]   ;;  %v879_v7 = vld [vmem:[#allocation2 + $0x60] sm:$0xff]  }
  0x1e   : > { %790 = vmatpush3.bf16.msra.mxu0 %v873_v1  ;;  %810 = vmatpush3.bf16.msra.mxu1 %v874_v2  ;;  %s849_s25 = smul.u32 12, %s1062_s16  ;;  %v880_v8 = vld [vmem:[#allocation2 + $0x20] sm:$0xff]   ;;  %v881_v9 = vld [vmem:[#allocation2 + $0x58] sm:$0xff]   ;;  %v883_v13 = vld [vmem:[#allocation2 + $0x50] sm:$0xff]   ;;  %s761_s29 = sshll.u32 %s1062_s16, 4 }
  0x1f   : > { %791 = vmatprep.subr.bf16.mxu0 %v941_v0  ;;  %811 = vmatprep.subr.bf16.mxu1 %v941_v0  ;;  %v882_v10 = vld [vmem:[#allocation2 + $0x18] sm:$0xff]   ;;  %v884_v16 = vld [vmem:[#allocation2 + $0x10] sm:$0xff]   ;;  %v885_v18 = vld [vmem:[#allocation2 + $0x48] sm:$0xff]   ;;  %s223_s6 = scalar_lea.vmem %s1057_s2, %s761_s29  ;;  %s226_s9 = scalar_lea.vmem %s1058_s3, %s1062_s16 }
  0x20   : > { %s1016_s28 = scalar_lea.vmem %s1055_s0, %s849_s25  ;;  %v886_v22 = vld [vmem:[#allocation2 + $0x8] sm:$0xff]   ;;  %v887_v23 = vld [vmem:[#allocation2 + $0x40] sm:$0xff]   ;;  %v891_v28 = vld [vmem:[#allocation2 + $0xb8] sm:$0xff]   ;;  %s229_s12 = scalar_lea.vmem %s1059_s4, %s1062_s16 }
  0x21   : > { %v231_v11 = vld [vmem:[%s1016_s28] sm:$0xf]  ;;  %v232_v12 = vld [vmem:[%s1016_s28 + $0x4] sm:$0xf]  ;;  %v892_v29 = vld [vmem:[#allocation2 + $0xb0] sm:$0xff]  }
  0x22   : > { %792 = vmatpush3.bf16.msra.mxu0 %v875_v3  ;;  %812 = vmatpush3.bf16.msra.mxu1 %v876_v4  ;;  %v732_v14 = vcombine.low %v231_v11, %v232_v12  ;;  %v890_v15 = vld [vmem:[%s1016_s28 + $0x8] ss:$0 sps:$4 sm:$0x11]   ;;  %v888_v26 = vld [vmem:[#allocation2] sm:$0xff]   ;;  %v895_v32 = vld [vmem:[#allocation2 + $0x98] sm:$0xff]  }
  0x23   : > { %793 = vmatprep.subr.bf16.mxu0 %v941_v0  ;;  %813 = vmatprep.subr.bf16.mxu1 %v941_v0  ;;  %v284_v21 = vshll.u32 %v890_v15, 16  ;;  %v893_v30 = vld [vmem:[#allocation2 + $0xa8] sm:$0xff]   ;;  %v894_v31 = vld [vmem:[#allocation2 + $0xa0] sm:$0xff]   ;;  %v896_v33 = vld [vmem:[#allocation2 + $0x90] sm:$0xff]   ;;  %v491_v39 = vrot.slane %v890_v15, 1 }
  0x24   : > { %v279_v17 = vshll.u32 %v732_v14, 16  ;;  %v277_v19 = vshrl.u32 %v732_v14, 16  ;;  %v468_v34 = vld [vmem:[%s1016_s28] sm:$0xe]  ;;  %v897_v35 = vld [vmem:[#allocation2 + $0x88] sm:$0xff]  }
  0x25   : > { %v286_v25 = vrot.slane %v284_v21, 1  ;;  %v750_v36 = vcombine.low %v468_v34, %v232_v12  ;;  %v898_v37 = vld [vmem:[#allocation2 + $0x80] sm:$0xff]  }
  0x26   : > { %794 = vmatpush3.bf16.msra.mxu0 %v877_v5  ;;  %814 = vmatpush3.bf16.msra.mxu1 %v878_v6  ;;  %v281_v20 = vrot.slane %v279_v17, 1 }
  0x27   : > { %795 = vmatprep.subr.bf16.mxu0 %v941_v0  ;;  %815 = vmatprep.subr.bf16.mxu1 %v941_v0  ;;  %v490_v38 = vrot.slane %v750_v36, 1 }
  0x28   : > { %v282_v24 = vor.u32 %v281_v20, %v277_v19 }
  0x29   : > { %v492_v40 = vsel %vm489_vm2, %v490_v38, %v491_v39 }
  0x2a   : > { %796 = vmatpush3.bf16.msra.mxu0 %v879_v7  ;;  %816 = vmatpush3.bf16.msra.mxu1 %v880_v8  ;;  %v287_v27 = vsel %vm275_vm1, %v282_v24, %v286_v25 }
  0x2b   : > { %797 = vmatprep.subr.bf16.mxu0 %v941_v0  ;;  %817 = vmatprep.subr.bf16.mxu1 %v941_v0 }
  0x2e   : > { %798 = vmatpush3.bf16.msra.mxu0 %v881_v9  ;;  %818 = vmatpush3.bf16.msra.mxu1 %v882_v10 }
  0x2f   : > { %799 = vmatprep.subr.bf16.mxu0 %v941_v0  ;;  %819 = vmatprep.subr.bf16.mxu1 %v941_v0 }
  0x32   : > { %800 = vmatpush3.bf16.msra.mxu0 %v883_v13  ;;  %820 = vmatpush3.bf16.msra.mxu1 %v884_v16 }
  0x33   : > { %801 = vmatprep.subr.bf16.mxu0 %v941_v0  ;;  %821 = vmatprep.subr.bf16.mxu1 %v941_v0 }
  0x36   : > { %802 = vmatpush3.bf16.msra.mxu0 %v885_v18  ;;  %822 = vmatpush3.bf16.msra.mxu1 %v886_v22 }
  0x37   : > { %803 = vmatprep.subr.bf16.mxu0 %v941_v0  ;;  %823 = vmatprep.subr.bf16.mxu1 %v941_v0 }
  0x3a   : > { %804 = vmatpush3.bf16.msra.mxu0 %v887_v23  ;;  %824 = vmatpush3.bf16.msra.mxu1 %v888_v26 }
  0x3b   : > { %829 = vmatprep.subr.bf16.mxu0 %v941_v0 }
  0x3d   : > { %806 = vmatmul.mubr.bf16.vlgmr.msra.gmra.mxu0 %v287_v27  ;;  %826 = vmatmul.mubr.bf16.vlgmr.msra.gmra.mxu1 %v732_v14 }
  0x3e   : > { %830 = vmatpush3.bf16.msra.mxu0 %v891_v28  ;;  %845 = vmatprep.mubr.msk.bf16.mxu0 %vm942_vm0, %v941_v0 }
  0x3f   : > { %831 = vmatprep.subr.bf16.mxu0 %v941_v0 }
  0x42   : > { %832 = vmatpush3.bf16.msra.mxu0 %v892_v29 }
  0x43   : > { %833 = vmatprep.subr.bf16.mxu0 %v941_v0 }
  0x46   : > { %834 = vmatpush3.bf16.msra.mxu0 %v893_v30 }
  0x47   : > { %835 = vmatprep.subr.bf16.mxu0 %v941_v0 }
  0x4a   : > { %836 = vmatpush3.bf16.msra.mxu0 %v894_v31 }
  0x4b   : > { %837 = vmatprep.subr.bf16.mxu0 %v941_v0 }
  0x4e   : > { %838 = vmatpush3.bf16.msra.mxu0 %v895_v32 }
  0x4f   : > { %839 = vmatprep.subr.bf16.mxu0 %v941_v0 }
  0x52   : > { %840 = vmatpush3.bf16.msra.mxu0 %v896_v33 }
  0x53   : > { %841 = vmatprep.subr.bf16.mxu0 %v941_v0 }
  0x56   : > { %842 = vmatpush3.bf16.msra.mxu0 %v897_v35 }
  0x57   : > { %843 = vmatprep.subr.bf16.mxu0 %v941_v0 }
  0x5a   : > { %844 = vmatpush3.bf16.msra.mxu0 %v898_v37 }
  0x5d   : > { %846 = vmatmul.mubr.bf16.vlgmr.msra.gmra.mxu0 %v492_v40 }
  0xfd   : > { %v371_v41 = vpop.f32.mrf.mxu0  ;;  %v461_v42 = vpop.f32.mrf.mxu1 }
  0xfe   : > { %v462_v49 = vadd.f32 %v461_v42, %v371_v41 }
  0xff   : > { %v807_v43 = vpop.f32.mrf.mxu0  ;;  %v827_v44 = vpop.f32.mrf.mxu1 }
 0x101   : > { %v374_v45 = vpop.f32.mrf.mxu0  ;;  %v464_v46 = vpop.f32.mrf.mxu1 }
 0x102   : > { %v465_v53 = vadd.f32 %v464_v46, %v374_v45 }
 0x103   : > { %v808_v47 = vpop.f32.mrf.mxu0  ;;  %v828_v48 = vpop.f32.mrf.mxu1 }
 0x11d   : > { %v576_v50 = vpop.f32.mrf.mxu0 }
 0x11e   : > { %v583_v51 = vadd.f32 %v576_v50, %v462_v49 }
 0x11f   : > { %v847_v52 = vpop.f32.mrf.mxu0 }
 0x120   : > { %585 = vst [vmem:[%s223_s6] sm:$0xff] %v583_v51  ;;  %v595_v57 = vmul.f32 %v583_v51, %v583_v51 }
 0x121   : > { %v579_v54 = vpop.f32.mrf.mxu0 }
 0x122   : > { %v584_v55 = vadd.f32 %v579_v54, %v465_v53 }
 0x123   : > { %v848_v56 = vpop.f32.mrf.mxu0 }
 0x124   : > { %586 = vst [vmem:[%s223_s6 + $0x8] sm:$0xff] %v584_v55  ;;  %v587_v58 = vadd.f32 %v584_v55, %v583_v51  ;;  %v596_v59 = vmul.f32 %v584_v55, %v584_v55 }
 0x126   : > { %v588_v60 = vrot.slane %v587_v58, 4  ;;  %v597_v61 = vadd.f32 %v596_v59, %v595_v57 }
 0x128   : > { %v589_v62 = vadd.f32 %v588_v60, %v587_v58  ;;  %v598_v63 = vrot.slane %v597_v61, 4 }
 0x12a   : > { %v590_v0 = vrot.slane %v589_v62, 2  ;;  %v599_v1 = vadd.f32 %v598_v63, %v597_v61 }
 0x12c   : > { %v591_v2 = vadd.f32 %v590_v0, %v589_v62  ;;  %v600_v3 = vrot.slane %v599_v1, 2 }
 0x12e   : > { %v592_v4 = vrot.slane %v591_v2, 1  ;;  %v601_v5 = vadd.f32 %v600_v3, %v599_v1 }
 0x130   : > { %v593_v6 = vadd.f32 %v592_v4, %v591_v2  ;;  %v602_v7 = vrot.slane %v601_v5, 1 }
 0x132   : > { %594 = vst [vmem:[%s226_s9] sm:$0x1] %v593_v6  ;;  %v603_v8 = vadd.f32 %v602_v7, %v601_v5 }
 0x134   : > { %604 = vst [vmem:[%s229_s12] sm:$0x1] %v603_v8 }
 0x135 PF: > { %s16_s15 = sadd.s32 1, %s936_s15  }
 0x136   : > { %p13_p1 = scmp.ge.s32.totalorder %s16_s15, 4  }
 0x138   :  { %15 = sbr.rel (!%p13_p1) target bundleno = 1 (0x1), region = 89 }
 0x13d   :  { %650 = vsyncpa [#allocation3], 1 }
 0x13e   :  { %652 = vsyncpa [#allocation3 + $0x1], 1 }

// kernel: resnet_forward.30
= control target key start
LH: loop header
LB: loop body
LE: loop exit
PB: predicated region body
PF: predicated region fallthrough
CT: control target
= control target key end

     0   :  { %s318_s12 = smov 0   ;;  %s335_s0 = inlined_call_operand.vmem [shape: f32[2,16,128], index: 0, kind: input, shape index: {}]   ;;  %s336_s1 = inlined_call_operand.vmem [shape: f32[1,128], index: 1, kind: input, shape index: {}]   ;;  %s337_s2 = inlined_call_operand.vmem [shape: f32[1,128], index: 2, kind: input, shape index: {}]   ;;  %s338_s3 = inlined_call_operand.vmem [shape: bf16[2,16,128], index: 3, kind: output, shape index: {}]  }
   0x1 LB: > { %s258_s13 = sadd.s32 4294967295, %s296_s12   ;;  %p262_p0 = scmp.ge.s32.totalorder %s296_s12, 1  ;;  %s296_s12 = sphi %s318_s12, %s13_s12  }
   0x2   : > { %p137_p1 = scmp.lt.s32.totalorder %s296_s12, 3 }
   0x4   : > { %p138_p2 = pnand %p262_p0, %p137_p1 }
   0x5   : > { %p161_p3 = scmp.lt.s32.totalorder (!%p138_p2), %s258_s13, 1 }
   0x6   : > { %141 = sbr.rel (%p138_p2) target bundleno = 24 (0x18), region = 32 }
   0xb   : > { %s340_s13 = smov (!%p161_p3, %s258_s13), 1  ;;  %v267_v0 = vld [vmem:[%s336_s1] ss:$0 sm:$0xff] }
   0xc   : > { %s273_s14 = sshll.u32 %s340_s13, 4  ;;  %v268_v3 = vld [vmem:[%s337_s2] ss:$0 sm:$0xff]  ;;  %s274_s22 = sshll.u32 %s340_s13, 3 }
   0xd   : > { %s165_s19 = scalar_lea.vmem %s335_s0, %s273_s14  ;;  %s170_s25 = scalar_lea.vmem %s338_s3, %s274_s22 }
   0xe   : > { %v171_v1 = vld [vmem:[%s165_s19] sm:$0xff]  ;;  %v172_v2 = vld [vmem:[%s165_s19 + $0x8] sm:$0xff] }
   0xf   : > { %v180_v4 = vmul.f32 %v267_v0, %v171_v1  ;;  %v181_v5 = vmul.f32 %v267_v0, %v172_v2 }
  0x11   : > { %v189_v6 = vadd.f32 %v268_v3, %v180_v4  ;;  %v190_v7 = vadd.f32 %v268_v3, %v181_v5 }
  0x13   : > { %v191_v8 = vmax.f32 %v189_v6, 0.0  ;;  %v192_v9 = vmax.f32 %v190_v7, 0.0 }
  0x15   : > { %v280_v10 = vpack.c.bf16 %v192_v9, %v191_v8 }
  0x17   : > { %281 = vst [vmem:[%s170_s25] sm:$0xff] %v280_v10  }
  0x18 PF: > { %s13_s12 = sadd.s32 1, %s296_s12  }
  0x19   : > { %p10_p4 = scmp.ge.s32.totalorder %s13_s12, 4  }
  0x1b   :  { %12 = sbr.rel (!%p10_p4) target bundleno = 1 (0x1), region = 62 }

// kernel: resnet_forward.32
= control target key start
LH: loop header
LB: loop body
LE: loop exit
PB: predicated region body
PF: predicated region fallthrough
CT: control target
= control target key end

     0   :  { %s395_s15 = smov 0   ;;  %s421_s0 = inlined_call_operand.vmem [shape: f32[2,16,128], index: 0, kind: input, shape index: {}]   ;;  %s422_s1 = inlined_call_operand.vmem [shape: f32[1,128], index: 1, kind: input, shape index: {}]   ;;  %s423_s2 = inlined_call_operand.vmem [shape: f32[1,128], index: 2, kind: input, shape index: {}]   ;;  %s424_s3 = inlined_call_operand.vmem [shape: bf16[2,16,128], index: 3, kind: input, shape index: {}]   ;;  %s425_s4 = inlined_call_operand.vmem [shape: bf16[2,16,128], index: 4, kind: output, shape index: {}]  }
   0x1 LB: > { %s323_s16 = sadd.s32 4294967295, %s368_s15   ;;  %p327_p0 = scmp.ge.s32.totalorder %s368_s15, 1  ;;  %s368_s15 = sphi %s395_s15, %s14_s15  }
   0x2   : > { %p172_p1 = scmp.lt.s32.totalorder %s368_s15, 3 }
   0x4   : > { %p173_p2 = pnand %p327_p0, %p172_p1 }
   0x5   : > { %p203_p3 = scmp.lt.s32.totalorder (!%p173_p2), %s323_s16, 1 }
   0x6   : > { %176 = sbr.rel (%p173_p2) target bundleno = 26 (0x1a), region = 36 }
   0xb   : > { %s427_s16 = smov (!%p203_p3, %s323_s16), 1  ;;  %v334_v0 = vld [vmem:[%s422_s1] ss:$0 sm:$0xff] }
   0xc   : > { %s340_s17 = sshll.u32 %s427_s16, 4  ;;  %s341_s18 = sshll.u32 %s427_s16, 3  ;;  %v335_v1 = vld [vmem:[%s423_s2] ss:$0 sm:$0xff] }
   0xd   : > { %s207_s23 = scalar_lea.vmem %s421_s0, %s340_s17  ;;  %s212_s26 = scalar_lea.vmem %s424_s3, %s341_s18 }
   0xe   : > { %v218_v2 = vld [vmem:[%s207_s23] sm:$0xff]  ;;  %v219_v3 = vld [vmem:[%s207_s23 + $0x8] sm:$0xff]  ;;  %s217_s5 = scalar_lea.vmem %s425_s4, %s341_s18 }
   0xf   : > { %v346_v4 = vld [vmem:[%s212_s26] sm:$0xff]   ;;  %v227_v5 = vmul.f32 %v334_v0, %v218_v2  ;;  %v228_v6 = vmul.f32 %v334_v0, %v219_v3 }
  0x10   : > { %v347_v7 = vunpack.c.l.bf16 %v346_v4  ;;  %v348_v8 = vunpack.c.h.bf16 %v346_v4 }
  0x11   : > { %v236_v9 = vadd.f32 %v335_v1, %v227_v5  ;;  %v237_v10 = vadd.f32 %v335_v1, %v228_v6 }
  0x13   : > { %v242_v11 = vadd.f32 %v347_v7, %v236_v9  ;;  %v243_v12 = vadd.f32 %v348_v8, %v237_v10 }
  0x15   : > { %v244_v13 = vmax.f32 %v242_v11, 0.0  ;;  %v245_v14 = vmax.f32 %v243_v12, 0.0 }
  0x17   : > { %v352_v15 = vpack.c.bf16 %v245_v14, %v244_v13 }
  0x19   : > { %353 = vst [vmem:[%s217_s5] sm:$0xff] %v352_v15  }
  0x1a PF: > { %s14_s15 = sadd.s32 1, %s368_s15  }
  0x1b   : > { %p11_p4 = scmp.ge.s32.totalorder %s14_s15, 4  }
  0x1d   :  { %13 = sbr.rel (!%p11_p4) target bundleno = 1 (0x1), region = 69 }

// kernel: resnet_forward.34
= control target key start
LH: loop header
LB: loop body
LE: loop exit
PB: predicated region body
PF: predicated region fallthrough
CT: control target
= control target key end

     0   :  { %s261_s12 = smov 0   ;;  %s297_s0 = inlined_call_operand.vmem [shape: f32[2,8,128], index: 0, kind: input, shape index: {}]   ;;  %s298_s1 = inlined_call_operand.vmem [shape: f32[1,128], index: 1, kind: input, shape index: {}]   ;;  %s299_s2 = inlined_call_operand.vmem [shape: f32[1,128], index: 2, kind: input, shape index: {}]   ;;  %s300_s3 = inlined_call_operand.vmem [shape: bf16[2,8,128], index: 3, kind: output, shape index: {}]  }
   0x1 LB: > { %s238_s13 = sadd.s32 4294967295, %s263_s12   ;;  %p242_p0 = scmp.ge.s32.totalorder %s263_s12, 1  ;;  %s263_s12 = sphi %s261_s12, %s13_s12  }
   0x2   : > { %p136_p1 = scmp.lt.s32.totalorder %s263_s12, 3 }
   0x4   : > { %p137_p2 = pnand %p242_p0, %p136_p1 }
   0x5   : > { %p158_p3 = scmp.lt.s32.totalorder (!%p137_p2), %s238_s13, 1 }
   0x6   : > { %140 = sbr.rel (%p137_p2) target bundleno = 22 (0x16), region = 32 }
   0xb   : > { %s302_s13 = smov (!%p158_p3, %s238_s13), 1  ;;  %v245_v0 = vld [vmem:[%s298_s1] ss:$0 sm:$0xff] }
   0xc   : > { %s243_s14 = sshll.u32 %s302_s13, 3  ;;  %v246_v2 = vld [vmem:[%s299_s2] ss:$0 sm:$0xff]  ;;  %s244_s22 = sshll.u32 %s302_s13, 2 }
   0xd   : > { %s161_s19 = scalar_lea.vmem %s297_s0, %s243_s14  ;;  %s165_s25 = scalar_lea.vmem %s300_s3, %s244_s22 }
   0xe   : > { %v166_v1 = vld [vmem:[%s161_s19] sm:$0xff] }
   0xf   : > { %v174_v3 = vmul.f32 %v245_v0, %v166_v1 }
  0x11   : > { %v182_v4 = vadd.f32 %v246_v2, %v174_v3 }
  0x13   : > { %v183_v5 = vpack.c.bf16 %v182_v4, %v182_v4 }
  0x15   : > { %184 = vst [vmem:[%s165_s25] sm:$0xf] %v183_v5 }
  0x16 PF: > { %s13_s12 = sadd.s32 1, %s263_s12  }
  0x17   : > { %p10_p4 = scmp.ge.s32.totalorder %s13_s12, 4  }
  0x19   :  { %12 = sbr.rel (!%p10_p4) target bundleno = 1 (0x1), region = 62 }

// kernel: resnet_forward.33
= control target key start
LH: loop header
LB: loop body
LE: loop exit
PB: predicated region body
PF: predicated region fallthrough
CT: control target
= control target key end

     0   :  { %10 = vsyncpa [#allocation3], 0  ;;  %s609_s15 = smov 0   ;;  %s660_s0 = inlined_call_operand.vmem [shape: bf16[2,8,128], index: 0, kind: input, shape index: {}]   ;;  %s661_s1 = inlined_call_operand.hbm [shape: bf16[1,128,128], index: 1, kind: input, shape index: {}]   ;;  %s662_s2 = inlined_call_operand.vmem [shape: f32[2,8,128], index: 2, kind: output, shape index: {0}]   ;;  %s663_s3 = inlined_call_operand.vmem [shape: f32[2,1,128], index: 3, kind: output, shape index: {1}]   ;;  %s664_s4 = inlined_call_operand.vmem [shape: f32[2,1,128], index: 4, kind: output, shape index: {2}]  }
   0x1 LB: > { %s615_s16 = sadd.s32 4294967295, %s577_s15   ;;  %p464_p0 = scmp.ge.s32.totalorder %s577_s15, 1  ;;  %s577_s15 = sphi %s609_s15, %s16_s15  }
   0x2   : > { %p146_p1 = scmp.lt.s32.totalorder %s577_s15, 3  ;;  %s579_s17 = smov [#allocation2]  }
   0x3   : > { %s158_s18 = sshll.u32 %s579_s17, 4  ;;  %p518_p3 = scmp.eq.s32.totalorder %s615_s16, 0  ;;  %s159_s18 = int_to_ptr.vmem [resolvable:$true] %s158_s18 }
   0x4   : > { %p619_p2 = pnand %p464_p0, %p146_p1  ;;  %s552_s20 = scalar_lea.vmem %s159_s18, 1024 }
   0x5   : > { %p553_p7 = scmp.ne.s32.totalorder %s159_s18, %s552_s20  ;;  %p560_p10 = scmp.lt.s32.totalorder %s159_s18, %s159_s18 }
   0x6   : > { %p514_p4 = pneg %p619_p2  ;;  %p561_p11 = scmp.lt.s32.totalorder %s552_s20, %s552_s20 }
   0x8   : > { %p515_p5 = pnand %p518_p3, %p514_p4  ;;  %p562_p12 = por %p561_p11, %p560_p10 }
   0xa   : > { %p543_p6 = pneg %p515_p5 }
   0xc   : > { %p555_p8 = pnand %p553_p7, %p543_p6 }
   0xe   : > { %p556_p9 = pneg %p555_p8 }
  0x10   : > { %p563_p13 = pnand %p562_p12, %p556_p9 }
  0x12   : > { %566 = shalt.err (!%p563_p13)
}
  0x13   : > { %s580_s21 = smov 64   ;;  %s581_s22 = smov 4  }
  0x14   : > { %517 = dma.hbm_to_vmem [thread:$0]  (!%p515_p5), %s661_s1, 1024, %s159_s18, [#allocation3], %s580_s21, %s580_s21, %s581_s22  }
  0x15   : > { %181 = sbr.rel (%p619_p2) target bundleno = 268 (0x10c), region = 28 }
  0x1a   : > { %572 = dma.done.wait (%p518_p3), [#allocation3], 1024  }
  0x1b   : > { %574 = vsyncadd (%p518_p3), [#allocation3], 4294966272  ;;  %v582_v0 = vmov 0.0   ;;  %vm583_vm0 = vmmov 0   ;;  %v533_v1 = vld [vmem:[#allocation2 + $0x38] sm:$0xff]   ;;  %v534_v2 = vld [vmem:[#allocation2 + $0x30] sm:$0xff]  }
  0x1c   : > { %490 = vmatprep.subr.bf16.mxu0 %v582_v0  ;;  %506 = vmatprep.mubr.msk.bf16.mxu0 %vm583_vm0, %v582_v0  ;;  %v535_v3 = vld [vmem:[#allocation2 + $0x28] sm:$0xff]   ;;  %v536_v4 = vld [vmem:[#allocation2 + $0x20] sm:$0xff]   ;;  %v537_v5 = vld [vmem:[#allocation2 + $0x18] sm:$0xff]   ;;  %p211_p0 = scmp.lt.s32.totalorder %s615_s16, 1 }
  0x1d   : > { %491 = vmatpush3.bf16.msra.mxu0 %v533_v1  ;;  %v538_v6 = vld [vmem:[#allocation2 + $0x10] sm:$0xff]   ;;  %v539_v7 = vld [vmem:[#allocation2 + $0x8] sm:$0xff]   ;;  %v540_v8 = vld [vmem:[#allocation2] sm:$0xff]  }
  0x1e   : > { %492 = vmatprep.subr.bf16.mxu0 %v582_v0  ;;  %s667_s16 = smov (!%p211_p0, %s615_s16), 1 }
  0x1f   : > { %s469_s25 = sshll.u32 %s667_s16, 2  ;;  %s470_s29 = sshll.u32 %s667_s16, 3 }
  0x20   : > { %s214_s28 = scalar_lea.vmem %s660_s0, %s469_s25  ;;  %s218_s6 = scalar_lea.vmem %s662_s2, %s470_s29 }
  0x21   : > { %493 = vmatpush3.bf16.msra.mxu0 %v534_v2  ;;  %v226_v9 = vld [vmem:[%s214_s28] sm:$0xf]  ;;  %s221_s9 = scalar_lea.vmem %s663_s3, %s667_s16  ;;  %s224_s12 = scalar_lea.vmem %s664_s4, %s667_s16 }
  0x22   : > { %494 = vmatprep.subr.bf16.mxu0 %v582_v0 }
  0x25   : > { %495 = vmatpush3.bf16.msra.mxu0 %v535_v3 }
  0x26   : > { %496 = vmatprep.subr.bf16.mxu0 %v582_v0 }
  0x29   : > { %497 = vmatpush3.bf16.msra.mxu0 %v536_v4 }
  0x2a   : > { %498 = vmatprep.subr.bf16.mxu0 %v582_v0 }
  0x2d   : > { %499 = vmatpush3.bf16.msra.mxu0 %v537_v5 }
  0x2e   : > { %500 = vmatprep.subr.bf16.mxu0 %v582_v0 }
  0x31   : > { %501 = vmatpush3.bf16.msra.mxu0 %v538_v6 }
  0x32   : > { %502 = vmatprep.subr.bf16.mxu0 %v582_v0 }
  0x35   : > { %503 = vmatpush3.bf16.msra.mxu0 %v539_v7 }
  0x36   : > { %504 = vmatprep.subr.bf16.mxu0 %v582_v0 }
  0x39   : > { %505 = vmatpush3.bf16.msra.mxu0 %v540_v8 }
  0x3c   : > { %507 = vmatmul.mubr.bf16.vlgmr.msra.gmra.mxu0 %v226_v9 }
  0xfc   : > { %v325_v10 = vpop.f32.mrf.mxu0 }
  0xfd   : > { %331 = vst [vmem:[%s218_s6] sm:$0xff] %v325_v10  ;;  %v332_v11 = vrot.slane %v325_v10, 4  ;;  %v339_v12 = vmul.f32 %v325_v10, %v325_v10 }
  0xfe   : > { %v508_v13 = vpop.f32.mrf.mxu0 }
  0xff   : > { %v333_v14 = vadd.f32 %v332_v11, %v325_v10  ;;  %v340_v15 = vrot.slane %v339_v12, 4 }
 0x100   : > { %v328_v16 = vpop.f32.mrf.mxu0 }
 0x101   : > { %v334_v17 = vrot.slane %v333_v14, 2  ;;  %v341_v18 = vadd.f32 %v340_v15, %v339_v12 }
 0x102   : > { %v509_v19 = vpop.f32.mrf.mxu0 }
 0x103   : > { %v335_v20 = vadd.f32 %v334_v17, %v333_v14  ;;  %v342_v21 = vrot.slane %v341_v18, 2 }
 0x105   : > { %v336_v22 = vrot.slane %v335_v20, 1  ;;  %v343_v23 = vadd.f32 %v342_v21, %v341_v18 }
 0x107   : > { %v337_v24 = vadd.f32 %v336_v22, %v335_v20  ;;  %v344_v25 = vrot.slane %v343_v23, 1 }
 0x109   : > { %338 = vst [vmem:[%s221_s9] sm:$0x1] %v337_v24  ;;  %v345_v26 = vadd.f32 %v344_v25, %v343_v23 }
 0x10b   : > { %346 = vst [vmem:[%s224_s12] sm:$0x1] %v345_v26 }
 0x10c PF: > { %s16_s15 = sadd.s32 1, %s577_s15  }
 0x10d   : > { %p13_p1 = scmp.ge.s32.totalorder %s16_s15, 4  }
 0x10f   :  { %15 = sbr.rel (!%p13_p1) target bundleno = 1 (0x1), region = 87 }
 0x114   :  { %390 = vsyncpa [#allocation3], 1 }
 0x115   :  { %392 = vsyncpa [#allocation3 + $0x1], 1 }

// kernel: resnet_forward.36
= control target key start
LH: loop header
LB: loop body
LE: loop exit
PB: predicated region body
PF: predicated region fallthrough
CT: control target
= control target key end

     0   :  { %s262_s12 = smov 0   ;;  %s298_s0 = inlined_call_operand.vmem [shape: f32[2,8,128], index: 0, kind: input, shape index: {}]   ;;  %s299_s1 = inlined_call_operand.vmem [shape: f32[1,128], index: 1, kind: input, shape index: {}]   ;;  %s300_s2 = inlined_call_operand.vmem [shape: f32[1,128], index: 2, kind: input, shape index: {}]   ;;  %s301_s3 = inlined_call_operand.vmem [shape: bf16[2,8,128], index: 3, kind: output, shape index: {}]  }
   0x1 LB: > { %s239_s13 = sadd.s32 4294967295, %s264_s12   ;;  %p243_p0 = scmp.ge.s32.totalorder %s264_s12, 1  ;;  %s264_s12 = sphi %s262_s12, %s13_s12  }
   0x2   : > { %p136_p1 = scmp.lt.s32.totalorder %s264_s12, 3 }
   0x4   : > { %p137_p2 = pnand %p243_p0, %p136_p1 }
   0x5   : > { %p158_p3 = scmp.lt.s32.totalorder (!%p137_p2), %s239_s13, 1 }
   0x6   : > { %140 = sbr.rel (%p137_p2) target bundleno = 24 (0x18), region = 32 }
   0xb   : > { %s303_s13 = smov (!%p158_p3, %s239_s13), 1  ;;  %v246_v0 = vld [vmem:[%s299_s1] ss:$0 sm:$0xff] }
   0xc   : > { %s244_s14 = sshll.u32 %s303_s13, 3  ;;  %v247_v2 = vld [vmem:[%s300_s2] ss:$0 sm:$0xff]  ;;  %s245_s22 = sshll.u32 %s303_s13, 2 }
   0xd   : > { %s161_s19 = scalar_lea.vmem %s298_s0, %s244_s14  ;;  %s165_s25 = scalar_lea.vmem %s301_s3, %s245_s22 }
   0xe   : > { %v166_v1 = vld [vmem:[%s161_s19] sm:$0xff] }
   0xf   : > { %v174_v3 = vmul.f32 %v246_v0, %v166_v1 }
  0x11   : > { %v182_v4 = vadd.f32 %v247_v2, %v174_v3 }
  0x13   : > { %v183_v5 = vmax.f32 %v182_v4, 0.0 }
  0x15   : > { %v184_v6 = vpack.c.bf16 %v183_v5, %v183_v5 }
  0x17   : > { %185 = vst [vmem:[%s165_s25] sm:$0xf] %v184_v6 }
  0x18 PF: > { %s13_s12 = sadd.s32 1, %s264_s12  }
  0x19   : > { %p10_p4 = scmp.ge.s32.totalorder %s13_s12, 4  }
  0x1b   :  { %12 = sbr.rel (!%p10_p4) target bundleno = 1 (0x1), region = 62 }

// kernel: resnet_forward.38
= control target key start
LH: loop header
LB: loop body
LE: loop exit
PB: predicated region body
PF: predicated region fallthrough
CT: control target
= control target key end

     0   :  { %s351_s15 = smov 0   ;;  %s371_s0 = inlined_call_operand.vmem [shape: f32[2,8,128], index: 0, kind: input, shape index: {}]   ;;  %s372_s1 = inlined_call_operand.vmem [shape: f32[1,128], index: 1, kind: input, shape index: {}]   ;;  %s373_s2 = inlined_call_operand.vmem [shape: f32[1,128], index: 2, kind: input, shape index: {}]   ;;  %s374_s3 = inlined_call_operand.vmem [shape: bf16[2,8,128], index: 3, kind: input, shape index: {}]   ;;  %s375_s4 = inlined_call_operand.vmem [shape: bf16[2,8,128], index: 4, kind: output, shape index: {}]  }
   0x1 LB: > { %s298_s16 = sadd.s32 4294967295, %s324_s15   ;;  %p302_p0 = scmp.ge.s32.totalorder %s324_s15, 1  ;;  %s324_s15 = sphi %s351_s15, %s14_s15  }
   0x2   : > { %p170_p1 = scmp.lt.s32.totalorder %s324_s15, 3 }
   0x4   : > { %p171_p2 = pnand %p302_p0, %p170_p1 }
   0x5   : > { %p198_p3 = scmp.lt.s32.totalorder (!%p171_p2), %s298_s16, 1 }
   0x6   : > { %174 = sbr.rel (%p171_p2) target bundleno = 26 (0x1a), region = 36 }
   0xb   : > { %s377_s16 = smov (!%p198_p3, %s298_s16), 1  ;;  %v306_v0 = vld [vmem:[%s372_s1] ss:$0 sm:$0xff] }
   0xc   : > { %s303_s17 = sshll.u32 %s377_s16, 3  ;;  %s304_s18 = sshll.u32 %s377_s16, 2  ;;  %v307_v2 = vld [vmem:[%s373_s2] ss:$0 sm:$0xff] }
   0xd   : > { %s201_s23 = scalar_lea.vmem %s371_s0, %s303_s17  ;;  %s205_s26 = scalar_lea.vmem %s374_s3, %s304_s18 }
   0xe   : > { %v210_v1 = vld [vmem:[%s201_s23] sm:$0xff]  ;;  %s209_s5 = scalar_lea.vmem %s375_s4, %s304_s18 }
   0xf   : > { %v227_v3 = vld [vmem:[%s205_s26] sm:$0xf]  ;;  %v218_v4 = vmul.f32 %v306_v0, %v210_v1 }
  0x10   : > { %v228_v5 = vunpack.c.l.bf16 %v227_v3 }
  0x11   : > { %v226_v6 = vadd.f32 %v307_v2, %v218_v4 }
  0x13   : > { %v229_v7 = vadd.f32 %v228_v5, %v226_v6 }
  0x15   : > { %v230_v8 = vmax.f32 %v229_v7, 0.0 }
  0x17   : > { %v231_v9 = vpack.c.bf16 %v230_v8, %v230_v8 }
  0x19   : > { %232 = vst [vmem:[%s209_s5] sm:$0xf] %v231_v9 }
  0x1a PF: > { %s14_s15 = sadd.s32 1, %s324_s15  }
  0x1b   : > { %p11_p4 = scmp.ge.s32.totalorder %s14_s15, 4  }
  0x1d   :  { %13 = sbr.rel (!%p11_p4) target bundleno = 1 (0x1), region = 69 }

// kernel: resnet_forward.35
= control target key start
LH: loop header
LB: loop body
LE: loop exit
PB: predicated region body
PF: predicated region fallthrough
CT: control target
= control target key end

     0   :  { %11 = vsyncpa [#allocation3], 0  ;;  %s1000_s18 = smov 0   ;;  %s1092_s0 = inlined_call_operand.vmem [shape: bf16[2,9,128], index: 0, kind: input, shape index: {}]   ;;  %s1093_s1 = inlined_call_operand.vmem [shape: bf16[2,9,128], index: 1, kind: input, shape index: {}]   ;;  %s1094_s2 = inlined_call_operand.hbm [shape: bf16[3,128,128], index: 2, kind: input, shape index: {}]   ;;  %s1095_s3 = inlined_call_operand.vmem [shape: f32[2,8,128], index: 3, kind: output, shape index: {0}]   ;;  %s1096_s4 = inlined_call_operand.vmem [shape: f32[2,1,128], index: 4, kind: output, shape index: {1}]   ;;  %s1097_s5 = inlined_call_operand.vmem [shape: f32[2,1,128], index: 5, kind: output, shape index: {2}]  }
   0x1 LB: > { %s1006_s19 = sadd.s32 4294967295, %s963_s18   ;;  %p753_p0 = scmp.ge.s32.totalorder %s963_s18, 1  ;;  %s963_s18 = sphi %s1000_s18, %s17_s18  }
   0x2   : > { %p173_p1 = scmp.lt.s32.totalorder %s963_s18, 3  ;;  %s965_s20 = smov [#allocation2]  }
   0x3   : > { %s185_s21 = sshll.u32 %s965_s20, 4  ;;  %p887_p3 = scmp.eq.s32.totalorder %s1006_s19, 0  ;;  %s186_s21 = int_to_ptr.vmem [resolvable:$true] %s185_s21 }
   0x4   : > { %p1010_p2 = pnand %p753_p0, %p173_p1  ;;  %s938_s23 = scalar_lea.vmem %s186_s21, 3072 }
   0x5   : > { %p939_p7 = scmp.ne.s32.totalorder %s186_s21, %s938_s23  ;;  %p946_p10 = scmp.lt.s32.totalorder %s186_s21, %s186_s21 }
   0x6   : > { %p883_p4 = pneg %p1010_p2  ;;  %p947_p11 = scmp.lt.s32.totalorder %s938_s23, %s938_s23 }
   0x8   : > { %p884_p5 = pnand %p887_p3, %p883_p4  ;;  %p948_p12 = por %p947_p11, %p946_p10 }
   0xa   : > { %p929_p6 = pneg %p884_p5 }
   0xc   : > { %p941_p8 = pnand %p939_p7, %p929_p6 }
   0xe   : > { %p942_p9 = pneg %p941_p8 }
  0x10   : > { %p949_p13 = pnand %p948_p12, %p942_p9 }
  0x12   : > { %952 = shalt.err (!%p949_p13)
}
  0x13   : > { %s966_s24 = smov 64   ;;  %s967_s25 = smov 4  }
  0x14   : > { %886 = dma.hbm_to_vmem [thread:$0]  (!%p884_p5), %s1094_s2, 3072, %s186_s21, [#allocation3], %s966_s24, %s966_s24, %s967_s25  }
  0x15   : > { %217 = sbr.rel (%p1010_p2) target bundleno = 303 (0x12f), region = 32 }
  0x1a   : > { %958 = dma.done.wait (%p887_p3), [#allocation3], 3072  }
  0x1b   : > { %960 = vsyncadd (%p887_p3), [#allocation3], 4294964224  ;;  %v968_v0 = vmov 0.0   ;;  %vm969_vm0 = vmmov 0   ;;  %v902_v1 = vld [vmem:[#allocation2 + $0x78] sm:$0xff]   ;;  %v904_v3 = vld [vmem:[#allocation2 + $0x70] sm:$0xff]  }
  0x1c   : > { %819 = vmatprep.subr.bf16.mxu0 %v968_v0  ;;  %839 = vmatprep.subr.bf16.mxu1 %v968_v0  ;;  %v903_v2 = vld [vmem:[#allocation2 + $0x38] sm:$0xff]   ;;  %v905_v4 = vld [vmem:[#allocation2 + $0x30] sm:$0xff]   ;;  %p255_p0 = scmp.lt.s32.totalorder %s1006_s19, 1  ;;  %v906_v5 = vld [vmem:[#allocation2 + $0x68] sm:$0xff]  }
  0x1d   : > { %835 = vmatprep.mubr.msk.bf16.mxu0 %vm969_vm0, %v968_v0  ;;  %855 = vmatprep.mubr.msk.bf16.mxu1 %vm969_vm0, %v968_v0  ;;  %v907_v6 = vld [vmem:[#allocation2 + $0x28] sm:$0xff]   ;;  %v908_v7 = vld [vmem:[#allocation2 + $0x60] sm:$0xff]   ;;  %v910_v9 = vld [vmem:[#allocation2 + $0x58] sm:$0xff]  }
  0x1e   : > { %820 = vmatpush3.bf16.msra.mxu0 %v902_v1  ;;  %840 = vmatpush3.bf16.msra.mxu1 %v903_v2  ;;  %s1100_s19 = smov (!%p255_p0, %s1006_s19), 1  ;;  %v909_v8 = vld [vmem:[#allocation2 + $0x20] sm:$0xff]   ;;  %v911_v10 = vld [vmem:[#allocation2 + $0x18] sm:$0xff]   ;;  %v912_v11 = vld [vmem:[#allocation2 + $0x50] sm:$0xff]  }
  0x1f   : > { %821 = vmatprep.subr.bf16.mxu0 %v968_v0  ;;  %841 = vmatprep.subr.bf16.mxu1 %v968_v0  ;;  %s1045_s28 = sshll.u32 %s1100_s19, 3  ;;  %v913_v12 = vld [vmem:[#allocation2 + $0x10] sm:$0xff]   ;;  %v914_v13 = vld [vmem:[#allocation2 + $0x48] sm:$0xff]   ;;  %v916_v15 = vld [vmem:[#allocation2 + $0x40] sm:$0xff]   ;;  %s271_s15 = scalar_lea.vmem %s1096_s4, %s1100_s19 }
  0x20   : > { %s1052_s6 = scalar_lea.vmem %s1092_s0, %s1045_s28  ;;  %v915_v14 = vld [vmem:[#allocation2 + $0x8] sm:$0xff]   ;;  %v917_v16 = vld [vmem:[#allocation2] sm:$0xff]   ;;  %s264_s9 = scalar_lea.vmem %s1093_s1, %s1045_s28  ;;  %v919_v18 = vld [vmem:[#allocation2 + $0xb8] sm:$0xff]  }
  0x21   : > { %v293_v17 = vld [vmem:[%s264_s9] sm:$0xf]  ;;  %v920_v20 = vld [vmem:[#allocation2 + $0xb0] sm:$0xff]   ;;  %v921_v21 = vld [vmem:[#allocation2 + $0xa8] sm:$0xff]   ;;  %s268_s12 = scalar_lea.vmem %s1095_s3, %s1045_s28  ;;  %s274_s20 = scalar_lea.vmem %s1097_s5, %s1100_s19 }
  0x22   : > { %822 = vmatpush3.bf16.msra.mxu0 %v904_v3  ;;  %842 = vmatpush3.bf16.msra.mxu1 %v905_v4  ;;  %v276_v19 = vld [vmem:[%s1052_s6] sm:$0xf]  ;;  %v923_v23 = vld [vmem:[#allocation2 + $0x98] sm:$0xff]   ;;  %v924_v25 = vld [vmem:[#allocation2 + $0x90] sm:$0xff]  }
  0x23   : > { %823 = vmatprep.subr.bf16.mxu0 %v968_v0  ;;  %843 = vmatprep.subr.bf16.mxu1 %v968_v0  ;;  %v922_v22 = vld [vmem:[#allocation2 + $0xa0] sm:$0xff]   ;;  %v925_v27 = vld [vmem:[#allocation2 + $0x88] sm:$0xff]  }
  0x24   : > { %v918_v24 = vld [vmem:[%s1052_s6] sm:$0x1f]  }
  0x25   : > { %v514_v26 = vshll.u32 %v918_v24, 16  ;;  %v512_v28 = vshrl.u32 %v918_v24, 16  ;;  %v926_v30 = vld [vmem:[#allocation2 + $0x80] sm:$0xff]  }
  0x26   : > { %824 = vmatpush3.bf16.msra.mxu0 %v906_v5  ;;  %844 = vmatpush3.bf16.msra.mxu1 %v907_v6 }
  0x27   : > { %825 = vmatprep.subr.bf16.mxu0 %v968_v0  ;;  %845 = vmatprep.subr.bf16.mxu1 %v968_v0  ;;  %v516_v29 = vrot.slane %v514_v26, 1 }
  0x29   : > { %v517_v31 = vor.u32 %v516_v29, %v512_v28 }
  0x2a   : > { %826 = vmatpush3.bf16.msra.mxu0 %v908_v7  ;;  %846 = vmatpush3.bf16.msra.mxu1 %v909_v8 }
  0x2b   : > { %827 = vmatprep.subr.bf16.mxu0 %v968_v0  ;;  %847 = vmatprep.subr.bf16.mxu1 %v968_v0 }
  0x2e   : > { %828 = vmatpush3.bf16.msra.mxu0 %v910_v9  ;;  %848 = vmatpush3.bf16.msra.mxu1 %v911_v10 }
  0x2f   : > { %829 = vmatprep.subr.bf16.mxu0 %v968_v0  ;;  %849 = vmatprep.subr.bf16.mxu1 %v968_v0 }
  0x32   : > { %830 = vmatpush3.bf16.msra.mxu0 %v912_v11  ;;  %850 = vmatpush3.bf16.msra.mxu1 %v913_v12 }
  0x33   : > { %831 = vmatprep.subr.bf16.mxu0 %v968_v0  ;;  %851 = vmatprep.subr.bf16.mxu1 %v968_v0 }
  0x36   : > { %832 = vmatpush3.bf16.msra.mxu0 %v914_v13  ;;  %852 = vmatpush3.bf16.msra.mxu1 %v915_v14 }
  0x37   : > { %833 = vmatprep.subr.bf16.mxu0 %v968_v0  ;;  %853 = vmatprep.subr.bf16.mxu1 %v968_v0 }
  0x3a   : > { %834 = vmatpush3.bf16.msra.mxu0 %v916_v15  ;;  %854 = vmatpush3.bf16.msra.mxu1 %v917_v16 }
  0x3b   : > { %859 = vmatprep.subr.bf16.mxu0 %v968_v0 }
  0x3d   : > { %836 = vmatmul.mubr.bf16.vlgmr.msra.gmra.mxu0 %v293_v17  ;;  %856 = vmatmul.mubr.bf16.vlgmr.msra.gmra.mxu1 %v276_v19 }
  0x3e   : > { %860 = vmatpush3.bf16.msra.mxu0 %v919_v18  ;;  %875 = vmatprep.mubr.msk.bf16.mxu0 %vm969_vm0, %v968_v0 }
  0x3f   : > { %861 = vmatprep.subr.bf16.mxu0 %v968_v0 }
  0x42   : > { %862 = vmatpush3.bf16.msra.mxu0 %v920_v20 }
  0x43   : > { %863 = vmatprep.subr.bf16.mxu0 %v968_v0 }
  0x46   : > { %864 = vmatpush3.bf16.msra.mxu0 %v921_v21 }
  0x47   : > { %865 = vmatprep.subr.bf16.mxu0 %v968_v0 }
  0x4a   : > { %866 = vmatpush3.bf16.msra.mxu0 %v922_v22 }
  0x4b   : > { %867 = vmatprep.subr.bf16.mxu0 %v968_v0 }
  0x4e   : > { %868 = vmatpush3.bf16.msra.mxu0 %v923_v23 }
  0x4f   : > { %869 = vmatprep.subr.bf16.mxu0 %v968_v0 }
  0x52   : > { %870 = vmatpush3.bf16.msra.mxu0 %v924_v25 }
  0x53   : > { %871 = vmatprep.subr.bf16.mxu0 %v968_v0 }
  0x56   : > { %872 = vmatpush3.bf16.msra.mxu0 %v925_v27 }
  0x57   : > { %873 = vmatprep.subr.bf16.mxu0 %v968_v0 }
  0x5a   : > { %874 = vmatpush3.bf16.msra.mxu0 %v926_v30 }
  0x5d   : > { %876 = vmatmul.mubr.bf16.vlgmr.msra.gmra.mxu0 %v517_v31 }
  0xfd   : > { %v393_v32 = vpop.f32.mrf.mxu0  ;;  %v481_v33 = vpop.f32.mrf.mxu1 }
  0xfe   : > { %v482_v40 = vadd.f32 %v481_v33, %v393_v32 }
  0xff   : > { %v837_v34 = vpop.f32.mrf.mxu0  ;;  %v857_v35 = vpop.f32.mrf.mxu1 }
 0x101   : > { %v396_v36 = vpop.f32.mrf.mxu0  ;;  %v484_v37 = vpop.f32.mrf.mxu1 }
 0x103   : > { %v838_v38 = vpop.f32.mrf.mxu0  ;;  %v858_v39 = vpop.f32.mrf.mxu1 }
 0x11d   : > { %v601_v41 = vpop.f32.mrf.mxu0 }
 0x11e   : > { %v607_v42 = vadd.f32 %v601_v41, %v482_v40 }
 0x11f   : > { %v877_v43 = vpop.f32.mrf.mxu0 }
 0x120   : > { %608 = vst [vmem:[%s268_s12] sm:$0xff] %v607_v42  ;;  %v609_v44 = vrot.slane %v607_v42, 4  ;;  %v616_v45 = vmul.f32 %v607_v42, %v607_v42 }
 0x121   : > { %v604_v46 = vpop.f32.mrf.mxu0 }
 0x122   : > { %v610_v47 = vadd.f32 %v609_v44, %v607_v42  ;;  %v617_v48 = vrot.slane %v616_v45, 4 }
 0x123   : > { %v878_v49 = vpop.f32.mrf.mxu0 }
 0x124   : > { %v611_v50 = vrot.slane %v610_v47, 2  ;;  %v618_v51 = vadd.f32 %v617_v48, %v616_v45 }
 0x126   : > { %v612_v52 = vadd.f32 %v611_v50, %v610_v47  ;;  %v619_v53 = vrot.slane %v618_v51, 2 }
 0x128   : > { %v613_v54 = vrot.slane %v612_v52, 1  ;;  %v620_v55 = vadd.f32 %v619_v53, %v618_v51 }
 0x12a   : > { %v614_v56 = vadd.f32 %v613_v54, %v612_v52  ;;  %v621_v57 = vrot.slane %v620_v55, 1 }
 0x12c   : > { %615 = vst [vmem:[%s271_s15] sm:$0x1] %v614_v56  ;;  %v622_v58 = vadd.f32 %v621_v57, %v620_v55 }
 0x12e   : > { %623 = vst [vmem:[%s274_s20] sm:$0x1] %v622_v58 }
 0x12f PF: > { %s17_s18 = sadd.s32 1, %s963_s18  }
 0x130   : > { %p14_p1 = scmp.ge.s32.totalorder %s17_s18, 4  }
 0x132   :  { %16 = sbr.rel (!%p14_p1) target bundleno = 1 (0x1), region = 96 }
 0x137   :  { %667 = vsyncpa [#allocation3], 1 }
 0x138   :  { %669 = vsyncpa [#allocation3 + $0x1], 1 }

// kernel: resnet_forward.37
= control target key start
LH: loop header
LB: loop body
LE: loop exit
PB: predicated region body
PF: predicated region fallthrough
CT: control target
= control target key end

     0   :  { %10 = vsyncpa [#allocation3], 0  ;;  %s939_s15 = smov 0   ;;  %s1028_s0 = inlined_call_operand.vmem [shape: bf16[2,10,128], index: 0, kind: input, shape index: {}]   ;;  %s1029_s1 = inlined_call_operand.hbm [shape: bf16[3,128,128], index: 1, kind: input, shape index: {}]   ;;  %s1030_s2 = inlined_call_operand.vmem [shape: f32[2,8,128], index: 2, kind: output, shape index: {0}]   ;;  %s1031_s3 = inlined_call_operand.vmem [shape: f32[2,1,128], index: 3, kind: output, shape index: {1}]   ;;  %s1032_s4 = inlined_call_operand.vmem [shape: f32[2,1,128], index: 4, kind: output, shape index: {2}]  }
   0x1 LB: > { %s945_s16 = sadd.s32 4294967295, %s907_s15   ;;  %p698_p0 = scmp.ge.s32.totalorder %s907_s15, 1  ;;  %s907_s15 = sphi %s939_s15, %s16_s15  }
   0x2   : > { %p146_p1 = scmp.lt.s32.totalorder %s907_s15, 3  ;;  %s909_s17 = smov [#allocation2]  }
   0x3   : > { %s158_s18 = sshll.u32 %s909_s17, 4  ;;  %p830_p3 = scmp.eq.s32.totalorder %s945_s16, 0  ;;  %s159_s18 = int_to_ptr.vmem [resolvable:$true] %s158_s18 }
   0x4   : > { %p949_p2 = pnand %p698_p0, %p146_p1  ;;  %s882_s20 = scalar_lea.vmem %s159_s18, 3072 }
   0x5   : > { %p883_p7 = scmp.ne.s32.totalorder %s159_s18, %s882_s20  ;;  %p890_p10 = scmp.lt.s32.totalorder %s159_s18, %s159_s18 }
   0x6   : > { %p826_p4 = pneg %p949_p2  ;;  %p891_p11 = scmp.lt.s32.totalorder %s882_s20, %s882_s20 }
   0x8   : > { %p827_p5 = pnand %p830_p3, %p826_p4  ;;  %p892_p12 = por %p891_p11, %p890_p10 }
   0xa   : > { %p873_p6 = pneg %p827_p5 }
   0xc   : > { %p885_p8 = pnand %p883_p7, %p873_p6 }
   0xe   : > { %p886_p9 = pneg %p885_p8 }
  0x10   : > { %p893_p13 = pnand %p892_p12, %p886_p9 }
  0x12   : > { %896 = shalt.err (!%p893_p13)
}
  0x13   : > { %s910_s21 = smov 64   ;;  %s911_s22 = smov 4  }
  0x14   : > { %829 = dma.hbm_to_vmem [thread:$0]  (!%p827_p5), %s1029_s1, 3072, %s159_s18, [#allocation3], %s910_s21, %s910_s21, %s911_s22  }
  0x15   : > { %182 = sbr.rel (%p949_p2) target bundleno = 303 (0x12f), region = 28 }
  0x1a   : > { %902 = dma.done.wait (%p830_p3), [#allocation3], 3072  }
  0x1b   : > { %904 = vsyncadd (%p830_p3), [#allocation3], 4294964224  ;;  %v912_v0 = vmov 0.0   ;;  %vm913_vm0 = vmmov 0   ;;  %v845_v1 = vld [vmem:[#allocation2 + $0x78] sm:$0xff]   ;;  %v847_v3 = vld [vmem:[#allocation2 + $0x70] sm:$0xff]  }
  0x1c   : > { %762 = vmatprep.subr.bf16.mxu0 %v912_v0  ;;  %782 = vmatprep.subr.bf16.mxu1 %v912_v0  ;;  %v846_v2 = vld [vmem:[#allocation2 + $0x38] sm:$0xff]   ;;  %p213_p0 = scmp.lt.s32.totalorder %s945_s16, 1  ;;  %v848_v4 = vld [vmem:[#allocation2 + $0x30] sm:$0xff]   ;;  %v849_v5 = vld [vmem:[#allocation2 + $0x68] sm:$0xff]  }
  0x1d   : > { %778 = vmatprep.mubr.msk.bf16.mxu0 %vm913_vm0, %v912_v0  ;;  %798 = vmatprep.mubr.msk.bf16.mxu1 %vm913_vm0, %v912_v0  ;;  %v850_v6 = vld [vmem:[#allocation2 + $0x28] sm:$0xff]   ;;  %v851_v7 = vld [vmem:[#allocation2 + $0x60] sm:$0xff]   ;;  %v853_v9 = vld [vmem:[#allocation2 + $0x58] sm:$0xff]  }
  0x1e   : > { %763 = vmatpush3.bf16.msra.mxu0 %v845_v1  ;;  %783 = vmatpush3.bf16.msra.mxu1 %v846_v2  ;;  %s1035_s16 = smov (!%p213_p0, %s945_s16), 1  ;;  %v852_v8 = vld [vmem:[#allocation2 + $0x20] sm:$0xff]   ;;  %v854_v10 = vld [vmem:[#allocation2 + $0x18] sm:$0xff]   ;;  %v855_v14 = vld [vmem:[#allocation2 + $0x50] sm:$0xff]  }
  0x1f   : > { %764 = vmatprep.subr.bf16.mxu0 %v912_v0  ;;  %784 = vmatprep.subr.bf16.mxu1 %v912_v0  ;;  %s734_s25 = sshll.u32 %s1035_s16, 3  ;;  %v856_v15 = vld [vmem:[#allocation2 + $0x10] sm:$0xff]   ;;  %v857_v17 = vld [vmem:[#allocation2 + $0x48] sm:$0xff]   ;;  %v859_v21 = vld [vmem:[#allocation2 + $0x40] sm:$0xff]   ;;  %s224_s8 = scalar_lea.vmem %s1031_s3, %s1035_s16 }
  0x20   : > { %s989_s28 = scalar_lea.vmem %s1028_s0, %s734_s25  ;;  %v858_v18 = vld [vmem:[#allocation2 + $0x8] sm:$0xff]   ;;  %v860_v22 = vld [vmem:[#allocation2] sm:$0xff]   ;;  %v862_v24 = vld [vmem:[#allocation2 + $0xb8] sm:$0xff]   ;;  %s221_s5 = scalar_lea.vmem %s1030_s2, %s734_s25 }
  0x21   : > { %v229_v11 = vld [vmem:[%s989_s28] sm:$0xf]  ;;  %v246_v12 = vld [vmem:[%s989_s28 + $0x4] sm:$0x1]  ;;  %v863_v25 = vld [vmem:[#allocation2 + $0xb0] sm:$0xff]   ;;  %s227_s11 = scalar_lea.vmem %s1032_s4, %s1035_s16 }
  0x22   : > { %765 = vmatpush3.bf16.msra.mxu0 %v847_v3  ;;  %785 = vmatpush3.bf16.msra.mxu1 %v848_v4  ;;  %v706_v13 = vcombine.low %v229_v11, %v246_v12  ;;  %v864_v26 = vld [vmem:[#allocation2 + $0xa8] sm:$0xff]   ;;  %v865_v27 = vld [vmem:[#allocation2 + $0xa0] sm:$0xff]   ;;  %v866_v28 = vld [vmem:[#allocation2 + $0x98] sm:$0xff]  }
  0x23   : > { %766 = vmatprep.subr.bf16.mxu0 %v912_v0  ;;  %786 = vmatprep.subr.bf16.mxu1 %v912_v0  ;;  %v867_v29 = vld [vmem:[#allocation2 + $0x90] sm:$0xff]   ;;  %v868_v30 = vld [vmem:[#allocation2 + $0x88] sm:$0xff]   ;;  %v453_v31 = vld [vmem:[%s989_s28] sm:$0xe] }
  0x24   : > { %v272_v16 = vshll.u32 %v706_v13, 16  ;;  %v270_v19 = vshrl.u32 %v706_v13, 16  ;;  %v723_v32 = vcombine.low %v453_v31, %v246_v12  ;;  %v869_v33 = vld [vmem:[#allocation2 + $0x80] sm:$0xff]  }
  0x26   : > { %767 = vmatpush3.bf16.msra.mxu0 %v849_v5  ;;  %787 = vmatpush3.bf16.msra.mxu1 %v850_v6  ;;  %v274_v20 = vrot.slane %v272_v16, 1  ;;  %v474_v34 = vrot.slane %v723_v32, 1 }
  0x27   : > { %768 = vmatprep.subr.bf16.mxu0 %v912_v0  ;;  %788 = vmatprep.subr.bf16.mxu1 %v912_v0 }
  0x28   : > { %v275_v23 = vor.u32 %v274_v20, %v270_v19 }
  0x2a   : > { %769 = vmatpush3.bf16.msra.mxu0 %v851_v7  ;;  %789 = vmatpush3.bf16.msra.mxu1 %v852_v8 }
  0x2b   : > { %770 = vmatprep.subr.bf16.mxu0 %v912_v0  ;;  %790 = vmatprep.subr.bf16.mxu1 %v912_v0 }
  0x2e   : > { %771 = vmatpush3.bf16.msra.mxu0 %v853_v9  ;;  %791 = vmatpush3.bf16.msra.mxu1 %v854_v10 }
  0x2f   : > { %772 = vmatprep.subr.bf16.mxu0 %v912_v0  ;;  %792 = vmatprep.subr.bf16.mxu1 %v912_v0 }
  0x32   : > { %773 = vmatpush3.bf16.msra.mxu0 %v855_v14  ;;  %793 = vmatpush3.bf16.msra.mxu1 %v856_v15 }
  0x33   : > { %774 = vmatprep.subr.bf16.mxu0 %v912_v0  ;;  %794 = vmatprep.subr.bf16.mxu1 %v912_v0 }
  0x36   : > { %775 = vmatpush3.bf16.msra.mxu0 %v857_v17  ;;  %795 = vmatpush3.bf16.msra.mxu1 %v858_v18 }
  0x37   : > { %776 = vmatprep.subr.bf16.mxu0 %v912_v0  ;;  %796 = vmatprep.subr.bf16.mxu1 %v912_v0 }
  0x3a   : > { %777 = vmatpush3.bf16.msra.mxu0 %v859_v21  ;;  %797 = vmatpush3.bf16.msra.mxu1 %v860_v22 }
  0x3b   : > { %802 = vmatprep.subr.bf16.mxu0 %v912_v0 }
  0x3d   : > { %779 = vmatmul.mubr.bf16.vlgmr.msra.gmra.mxu0 %v275_v23  ;;  %799 = vmatmul.mubr.bf16.vlgmr.msra.gmra.mxu1 %v229_v11 }
  0x3e   : > { %803 = vmatpush3.bf16.msra.mxu0 %v862_v24  ;;  %818 = vmatprep.mubr.msk.bf16.mxu0 %vm913_vm0, %v912_v0 }
  0x3f   : > { %804 = vmatprep.subr.bf16.mxu0 %v912_v0 }
  0x42   : > { %805 = vmatpush3.bf16.msra.mxu0 %v863_v25 }
  0x43   : > { %806 = vmatprep.subr.bf16.mxu0 %v912_v0 }
  0x46   : > { %807 = vmatpush3.bf16.msra.mxu0 %v864_v26 }
  0x47   : > { %808 = vmatprep.subr.bf16.mxu0 %v912_v0 }
  0x4a   : > { %809 = vmatpush3.bf16.msra.mxu0 %v865_v27 }
  0x4b   : > { %810 = vmatprep.subr.bf16.mxu0 %v912_v0 }
  0x4e   : > { %811 = vmatpush3.bf16.msra.mxu0 %v866_v28 }
  0x4f   : > { %812 = vmatprep.subr.bf16.mxu0 %v912_v0 }
  0x52   : > { %813 = vmatpush3.bf16.msra.mxu0 %v867_v29 }
  0x53   : > { %814 = vmatprep.subr.bf16.mxu0 %v912_v0 }
  0x56   : > { %815 = vmatpush3.bf16.msra.mxu0 %v868_v30 }
  0x57   : > { %816 = vmatprep.subr.bf16.mxu0 %v912_v0 }
  0x5a   : > { %817 = vmatpush3.bf16.msra.mxu0 %v869_v33 }
  0x5d   : > { %819 = vmatmul.mubr.bf16.vlgmr.msra.gmra.mxu0 %v474_v34 }
  0xfd   : > { %v359_v35 = vpop.f32.mrf.mxu0  ;;  %v447_v36 = vpop.f32.mrf.mxu1 }
  0xfe   : > { %v448_v43 = vadd.f32 %v447_v36, %v359_v35 }
  0xff   : > { %v780_v37 = vpop.f32.mrf.mxu0  ;;  %v800_v38 = vpop.f32.mrf.mxu1 }
 0x101   : > { %v362_v39 = vpop.f32.mrf.mxu0  ;;  %v450_v40 = vpop.f32.mrf.mxu1 }
 0x103   : > { %v781_v41 = vpop.f32.mrf.mxu0  ;;  %v801_v42 = vpop.f32.mrf.mxu1 }
 0x11d   : > { %v558_v44 = vpop.f32.mrf.mxu0 }
 0x11e   : > { %v564_v45 = vadd.f32 %v558_v44, %v448_v43 }
 0x11f   : > { %v820_v46 = vpop.f32.mrf.mxu0 }
 0x120   : > { %565 = vst [vmem:[%s221_s5] sm:$0xff] %v564_v45  ;;  %v566_v47 = vrot.slane %v564_v45, 4  ;;  %v573_v48 = vmul.f32 %v564_v45, %v564_v45 }
 0x121   : > { %v561_v49 = vpop.f32.mrf.mxu0 }
 0x122   : > { %v567_v50 = vadd.f32 %v566_v47, %v564_v45  ;;  %v574_v51 = vrot.slane %v573_v48, 4 }
 0x123   : > { %v821_v52 = vpop.f32.mrf.mxu0 }
 0x124   : > { %v568_v53 = vrot.slane %v567_v50, 2  ;;  %v575_v54 = vadd.f32 %v574_v51, %v573_v48 }
 0x126   : > { %v569_v55 = vadd.f32 %v568_v53, %v567_v50  ;;  %v576_v56 = vrot.slane %v575_v54, 2 }
 0x128   : > { %v570_v57 = vrot.slane %v569_v55, 1  ;;  %v577_v58 = vadd.f32 %v576_v56, %v575_v54 }
 0x12a   : > { %v571_v59 = vadd.f32 %v570_v57, %v569_v55  ;;  %v578_v60 = vrot.slane %v577_v58, 1 }
 0x12c   : > { %572 = vst [vmem:[%s224_s8] sm:$0x1] %v571_v59  ;;  %v579_v61 = vadd.f32 %v578_v60, %v577_v58 }
 0x12e   : > { %580 = vst [vmem:[%s227_s11] sm:$0x1] %v579_v61 }
 0x12f PF: > { %s16_s15 = sadd.s32 1, %s907_s15  }
 0x130   : > { %p13_p1 = scmp.ge.s32.totalorder %s16_s15, 4  }
 0x132   :  { %15 = sbr.rel (!%p13_p1) target bundleno = 1 (0x1), region = 89 }
 0x137   :  { %624 = vsyncpa [#allocation3], 1 }
 0x138   :  { %626 = vsyncpa [#allocation3 + $0x1], 1 }

// kernel: resnet_forward.39
= control target key start
LH: loop header
LB: loop body
LE: loop exit
PB: predicated region body
PF: predicated region fallthrough
CT: control target
= control target key end

     0   :  { %s648_s15 = smov 0   ;;  %s732_s0 = inlined_call_operand.vmem [shape: bf16[2,4,128], index: 0, kind: input, shape index: {}]   ;;  %s733_s1 = inlined_call_operand.vmem [shape: bf16[1,128,256], index: 1, kind: input, shape index: {}]   ;;  %s734_s2 = inlined_call_operand.vmem [shape: f32[2,4,256], index: 2, kind: output, shape index: {0}]   ;;  %s735_s3 = inlined_call_operand.vmem [shape: f32[2,1,256], index: 3, kind: output, shape index: {1}]   ;;  %s736_s4 = inlined_call_operand.vmem [shape: f32[2,1,256], index: 4, kind: output, shape index: {2}]  }
   0x1 LB: > { %s550_s16 = sadd.s32 4294967295, %s619_s15   ;;  %p554_p0 = scmp.ge.s32.totalorder %s619_s15, 1  ;;  %s619_s15 = sphi %s648_s15, %s15_s15  }
   0x2   : > { %p166_p1 = scmp.lt.s32.totalorder %s619_s15, 3 }
   0x4   : > { %p167_p2 = pnand %p554_p0, %p166_p1 }
   0x5   : > { %p199_p3 = scmp.lt.s32.totalorder (!%p167_p2), %s550_s16, 1 }
   0x6   : > { %170 = sbr.rel (%p167_p2) target bundleno = 261 (0x105), region = 28 }
   0xb   : > { %v589_v0 = vld [vmem:[%s733_s1 + $0x74] ss:$8 sps:$4 sm:$0xff]   ;;  %v591_v1 = vld [vmem:[%s733_s1 + $0x70] ss:$8 sps:$4 sm:$0xff]   ;;  %v621_v2 = vmov 0   ;;  %s738_s16 = smov (!%p199_p3, %s550_s16), 1  ;;  %v381_v33 = vlaneseq }
   0xc   : > { %346 = vmatprep.mubr.bf16.mxu0 %v621_v2  ;;  %314 = vmatprep.subr.bf16.mxu0 %v589_v0  ;;  %v592_v3 = vld [vmem:[%s733_s1 + $0x64] ss:$8 sps:$4 sm:$0xff]   ;;  %v594_v4 = vld [vmem:[%s733_s1 + $0x60] ss:$8 sps:$4 sm:$0xff]   ;;  %v595_v5 = vld [vmem:[%s733_s1 + $0x54] ss:$8 sps:$4 sm:$0xff]  }
   0xd   : > { %315 = vmatpush1.bf16.msra.mxu0 %v591_v1  ;;  %v597_v6 = vld [vmem:[%s733_s1 + $0x50] ss:$8 sps:$4 sm:$0xff]   ;;  %v598_v7 = vld [vmem:[%s733_s1 + $0x44] ss:$8 sps:$4 sm:$0xff]   ;;  %v600_v8 = vld [vmem:[%s733_s1 + $0x40] ss:$8 sps:$4 sm:$0xff]  }
   0xe   : > { %316 = vmatprep.subr.bf16.mxu0 %v592_v3  ;;  %v601_v9 = vld [vmem:[%s733_s1 + $0x34] ss:$8 sps:$4 sm:$0xff]   ;;  %v603_v10 = vld [vmem:[%s733_s1 + $0x30] ss:$8 sps:$4 sm:$0xff]   ;;  %v604_v11 = vld [vmem:[%s733_s1 + $0x24] ss:$8 sps:$4 sm:$0xff]  }
   0xf   : > { %v606_v12 = vld [vmem:[%s733_s1 + $0x20] ss:$8 sps:$4 sm:$0xff]   ;;  %v607_v13 = vld [vmem:[%s733_s1 + $0x14] ss:$8 sps:$4 sm:$0xff]   ;;  %v609_v14 = vld [vmem:[%s733_s1 + $0x10] ss:$8 sps:$4 sm:$0xff]  }
  0x10   : > { %v610_v15 = vld [vmem:[%s733_s1 + $0x4] ss:$8 sps:$4 sm:$0xff]   ;;  %s705_s23 = sshll.u32 %s738_s16, 1  ;;  %v612_v16 = vld [vmem:[%s733_s1] ss:$8 sps:$4 sm:$0xff]   ;;  %vm360_vm0 = vcmask 1043456  }
  0x11   : > { %317 = vmatpush1.bf16.msra.mxu0 %v594_v4  ;;  %s202_s28 = scalar_lea.vmem %s732_s0, %s705_s23  ;;  %s578_s29 = sshll.u32 %s738_s16, 3  ;;  %v622_v31 = vmov 1966171168   ;;  %v382_v45 = vshrl.u32 %v381_v33, 7  ;;  %vm395_vm1 = vcmp.lt.s32.totalorder %v381_v33, 256 }
  0x12   : > { %318 = vmatprep.subr.bf16.mxu0 %v595_v5  ;;  %v217_v17 = vld [vmem:[%s202_s28] sm:$0x3]  ;;  %s207_s6 = scalar_lea.vmem %s734_s2, %s578_s29  ;;  %v379_v32 = vunpack.c.l.s4 %v622_v31  ;;  %s211_s8 = scalar_lea.vmem %s735_s3, %s705_s23 }
  0x13   : > { %s215_s11 = scalar_lea.vmem %s736_s4, %s705_s23 }
  0x14   : > { %v380_v44 = vunpack.c.0.s8 %v379_v32 }
  0x15   : > { %319 = vmatpush1.bf16.msra.mxu0 %v597_v6 }
  0x16   : > { %320 = vmatprep.subr.bf16.mxu0 %v598_v7  ;;  %v383_v55 = vsub.s32 %v380_v44, %v382_v45 }
  0x19   : > { %321 = vmatpush1.bf16.msra.mxu0 %v600_v8 }
  0x1a   : > { %322 = vmatprep.subr.bf16.mxu0 %v601_v9 }
  0x1d   : > { %323 = vmatpush1.bf16.msra.mxu0 %v603_v10 }
  0x1e   : > { %324 = vmatprep.subr.bf16.mxu0 %v604_v11 }
  0x21   : > { %325 = vmatpush1.bf16.msra.mxu0 %v606_v12 }
  0x22   : > { %326 = vmatprep.subr.bf16.mxu0 %v607_v13 }
  0x25   : > { %327 = vmatpush1.bf16.msra.mxu0 %v609_v14 }
  0x26   : > { %328 = vmatprep.subr.bf16.mxu0 %v610_v15 }
  0x29   : > { %329 = vmatpush1.bf16.msra.mxu0 %v612_v16 }
  0x2c   : > { %347 = vmatmul.mubr.bf16.vlgmr.msra.gmra.mxu0 %v217_v17 }
  0xec   : > { %v348_v18 = vpop.f32.mrf.mxu0 }
  0xed   : > { %v361_v19 = vsel %vm360_vm0, %v348_v18, 0.0  ;;  %v398_v20 = vmul.f32 %v348_v18, %v348_v18 }
  0xee   : > { %v362_v21 = vrot.slane %v361_v19, 4  ;;  %v350_v22 = vpop.f32.mrf.mxu0 }
  0xef   : > { %v400_v23 = vsel %vm360_vm0, %v398_v20, 0.0  ;;  %v357_v24 = vcombine.low %v348_v18, %v350_v22  ;;  %v368_v25 = vsel %vm360_vm0, %v350_v22, 0.0  ;;  %v399_v26 = vmul.f32 %v350_v22, %v350_v22 }
  0xf0   : > { %v363_v27 = vadd.f32 %v362_v21, %v361_v19  ;;  %v401_v28 = vrot.slane %v400_v23, 4  ;;  %v369_v29 = vrot.slane %v368_v25, 4  ;;  %v352_v30 = vpop.f32.mrf.mxu0 }
  0xf1   : > { %359 = vst [vmem:[%s207_s6] sm:$0xff] %v357_v24  ;;  %v407_v34 = vsel %vm360_vm0, %v399_v26, 0.0 }
  0xf2   : > { %v364_v35 = vrot.slane %v363_v27, 2  ;;  %v402_v36 = vadd.f32 %v401_v28, %v400_v23  ;;  %v370_v37 = vadd.f32 %v369_v29, %v368_v25  ;;  %v408_v38 = vrot.slane %v407_v34, 4  ;;  %v353_v39 = vpop.f32.mrf.mxu0 }
  0xf4   : > { %v365_v40 = vadd.f32 %v364_v35, %v363_v27  ;;  %v403_v41 = vrot.slane %v402_v36, 2  ;;  %v371_v42 = vrot.slane %v370_v37, 2  ;;  %v409_v43 = vadd.f32 %v408_v38, %v407_v34 }
  0xf6   : > { %v366_v46 = vrot.slane %v365_v40, 1  ;;  %v404_v47 = vadd.f32 %v403_v41, %v402_v36  ;;  %v372_v48 = vadd.f32 %v371_v42, %v370_v37  ;;  %v410_v49 = vrot.slane %v409_v43, 2 }
  0xf8   : > { %v405_v50 = vrot.slane %v404_v47, 1  ;;  %v373_v51 = vrot.slane %v372_v48, 1  ;;  %v411_v52 = vadd.f32 %v410_v49, %v409_v43  ;;  %v367_v53 = vadd.f32 %v366_v46, %v365_v40 }
  0xfa   : > { %v374_v54 = vadd.f32 %v373_v51, %v372_v48  ;;  %v412_v56 = vrot.slane %v411_v52, 1  ;;  %v406_v57 = vadd.f32 %v405_v50, %v404_v47 }
  0xfc   : > { %v377_v58 = vcombine.low %v367_v53, %v374_v54  ;;  %v413_v59 = vadd.f32 %v412_v56, %v411_v52 }
  0xfe   : > { %v384_v60 = vrot.slane %v377_v58, %v383_v55  ;;  %v416_v61 = vcombine.low %v406_v57, %v413_v59 }
 0x100   : > { %v391_v62 = vrot.slane %v384_v60, %v383_v55  ;;  %v423_v63 = vrot.slane %v416_v61, %v383_v55 }
 0x102   : > { %397 = vst.msk [vmem:[%s211_s8] sm:$0x3] %vm395_vm1, %v391_v62  ;;  %v430_v0 = vrot.slane %v423_v63, %v383_v55 }
 0x104   : > { %432 = vst.msk [vmem:[%s215_s11] sm:$0x3] %vm395_vm1, %v430_v0 }
 0x105 PF: > { %s15_s15 = sadd.s32 1, %s619_s15  }
 0x106   : > { %p12_p4 = scmp.ge.s32.totalorder %s15_s15, 4  }
 0x108   :  { %14 = sbr.rel (!%p12_p4) target bundleno = 1 (0x1), region = 82 }

// kernel: resnet_forward.41
= control target key start
LH: loop header
LB: loop body
LE: loop exit
PB: predicated region body
PF: predicated region fallthrough
CT: control target
= control target key end

     0   :  { %11 = vsyncpa [#allocation3], 0  ;;  %s1158_s18 = smov 0   ;;  %s1222_s0 = inlined_call_operand.vmem [shape: bf16[2,5,128], index: 0, kind: input, shape index: {}]   ;;  %s1223_s1 = inlined_call_operand.vmem [shape: bf16[2,5,128], index: 1, kind: input, shape index: {}]   ;;  %s1224_s2 = inlined_call_operand.hbm [shape: bf16[3,128,256], index: 2, kind: input, shape index: {}]   ;;  %s1225_s3 = inlined_call_operand.vmem [shape: f32[2,4,256], index: 3, kind: output, shape index: {0}]   ;;  %s1226_s4 = inlined_call_operand.vmem [shape: f32[2,1,256], index: 4, kind: output, shape index: {1}]   ;;  %s1227_s5 = inlined_call_operand.vmem [shape: f32[2,1,256], index: 5, kind: output, shape index: {2}]  }
   0x1 LB: > { %s1164_s19 = sadd.s32 4294967295, %s1121_s18   ;;  %p926_p0 = scmp.ge.s32.totalorder %s1121_s18, 1  ;;  %s1121_s18 = sphi %s1158_s18, %s17_s18  }
   0x2   : > { %p173_p1 = scmp.lt.s32.totalorder %s1121_s18, 3  ;;  %s1123_s20 = smov [#allocation2]  }
   0x3   : > { %s185_s21 = sshll.u32 %s1123_s20, 4  ;;  %p997_p3 = scmp.eq.s32.totalorder %s1164_s19, 0  ;;  %s186_s21 = int_to_ptr.vmem [resolvable:$true] %s185_s21 }
   0x4   : > { %p1168_p2 = pnand %p926_p0, %p173_p1  ;;  %s1096_s23 = scalar_lea.vmem %s186_s21, 6144 }
   0x5   : > { %p1097_p7 = scmp.ne.s32.totalorder %s186_s21, %s1096_s23  ;;  %p1104_p10 = scmp.lt.s32.totalorder %s186_s21, %s186_s21 }
   0x6   : > { %p993_p4 = pneg %p1168_p2  ;;  %p1105_p11 = scmp.lt.s32.totalorder %s1096_s23, %s1096_s23 }
   0x8   : > { %p994_p5 = pnand %p997_p3, %p993_p4  ;;  %p1106_p12 = por %p1105_p11, %p1104_p10 }
   0xa   : > { %p1087_p6 = pneg %p994_p5 }
   0xc   : > { %p1099_p8 = pnand %p1097_p7, %p1087_p6 }
   0xe   : > { %p1100_p9 = pneg %p1099_p8 }
  0x10   : > { %p1107_p13 = pnand %p1106_p12, %p1100_p9 }
  0x12   : > { %1110 = shalt.err (!%p1107_p13)
}
  0x13   : > { %s1124_s24 = smov 128   ;;  %s1125_s25 = smov 8  }
  0x14   : > { %996 = dma.hbm_to_vmem [thread:$0]  (!%p994_p5), %s1224_s2, 6144, %s186_s21, [#allocation3], %s1124_s24, %s1124_s24, %s1125_s25  }
  0x15   : > { %215 = sbr.rel (%p1168_p2) target bundleno = 312 (0x138), region = 32 }
  0x1a   : > { %1116 = dma.done.wait (%p997_p3), [#allocation3], 6144  }
  0x1b   : > { %1118 = vsyncadd (%p997_p3), [#allocation3], 4294961152  ;;  %v1126_v0 = vmov 0   ;;  %v1012_v1 = vld [vmem:[#allocation2 + $0xf4] ss:$8 sps:$4 sm:$0xff]   ;;  %p254_p0 = scmp.lt.s32.totalorder %s1164_s19, 1 }
  0x1c   : > { %423 = vmatprep.mubr.bf16.mxu0 %v1126_v0  ;;  %544 = vmatprep.mubr.bf16.mxu1 %v1126_v0  ;;  %v1014_v2 = vld [vmem:[#allocation2 + $0x74] ss:$8 sps:$4 sm:$0xff]   ;;  %v1016_v3 = vld [vmem:[#allocation2 + $0xf0] ss:$8 sps:$4 sm:$0xff]   ;;  %v1018_v5 = vld [vmem:[#allocation2 + $0xe4] ss:$8 sps:$4 sm:$0xff]  }
  0x1d   : > { %391 = vmatprep.subr.bf16.mxu0 %v1012_v1  ;;  %v1017_v4 = vld [vmem:[#allocation2 + $0x70] ss:$8 sps:$4 sm:$0xff]   ;;  %512 = vmatprep.subr.bf16.mxu1 %v1014_v2  ;;  %v1020_v6 = vld [vmem:[#allocation2 + $0x64] ss:$8 sps:$4 sm:$0xff]   ;;  %v1022_v7 = vld [vmem:[#allocation2 + $0xe0] ss:$8 sps:$4 sm:$0xff]  }
  0x1e   : > { %392 = vmatpush1.bf16.msra.mxu0 %v1016_v3  ;;  %513 = vmatpush1.bf16.msra.mxu1 %v1017_v4  ;;  %v1023_v8 = vld [vmem:[#allocation2 + $0x60] ss:$8 sps:$4 sm:$0xff]   ;;  %v1024_v9 = vld [vmem:[#allocation2 + $0xd4] ss:$8 sps:$4 sm:$0xff]   ;;  %v1028_v11 = vld [vmem:[#allocation2 + $0xd0] ss:$8 sps:$4 sm:$0xff]  }
  0x1f   : > { %393 = vmatprep.subr.bf16.mxu0 %v1018_v5  ;;  %514 = vmatprep.subr.bf16.mxu1 %v1020_v6  ;;  %v1026_v10 = vld [vmem:[#allocation2 + $0x54] ss:$8 sps:$4 sm:$0xff]   ;;  %v1029_v12 = vld [vmem:[#allocation2 + $0x50] ss:$8 sps:$4 sm:$0xff]   ;;  %v1030_v13 = vld [vmem:[#allocation2 + $0xc4] ss:$8 sps:$4 sm:$0xff]  }
  0x20   : > { %v1032_v14 = vld [vmem:[#allocation2 + $0x44] ss:$8 sps:$4 sm:$0xff]   ;;  %v1034_v15 = vld [vmem:[#allocation2 + $0xc0] ss:$8 sps:$4 sm:$0xff]   ;;  %v1036_v17 = vld [vmem:[#allocation2 + $0xb4] ss:$8 sps:$4 sm:$0xff]  }
  0x21   : > { %v1035_v16 = vld [vmem:[#allocation2 + $0x40] ss:$8 sps:$4 sm:$0xff]   ;;  %v1038_v18 = vld [vmem:[#allocation2 + $0x34] ss:$8 sps:$4 sm:$0xff]   ;;  %s1230_s19 = smov (!%p254_p0, %s1164_s19), 1  ;;  %vm710_vm0 = vcmask 1043456  }
  0x22   : > { %394 = vmatpush1.bf16.msra.mxu0 %v1022_v7  ;;  %515 = vmatpush1.bf16.msra.mxu1 %v1023_v8  ;;  %v1040_v19 = vld [vmem:[#allocation2 + $0xb0] ss:$8 sps:$4 sm:$0xff]   ;;  %v1042_v21 = vld [vmem:[#allocation2 + $0xa4] ss:$8 sps:$4 sm:$0xff]   ;;  %s931_s28 = sshll.u32 %s1230_s19, 2  ;;  %s988_s10 = sshll.u32 %s1230_s19, 3 }
  0x23   : > { %395 = vmatprep.subr.bf16.mxu0 %v1024_v9  ;;  %516 = vmatprep.subr.bf16.mxu1 %v1026_v10  ;;  %v1041_v20 = vld [vmem:[#allocation2 + $0x30] ss:$8 sps:$4 sm:$0xff]   ;;  %v1044_v22 = vld [vmem:[#allocation2 + $0x24] ss:$8 sps:$4 sm:$0xff]   ;;  %v1046_v23 = vld [vmem:[#allocation2 + $0xa0] ss:$8 sps:$4 sm:$0xff]   ;;  %s1196_s6 = scalar_lea.vmem %s1222_s0, %s931_s28  ;;  %s261_s9 = scalar_lea.vmem %s1223_s1, %s931_s28 }
  0x24   : > { %v1047_v24 = vld [vmem:[#allocation2 + $0x20] ss:$8 sps:$4 sm:$0xff]   ;;  %v1048_v25 = vld [vmem:[#allocation2 + $0x94] ss:$8 sps:$4 sm:$0xff]   ;;  %v1052_v27 = vld [vmem:[#allocation2 + $0x90] ss:$8 sps:$4 sm:$0xff]   ;;  %s266_s13 = scalar_lea.vmem %s1225_s3, %s988_s10 }
  0x25   : > { %v1050_v26 = vld [vmem:[#allocation2 + $0x14] ss:$8 sps:$4 sm:$0xff]   ;;  %v1053_v28 = vld [vmem:[#allocation2 + $0x10] ss:$8 sps:$4 sm:$0xff]   ;;  %v1054_v29 = vld [vmem:[#allocation2 + $0x84] ss:$8 sps:$4 sm:$0xff]  }
  0x26   : > { %396 = vmatpush1.bf16.msra.mxu0 %v1028_v11  ;;  %517 = vmatpush1.bf16.msra.mxu1 %v1029_v12  ;;  %v1056_v30 = vld [vmem:[#allocation2 + $0x4] ss:$8 sps:$4 sm:$0xff]   ;;  %v1058_v31 = vld [vmem:[#allocation2 + $0x80] ss:$8 sps:$4 sm:$0xff]   ;;  %v1063_v33 = vld [vmem:[#allocation2 + $0x174] ss:$8 sps:$4 sm:$0xff]  }
  0x27   : > { %397 = vmatprep.subr.bf16.mxu0 %v1030_v13  ;;  %518 = vmatprep.subr.bf16.mxu1 %v1032_v14  ;;  %v1059_v32 = vld [vmem:[#allocation2] ss:$8 sps:$4 sm:$0xff]   ;;  %v1061_v36 = vld [vmem:[#allocation2 + $0x170] ss:$8 sps:$4 sm:$0xff]   ;;  %v1066_v37 = vld [vmem:[#allocation2 + $0x164] ss:$8 sps:$4 sm:$0xff]  }
  0x28   : > { %v293_v34 = vld [vmem:[%s261_s9] sm:$0x3]  ;;  %v1069_v39 = vld [vmem:[#allocation2 + $0x154] ss:$8 sps:$4 sm:$0xff]   ;;  %v1067_v40 = vld [vmem:[#allocation2 + $0x150] ss:$8 sps:$4 sm:$0xff]  }
  0x29   : > { %v276_v35 = vld [vmem:[%s1196_s6] sm:$0x3]  ;;  %v1072_v41 = vld [vmem:[#allocation2 + $0x144] ss:$8 sps:$4 sm:$0xff]   ;;  %v1075_v43 = vld [vmem:[#allocation2 + $0x134] ss:$8 sps:$4 sm:$0xff]  }
  0x2a   : > { %398 = vmatpush1.bf16.msra.mxu0 %v1034_v15  ;;  %519 = vmatpush1.bf16.msra.mxu1 %v1035_v16  ;;  %v1064_v38 = vld [vmem:[#allocation2 + $0x160] ss:$8 sps:$4 sm:$0xff]   ;;  %v1073_v44 = vld [vmem:[#allocation2 + $0x130] ss:$8 sps:$4 sm:$0xff]   ;;  %v1078_v45 = vld [vmem:[#allocation2 + $0x124] ss:$8 sps:$4 sm:$0xff]  }
  0x2b   : > { %399 = vmatprep.subr.bf16.mxu0 %v1036_v17  ;;  %520 = vmatprep.subr.bf16.mxu1 %v1038_v18  ;;  %v1070_v42 = vld [vmem:[#allocation2 + $0x140] ss:$8 sps:$4 sm:$0xff]   ;;  %v1081_v48 = vld [vmem:[#allocation2 + $0x114] ss:$8 sps:$4 sm:$0xff]   ;;  %v1079_v50 = vld [vmem:[#allocation2 + $0x110] ss:$8 sps:$4 sm:$0xff]  }
  0x2c   : > { %v1060_v46 = vld [vmem:[%s1196_s6] ss:$0 sps:$4 sm:$0x77]   ;;  %v1084_v51 = vld [vmem:[#allocation2 + $0x104] ss:$8 sps:$4 sm:$0xff]   ;;  %s935_s14 = sshll.u32 %s1230_s19, 1 }
  0x2d   : > { %v1076_v47 = vld [vmem:[#allocation2 + $0x120] ss:$8 sps:$4 sm:$0xff]   ;;  %v577_v49 = vshll.u32 %v1060_v46, 16  ;;  %v575_v52 = vshrl.u32 %v1060_v46, 16  ;;  %v1127_v18 = vmov 1966171168   ;;  %s270_s17 = scalar_lea.vmem %s1226_s4, %s935_s14  ;;  %s274_s22 = scalar_lea.vmem %s1227_s5, %s935_s14 }
  0x2e   : > { %400 = vmatpush1.bf16.msra.mxu0 %v1040_v19  ;;  %521 = vmatpush1.bf16.msra.mxu1 %v1041_v20  ;;  %v1082_v54 = vld [vmem:[#allocation2 + $0x100] ss:$8 sps:$4 sm:$0xff]   ;;  %v729_v19 = vunpack.c.l.s4 %v1127_v18  ;;  %v731_v20 = vlaneseq }
  0x2f   : > { %401 = vmatprep.subr.bf16.mxu0 %v1042_v21  ;;  %522 = vmatprep.subr.bf16.mxu1 %v1044_v22  ;;  %v579_v53 = vrot.slane %v577_v49, 1 }
  0x30   : > { %vm745_vm1 = vcmp.lt.s32.totalorder %v731_v20, 256 }
  0x31   : > { %v580_v55 = vor.u32 %v579_v53, %v575_v52 }
  0x32   : > { %402 = vmatpush1.bf16.msra.mxu0 %v1046_v23  ;;  %523 = vmatpush1.bf16.msra.mxu1 %v1047_v24 }
  0x33   : > { %403 = vmatprep.subr.bf16.mxu0 %v1048_v25  ;;  %524 = vmatprep.subr.bf16.mxu1 %v1050_v26 }
  0x36   : > { %404 = vmatpush1.bf16.msra.mxu0 %v1052_v27  ;;  %525 = vmatpush1.bf16.msra.mxu1 %v1053_v28 }
  0x37   : > { %405 = vmatprep.subr.bf16.mxu0 %v1054_v29  ;;  %526 = vmatprep.subr.bf16.mxu1 %v1056_v30  ;;  %v730_v30 = vunpack.c.0.s8 %v729_v19 }
  0x3a   : > { %406 = vmatpush1.bf16.msra.mxu0 %v1058_v31  ;;  %527 = vmatpush1.bf16.msra.mxu1 %v1059_v32  ;;  %v732_v31 = vshrl.u32 %v731_v20, 7 }
  0x3b   : > { %662 = vmatprep.subr.bf16.mxu0 %v1063_v33 }
  0x3d   : > { %424 = vmatmul.mubr.bf16.vlgmr.msra.gmra.mxu0 %v293_v34  ;;  %545 = vmatmul.mubr.bf16.vlgmr.msra.gmra.mxu1 %v276_v35 }
  0x3e   : > { %663 = vmatpush1.bf16.msra.mxu0 %v1061_v36  ;;  %694 = vmatprep.mubr.bf16.mxu0 %v1126_v0 }
  0x3f   : > { %664 = vmatprep.subr.bf16.mxu0 %v1066_v37 }
  0x42   : > { %665 = vmatpush1.bf16.msra.mxu0 %v1064_v38 }
  0x43   : > { %666 = vmatprep.subr.bf16.mxu0 %v1069_v39 }
  0x46   : > { %667 = vmatpush1.bf16.msra.mxu0 %v1067_v40 }
  0x47   : > { %668 = vmatprep.subr.bf16.mxu0 %v1072_v41  ;;  %v733_v41 = vsub.s32 %v730_v30, %v732_v31 }
  0x4a   : > { %669 = vmatpush1.bf16.msra.mxu0 %v1070_v42 }
  0x4b   : > { %670 = vmatprep.subr.bf16.mxu0 %v1075_v43 }
  0x4e   : > { %671 = vmatpush1.bf16.msra.mxu0 %v1073_v44 }
  0x4f   : > { %672 = vmatprep.subr.bf16.mxu0 %v1078_v45 }
  0x52   : > { %673 = vmatpush1.bf16.msra.mxu0 %v1076_v47 }
  0x53   : > { %674 = vmatprep.subr.bf16.mxu0 %v1081_v48 }
  0x56   : > { %675 = vmatpush1.bf16.msra.mxu0 %v1079_v50 }
  0x57   : > { %676 = vmatprep.subr.bf16.mxu0 %v1084_v51 }
  0x5a   : > { %677 = vmatpush1.bf16.msra.mxu0 %v1082_v54 }
  0x5d   : > { %695 = vmatmul.mubr.bf16.vlgmr.msra.gmra.mxu0 %v580_v55 }
  0xfd   : > { %v425_v56 = vpop.f32.mrf.mxu0  ;;  %v546_v57 = vpop.f32.mrf.mxu1 }
  0xfe   : > { %v547_v0 = vadd.f32 %v546_v57, %v425_v56 }
  0xff   : > { %v427_v58 = vpop.f32.mrf.mxu0  ;;  %v548_v59 = vpop.f32.mrf.mxu1 }
 0x100   : > { %v549_v2 = vadd.f32 %v548_v59, %v427_v58 }
 0x101   : > { %v429_v60 = vpop.f32.mrf.mxu0  ;;  %v550_v61 = vpop.f32.mrf.mxu1 }
 0x103   : > { %v430_v62 = vpop.f32.mrf.mxu0  ;;  %v551_v63 = vpop.f32.mrf.mxu1 }
 0x11d   : > { %v696_v1 = vpop.f32.mrf.mxu0 }
 0x11e   : > { %v703_v3 = vadd.f32 %v696_v1, %v547_v0 }
 0x11f   : > { %v698_v4 = vpop.f32.mrf.mxu0 }
 0x120   : > { %v711_v5 = vsel %vm710_vm0, %v703_v3, 0.0  ;;  %v748_v6 = vmul.f32 %v703_v3, %v703_v3  ;;  %v704_v7 = vadd.f32 %v698_v4, %v549_v2 }
 0x121   : > { %v712_v8 = vrot.slane %v711_v5, 4  ;;  %v700_v9 = vpop.f32.mrf.mxu0 }
 0x122   : > { %v750_v10 = vsel %vm710_vm0, %v748_v6, 0.0  ;;  %v707_v11 = vcombine.low %v703_v3, %v704_v7  ;;  %v718_v12 = vsel %vm710_vm0, %v704_v7, 0.0  ;;  %v749_v13 = vmul.f32 %v704_v7, %v704_v7 }
 0x123   : > { %v713_v14 = vadd.f32 %v712_v8, %v711_v5  ;;  %v751_v15 = vrot.slane %v750_v10, 4  ;;  %v719_v16 = vrot.slane %v718_v12, 4  ;;  %v701_v17 = vpop.f32.mrf.mxu0 }
 0x124   : > { %709 = vst [vmem:[%s266_s13] sm:$0xff] %v707_v11  ;;  %v757_v21 = vsel %vm710_vm0, %v749_v13, 0.0 }
 0x125   : > { %v714_v22 = vrot.slane %v713_v14, 2  ;;  %v752_v23 = vadd.f32 %v751_v15, %v750_v10  ;;  %v720_v24 = vadd.f32 %v719_v16, %v718_v12  ;;  %v758_v25 = vrot.slane %v757_v21, 4 }
 0x127   : > { %v715_v26 = vadd.f32 %v714_v22, %v713_v14  ;;  %v753_v27 = vrot.slane %v752_v23, 2  ;;  %v721_v28 = vrot.slane %v720_v24, 2  ;;  %v759_v29 = vadd.f32 %v758_v25, %v757_v21 }
 0x129   : > { %v716_v32 = vrot.slane %v715_v26, 1  ;;  %v754_v33 = vadd.f32 %v753_v27, %v752_v23  ;;  %v722_v34 = vadd.f32 %v721_v28, %v720_v24  ;;  %v760_v35 = vrot.slane %v759_v29, 2 }
 0x12b   : > { %v755_v36 = vrot.slane %v754_v33, 1  ;;  %v723_v37 = vrot.slane %v722_v34, 1  ;;  %v761_v38 = vadd.f32 %v760_v35, %v759_v29  ;;  %v717_v39 = vadd.f32 %v716_v32, %v715_v26 }
 0x12d   : > { %v724_v40 = vadd.f32 %v723_v37, %v722_v34  ;;  %v762_v42 = vrot.slane %v761_v38, 1  ;;  %v756_v43 = vadd.f32 %v755_v36, %v754_v33 }
 0x12f   : > { %v727_v44 = vcombine.low %v717_v39, %v724_v40  ;;  %v763_v45 = vadd.f32 %v762_v42, %v761_v38 }
 0x131   : > { %v734_v46 = vrot.slane %v727_v44, %v733_v41  ;;  %v766_v47 = vcombine.low %v756_v43, %v763_v45 }
 0x133   : > { %v741_v48 = vrot.slane %v734_v46, %v733_v41  ;;  %v773_v49 = vrot.slane %v766_v47, %v733_v41 }
 0x135   : > { %747 = vst.msk [vmem:[%s270_s17] sm:$0x3] %vm745_vm1, %v741_v48  ;;  %v780_v50 = vrot.slane %v773_v49, %v733_v41 }
 0x137   : > { %782 = vst.msk [vmem:[%s274_s22] sm:$0x3] %vm745_vm1, %v780_v50 }
 0x138 PF: > { %s17_s18 = sadd.s32 1, %s1121_s18  }
 0x139   : > { %p14_p1 = scmp.ge.s32.totalorder %s17_s18, 4  }
 0x13b   :  { %16 = sbr.rel (!%p14_p1) target bundleno = 1 (0x1), region = 96 }
 0x140   :  { %832 = vsyncpa [#allocation3], 1 }
 0x141   :  { %834 = vsyncpa [#allocation3 + $0x1], 1 }

// kernel: resnet_forward.42
= control target key start
LH: loop header
LB: loop body
LE: loop exit
PB: predicated region body
PF: predicated region fallthrough
CT: control target
= control target key end

     0   :  { %s322_s12 = smov 0   ;;  %s345_s0 = inlined_call_operand.vmem [shape: f32[2,4,256], index: 0, kind: input, shape index: {}]   ;;  %s346_s1 = inlined_call_operand.vmem [shape: f32[1,256], index: 1, kind: input, shape index: {}]   ;;  %s347_s2 = inlined_call_operand.vmem [shape: f32[1,256], index: 2, kind: input, shape index: {}]   ;;  %s348_s3 = inlined_call_operand.vmem [shape: bf16[2,4,256], index: 3, kind: output, shape index: {}]  }
   0x1 LB: > { %s271_s13 = sadd.s32 4294967295, %s300_s12   ;;  %p275_p0 = scmp.ge.s32.totalorder %s300_s12, 1  ;;  %s300_s12 = sphi %s322_s12, %s13_s12  }
   0x2   : > { %p137_p1 = scmp.lt.s32.totalorder %s300_s12, 3 }
   0x4   : > { %p138_p2 = pnand %p275_p0, %p137_p1 }
   0x5   : > { %p161_p3 = scmp.lt.s32.totalorder (!%p138_p2), %s271_s13, 1 }
   0x6   : > { %141 = sbr.rel (%p138_p2) target bundleno = 32 (0x20), region = 32 }
   0xb   : > { %v174_v0 = vlaneseq  ;;  %s350_s13 = smov (!%p161_p3, %s271_s13), 1  ;;  %v172_v2 = vld [vmem:[%s346_s1] sm:$0x3] }
   0xc   : > { %v185_v3 = vld [vmem:[%s347_s2] sm:$0x3]  ;;  %s284_s18 = sshll.u32 %s350_s13, 3  ;;  %s285_s22 = sshll.u32 %s350_s13, 2 }
   0xd   : > { %v175_v1 = vshrl.u32 %v174_v0, 7  ;;  %s165_s21 = scalar_lea.vmem %s345_s0, %s284_s18  ;;  %s170_s25 = scalar_lea.vmem %s348_s3, %s285_s22 }
   0xe   : > { %v171_v10 = vld [vmem:[%s165_s21] sm:$0xff] }
   0xf   : > { %v176_v4 = vsub.s32 0, %v175_v1  ;;  %v180_v5 = vsub.s32 1, %v175_v1 }
  0x11   : > { %v177_v6 = vrot.slane %v172_v2, %v176_v4  ;;  %v181_v7 = vrot.slane %v172_v2, %v180_v5  ;;  %v190_v8 = vrot.slane %v185_v3, %v176_v4  ;;  %v194_v9 = vrot.slane %v185_v3, %v180_v5 }
  0x13   : > { %v182_v11 = vcombine.low %v177_v6, %v181_v7  ;;  %v195_v12 = vcombine.low %v190_v8, %v194_v9 }
  0x15   : > { %v184_v13 = vmul.f32 %v182_v11, %v171_v10 }
  0x17   : > { %v197_v14 = vadd.f32 %v195_v12, %v184_v13 }
  0x19   : > { %v198_v15 = vmax.f32 %v197_v14, 0.0 }
  0x1b   : > { %v200_v16 = vcombine.high %v198_v15, %v198_v15 }
  0x1d   : > { %v280_v17 = vpack.c.bf16 %v200_v16, %v198_v15 }
  0x1f   : > { %281 = vst.sshfl [vmem:[%s170_s25] sm:$0x33 pattern:$0x76325410] %v280_v17 }
  0x20 PF: > { %s13_s12 = sadd.s32 1, %s300_s12  }
  0x21   : > { %p10_p4 = scmp.ge.s32.totalorder %s13_s12, 4  }
  0x23   :  { %12 = sbr.rel (!%p10_p4) target bundleno = 1 (0x1), region = 62 }

// kernel: resnet_forward.43
= control target key start
LH: loop header
LB: loop body
LE: loop exit
PB: predicated region body
PF: predicated region fallthrough
CT: control target
= control target key end

     0   :  { %10 = vsyncpa [#allocation3], 0  ;;  %s1542_s15 = smov 0   ;;  %s1610_s0 = inlined_call_operand.vmem [shape: bf16[2,6,256], index: 0, kind: input, shape index: {}]   ;;  %s1611_s1 = inlined_call_operand.hbm [shape: bf16[3,256,256], index: 1, kind: input, shape index: {}]   ;;  %s1612_s2 = inlined_call_operand.vmem [shape: f32[2,4,256], index: 2, kind: output, shape index: {0}]   ;;  %s1613_s3 = inlined_call_operand.vmem [shape: f32[2,1,256], index: 3, kind: output, shape index: {1}]   ;;  %s1614_s4 = inlined_call_operand.vmem [shape: f32[2,1,256], index: 4, kind: output, shape index: {2}]  }
   0x1 LB: > { %s1548_s16 = sadd.s32 4294967295, %s1511_s15   ;;  %p1186_p0 = scmp.ge.s32.totalorder %s1511_s15, 1  ;;  %s1511_s15 = sphi %s1542_s15, %s16_s15  }
   0x2   : > { %p146_p1 = scmp.lt.s32.totalorder %s1511_s15, 3  ;;  %s1513_s17 = smov [#allocation2]  }
   0x3   : > { %s158_s18 = sshll.u32 %s1513_s17, 4  ;;  %p1311_p3 = scmp.eq.s32.totalorder %s1548_s16, 0  ;;  %s159_s18 = int_to_ptr.vmem [resolvable:$true] %s158_s18 }
   0x4   : > { %p1552_p2 = pnand %p1186_p0, %p146_p1  ;;  %s1486_s20 = scalar_lea.vmem %s159_s18, 12288 }
   0x5   : > { %p1487_p7 = scmp.ne.s32.totalorder %s159_s18, %s1486_s20  ;;  %p1494_p10 = scmp.lt.s32.totalorder %s159_s18, %s159_s18 }
   0x6   : > { %p1307_p4 = pneg %p1552_p2  ;;  %p1495_p11 = scmp.lt.s32.totalorder %s1486_s20, %s1486_s20 }
   0x8   : > { %p1308_p5 = pnand %p1311_p3, %p1307_p4  ;;  %p1496_p12 = por %p1495_p11, %p1494_p10 }
   0xa   : > { %p1477_p6 = pneg %p1308_p5 }
   0xc   : > { %p1489_p8 = pnand %p1487_p7, %p1477_p6 }
   0xe   : > { %p1490_p9 = pneg %p1489_p8 }
  0x10   : > { %p1497_p13 = pnand %p1496_p12, %p1490_p9 }
  0x12   : > { %1500 = shalt.err (!%p1497_p13)
}
  0x13   : > { %s1514_s21 = smov 128   ;;  %s1515_s22 = smov 8  }
  0x14   : > { %1310 = dma.hbm_to_vmem [thread:$0]  (!%p1308_p5), %s1611_s1, 12288, %s159_s18, [#allocation3], %s1514_s21, %s1514_s21, %s1515_s22  }
  0x15   : > { %182 = sbr.rel (%p1552_p2) target bundleno = 375 (0x177), region = 28 }
  0x1a   : > { %1506 = dma.done.wait (%p1311_p3), [#allocation3], 12288  }
  0x1b   : > { %1508 = vsyncadd (%p1311_p3), [#allocation3], 4294955008  ;;  %v1325_v0 = vld [vmem:[#allocation2 + $0x174] ss:$8 sps:$4 sm:$0xff]   ;;  %v1329_v2 = vld [vmem:[#allocation2 + $0x170] ss:$8 sps:$4 sm:$0xff]  }
  0x1c   : > { %v1327_v1 = vld [vmem:[#allocation2 + $0x74] ss:$8 sps:$4 sm:$0xff]   ;;  %482 = vmatprep.subr.bf16.mxu0 %v1325_v0  ;;  %v1330_v3 = vld [vmem:[#allocation2 + $0x70] ss:$8 sps:$4 sm:$0xff]   ;;  %v1331_v4 = vld [vmem:[#allocation2 + $0x164] ss:$8 sps:$4 sm:$0xff]  }
  0x1d   : > { %690 = vmatprep.subr.bf16.mxu1 %v1327_v1  ;;  %483 = vmatpush1.bf16.msra.mxu0 %v1329_v2  ;;  %v1333_v5 = vld [vmem:[#allocation2 + $0x64] ss:$8 sps:$4 sm:$0xff]   ;;  %v1335_v6 = vld [vmem:[#allocation2 + $0x160] ss:$8 sps:$4 sm:$0xff]   ;;  %v1337_v8 = vld [vmem:[#allocation2 + $0x154] ss:$8 sps:$4 sm:$0xff]  }
  0x1e   : > { %691 = vmatpush1.bf16.msra.mxu1 %v1330_v3  ;;  %484 = vmatprep.subr.bf16.mxu0 %v1331_v4  ;;  %v1336_v7 = vld [vmem:[#allocation2 + $0x60] ss:$8 sps:$4 sm:$0xff]   ;;  %v1339_v9 = vld [vmem:[#allocation2 + $0x54] ss:$8 sps:$4 sm:$0xff]   ;;  %v1341_v10 = vld [vmem:[#allocation2 + $0x150] ss:$8 sps:$4 sm:$0xff]  }
  0x1f   : > { %692 = vmatprep.subr.bf16.mxu1 %v1333_v5  ;;  %v1342_v11 = vld [vmem:[#allocation2 + $0x50] ss:$8 sps:$4 sm:$0xff]   ;;  %v1343_v12 = vld [vmem:[#allocation2 + $0x144] ss:$8 sps:$4 sm:$0xff]   ;;  %v1347_v14 = vld [vmem:[#allocation2 + $0x140] ss:$8 sps:$4 sm:$0xff]  }
  0x20   : > { %v1345_v13 = vld [vmem:[#allocation2 + $0x44] ss:$8 sps:$4 sm:$0xff]   ;;  %v1348_v15 = vld [vmem:[#allocation2 + $0x40] ss:$8 sps:$4 sm:$0xff]   ;;  %v1349_v16 = vld [vmem:[#allocation2 + $0x134] ss:$8 sps:$4 sm:$0xff]  }
  0x21   : > { %485 = vmatpush1.bf16.msra.mxu0 %v1335_v6  ;;  %v1351_v17 = vld [vmem:[#allocation2 + $0x34] ss:$8 sps:$4 sm:$0xff]   ;;  %v1353_v18 = vld [vmem:[#allocation2 + $0x130] ss:$8 sps:$4 sm:$0xff]   ;;  %v1355_v20 = vld [vmem:[#allocation2 + $0x124] ss:$8 sps:$4 sm:$0xff]  }
  0x22   : > { %693 = vmatpush1.bf16.msra.mxu1 %v1336_v7  ;;  %486 = vmatprep.subr.bf16.mxu0 %v1337_v8  ;;  %v1354_v19 = vld [vmem:[#allocation2 + $0x30] ss:$8 sps:$4 sm:$0xff]   ;;  %v1357_v21 = vld [vmem:[#allocation2 + $0x24] ss:$8 sps:$4 sm:$0xff]   ;;  %v1359_v22 = vld [vmem:[#allocation2 + $0x120] ss:$8 sps:$4 sm:$0xff]  }
  0x23   : > { %694 = vmatprep.subr.bf16.mxu1 %v1339_v9  ;;  %v1360_v23 = vld [vmem:[#allocation2 + $0x20] ss:$8 sps:$4 sm:$0xff]   ;;  %v1361_v24 = vld [vmem:[#allocation2 + $0x114] ss:$8 sps:$4 sm:$0xff]   ;;  %v1365_v26 = vld [vmem:[#allocation2 + $0x110] ss:$8 sps:$4 sm:$0xff]  }
  0x24   : > { %v1363_v25 = vld [vmem:[#allocation2 + $0x14] ss:$8 sps:$4 sm:$0xff]   ;;  %v1366_v27 = vld [vmem:[#allocation2 + $0x10] ss:$8 sps:$4 sm:$0xff]   ;;  %v1367_v28 = vld [vmem:[#allocation2 + $0x104] ss:$8 sps:$4 sm:$0xff]  }
  0x25   : > { %487 = vmatpush1.bf16.msra.mxu0 %v1341_v10  ;;  %v1369_v29 = vld [vmem:[#allocation2 + $0x4] ss:$8 sps:$4 sm:$0xff]   ;;  %v1371_v30 = vld [vmem:[#allocation2 + $0x100] ss:$8 sps:$4 sm:$0xff]   ;;  %v1373_v32 = vld [vmem:[#allocation2 + $0x1f4] ss:$8 sps:$4 sm:$0xff]  }
  0x26   : > { %695 = vmatpush1.bf16.msra.mxu1 %v1342_v11  ;;  %488 = vmatprep.subr.bf16.mxu0 %v1343_v12  ;;  %v1372_v31 = vld [vmem:[#allocation2] ss:$8 sps:$4 sm:$0xff]   ;;  %p216_p0 = scmp.lt.s32.totalorder %s1548_s16, 1  ;;  %v1375_v33 = vld [vmem:[#allocation2 + $0xf4] ss:$8 sps:$4 sm:$0xff]   ;;  %vm982_vm0 = vcmask 1043456  }
  0x27   : > { %696 = vmatprep.subr.bf16.mxu1 %v1345_v13  ;;  %v1377_v34 = vld [vmem:[#allocation2 + $0x1f0] ss:$8 sps:$4 sm:$0xff]   ;;  %v1379_v36 = vld [vmem:[#allocation2 + $0x1e4] ss:$8 sps:$4 sm:$0xff]   ;;  %v1383_v38 = vld [vmem:[#allocation2 + $0x1e0] ss:$8 sps:$4 sm:$0xff]  }
  0x28   : > { %v1378_v35 = vld [vmem:[#allocation2 + $0xf0] ss:$8 sps:$4 sm:$0xff]   ;;  %s1617_s16 = smov (!%p216_p0, %s1548_s16), 1  ;;  %v1381_v37 = vld [vmem:[#allocation2 + $0xe4] ss:$8 sps:$4 sm:$0xff]  }
  0x29   : > { %489 = vmatpush1.bf16.msra.mxu0 %v1347_v14  ;;  %v1384_v39 = vld [vmem:[#allocation2 + $0xe0] ss:$8 sps:$4 sm:$0xff]   ;;  %v1385_v40 = vld [vmem:[#allocation2 + $0x1d4] ss:$8 sps:$4 sm:$0xff]   ;;  %s1301_s25 = sshll.u32 %s1617_s16, 3  ;;  %s1195_s6 = sshll.u32 %s1617_s16, 1 }
  0x2a   : > { %697 = vmatpush1.bf16.msra.mxu1 %v1348_v15  ;;  %490 = vmatprep.subr.bf16.mxu0 %v1349_v16  ;;  %v1387_v41 = vld [vmem:[#allocation2 + $0xd4] ss:$8 sps:$4 sm:$0xff]   ;;  %v1389_v42 = vld [vmem:[#allocation2 + $0x1d0] ss:$8 sps:$4 sm:$0xff]   ;;  %s1580_s28 = scalar_lea.vmem %s1610_s0, %s1301_s25  ;;  %v1391_v44 = vld [vmem:[#allocation2 + $0x1c4] ss:$8 sps:$4 sm:$0xff]   ;;  %s225_s5 = scalar_lea.vmem %s1612_s2, %s1301_s25 }
  0x2b   : > { %698 = vmatprep.subr.bf16.mxu1 %v1351_v17  ;;  %v1390_v43 = vld [vmem:[#allocation2 + $0xd0] ss:$8 sps:$4 sm:$0xff]   ;;  %v1393_v45 = vld [vmem:[#allocation2 + $0xc4] ss:$8 sps:$4 sm:$0xff]   ;;  %v1395_v46 = vld [vmem:[#allocation2 + $0x1c0] ss:$8 sps:$4 sm:$0xff]   ;;  %s229_s9 = scalar_lea.vmem %s1613_s3, %s1195_s6  ;;  %s233_s12 = scalar_lea.vmem %s1614_s4, %s1195_s6 }
  0x2c   : > { %v267_v47 = vld [vmem:[%s1580_s28] sm:$0x77]  ;;  %v1397_v51 = vld [vmem:[#allocation2 + $0x1b4] ss:$8 sps:$4 sm:$0xff]   ;;  %v1401_v56 = vld [vmem:[#allocation2 + $0x1b0] ss:$8 sps:$4 sm:$0xff]  }
  0x2d   : > { %491 = vmatpush1.bf16.msra.mxu0 %v1353_v18  ;;  %v1198_v48 = vcombine.high %v267_v47, %v267_v47  ;;  %v234_v49 = vld [vmem:[%s1580_s28] sm:$0x33]  ;;  %v1399_v53 = vld [vmem:[#allocation2 + $0xb4] ss:$8 sps:$4 sm:$0xff]   ;;  %v1402_v57 = vld [vmem:[#allocation2 + $0xb0] ss:$8 sps:$4 sm:$0xff]   ;;  %v1197_v0 = vcombine.low %v267_v47, %v267_v47 }
  0x2e   : > { %699 = vmatpush1.bf16.msra.mxu1 %v1354_v19  ;;  %492 = vmatprep.subr.bf16.mxu0 %v1355_v20  ;;  %v1396_v50 = vld [vmem:[#allocation2 + $0xc0] ss:$8 sps:$4 sm:$0xff]   ;;  %v1232_v52 = vcombine.high %v234_v49, %v234_v49  ;;  %v1403_v59 = vld [vmem:[#allocation2 + $0x1a4] ss:$8 sps:$4 sm:$0xff]   ;;  %v1409_v1 = vld [vmem:[#allocation2 + $0x194] ss:$8 sps:$4 sm:$0xff]   ;;  %v1231_v13 = vcombine.low %v234_v49, %v234_v49 }
  0x2f   : > { %700 = vmatprep.subr.bf16.mxu1 %v1357_v21  ;;  %v314_v54 = vshrl.u32 %v1198_v48, 16  ;;  %v316_v55 = vshll.u32 %v1198_v48, 16  ;;  %v1405_v60 = vld [vmem:[#allocation2 + $0xa4] ss:$8 sps:$4 sm:$0xff]   ;;  %v1407_v62 = vld [vmem:[#allocation2 + $0x1a0] ss:$8 sps:$4 sm:$0xff]  }
  0x30   : > { %722 = vmatprep.mubr.bf16.mxu1 %v1232_v52  ;;  %v1408_v63 = vld [vmem:[#allocation2 + $0xa0] ss:$8 sps:$4 sm:$0xff]   ;;  %v1411_v2 = vld [vmem:[#allocation2 + $0x94] ss:$8 sps:$4 sm:$0xff]   ;;  %v1413_v3 = vld [vmem:[#allocation2 + $0x190] ss:$8 sps:$4 sm:$0xff]  }
  0x31   : > { %493 = vmatpush1.bf16.msra.mxu0 %v1359_v22  ;;  %v318_v58 = vrot.slane %v316_v55, 1  ;;  %v1414_v4 = vld [vmem:[#allocation2 + $0x90] ss:$8 sps:$4 sm:$0xff]   ;;  %v309_v5 = vshll.u32 %v1197_v0, 16  ;;  %v1415_v6 = vld [vmem:[#allocation2 + $0x184] ss:$8 sps:$4 sm:$0xff]  }
  0x32   : > { %701 = vmatpush1.bf16.msra.mxu1 %v1360_v23  ;;  %494 = vmatprep.subr.bf16.mxu0 %v1361_v24  ;;  %v1417_v7 = vld [vmem:[#allocation2 + $0x84] ss:$8 sps:$4 sm:$0xff]   ;;  %v1419_v8 = vld [vmem:[#allocation2 + $0x180] ss:$8 sps:$4 sm:$0xff]   ;;  %v307_v9 = vshrl.u32 %v1197_v0, 16 }
  0x33   : > { %702 = vmatprep.subr.bf16.mxu1 %v1363_v25  ;;  %v319_v61 = vor.u32 %v318_v58, %v314_v54  ;;  %v311_v10 = vrot.slane %v309_v5, 1  ;;  %v1420_v11 = vld [vmem:[#allocation2 + $0x80] ss:$8 sps:$4 sm:$0xff]   ;;  %v1427_v12 = vld [vmem:[#allocation2 + $0x274] ss:$8 sps:$4 sm:$0xff]  }
  0x34   : > { %v1425_v15 = vld [vmem:[#allocation2 + $0x270] ss:$8 sps:$4 sm:$0xff]   ;;  %v1430_v16 = vld [vmem:[#allocation2 + $0x264] ss:$8 sps:$4 sm:$0xff]   ;;  %v1428_v19 = vld [vmem:[#allocation2 + $0x260] ss:$8 sps:$4 sm:$0xff]  }
  0x35   : > { %495 = vmatpush1.bf16.msra.mxu0 %v1365_v26  ;;  %514 = vmatprep.mubr.bf16.mxu0 %v319_v61  ;;  %v312_v14 = vor.u32 %v311_v10, %v307_v9  ;;  %v1585_v17 = vld [vmem:[%s1580_s28] sm:$0x66]  ;;  %v1433_v21 = vld [vmem:[#allocation2 + $0x254] ss:$8 sps:$4 sm:$0xff]   ;;  %v1431_v22 = vld [vmem:[#allocation2 + $0x250] ss:$8 sps:$4 sm:$0xff]  }
  0x36   : > { %703 = vmatpush1.bf16.msra.mxu1 %v1366_v27  ;;  %496 = vmatprep.subr.bf16.mxu0 %v1367_v28  ;;  %v1266_v18 = vcombine.high %v1585_v17, %v1585_v17  ;;  %v1436_v23 = vld [vmem:[#allocation2 + $0x244] ss:$8 sps:$4 sm:$0xff]   ;;  %v1434_v24 = vld [vmem:[#allocation2 + $0x240] ss:$8 sps:$4 sm:$0xff]   ;;  %v1439_v25 = vld [vmem:[#allocation2 + $0x234] ss:$8 sps:$4 sm:$0xff]   ;;  %v1265_v48 = vcombine.low %v1585_v17, %v1585_v17 }
  0x37   : > { %704 = vmatprep.subr.bf16.mxu1 %v1369_v29  ;;  %v1437_v26 = vld [vmem:[#allocation2 + $0x230] ss:$8 sps:$4 sm:$0xff]   ;;  %v1442_v27 = vld [vmem:[#allocation2 + $0x224] ss:$8 sps:$4 sm:$0xff]   ;;  %v1440_v28 = vld [vmem:[#allocation2 + $0x220] ss:$8 sps:$4 sm:$0xff]  }
  0x38   : > { %v771_v20 = vrot.slane %v1266_v18, 1  ;;  %v1445_v29 = vld [vmem:[#allocation2 + $0x214] ss:$8 sps:$4 sm:$0xff]   ;;  %v1472_v47 = vld [vmem:[#allocation2 + $0x284] ss:$8 sps:$4 sm:$0xff]  }
  0x39   : > { %497 = vmatpush1.bf16.msra.mxu0 %v1371_v30  ;;  %v1443_v30 = vld [vmem:[#allocation2 + $0x210] ss:$8 sps:$4 sm:$0xff]   ;;  %v1470_v49 = vld [vmem:[#allocation2 + $0x280] ss:$8 sps:$4 sm:$0xff]  }
  0x3a   : > { %705 = vmatpush1.bf16.msra.mxu1 %v1372_v31  ;;  %498 = vmatprep.subr.bf16.mxu0 %v1373_v32  ;;  %v1448_v31 = vld [vmem:[#allocation2 + $0x204] ss:$8 sps:$4 sm:$0xff]   ;;  %v1446_v32 = vld [vmem:[#allocation2 + $0x200] ss:$8 sps:$4 sm:$0xff]  }
  0x3b   : > { %706 = vmatprep.subr.bf16.mxu1 %v1375_v33  ;;  %v1451_v33 = vld [vmem:[#allocation2 + $0x2f4] ss:$8 sps:$4 sm:$0xff]  }
  0x3d   : > { %499 = vmatpush2.bf16.msra.mxu0 %v1377_v34  ;;  %v1449_v34 = vld [vmem:[#allocation2 + $0x2f0] ss:$8 sps:$4 sm:$0xff]  }
  0x3e   : > { %707 = vmatpush2.bf16.msra.mxu1 %v1378_v35  ;;  %500 = vmatprep.subr.bf16.mxu0 %v1379_v36  ;;  %v1454_v35 = vld [vmem:[#allocation2 + $0x2e4] ss:$8 sps:$4 sm:$0xff]   ;;  %v1452_v36 = vld [vmem:[#allocation2 + $0x2e0] ss:$8 sps:$4 sm:$0xff]  }
  0x3f   : > { %708 = vmatprep.subr.bf16.mxu1 %v1381_v37  ;;  %v1457_v37 = vld [vmem:[#allocation2 + $0x2d4] ss:$8 sps:$4 sm:$0xff]  }
  0x41   : > { %501 = vmatpush2.bf16.msra.mxu0 %v1383_v38  ;;  %v1455_v38 = vld [vmem:[#allocation2 + $0x2d0] ss:$8 sps:$4 sm:$0xff]  }
  0x42   : > { %709 = vmatpush2.bf16.msra.mxu1 %v1384_v39  ;;  %502 = vmatprep.subr.bf16.mxu0 %v1385_v40  ;;  %v1460_v39 = vld [vmem:[#allocation2 + $0x2c4] ss:$8 sps:$4 sm:$0xff]   ;;  %v1458_v40 = vld [vmem:[#allocation2 + $0x2c0] ss:$8 sps:$4 sm:$0xff]  }
  0x43   : > { %710 = vmatprep.subr.bf16.mxu1 %v1387_v41  ;;  %v1463_v41 = vld [vmem:[#allocation2 + $0x2b4] ss:$8 sps:$4 sm:$0xff]  }
  0x45   : > { %503 = vmatpush2.bf16.msra.mxu0 %v1389_v42  ;;  %v1461_v42 = vld [vmem:[#allocation2 + $0x2b0] ss:$8 sps:$4 sm:$0xff]  }
  0x46   : > { %711 = vmatpush2.bf16.msra.mxu1 %v1390_v43  ;;  %504 = vmatprep.subr.bf16.mxu0 %v1391_v44  ;;  %v1466_v43 = vld [vmem:[#allocation2 + $0x2a4] ss:$8 sps:$4 sm:$0xff]   ;;  %v1464_v44 = vld [vmem:[#allocation2 + $0x2a0] ss:$8 sps:$4 sm:$0xff]  }
  0x47   : > { %712 = vmatprep.subr.bf16.mxu1 %v1393_v45  ;;  %v1469_v45 = vld [vmem:[#allocation2 + $0x294] ss:$8 sps:$4 sm:$0xff]  }
  0x49   : > { %505 = vmatpush2.bf16.msra.mxu0 %v1395_v46  ;;  %v1467_v46 = vld [vmem:[#allocation2 + $0x290] ss:$8 sps:$4 sm:$0xff]  }
  0x4a   : > { %713 = vmatpush2.bf16.msra.mxu1 %v1396_v50  ;;  %506 = vmatprep.subr.bf16.mxu0 %v1397_v51  ;;  %v770_v50 = vrot.slane %v1265_v48, 1 }
  0x4b   : > { %714 = vmatprep.subr.bf16.mxu1 %v1399_v53 }
  0x4d   : > { %507 = vmatpush2.bf16.msra.mxu0 %v1401_v56 }
  0x4e   : > { %715 = vmatpush2.bf16.msra.mxu1 %v1402_v57  ;;  %508 = vmatprep.subr.bf16.mxu0 %v1403_v59 }
  0x4f   : > { %716 = vmatprep.subr.bf16.mxu1 %v1405_v60 }
  0x51   : > { %509 = vmatpush2.bf16.msra.mxu0 %v1407_v62 }
  0x52   : > { %717 = vmatpush2.bf16.msra.mxu1 %v1408_v63  ;;  %510 = vmatprep.subr.bf16.mxu0 %v1409_v1 }
  0x53   : > { %718 = vmatprep.subr.bf16.mxu1 %v1411_v2 }
  0x55   : > { %511 = vmatpush2.bf16.msra.mxu0 %v1413_v3 }
  0x56   : > { %719 = vmatpush2.bf16.msra.mxu1 %v1414_v4  ;;  %512 = vmatprep.subr.bf16.mxu0 %v1415_v6 }
  0x57   : > { %720 = vmatprep.subr.bf16.mxu1 %v1417_v7 }
  0x59   : > { %513 = vmatpush2.bf16.msra.mxu0 %v1419_v8 }
  0x5a   : > { %721 = vmatpush2.bf16.msra.mxu1 %v1420_v11  ;;  %934 = vmatprep.subr.bf16.mxu0 %v1427_v12 }
  0x5c   : > { %515 = vmatmul.mubr.bf16.vlgmr.msra.gmra.mxu0 %v312_v14 }
  0x5d   : > { %723 = vmatmul.mubr.bf16.vlgmr.msra.gmra.mxu1 %v1231_v13  ;;  %935 = vmatpush1.bf16.msra.mxu0 %v1425_v15  ;;  %v1516_v13 = vmov 1966171168   ;;  %v1003_v15 = vlaneseq }
  0x5e   : > { %936 = vmatprep.subr.bf16.mxu0 %v1430_v16  ;;  %966 = vmatprep.mubr.bf16.mxu0 %v771_v20  ;;  %v1001_v14 = vunpack.c.l.s4 %v1516_v13 }
  0x5f   : > { %vm1017_vm1 = vcmp.lt.s32.totalorder %v1003_v15, 256 }
  0x61   : > { %937 = vmatpush1.bf16.msra.mxu0 %v1428_v19 }
  0x62   : > { %938 = vmatprep.subr.bf16.mxu0 %v1433_v21 }
  0x65   : > { %939 = vmatpush1.bf16.msra.mxu0 %v1431_v22 }
  0x66   : > { %940 = vmatprep.subr.bf16.mxu0 %v1436_v23 }
  0x69   : > { %941 = vmatpush1.bf16.msra.mxu0 %v1434_v24 }
  0x6a   : > { %942 = vmatprep.subr.bf16.mxu0 %v1439_v25  ;;  %v1002_v25 = vunpack.c.0.s8 %v1001_v14 }
  0x6d   : > { %943 = vmatpush1.bf16.msra.mxu0 %v1437_v26  ;;  %v1004_v26 = vshrl.u32 %v1003_v15, 7 }
  0x6e   : > { %944 = vmatprep.subr.bf16.mxu0 %v1442_v27 }
  0x71   : > { %945 = vmatpush1.bf16.msra.mxu0 %v1440_v28 }
  0x72   : > { %946 = vmatprep.subr.bf16.mxu0 %v1445_v29 }
  0x75   : > { %947 = vmatpush1.bf16.msra.mxu0 %v1443_v30 }
  0x76   : > { %948 = vmatprep.subr.bf16.mxu0 %v1448_v31 }
  0x79   : > { %949 = vmatpush1.bf16.msra.mxu0 %v1446_v32 }
  0x7a   : > { %950 = vmatprep.subr.bf16.mxu0 %v1451_v33 }
  0x7d   : > { %951 = vmatpush2.bf16.msra.mxu0 %v1449_v34 }
  0x7e   : > { %952 = vmatprep.subr.bf16.mxu0 %v1454_v35 }
  0x81   : > { %953 = vmatpush2.bf16.msra.mxu0 %v1452_v36  ;;  %v1005_v36 = vsub.s32 %v1002_v25, %v1004_v26 }
  0x82   : > { %954 = vmatprep.subr.bf16.mxu0 %v1457_v37 }
  0x85   : > { %955 = vmatpush2.bf16.msra.mxu0 %v1455_v38 }
  0x86   : > { %956 = vmatprep.subr.bf16.mxu0 %v1460_v39 }
  0x89   : > { %957 = vmatpush2.bf16.msra.mxu0 %v1458_v40 }
  0x8a   : > { %958 = vmatprep.subr.bf16.mxu0 %v1463_v41 }
  0x8d   : > { %959 = vmatpush2.bf16.msra.mxu0 %v1461_v42 }
  0x8e   : > { %960 = vmatprep.subr.bf16.mxu0 %v1466_v43 }
  0x91   : > { %961 = vmatpush2.bf16.msra.mxu0 %v1464_v44 }
  0x92   : > { %962 = vmatprep.subr.bf16.mxu0 %v1469_v45 }
  0x95   : > { %963 = vmatpush2.bf16.msra.mxu0 %v1467_v46 }
  0x96   : > { %964 = vmatprep.subr.bf16.mxu0 %v1472_v47 }
  0x99   : > { %965 = vmatpush2.bf16.msra.mxu0 %v1470_v49 }
  0x9c   : > { %967 = vmatmul.mubr.bf16.vlgmr.msra.gmra.mxu0 %v770_v50 }
 0x11c   : > { %v516_v51 = vpop.f32.mrf.mxu0 }
 0x11d   : > { %v724_v52 = vpop.f32.mrf.mxu1 }
 0x11e   : > { %v725_v53 = vadd.f32 %v724_v52, %v516_v51  ;;  %v518_v54 = vpop.f32.mrf.mxu0 }
 0x11f   : > { %v726_v55 = vpop.f32.mrf.mxu1 }
 0x120   : > { %v520_v56 = vpop.f32.mrf.mxu0  ;;  %v727_v61 = vadd.f32 %v726_v55, %v518_v54 }
 0x121   : > { %v728_v57 = vpop.f32.mrf.mxu1 }
 0x122   : > { %v521_v58 = vpop.f32.mrf.mxu0 }
 0x123   : > { %v729_v59 = vpop.f32.mrf.mxu1 }
 0x15c   : > { %v968_v60 = vpop.f32.mrf.mxu0 }
 0x15d   : > { %v975_v62 = vadd.f32 %v968_v60, %v725_v53 }
 0x15e   : > { %v970_v63 = vpop.f32.mrf.mxu0 }
 0x15f   : > { %v983_v0 = vsel %vm982_vm0, %v975_v62, 0.0  ;;  %v1020_v1 = vmul.f32 %v975_v62, %v975_v62  ;;  %v976_v2 = vadd.f32 %v970_v63, %v727_v61 }
 0x160   : > { %v984_v3 = vrot.slane %v983_v0, 4  ;;  %v972_v4 = vpop.f32.mrf.mxu0 }
 0x161   : > { %v1022_v5 = vsel %vm982_vm0, %v1020_v1, 0.0  ;;  %v979_v6 = vcombine.low %v975_v62, %v976_v2  ;;  %v990_v7 = vsel %vm982_vm0, %v976_v2, 0.0  ;;  %v1021_v8 = vmul.f32 %v976_v2, %v976_v2 }
 0x162   : > { %v985_v9 = vadd.f32 %v984_v3, %v983_v0  ;;  %v1023_v10 = vrot.slane %v1022_v5, 4  ;;  %v991_v11 = vrot.slane %v990_v7, 4  ;;  %v973_v12 = vpop.f32.mrf.mxu0 }
 0x163   : > { %981 = vst [vmem:[%s225_s5] sm:$0xff] %v979_v6  ;;  %v1029_v16 = vsel %vm982_vm0, %v1021_v8, 0.0 }
 0x164   : > { %v986_v17 = vrot.slane %v985_v9, 2  ;;  %v1024_v18 = vadd.f32 %v1023_v10, %v1022_v5  ;;  %v992_v19 = vadd.f32 %v991_v11, %v990_v7  ;;  %v1030_v20 = vrot.slane %v1029_v16, 4 }
 0x166   : > { %v987_v21 = vadd.f32 %v986_v17, %v985_v9  ;;  %v1025_v22 = vrot.slane %v1024_v18, 2  ;;  %v993_v23 = vrot.slane %v992_v19, 2  ;;  %v1031_v24 = vadd.f32 %v1030_v20, %v1029_v16 }
 0x168   : > { %v988_v27 = vrot.slane %v987_v21, 1  ;;  %v1026_v28 = vadd.f32 %v1025_v22, %v1024_v18  ;;  %v994_v29 = vadd.f32 %v993_v23, %v992_v19  ;;  %v1032_v30 = vrot.slane %v1031_v24, 2 }
 0x16a   : > { %v1027_v31 = vrot.slane %v1026_v28, 1  ;;  %v995_v32 = vrot.slane %v994_v29, 1  ;;  %v1033_v33 = vadd.f32 %v1032_v30, %v1031_v24  ;;  %v989_v34 = vadd.f32 %v988_v27, %v987_v21 }
 0x16c   : > { %v996_v35 = vadd.f32 %v995_v32, %v994_v29  ;;  %v1034_v37 = vrot.slane %v1033_v33, 1  ;;  %v1028_v38 = vadd.f32 %v1027_v31, %v1026_v28 }
 0x16e   : > { %v999_v39 = vcombine.low %v989_v34, %v996_v35  ;;  %v1035_v40 = vadd.f32 %v1034_v37, %v1033_v33 }
 0x170   : > { %v1006_v41 = vrot.slane %v999_v39, %v1005_v36  ;;  %v1038_v42 = vcombine.low %v1028_v38, %v1035_v40 }
 0x172   : > { %v1013_v43 = vrot.slane %v1006_v41, %v1005_v36  ;;  %v1045_v44 = vrot.slane %v1038_v42, %v1005_v36 }
 0x174   : > { %1019 = vst.msk [vmem:[%s229_s9] sm:$0x3] %vm1017_vm1, %v1013_v43  ;;  %v1052_v45 = vrot.slane %v1045_v44, %v1005_v36 }
 0x176   : > { %1054 = vst.msk [vmem:[%s233_s12] sm:$0x3] %vm1017_vm1, %v1052_v45 }
 0x177 PF: > { %s16_s15 = sadd.s32 1, %s1511_s15  }
 0x178   : > { %p13_p1 = scmp.ge.s32.totalorder %s16_s15, 4  }
 0x17a   :  { %15 = sbr.rel (!%p13_p1) target bundleno = 1 (0x1), region = 89 }
 0x17f   :  { %1104 = vsyncpa [#allocation3], 1 }
 0x180   :  { %1106 = vsyncpa [#allocation3 + $0x1], 1 }

// kernel: resnet_forward.40
= control target key start
LH: loop header
LB: loop body
LE: loop exit
PB: predicated region body
PF: predicated region fallthrough
CT: control target
= control target key end

     0   :  { %s321_s12 = smov 0   ;;  %s344_s0 = inlined_call_operand.vmem [shape: f32[2,4,256], index: 0, kind: input, shape index: {}]   ;;  %s345_s1 = inlined_call_operand.vmem [shape: f32[1,256], index: 1, kind: input, shape index: {}]   ;;  %s346_s2 = inlined_call_operand.vmem [shape: f32[1,256], index: 2, kind: input, shape index: {}]   ;;  %s347_s3 = inlined_call_operand.vmem [shape: bf16[2,4,256], index: 3, kind: output, shape index: {}]  }
   0x1 LB: > { %s270_s13 = sadd.s32 4294967295, %s299_s12   ;;  %p274_p0 = scmp.ge.s32.totalorder %s299_s12, 1  ;;  %s299_s12 = sphi %s321_s12, %s13_s12  }
   0x2   : > { %p137_p1 = scmp.lt.s32.totalorder %s299_s12, 3 }
   0x4   : > { %p138_p2 = pnand %p274_p0, %p137_p1 }
   0x5   : > { %p161_p3 = scmp.lt.s32.totalorder (!%p138_p2), %s270_s13, 1 }
   0x6   : > { %141 = sbr.rel (%p138_p2) target bundleno = 30 (0x1e), region = 32 }
   0xb   : > { %v174_v0 = vlaneseq  ;;  %s349_s13 = smov (!%p161_p3, %s270_s13), 1  ;;  %v172_v2 = vld [vmem:[%s345_s1] sm:$0x3] }
   0xc   : > { %v185_v3 = vld [vmem:[%s346_s2] sm:$0x3]  ;;  %s283_s18 = sshll.u32 %s349_s13, 3  ;;  %s284_s22 = sshll.u32 %s349_s13, 2 }
   0xd   : > { %v175_v1 = vshrl.u32 %v174_v0, 7  ;;  %s165_s21 = scalar_lea.vmem %s344_s0, %s283_s18  ;;  %s170_s25 = scalar_lea.vmem %s347_s3, %s284_s22 }
   0xe   : > { %v171_v10 = vld [vmem:[%s165_s21] sm:$0xff] }
   0xf   : > { %v176_v4 = vsub.s32 0, %v175_v1  ;;  %v180_v5 = vsub.s32 1, %v175_v1 }
  0x11   : > { %v177_v6 = vrot.slane %v172_v2, %v176_v4  ;;  %v181_v7 = vrot.slane %v172_v2, %v180_v5  ;;  %v190_v8 = vrot.slane %v185_v3, %v176_v4  ;;  %v194_v9 = vrot.slane %v185_v3, %v180_v5 }
  0x13   : > { %v182_v11 = vcombine.low %v177_v6, %v181_v7  ;;  %v195_v12 = vcombine.low %v190_v8, %v194_v9 }
  0x15   : > { %v184_v13 = vmul.f32 %v182_v11, %v171_v10 }
  0x17   : > { %v197_v14 = vadd.f32 %v195_v12, %v184_v13 }
  0x19   : > { %v199_v15 = vcombine.high %v197_v14, %v197_v14 }
  0x1b   : > { %v279_v16 = vpack.c.bf16 %v199_v15, %v197_v14 }
  0x1d   : > { %280 = vst.sshfl [vmem:[%s170_s25] sm:$0x33 pattern:$0x76325410] %v279_v16 }
  0x1e PF: > { %s13_s12 = sadd.s32 1, %s299_s12  }
  0x1f   : > { %p10_p4 = scmp.ge.s32.totalorder %s13_s12, 4  }
  0x21   :  { %12 = sbr.rel (!%p10_p4) target bundleno = 1 (0x1), region = 62 }

// kernel: resnet_forward.44
= control target key start
LH: loop header
LB: loop body
LE: loop exit
PB: predicated region body
PF: predicated region fallthrough
CT: control target
= control target key end

     0   :  { %s392_s15 = smov 0   ;;  %s418_s0 = inlined_call_operand.vmem [shape: f32[2,4,256], index: 0, kind: input, shape index: {}]   ;;  %s419_s1 = inlined_call_operand.vmem [shape: f32[1,256], index: 1, kind: input, shape index: {}]   ;;  %s420_s2 = inlined_call_operand.vmem [shape: f32[1,256], index: 2, kind: input, shape index: {}]   ;;  %s421_s3 = inlined_call_operand.vmem [shape: bf16[2,4,256], index: 3, kind: input, shape index: {}]   ;;  %s422_s4 = inlined_call_operand.vmem [shape: bf16[2,4,256], index: 4, kind: output, shape index: {}]  }
   0x1 LB: > { %s333_s16 = sadd.s32 4294967295, %s365_s15   ;;  %p337_p0 = scmp.ge.s32.totalorder %s365_s15, 1  ;;  %s365_s15 = sphi %s392_s15, %s14_s15  }
   0x2   : > { %p172_p1 = scmp.lt.s32.totalorder %s365_s15, 3 }
   0x4   : > { %p173_p2 = pnand %p337_p0, %p172_p1 }
   0x5   : > { %p203_p3 = scmp.lt.s32.totalorder (!%p173_p2), %s333_s16, 1 }
   0x6   : > { %176 = sbr.rel (%p173_p2) target bundleno = 34 (0x22), region = 36 }
   0xb   : > { %v221_v0 = vlaneseq  ;;  %s424_s16 = smov (!%p203_p3, %s333_s16), 1  ;;  %v219_v2 = vld [vmem:[%s419_s1] sm:$0x3] }
   0xc   : > { %v232_v3 = vld [vmem:[%s420_s2] sm:$0x3]  ;;  %s348_s21 = sshll.u32 %s424_s16, 3  ;;  %s349_s22 = sshll.u32 %s424_s16, 2 }
   0xd   : > { %v222_v1 = vshrl.u32 %v221_v0, 7  ;;  %s207_s25 = scalar_lea.vmem %s418_s0, %s348_s21  ;;  %s212_s28 = scalar_lea.vmem %s421_s3, %s349_s22 }
   0xe   : > { %v218_v10 = vld [vmem:[%s207_s25] sm:$0xff]  ;;  %s217_s5 = scalar_lea.vmem %s422_s4, %s349_s22 }
   0xf   : > { %v223_v4 = vsub.s32 0, %v222_v1  ;;  %v227_v5 = vsub.s32 1, %v222_v1  ;;  %v245_v11 = vld [vmem:[%s212_s28] sm:$0xf] }
  0x10   : > { %v246_v15 = vunpack.c.l.bf16 %v245_v11 }
  0x11   : > { %v224_v6 = vrot.slane %v219_v2, %v223_v4  ;;  %v228_v7 = vrot.slane %v219_v2, %v227_v5  ;;  %v237_v8 = vrot.slane %v232_v3, %v223_v4  ;;  %v241_v9 = vrot.slane %v232_v3, %v227_v5 }
  0x13   : > { %v229_v12 = vcombine.low %v224_v6, %v228_v7  ;;  %v242_v13 = vcombine.low %v237_v8, %v241_v9 }
  0x15   : > { %v231_v14 = vmul.f32 %v229_v12, %v218_v10 }
  0x17   : > { %v244_v16 = vadd.f32 %v242_v13, %v231_v14 }
  0x19   : > { %v247_v17 = vadd.f32 %v246_v15, %v244_v16 }
  0x1b   : > { %v248_v18 = vmax.f32 %v247_v17, 0.0 }
  0x1d   : > { %v250_v19 = vcombine.high %v248_v18, %v248_v18 }
  0x1f   : > { %v344_v20 = vpack.c.bf16 %v250_v19, %v248_v18 }
  0x21   : > { %345 = vst.sshfl [vmem:[%s217_s5] sm:$0x33 pattern:$0x76325410] %v344_v20 }
  0x22 PF: > { %s14_s15 = sadd.s32 1, %s365_s15  }
  0x23   : > { %p11_p4 = scmp.ge.s32.totalorder %s14_s15, 4  }
  0x25   :  { %13 = sbr.rel (!%p11_p4) target bundleno = 1 (0x1), region = 69 }

// kernel: resnet_forward.48
= control target key start
LH: loop header
LB: loop body
LE: loop exit
PB: predicated region body
PF: predicated region fallthrough
CT: control target
= control target key end

     0   :  { %s408_s12 = smov 0   ;;  %s435_s0 = inlined_call_operand.vmem [shape: f32[2,2,512], index: 0, kind: input, shape index: {}]   ;;  %s436_s1 = inlined_call_operand.vmem [shape: f32[1,512], index: 1, kind: input, shape index: {}]   ;;  %s437_s2 = inlined_call_operand.vmem [shape: f32[1,512], index: 2, kind: input, shape index: {}]   ;;  %s438_s3 = inlined_call_operand.vmem [shape: bf16[2,2,512], index: 3, kind: output, shape index: {}]  }
   0x1 LB: > { %s354_s13 = sadd.s32 4294967295, %s384_s12   ;;  %p358_p0 = scmp.ge.s32.totalorder %s384_s12, 1  ;;  %s384_s12 = sphi %s408_s12, %s13_s12  }
   0x2   : > { %p137_p1 = scmp.lt.s32.totalorder %s384_s12, 3 }
   0x4   : > { %p138_p2 = pnand %p358_p0, %p137_p1 }
   0x5   : > { %p160_p3 = scmp.lt.s32.totalorder (!%p138_p2), %s354_s13, 1 }
   0x6   : > { %141 = sbr.rel (%p138_p2) target bundleno = 44 (0x2c), region = 32 }
   0xb   : > { %v172_v0 = vlaneseq  ;;  %v386_v1 = vmov 1983009808   ;;  %s440_s13 = smov (!%p160_p3, %s354_s13), 1  ;;  %v170_v4 = vld [vmem:[%s436_s1] sm:$0xf] }
   0xc   : > { %v191_v2 = vunpack.c.l.s4 %v386_v1  ;;  %v207_v10 = vld [vmem:[%s437_s2] sm:$0xf]  ;;  %s367_s18 = sshll.u32 %s440_s13, 3  ;;  %v387_v32 = vmov 1966171168   ;;  %s361_s22 = sshll.u32 %s440_s13, 2 }
   0xd   : > { %v173_v3 = vshrl.u32 %v172_v0, 7  ;;  %s164_s21 = scalar_lea.vmem %s435_s0, %s367_s18  ;;  %v278_v33 = vunpack.c.l.s4 %v387_v32  ;;  %s168_s25 = scalar_lea.vmem %s438_s3, %s361_s22 }
   0xe   : > { %v192_v5 = vunpack.c.0.s8 %v191_v2  ;;  %v169_v26 = vld [vmem:[%s164_s21] sm:$0xff] }
   0xf   : > { %v174_v6 = vsub.s32 0, %v173_v3  ;;  %v178_v7 = vsub.s32 1, %v173_v3  ;;  %v182_v8 = vsub.s32 2, %v173_v3  ;;  %v186_v9 = vsub.s32 3, %v173_v3 }
  0x10   : > { %v195_v11 = vsub.s32 %v192_v5, %v173_v3  ;;  %v279_v36 = vunpack.c.0.s8 %v278_v33 }
  0x11   : > { %v175_v12 = vrot.slane %v170_v4, %v174_v6  ;;  %v179_v13 = vrot.slane %v170_v4, %v178_v7  ;;  %v183_v14 = vrot.slane %v170_v4, %v182_v8  ;;  %v187_v15 = vrot.slane %v170_v4, %v186_v9 }
  0x12   : > { %v212_v16 = vrot.slane %v207_v10, %v174_v6  ;;  %v216_v17 = vrot.slane %v207_v10, %v178_v7  ;;  %v220_v18 = vrot.slane %v207_v10, %v182_v8  ;;  %v224_v19 = vrot.slane %v207_v10, %v186_v9 }
  0x13   : > { %v188_v20 = vcombine.low %v175_v12, %v179_v13  ;;  %v189_v21 = vcombine.low %v183_v14, %v187_v15  ;;  %v282_v41 = vsub.s32 %v279_v36, %v173_v3 }
  0x14   : > { %v225_v22 = vcombine.low %v212_v16, %v216_v17  ;;  %v226_v23 = vcombine.low %v220_v18, %v224_v19 }
  0x15   : > { %v196_v24 = vrot.slane %v188_v20, %v195_v11  ;;  %v203_v25 = vrot.slane %v189_v21, %v195_v11 }
  0x16   : > { %v233_v27 = vrot.slane %v225_v22, %v195_v11  ;;  %v240_v28 = vrot.slane %v226_v23, %v195_v11 }
  0x17   : > { %v204_v29 = vcombine.low %v196_v24, %v203_v25 }
  0x18   : > { %v241_v30 = vcombine.low %v233_v27, %v240_v28 }
  0x19   : > { %v206_v31 = vmul.f32 %v204_v29, %v169_v26 }
  0x1b   : > { %v243_v34 = vadd.f32 %v241_v30, %v206_v31 }
  0x1d   : > { %v244_v35 = vmax.f32 %v243_v34, 0.0 }
  0x1f   : > { %v246_v37 = vcombine.high %v244_v35, %v244_v35  ;;  %v253_v38 = vrot.slane %v244_v35, %v195_v11 }
  0x21   : > { %v260_v39 = vrot.slane %v246_v37, %v195_v11  ;;  %v261_v40 = vcombine.high %v253_v38, %v253_v38 }
  0x23   : > { %v262_v42 = vcombine.high %v260_v39, %v260_v39  ;;  %v362_v43 = vpack.c.bf16 %v261_v40, %v253_v38 }
  0x25   : > { %v363_v44 = vpack.c.bf16 %v262_v42, %v260_v39  ;;  %v283_v45 = vrot.slane %v362_v43, %v282_v41 }
  0x27   : > { %v290_v46 = vrot.slane %v363_v44, %v282_v41 }
  0x29   : > { %v291_v47 = vcombine.low %v283_v45, %v290_v46 }
  0x2b   : > { %364 = vst.sshfl [vmem:[%s168_s25] sm:$0x55 pattern:$0x73625140] %v291_v47 }
  0x2c PF: > { %s13_s12 = sadd.s32 1, %s384_s12  }
  0x2d   : > { %p10_p4 = scmp.ge.s32.totalorder %s13_s12, 4  }
  0x2f   :  { %12 = sbr.rel (!%p10_p4) target bundleno = 1 (0x1), region = 62 }

// kernel: resnet_forward.47
= control target key start
LH: loop header
LB: loop body
LE: loop exit
PB: predicated region body
PF: predicated region fallthrough
CT: control target
= control target key end

     0   :  { %11 = vsyncpa [#allocation3], 0  ;;  %s2623_s18 = smov 0   ;;  %s2711_s0 = inlined_call_operand.vmem [shape: bf16[2,3,256], index: 0, kind: input, shape index: {}]   ;;  %s2712_s1 = inlined_call_operand.vmem [shape: bf16[2,3,256], index: 1, kind: input, shape index: {}]   ;;  %s2713_s2 = inlined_call_operand.hbm [shape: bf16[3,256,512], index: 2, kind: input, shape index: {}]   ;;  %s2714_s3 = inlined_call_operand.vmem [shape: f32[2,2,512], index: 3, kind: output, shape index: {0}]   ;;  %s2715_s4 = inlined_call_operand.vmem [shape: f32[2,1,512], index: 4, kind: output, shape index: {1}]   ;;  %s2716_s5 = inlined_call_operand.vmem [shape: f32[2,1,512], index: 5, kind: output, shape index: {2}]  }
   0x1 LB: > { %s2629_s19 = sadd.s32 4294967295, %s2586_s18   ;;  %p2026_p0 = scmp.ge.s32.totalorder %s2586_s18, 1  ;;  %s2586_s18 = sphi %s2623_s18, %s17_s18  }
   0x2   : > { %p173_p1 = scmp.lt.s32.totalorder %s2586_s18, 3  ;;  %s2588_s20 = smov [#allocation2]  }
   0x3   : > { %s185_s21 = sshll.u32 %s2588_s20, 4  ;;  %p2247_p3 = scmp.eq.s32.totalorder %s2629_s19, 0  ;;  %s186_s21 = int_to_ptr.vmem [resolvable:$true] %s185_s21 }
   0x4   : > { %p2633_p2 = pnand %p2026_p0, %p173_p1  ;;  %s2561_s23 = scalar_lea.vmem %s186_s21, 24576 }
   0x5   : > { %p2562_p7 = scmp.ne.s32.totalorder %s186_s21, %s2561_s23  ;;  %p2569_p10 = scmp.lt.s32.totalorder %s186_s21, %s186_s21 }
   0x6   : > { %p2243_p4 = pneg %p2633_p2  ;;  %p2570_p11 = scmp.lt.s32.totalorder %s2561_s23, %s2561_s23 }
   0x8   : > { %p2244_p5 = pnand %p2247_p3, %p2243_p4  ;;  %p2571_p12 = por %p2570_p11, %p2569_p10 }
   0xa   : > { %p2552_p6 = pneg %p2244_p5 }
   0xc   : > { %p2564_p8 = pnand %p2562_p7, %p2552_p6 }
   0xe   : > { %p2565_p9 = pneg %p2564_p8 }
  0x10   : > { %p2572_p13 = pnand %p2571_p12, %p2565_p9 }
  0x12   : > { %2575 = shalt.err (!%p2572_p13)
}
  0x13   : > { %s2589_s24 = smov 256   ;;  %s2590_s25 = smov 16  }
  0x14   : > { %2246 = dma.hbm_to_vmem [thread:$0]  (!%p2244_p5), %s2713_s2, 24576, %s186_s21, [#allocation3], %s2589_s24, %s2589_s24, %s2590_s25  }
  0x15   : > { %217 = sbr.rel (%p2633_p2) target bundleno = 447 (0x1bf), region = 32 }
  0x1a   : > { %2581 = dma.done.wait (%p2247_p3), [#allocation3], 24576  }
  0x1b   : > { %2583 = vsyncadd (%p2247_p3), [#allocation3], 4294942720  ;;  %v2262_v0 = vld [vmem:[#allocation2 + $0x2e4] ss:$16 sps:$4 sm:$0xff]   ;;  %v2264_v1 = vld [vmem:[#allocation2 + $0x2ec] ss:$16 sps:$4 sm:$0xff]  }
  0x1c   : > { %743 = vmatprep.subr.bf16.mxu0 %v2262_v0  ;;  %v2266_v2 = vld [vmem:[#allocation2 + $0x2e0] ss:$16 sps:$4 sm:$0xff]   ;;  %v2267_v3 = vld [vmem:[#allocation2 + $0x2e8] ss:$16 sps:$4 sm:$0xff]   ;;  %784 = vmatprep.subr.bf16.mxu1 %v2264_v1  ;;  %v2268_v4 = vld [vmem:[#allocation2 + $0x2c4] ss:$16 sps:$4 sm:$0xff]  }
  0x1d   : > { %744 = vmatpush1.bf16.msra.mxu0 %v2266_v2  ;;  %785 = vmatpush1.bf16.msra.mxu1 %v2267_v3  ;;  %v2270_v5 = vld [vmem:[#allocation2 + $0x2cc] ss:$16 sps:$4 sm:$0xff]   ;;  %v2272_v6 = vld [vmem:[#allocation2 + $0x2c0] ss:$16 sps:$4 sm:$0xff]   ;;  %v2273_v7 = vld [vmem:[#allocation2 + $0x2c8] ss:$16 sps:$4 sm:$0xff]  }
  0x1e   : > { %745 = vmatprep.subr.bf16.mxu0 %v2268_v4  ;;  %786 = vmatprep.subr.bf16.mxu1 %v2270_v5  ;;  %v2274_v8 = vld [vmem:[#allocation2 + $0x2a4] ss:$16 sps:$4 sm:$0xff]   ;;  %v2276_v9 = vld [vmem:[#allocation2 + $0x2ac] ss:$16 sps:$4 sm:$0xff]   ;;  %v2278_v10 = vld [vmem:[#allocation2 + $0x2a0] ss:$16 sps:$4 sm:$0xff]  }
  0x1f   : > { %v2279_v11 = vld [vmem:[#allocation2 + $0x2a8] ss:$16 sps:$4 sm:$0xff]   ;;  %v2280_v12 = vld [vmem:[#allocation2 + $0x284] ss:$16 sps:$4 sm:$0xff]   ;;  %v2282_v13 = vld [vmem:[#allocation2 + $0x28c] ss:$16 sps:$4 sm:$0xff]  }
  0x20   : > { %v2284_v14 = vld [vmem:[#allocation2 + $0x280] ss:$16 sps:$4 sm:$0xff]   ;;  %v2285_v15 = vld [vmem:[#allocation2 + $0x288] ss:$16 sps:$4 sm:$0xff]   ;;  %v2286_v16 = vld [vmem:[#allocation2 + $0x264] ss:$16 sps:$4 sm:$0xff]  }
  0x21   : > { %746 = vmatpush1.bf16.msra.mxu0 %v2272_v6  ;;  %787 = vmatpush1.bf16.msra.mxu1 %v2273_v7  ;;  %v2288_v17 = vld [vmem:[#allocation2 + $0x26c] ss:$16 sps:$4 sm:$0xff]   ;;  %v2290_v18 = vld [vmem:[#allocation2 + $0x260] ss:$16 sps:$4 sm:$0xff]   ;;  %v2291_v19 = vld [vmem:[#allocation2 + $0x268] ss:$16 sps:$4 sm:$0xff]  }
  0x22   : > { %747 = vmatprep.subr.bf16.mxu0 %v2274_v8  ;;  %788 = vmatprep.subr.bf16.mxu1 %v2276_v9  ;;  %v2292_v20 = vld [vmem:[#allocation2 + $0x244] ss:$16 sps:$4 sm:$0xff]   ;;  %v2294_v21 = vld [vmem:[#allocation2 + $0x24c] ss:$16 sps:$4 sm:$0xff]   ;;  %v2296_v22 = vld [vmem:[#allocation2 + $0x240] ss:$16 sps:$4 sm:$0xff]  }
  0x23   : > { %v2297_v23 = vld [vmem:[#allocation2 + $0x248] ss:$16 sps:$4 sm:$0xff]   ;;  %v2298_v24 = vld [vmem:[#allocation2 + $0x224] ss:$16 sps:$4 sm:$0xff]   ;;  %v2300_v25 = vld [vmem:[#allocation2 + $0x22c] ss:$16 sps:$4 sm:$0xff]  }
  0x24   : > { %v2302_v26 = vld [vmem:[#allocation2 + $0x220] ss:$16 sps:$4 sm:$0xff]   ;;  %v2303_v27 = vld [vmem:[#allocation2 + $0x228] ss:$16 sps:$4 sm:$0xff]   ;;  %v2304_v28 = vld [vmem:[#allocation2 + $0x204] ss:$16 sps:$4 sm:$0xff]  }
  0x25   : > { %748 = vmatpush1.bf16.msra.mxu0 %v2278_v10  ;;  %789 = vmatpush1.bf16.msra.mxu1 %v2279_v11  ;;  %v2306_v29 = vld [vmem:[#allocation2 + $0x20c] ss:$16 sps:$4 sm:$0xff]   ;;  %v2308_v30 = vld [vmem:[#allocation2 + $0x200] ss:$16 sps:$4 sm:$0xff]   ;;  %v2309_v31 = vld [vmem:[#allocation2 + $0x208] ss:$16 sps:$4 sm:$0xff]  }
  0x26   : > { %749 = vmatprep.subr.bf16.mxu0 %v2280_v12  ;;  %790 = vmatprep.subr.bf16.mxu1 %v2282_v13  ;;  %v2310_v32 = vld [vmem:[#allocation2 + $0x3e4] ss:$16 sps:$4 sm:$0xff]   ;;  %v2312_v33 = vld [vmem:[#allocation2 + $0x3ec] ss:$16 sps:$4 sm:$0xff]   ;;  %p258_p0 = scmp.lt.s32.totalorder %s2629_s19, 1  ;;  %vm1758_vm0 = vcmask 1041408  }
  0x27   : > { %v2314_v34 = vld [vmem:[#allocation2 + $0x3e0] ss:$16 sps:$4 sm:$0xff]   ;;  %v2315_v35 = vld [vmem:[#allocation2 + $0x3e8] ss:$16 sps:$4 sm:$0xff]   ;;  %v2316_v36 = vld [vmem:[#allocation2 + $0x3c4] ss:$16 sps:$4 sm:$0xff]  }
  0x28   : > { %v2318_v37 = vld [vmem:[#allocation2 + $0x3cc] ss:$16 sps:$4 sm:$0xff]   ;;  %s2719_s19 = smov (!%p258_p0, %s2629_s19), 1  ;;  %v2320_v38 = vld [vmem:[#allocation2 + $0x3c0] ss:$16 sps:$4 sm:$0xff]  }
  0x29   : > { %750 = vmatpush1.bf16.msra.mxu0 %v2284_v14  ;;  %791 = vmatpush1.bf16.msra.mxu1 %v2285_v15  ;;  %v2321_v39 = vld [vmem:[#allocation2 + $0x3c8] ss:$16 sps:$4 sm:$0xff]   ;;  %v2322_v40 = vld [vmem:[#allocation2 + $0x3a4] ss:$16 sps:$4 sm:$0xff]   ;;  %v2324_v41 = vld [vmem:[#allocation2 + $0x3ac] ss:$16 sps:$4 sm:$0xff]  }
  0x2a   : > { %751 = vmatprep.subr.bf16.mxu0 %v2286_v16  ;;  %792 = vmatprep.subr.bf16.mxu1 %v2288_v17  ;;  %s2656_s28 = sshll.u32 %s2719_s19, 2  ;;  %v2326_v42 = vld [vmem:[#allocation2 + $0x3a0] ss:$16 sps:$4 sm:$0xff]   ;;  %v2327_v43 = vld [vmem:[#allocation2 + $0x3a8] ss:$16 sps:$4 sm:$0xff]   ;;  %s2238_s10 = sshll.u32 %s2719_s19, 3 }
  0x2b   : > { %v2328_v44 = vld [vmem:[#allocation2 + $0x384] ss:$16 sps:$4 sm:$0xff]   ;;  %s267_s6 = scalar_lea.vmem %s2712_s1, %s2656_s28  ;;  %v2330_v45 = vld [vmem:[#allocation2 + $0x38c] ss:$16 sps:$4 sm:$0xff]   ;;  %v2332_v47 = vld [vmem:[#allocation2 + $0x380] ss:$16 sps:$4 sm:$0xff]   ;;  %s2666_s9 = scalar_lea.vmem %s2711_s0, %s2656_s28 }
  0x2c   : > { %v2039_v46 = vld.sshfl [vmem:[%s267_s6] sm:$0x11 pattern:$0x76325410]  ;;  %v2333_v48 = vld [vmem:[#allocation2 + $0x388] ss:$16 sps:$4 sm:$0xff]   ;;  %s272_s13 = scalar_lea.vmem %s2714_s3, %s2238_s10  ;;  %s276_s16 = scalar_lea.vmem %s2715_s4, %s2656_s28 }
  0x2d   : > { %752 = vmatpush1.bf16.msra.mxu0 %v2290_v18  ;;  %793 = vmatpush1.bf16.msra.mxu1 %v2291_v19  ;;  %v420_v49 = vcombine.high %v2039_v46, %v2039_v46  ;;  %v2334_v50 = vld [vmem:[#allocation2 + $0x364] ss:$16 sps:$4 sm:$0xff]   ;;  %v2336_v51 = vld [vmem:[#allocation2 + $0x36c] ss:$16 sps:$4 sm:$0xff]   ;;  %v2338_v52 = vld [vmem:[#allocation2 + $0x360] ss:$16 sps:$4 sm:$0xff]   ;;  %s280_s20 = scalar_lea.vmem %s2716_s5, %s2656_s28 }
  0x2e   : > { %753 = vmatprep.subr.bf16.mxu0 %v2292_v20  ;;  %794 = vmatprep.subr.bf16.mxu1 %v2294_v21  ;;  %v2339_v53 = vld [vmem:[#allocation2 + $0x368] ss:$16 sps:$4 sm:$0xff]   ;;  %v2340_v54 = vld [vmem:[#allocation2 + $0x344] ss:$16 sps:$4 sm:$0xff]   ;;  %v2342_v55 = vld [vmem:[#allocation2 + $0x34c] ss:$16 sps:$4 sm:$0xff]  }
  0x2f   : > { %775 = vmatprep.mubr.bf16.mxu0 %v420_v49  ;;  %816 = vmatprep.mubr.bf16.mxu1 %v420_v49  ;;  %v2344_v56 = vld [vmem:[#allocation2 + $0x340] ss:$16 sps:$4 sm:$0xff]   ;;  %v2345_v57 = vld [vmem:[#allocation2 + $0x348] ss:$16 sps:$4 sm:$0xff]   ;;  %v2346_v58 = vld [vmem:[#allocation2 + $0x324] ss:$16 sps:$4 sm:$0xff]  }
  0x30   : > { %v2348_v59 = vld [vmem:[#allocation2 + $0x32c] ss:$16 sps:$4 sm:$0xff]   ;;  %v2350_v60 = vld [vmem:[#allocation2 + $0x320] ss:$16 sps:$4 sm:$0xff]   ;;  %v2351_v61 = vld [vmem:[#allocation2 + $0x328] ss:$16 sps:$4 sm:$0xff]  }
  0x31   : > { %754 = vmatpush1.bf16.msra.mxu0 %v2296_v22  ;;  %795 = vmatpush1.bf16.msra.mxu1 %v2297_v23  ;;  %v2352_v62 = vld [vmem:[#allocation2 + $0x304] ss:$16 sps:$4 sm:$0xff]   ;;  %v2354_v63 = vld [vmem:[#allocation2 + $0x30c] ss:$16 sps:$4 sm:$0xff]   ;;  %v2356_v0 = vld [vmem:[#allocation2 + $0x300] ss:$16 sps:$4 sm:$0xff]  }
  0x32   : > { %755 = vmatprep.subr.bf16.mxu0 %v2298_v24  ;;  %796 = vmatprep.subr.bf16.mxu1 %v2300_v25  ;;  %v2357_v1 = vld [vmem:[#allocation2 + $0x308] ss:$16 sps:$4 sm:$0xff]   ;;  %v2360_v2 = vld [vmem:[#allocation2 + $0xe4] ss:$16 sps:$4 sm:$0xff]   ;;  %v2363_v3 = vld [vmem:[#allocation2 + $0xec] ss:$16 sps:$4 sm:$0xff]  }
  0x33   : > { %v2358_v4 = vld [vmem:[#allocation2 + $0xe0] ss:$16 sps:$4 sm:$0xff]   ;;  %v2361_v5 = vld [vmem:[#allocation2 + $0xe8] ss:$16 sps:$4 sm:$0xff]   ;;  %v2366_v6 = vld [vmem:[#allocation2 + $0xc4] ss:$16 sps:$4 sm:$0xff]  }
  0x34   : > { %v2369_v7 = vld [vmem:[#allocation2 + $0xcc] ss:$16 sps:$4 sm:$0xff]   ;;  %v2364_v8 = vld [vmem:[#allocation2 + $0xc0] ss:$16 sps:$4 sm:$0xff]   ;;  %v2367_v9 = vld [vmem:[#allocation2 + $0xc8] ss:$16 sps:$4 sm:$0xff]  }
  0x35   : > { %756 = vmatpush1.bf16.msra.mxu0 %v2302_v26  ;;  %797 = vmatpush1.bf16.msra.mxu1 %v2303_v27  ;;  %v2372_v10 = vld [vmem:[#allocation2 + $0xa4] ss:$16 sps:$4 sm:$0xff]   ;;  %v2375_v11 = vld [vmem:[#allocation2 + $0xac] ss:$16 sps:$4 sm:$0xff]   ;;  %v2370_v12 = vld [vmem:[#allocation2 + $0xa0] ss:$16 sps:$4 sm:$0xff]  }
  0x36   : > { %757 = vmatprep.subr.bf16.mxu0 %v2304_v28  ;;  %798 = vmatprep.subr.bf16.mxu1 %v2306_v29  ;;  %v2373_v13 = vld [vmem:[#allocation2 + $0xa8] ss:$16 sps:$4 sm:$0xff]   ;;  %v2378_v14 = vld [vmem:[#allocation2 + $0x84] ss:$16 sps:$4 sm:$0xff]   ;;  %v2381_v15 = vld [vmem:[#allocation2 + $0x8c] ss:$16 sps:$4 sm:$0xff]  }
  0x37   : > { %v2376_v16 = vld [vmem:[#allocation2 + $0x80] ss:$16 sps:$4 sm:$0xff]   ;;  %v2379_v17 = vld [vmem:[#allocation2 + $0x88] ss:$16 sps:$4 sm:$0xff]   ;;  %v2384_v18 = vld [vmem:[#allocation2 + $0x64] ss:$16 sps:$4 sm:$0xff]  }
  0x38   : > { %v2387_v19 = vld [vmem:[#allocation2 + $0x6c] ss:$16 sps:$4 sm:$0xff]   ;;  %v2382_v20 = vld [vmem:[#allocation2 + $0x60] ss:$16 sps:$4 sm:$0xff]   ;;  %v2385_v21 = vld [vmem:[#allocation2 + $0x68] ss:$16 sps:$4 sm:$0xff]  }
  0x39   : > { %758 = vmatpush1.bf16.msra.mxu0 %v2308_v30  ;;  %799 = vmatpush1.bf16.msra.mxu1 %v2309_v31  ;;  %v2390_v22 = vld [vmem:[#allocation2 + $0x44] ss:$16 sps:$4 sm:$0xff]   ;;  %v2393_v23 = vld [vmem:[#allocation2 + $0x4c] ss:$16 sps:$4 sm:$0xff]   ;;  %v2388_v24 = vld [vmem:[#allocation2 + $0x40] ss:$16 sps:$4 sm:$0xff]  }
  0x3a   : > { %759 = vmatprep.subr.bf16.mxu0 %v2310_v32  ;;  %800 = vmatprep.subr.bf16.mxu1 %v2312_v33  ;;  %v2391_v25 = vld [vmem:[#allocation2 + $0x48] ss:$16 sps:$4 sm:$0xff]   ;;  %v2396_v26 = vld [vmem:[#allocation2 + $0x24] ss:$16 sps:$4 sm:$0xff]   ;;  %v2399_v27 = vld [vmem:[#allocation2 + $0x2c] ss:$16 sps:$4 sm:$0xff]  }
  0x3b   : > { %v2669_v28 = vld.sshfl [vmem:[%s2666_s9] sm:$0x11 pattern:$0x76325410]  ;;  %v2397_v31 = vld [vmem:[#allocation2 + $0x28] ss:$16 sps:$4 sm:$0xff]  }
  0x3c   : > { %v2394_v29 = vld [vmem:[#allocation2 + $0x20] ss:$16 sps:$4 sm:$0xff]   ;;  %v833_v30 = vcombine.high %v2669_v28, %v2669_v28  ;;  %v2402_v32 = vld [vmem:[#allocation2 + $0x4] ss:$16 sps:$4 sm:$0xff]   ;;  %v2405_v33 = vld [vmem:[#allocation2 + $0xc] ss:$16 sps:$4 sm:$0xff]  }
  0x3d   : > { %760 = vmatpush2.bf16.msra.mxu0 %v2314_v34  ;;  %801 = vmatpush2.bf16.msra.mxu1 %v2315_v35  ;;  %v2400_v34 = vld [vmem:[#allocation2] ss:$16 sps:$4 sm:$0xff]   ;;  %v2403_v35 = vld [vmem:[#allocation2 + $0x8] ss:$16 sps:$4 sm:$0xff]   ;;  %v2429_v49 = vld [vmem:[#allocation2 + $0x18c] ss:$16 sps:$4 sm:$0xff]  }
  0x3e   : > { %761 = vmatprep.subr.bf16.mxu0 %v2316_v36  ;;  %802 = vmatprep.subr.bf16.mxu1 %v2318_v37  ;;  %v2408_v36 = vld [vmem:[#allocation2 + $0x1e4] ss:$16 sps:$4 sm:$0xff]   ;;  %v2411_v37 = vld [vmem:[#allocation2 + $0x1ec] ss:$16 sps:$4 sm:$0xff]  }
  0x41   : > { %762 = vmatpush2.bf16.msra.mxu0 %v2320_v38  ;;  %803 = vmatpush2.bf16.msra.mxu1 %v2321_v39  ;;  %v2406_v38 = vld [vmem:[#allocation2 + $0x1e0] ss:$16 sps:$4 sm:$0xff]   ;;  %v2409_v39 = vld [vmem:[#allocation2 + $0x1e8] ss:$16 sps:$4 sm:$0xff]  }
  0x42   : > { %763 = vmatprep.subr.bf16.mxu0 %v2322_v40  ;;  %804 = vmatprep.subr.bf16.mxu1 %v2324_v41  ;;  %v2414_v40 = vld [vmem:[#allocation2 + $0x1c4] ss:$16 sps:$4 sm:$0xff]   ;;  %v2417_v41 = vld [vmem:[#allocation2 + $0x1cc] ss:$16 sps:$4 sm:$0xff]  }
  0x45   : > { %764 = vmatpush2.bf16.msra.mxu0 %v2326_v42  ;;  %805 = vmatpush2.bf16.msra.mxu1 %v2327_v43  ;;  %v2412_v42 = vld [vmem:[#allocation2 + $0x1c0] ss:$16 sps:$4 sm:$0xff]   ;;  %v2415_v43 = vld [vmem:[#allocation2 + $0x1c8] ss:$16 sps:$4 sm:$0xff]  }
  0x46   : > { %765 = vmatprep.subr.bf16.mxu0 %v2328_v44  ;;  %806 = vmatprep.subr.bf16.mxu1 %v2330_v45  ;;  %v2420_v44 = vld [vmem:[#allocation2 + $0x1a4] ss:$16 sps:$4 sm:$0xff]   ;;  %v2423_v45 = vld [vmem:[#allocation2 + $0x1ac] ss:$16 sps:$4 sm:$0xff]  }
  0x49   : > { %766 = vmatpush2.bf16.msra.mxu0 %v2332_v47  ;;  %807 = vmatpush2.bf16.msra.mxu1 %v2333_v48  ;;  %v2421_v47 = vld [vmem:[#allocation2 + $0x1a8] ss:$16 sps:$4 sm:$0xff]   ;;  %v2426_v48 = vld [vmem:[#allocation2 + $0x184] ss:$16 sps:$4 sm:$0xff]  }
  0x4a   : > { %767 = vmatprep.subr.bf16.mxu0 %v2334_v50  ;;  %808 = vmatprep.subr.bf16.mxu1 %v2336_v51  ;;  %v2424_v50 = vld [vmem:[#allocation2 + $0x180] ss:$16 sps:$4 sm:$0xff]   ;;  %v2427_v51 = vld [vmem:[#allocation2 + $0x188] ss:$16 sps:$4 sm:$0xff]  }
  0x4d   : > { %768 = vmatpush2.bf16.msra.mxu0 %v2338_v52  ;;  %809 = vmatpush2.bf16.msra.mxu1 %v2339_v53  ;;  %v2432_v52 = vld [vmem:[#allocation2 + $0x164] ss:$16 sps:$4 sm:$0xff]   ;;  %v2435_v53 = vld [vmem:[#allocation2 + $0x16c] ss:$16 sps:$4 sm:$0xff]  }
  0x4e   : > { %769 = vmatprep.subr.bf16.mxu0 %v2340_v54  ;;  %810 = vmatprep.subr.bf16.mxu1 %v2342_v55  ;;  %v2430_v54 = vld [vmem:[#allocation2 + $0x160] ss:$16 sps:$4 sm:$0xff]   ;;  %v2433_v55 = vld [vmem:[#allocation2 + $0x168] ss:$16 sps:$4 sm:$0xff]  }
  0x51   : > { %770 = vmatpush2.bf16.msra.mxu0 %v2344_v56  ;;  %811 = vmatpush2.bf16.msra.mxu1 %v2345_v57  ;;  %v2438_v56 = vld [vmem:[#allocation2 + $0x144] ss:$16 sps:$4 sm:$0xff]   ;;  %v2441_v57 = vld [vmem:[#allocation2 + $0x14c] ss:$16 sps:$4 sm:$0xff]  }
  0x52   : > { %771 = vmatprep.subr.bf16.mxu0 %v2346_v58  ;;  %812 = vmatprep.subr.bf16.mxu1 %v2348_v59  ;;  %v2436_v58 = vld [vmem:[#allocation2 + $0x140] ss:$16 sps:$4 sm:$0xff]   ;;  %v2439_v59 = vld [vmem:[#allocation2 + $0x148] ss:$16 sps:$4 sm:$0xff]  }
  0x55   : > { %772 = vmatpush2.bf16.msra.mxu0 %v2350_v60  ;;  %813 = vmatpush2.bf16.msra.mxu1 %v2351_v61  ;;  %v2674_v60 = vld.sshfl [vmem:[%s2666_s9] sm:$0x33 pattern:$0x76325410]  ;;  %v2444_v61 = vld [vmem:[#allocation2 + $0x124] ss:$16 sps:$4 sm:$0xff]  }
  0x56   : > { %773 = vmatprep.subr.bf16.mxu0 %v2352_v62  ;;  %814 = vmatprep.subr.bf16.mxu1 %v2354_v63  ;;  %v2447_v62 = vld [vmem:[#allocation2 + $0x12c] ss:$16 sps:$4 sm:$0xff]   ;;  %v1312_v63 = vcombine.high %v2674_v60, %v2674_v60 }
  0x59   : > { %774 = vmatpush2.bf16.msra.mxu0 %v2356_v0  ;;  %815 = vmatpush2.bf16.msra.mxu1 %v2357_v1  ;;  %v2442_v0 = vld [vmem:[#allocation2 + $0x120] ss:$16 sps:$4 sm:$0xff]   ;;  %v2445_v1 = vld [vmem:[#allocation2 + $0x128] ss:$16 sps:$4 sm:$0xff]  }
  0x5a   : > { %1156 = vmatprep.subr.bf16.mxu0 %v2360_v2  ;;  %1197 = vmatprep.subr.bf16.mxu1 %v2363_v3  ;;  %v2450_v2 = vld [vmem:[#allocation2 + $0x104] ss:$16 sps:$4 sm:$0xff]   ;;  %v2453_v3 = vld [vmem:[#allocation2 + $0x10c] ss:$16 sps:$4 sm:$0xff]  }
  0x5c   : > { %776 = vmatmul.mubr.bf16.vlgmr.msra.gmra.mxu0 %v2039_v46  ;;  %817 = vmatmul.mubr.bf16.vlgmr.msra.gmra.mxu1 %v2039_v46  ;;  %v2418_v46 = vld [vmem:[#allocation2 + $0x1a0] ss:$16 sps:$4 sm:$0xff]  }
  0x5d   : > { %1157 = vmatpush1.bf16.msra.mxu0 %v2358_v4  ;;  %1198 = vmatpush1.bf16.msra.mxu1 %v2361_v5  ;;  %v1323_v4 = vshll.u32 %v1312_v63, 16  ;;  %v2448_v5 = vld [vmem:[#allocation2 + $0x100] ss:$16 sps:$4 sm:$0xff]  }
  0x5e   : > { %1158 = vmatprep.subr.bf16.mxu0 %v2366_v6  ;;  %1199 = vmatprep.subr.bf16.mxu1 %v2369_v7  ;;  %v2451_v6 = vld [vmem:[#allocation2 + $0x108] ss:$16 sps:$4 sm:$0xff]   ;;  %v2456_v7 = vld [vmem:[#allocation2 + $0x4e4] ss:$16 sps:$4 sm:$0xff]  }
  0x5f   : > { %1188 = vmatprep.mubr.bf16.mxu0 %v833_v30  ;;  %1229 = vmatprep.mubr.bf16.mxu1 %v833_v30  ;;  %v2486_v30 = vld [vmem:[#allocation2 + $0x444] ss:$16 sps:$4 sm:$0xff]  }
  0x61   : > { %1159 = vmatpush1.bf16.msra.mxu0 %v2364_v8  ;;  %1200 = vmatpush1.bf16.msra.mxu1 %v2367_v9  ;;  %v2459_v8 = vld [vmem:[#allocation2 + $0x4ec] ss:$16 sps:$4 sm:$0xff]   ;;  %v1321_v9 = vshrl.u32 %v1312_v63, 16  ;;  %v2534_v63 = vld [vmem:[#allocation2 + $0x544] ss:$16 sps:$4 sm:$0xff]  }
  0x62   : > { %1160 = vmatprep.subr.bf16.mxu0 %v2372_v10  ;;  %1201 = vmatprep.subr.bf16.mxu1 %v2375_v11  ;;  %v1325_v10 = vrot.slane %v1323_v4, 1  ;;  %v2454_v11 = vld [vmem:[#allocation2 + $0x4e0] ss:$16 sps:$4 sm:$0xff]   ;;  %v2543_v4 = vld [vmem:[#allocation2 + $0x52c] ss:$16 sps:$4 sm:$0xff]  }
  0x65   : > { %1161 = vmatpush1.bf16.msra.mxu0 %v2370_v12  ;;  %1202 = vmatpush1.bf16.msra.mxu1 %v2373_v13  ;;  %v2457_v12 = vld [vmem:[#allocation2 + $0x4e8] ss:$16 sps:$4 sm:$0xff]   ;;  %v2462_v13 = vld [vmem:[#allocation2 + $0x4c4] ss:$16 sps:$4 sm:$0xff]  }
  0x66   : > { %1162 = vmatprep.subr.bf16.mxu0 %v2378_v14  ;;  %1203 = vmatprep.subr.bf16.mxu1 %v2381_v15  ;;  %v2465_v14 = vld [vmem:[#allocation2 + $0x4cc] ss:$16 sps:$4 sm:$0xff]   ;;  %v1326_v15 = vor.u32 %v1325_v10, %v1321_v9  ;;  %v1314_v10 = vshrl.u32 %v2674_v60, 16 }
  0x67   : > { %v2549_v9 = vld [vmem:[#allocation2 + $0x50c] ss:$16 sps:$4 sm:$0xff]  }
  0x69   : > { %1163 = vmatpush1.bf16.msra.mxu0 %v2376_v16  ;;  %1204 = vmatpush1.bf16.msra.mxu1 %v2379_v17  ;;  %v2460_v16 = vld [vmem:[#allocation2 + $0x4c0] ss:$16 sps:$4 sm:$0xff]   ;;  %v2463_v17 = vld [vmem:[#allocation2 + $0x4c8] ss:$16 sps:$4 sm:$0xff]  }
  0x6a   : > { %1164 = vmatprep.subr.bf16.mxu0 %v2384_v18  ;;  %1205 = vmatprep.subr.bf16.mxu1 %v2387_v19  ;;  %v2468_v18 = vld [vmem:[#allocation2 + $0x4a4] ss:$16 sps:$4 sm:$0xff]   ;;  %v2471_v19 = vld [vmem:[#allocation2 + $0x4ac] ss:$16 sps:$4 sm:$0xff]  }
  0x6d   : > { %1165 = vmatpush1.bf16.msra.mxu0 %v2382_v20  ;;  %1206 = vmatpush1.bf16.msra.mxu1 %v2385_v21  ;;  %v2466_v20 = vld [vmem:[#allocation2 + $0x4a0] ss:$16 sps:$4 sm:$0xff]   ;;  %v2469_v21 = vld [vmem:[#allocation2 + $0x4a8] ss:$16 sps:$4 sm:$0xff]  }
  0x6e   : > { %1166 = vmatprep.subr.bf16.mxu0 %v2390_v22  ;;  %1207 = vmatprep.subr.bf16.mxu1 %v2393_v23  ;;  %v2474_v22 = vld [vmem:[#allocation2 + $0x484] ss:$16 sps:$4 sm:$0xff]   ;;  %v2477_v23 = vld [vmem:[#allocation2 + $0x48c] ss:$16 sps:$4 sm:$0xff]  }
  0x71   : > { %1167 = vmatpush1.bf16.msra.mxu0 %v2388_v24  ;;  %1208 = vmatpush1.bf16.msra.mxu1 %v2391_v25  ;;  %v2472_v24 = vld [vmem:[#allocation2 + $0x480] ss:$16 sps:$4 sm:$0xff]   ;;  %v2475_v25 = vld [vmem:[#allocation2 + $0x488] ss:$16 sps:$4 sm:$0xff]  }
  0x72   : > { %1168 = vmatprep.subr.bf16.mxu0 %v2396_v26  ;;  %1209 = vmatprep.subr.bf16.mxu1 %v2399_v27  ;;  %v2480_v26 = vld [vmem:[#allocation2 + $0x464] ss:$16 sps:$4 sm:$0xff]   ;;  %v2483_v27 = vld [vmem:[#allocation2 + $0x46c] ss:$16 sps:$4 sm:$0xff]  }
  0x75   : > { %1169 = vmatpush1.bf16.msra.mxu0 %v2394_v29  ;;  %1210 = vmatpush1.bf16.msra.mxu1 %v2397_v31  ;;  %v2481_v29 = vld [vmem:[#allocation2 + $0x468] ss:$16 sps:$4 sm:$0xff]   ;;  %v2489_v31 = vld [vmem:[#allocation2 + $0x44c] ss:$16 sps:$4 sm:$0xff]  }
  0x76   : > { %1170 = vmatprep.subr.bf16.mxu0 %v2402_v32  ;;  %1211 = vmatprep.subr.bf16.mxu1 %v2405_v33  ;;  %v2484_v32 = vld [vmem:[#allocation2 + $0x440] ss:$16 sps:$4 sm:$0xff]   ;;  %v2487_v33 = vld [vmem:[#allocation2 + $0x448] ss:$16 sps:$4 sm:$0xff]  }
  0x79   : > { %1171 = vmatpush1.bf16.msra.mxu0 %v2400_v34  ;;  %1212 = vmatpush1.bf16.msra.mxu1 %v2403_v35  ;;  %v2492_v34 = vld [vmem:[#allocation2 + $0x424] ss:$16 sps:$4 sm:$0xff]   ;;  %v2495_v35 = vld [vmem:[#allocation2 + $0x42c] ss:$16 sps:$4 sm:$0xff]  }
  0x7a   : > { %1172 = vmatprep.subr.bf16.mxu0 %v2408_v36  ;;  %1213 = vmatprep.subr.bf16.mxu1 %v2411_v37  ;;  %v2490_v36 = vld [vmem:[#allocation2 + $0x420] ss:$16 sps:$4 sm:$0xff]   ;;  %v2493_v37 = vld [vmem:[#allocation2 + $0x428] ss:$16 sps:$4 sm:$0xff]  }
  0x7d   : > { %1173 = vmatpush2.bf16.msra.mxu0 %v2406_v38  ;;  %1214 = vmatpush2.bf16.msra.mxu1 %v2409_v39  ;;  %v2498_v38 = vld [vmem:[#allocation2 + $0x404] ss:$16 sps:$4 sm:$0xff]   ;;  %v2501_v39 = vld [vmem:[#allocation2 + $0x40c] ss:$16 sps:$4 sm:$0xff]  }
  0x7e   : > { %1174 = vmatprep.subr.bf16.mxu0 %v2414_v40  ;;  %1215 = vmatprep.subr.bf16.mxu1 %v2417_v41  ;;  %v2496_v40 = vld [vmem:[#allocation2 + $0x400] ss:$16 sps:$4 sm:$0xff]   ;;  %v2499_v41 = vld [vmem:[#allocation2 + $0x408] ss:$16 sps:$4 sm:$0xff]  }
  0x81   : > { %1175 = vmatpush2.bf16.msra.mxu0 %v2412_v42  ;;  %1216 = vmatpush2.bf16.msra.mxu1 %v2415_v43  ;;  %v2504_v42 = vld [vmem:[#allocation2 + $0x5e4] ss:$16 sps:$4 sm:$0xff]   ;;  %v2507_v43 = vld [vmem:[#allocation2 + $0x5ec] ss:$16 sps:$4 sm:$0xff]  }
  0x82   : > { %1176 = vmatprep.subr.bf16.mxu0 %v2420_v44  ;;  %1217 = vmatprep.subr.bf16.mxu1 %v2423_v45  ;;  %v2502_v44 = vld [vmem:[#allocation2 + $0x5e0] ss:$16 sps:$4 sm:$0xff]   ;;  %v2505_v45 = vld [vmem:[#allocation2 + $0x5e8] ss:$16 sps:$4 sm:$0xff]  }
  0x85   : > { %1177 = vmatpush2.bf16.msra.mxu0 %v2418_v46  ;;  %1218 = vmatpush2.bf16.msra.mxu1 %v2421_v47  ;;  %v2510_v46 = vld [vmem:[#allocation2 + $0x5c4] ss:$16 sps:$4 sm:$0xff]   ;;  %v2513_v47 = vld [vmem:[#allocation2 + $0x5cc] ss:$16 sps:$4 sm:$0xff]  }
  0x86   : > { %1178 = vmatprep.subr.bf16.mxu0 %v2426_v48  ;;  %1219 = vmatprep.subr.bf16.mxu1 %v2429_v49  ;;  %v2508_v48 = vld [vmem:[#allocation2 + $0x5c0] ss:$16 sps:$4 sm:$0xff]   ;;  %v2511_v49 = vld [vmem:[#allocation2 + $0x5c8] ss:$16 sps:$4 sm:$0xff]  }
  0x89   : > { %1179 = vmatpush2.bf16.msra.mxu0 %v2424_v50  ;;  %1220 = vmatpush2.bf16.msra.mxu1 %v2427_v51  ;;  %v2516_v50 = vld [vmem:[#allocation2 + $0x5a4] ss:$16 sps:$4 sm:$0xff]   ;;  %v2519_v51 = vld [vmem:[#allocation2 + $0x5ac] ss:$16 sps:$4 sm:$0xff]  }
  0x8a   : > { %1180 = vmatprep.subr.bf16.mxu0 %v2432_v52  ;;  %1221 = vmatprep.subr.bf16.mxu1 %v2435_v53  ;;  %v2514_v52 = vld [vmem:[#allocation2 + $0x5a0] ss:$16 sps:$4 sm:$0xff]   ;;  %v2517_v53 = vld [vmem:[#allocation2 + $0x5a8] ss:$16 sps:$4 sm:$0xff]  }
  0x8d   : > { %1181 = vmatpush2.bf16.msra.mxu0 %v2430_v54  ;;  %1222 = vmatpush2.bf16.msra.mxu1 %v2433_v55  ;;  %v2522_v54 = vld [vmem:[#allocation2 + $0x584] ss:$16 sps:$4 sm:$0xff]   ;;  %v2525_v55 = vld [vmem:[#allocation2 + $0x58c] ss:$16 sps:$4 sm:$0xff]  }
  0x8e   : > { %1182 = vmatprep.subr.bf16.mxu0 %v2438_v56  ;;  %1223 = vmatprep.subr.bf16.mxu1 %v2441_v57  ;;  %v2520_v56 = vld [vmem:[#allocation2 + $0x580] ss:$16 sps:$4 sm:$0xff]   ;;  %v2523_v57 = vld [vmem:[#allocation2 + $0x588] ss:$16 sps:$4 sm:$0xff]  }
  0x91   : > { %1183 = vmatpush2.bf16.msra.mxu0 %v2436_v58  ;;  %1224 = vmatpush2.bf16.msra.mxu1 %v2439_v59  ;;  %v2528_v58 = vld [vmem:[#allocation2 + $0x564] ss:$16 sps:$4 sm:$0xff]   ;;  %v2531_v59 = vld [vmem:[#allocation2 + $0x56c] ss:$16 sps:$4 sm:$0xff]  }
  0x92   : > { %1184 = vmatprep.subr.bf16.mxu0 %v2444_v61  ;;  %1225 = vmatprep.subr.bf16.mxu1 %v2447_v62  ;;  %v2526_v61 = vld [vmem:[#allocation2 + $0x560] ss:$16 sps:$4 sm:$0xff]   ;;  %v2529_v62 = vld [vmem:[#allocation2 + $0x568] ss:$16 sps:$4 sm:$0xff]  }
  0x95   : > { %1185 = vmatpush2.bf16.msra.mxu0 %v2442_v0  ;;  %1226 = vmatpush2.bf16.msra.mxu1 %v2445_v1  ;;  %v2537_v0 = vld [vmem:[#allocation2 + $0x54c] ss:$16 sps:$4 sm:$0xff]   ;;  %v2532_v1 = vld [vmem:[#allocation2 + $0x540] ss:$16 sps:$4 sm:$0xff]  }
  0x96   : > { %1186 = vmatprep.subr.bf16.mxu0 %v2450_v2  ;;  %1227 = vmatprep.subr.bf16.mxu1 %v2453_v3  ;;  %v2535_v2 = vld [vmem:[#allocation2 + $0x548] ss:$16 sps:$4 sm:$0xff]   ;;  %v2540_v3 = vld [vmem:[#allocation2 + $0x524] ss:$16 sps:$4 sm:$0xff]  }
  0x99   : > { %1187 = vmatpush2.bf16.msra.mxu0 %v2448_v5  ;;  %1228 = vmatpush2.bf16.msra.mxu1 %v2451_v6  ;;  %v1316_v5 = vshll.u32 %v2674_v60, 16  ;;  %v2538_v6 = vld [vmem:[#allocation2 + $0x520] ss:$16 sps:$4 sm:$0xff]  }
  0x9a   : > { %1649 = vmatprep.subr.bf16.mxu0 %v2456_v7  ;;  %1690 = vmatprep.subr.bf16.mxu1 %v2459_v8  ;;  %v2541_v7 = vld [vmem:[#allocation2 + $0x528] ss:$16 sps:$4 sm:$0xff]   ;;  %v2546_v8 = vld [vmem:[#allocation2 + $0x504] ss:$16 sps:$4 sm:$0xff]  }
  0x9c   : > { %1189 = vmatmul.mubr.bf16.vlgmr.msra.gmra.mxu0 %v2669_v28  ;;  %1230 = vmatmul.mubr.bf16.vlgmr.msra.gmra.mxu1 %v2669_v28  ;;  %v2478_v28 = vld [vmem:[#allocation2 + $0x460] ss:$16 sps:$4 sm:$0xff]  }
  0x9d   : > { %1650 = vmatpush1.bf16.msra.mxu0 %v2454_v11  ;;  %1691 = vmatpush1.bf16.msra.mxu1 %v2457_v12  ;;  %v1318_v11 = vrot.slane %v1316_v5, 1  ;;  %v2544_v12 = vld [vmem:[#allocation2 + $0x500] ss:$16 sps:$4 sm:$0xff]  }
  0x9e   : > { %1651 = vmatprep.subr.bf16.mxu0 %v2462_v13  ;;  %1692 = vmatprep.subr.bf16.mxu1 %v2465_v14  ;;  %v2547_v13 = vld [vmem:[#allocation2 + $0x508] ss:$16 sps:$4 sm:$0xff]  }
  0x9f   : > { %1681 = vmatprep.mubr.bf16.mxu0 %v1326_v15  ;;  %1722 = vmatprep.mubr.bf16.mxu1 %v1326_v15  ;;  %v1319_v14 = vor.u32 %v1318_v11, %v1314_v10 }
  0xa1   : > { %1652 = vmatpush1.bf16.msra.mxu0 %v2460_v16  ;;  %1693 = vmatpush1.bf16.msra.mxu1 %v2463_v17 }
  0xa2   : > { %1653 = vmatprep.subr.bf16.mxu0 %v2468_v18  ;;  %1694 = vmatprep.subr.bf16.mxu1 %v2471_v19 }
  0xa5   : > { %1654 = vmatpush1.bf16.msra.mxu0 %v2466_v20  ;;  %1695 = vmatpush1.bf16.msra.mxu1 %v2469_v21 }
  0xa6   : > { %1655 = vmatprep.subr.bf16.mxu0 %v2474_v22  ;;  %1696 = vmatprep.subr.bf16.mxu1 %v2477_v23 }
  0xa9   : > { %1656 = vmatpush1.bf16.msra.mxu0 %v2472_v24  ;;  %1697 = vmatpush1.bf16.msra.mxu1 %v2475_v25 }
  0xaa   : > { %1657 = vmatprep.subr.bf16.mxu0 %v2480_v26  ;;  %1698 = vmatprep.subr.bf16.mxu1 %v2483_v27 }
  0xad   : > { %1658 = vmatpush1.bf16.msra.mxu0 %v2478_v28  ;;  %1699 = vmatpush1.bf16.msra.mxu1 %v2481_v29 }
  0xae   : > { %1659 = vmatprep.subr.bf16.mxu0 %v2486_v30  ;;  %1700 = vmatprep.subr.bf16.mxu1 %v2489_v31 }
  0xb1   : > { %1660 = vmatpush1.bf16.msra.mxu0 %v2484_v32  ;;  %1701 = vmatpush1.bf16.msra.mxu1 %v2487_v33 }
  0xb2   : > { %1661 = vmatprep.subr.bf16.mxu0 %v2492_v34  ;;  %1702 = vmatprep.subr.bf16.mxu1 %v2495_v35  ;;  %v2591_v34 = vmov 1983009808  }
  0xb3   : > { %v1742_v35 = vunpack.c.l.s4 %v2591_v34 }
  0xb5   : > { %1662 = vmatpush1.bf16.msra.mxu0 %v2490_v36  ;;  %1703 = vmatpush1.bf16.msra.mxu1 %v2493_v37  ;;  %v1744_v36 = vlaneseq }
  0xb6   : > { %1663 = vmatprep.subr.bf16.mxu0 %v2498_v38  ;;  %1704 = vmatprep.subr.bf16.mxu1 %v2501_v39 }
  0xb7   : > { %vm1818_vm1 = vcmp.lt.s32.totalorder %v1744_v36, 512 }
  0xb9   : > { %1664 = vmatpush1.bf16.msra.mxu0 %v2496_v40  ;;  %1705 = vmatpush1.bf16.msra.mxu1 %v2499_v41  ;;  %v1743_v41 = vunpack.c.0.s8 %v1742_v35 }
  0xba   : > { %1665 = vmatprep.subr.bf16.mxu0 %v2504_v42  ;;  %1706 = vmatprep.subr.bf16.mxu1 %v2507_v43  ;;  %v2683_v42 = vshrl.u32 %v1744_v36, 7 }
  0xbd   : > { %1666 = vmatpush2.bf16.msra.mxu0 %v2502_v44  ;;  %1707 = vmatpush2.bf16.msra.mxu1 %v2505_v45 }
  0xbe   : > { %1667 = vmatprep.subr.bf16.mxu0 %v2510_v46  ;;  %1708 = vmatprep.subr.bf16.mxu1 %v2513_v47 }
  0xc1   : > { %1668 = vmatpush2.bf16.msra.mxu0 %v2508_v48  ;;  %1709 = vmatpush2.bf16.msra.mxu1 %v2511_v49 }
  0xc2   : > { %1669 = vmatprep.subr.bf16.mxu0 %v2516_v50  ;;  %1710 = vmatprep.subr.bf16.mxu1 %v2519_v51 }
  0xc5   : > { %1670 = vmatpush2.bf16.msra.mxu0 %v2514_v52  ;;  %1711 = vmatpush2.bf16.msra.mxu1 %v2517_v53 }
  0xc6   : > { %1671 = vmatprep.subr.bf16.mxu0 %v2522_v54  ;;  %1712 = vmatprep.subr.bf16.mxu1 %v2525_v55 }
  0xc9   : > { %1672 = vmatpush2.bf16.msra.mxu0 %v2520_v56  ;;  %1713 = vmatpush2.bf16.msra.mxu1 %v2523_v57  ;;  %v1746_v57 = vsub.s32 %v1743_v41, %v2683_v42 }
  0xca   : > { %1673 = vmatprep.subr.bf16.mxu0 %v2528_v58  ;;  %1714 = vmatprep.subr.bf16.mxu1 %v2531_v59 }
  0xcd   : > { %1674 = vmatpush2.bf16.msra.mxu0 %v2526_v61  ;;  %1715 = vmatpush2.bf16.msra.mxu1 %v2529_v62 }
  0xce   : > { %1675 = vmatprep.subr.bf16.mxu0 %v2534_v63  ;;  %1716 = vmatprep.subr.bf16.mxu1 %v2537_v0 }
  0xd1   : > { %1676 = vmatpush2.bf16.msra.mxu0 %v2532_v1  ;;  %1717 = vmatpush2.bf16.msra.mxu1 %v2535_v2 }
  0xd2   : > { %1677 = vmatprep.subr.bf16.mxu0 %v2540_v3  ;;  %1718 = vmatprep.subr.bf16.mxu1 %v2543_v4 }
  0xd5   : > { %1678 = vmatpush2.bf16.msra.mxu0 %v2538_v6  ;;  %1719 = vmatpush2.bf16.msra.mxu1 %v2541_v7 }
  0xd6   : > { %1679 = vmatprep.subr.bf16.mxu0 %v2546_v8  ;;  %1720 = vmatprep.subr.bf16.mxu1 %v2549_v9 }
  0xd9   : > { %1680 = vmatpush2.bf16.msra.mxu0 %v2544_v12  ;;  %1721 = vmatpush2.bf16.msra.mxu1 %v2547_v13 }
  0xdc   : > { %1682 = vmatmul.mubr.bf16.vlgmr.msra.gmra.mxu0 %v1319_v14  ;;  %1723 = vmatmul.mubr.bf16.vlgmr.msra.gmra.mxu1 %v1319_v14 }
 0x11c   : > { %v777_v15 = vpop.f32.mrf.mxu0  ;;  %v818_v16 = vpop.f32.mrf.mxu1 }
 0x11e   : > { %v779_v17 = vpop.f32.mrf.mxu0  ;;  %v820_v18 = vpop.f32.mrf.mxu1 }
 0x120   : > { %v781_v19 = vpop.f32.mrf.mxu0  ;;  %v822_v20 = vpop.f32.mrf.mxu1 }
 0x121   : > { %v2592_v20 = vmov 1966171168  }
 0x122   : > { %v782_v21 = vpop.f32.mrf.mxu0  ;;  %v823_v60 = vpop.f32.mrf.mxu1 }
 0x123   : > { %v1794_v21 = vunpack.c.l.s4 %v2592_v20 }
 0x15c   : > { %v1190_v22 = vpop.f32.mrf.mxu0  ;;  %v1231_v23 = vpop.f32.mrf.mxu1 }
 0x15d   : > { %v1191_v24 = vadd.f32 %v1190_v22, %v777_v15  ;;  %v1232_v25 = vadd.f32 %v1231_v23, %v818_v16 }
 0x15e   : > { %v1192_v26 = vpop.f32.mrf.mxu0  ;;  %v1233_v27 = vpop.f32.mrf.mxu1 }
 0x15f   : > { %v1193_v28 = vadd.f32 %v1192_v26, %v779_v17  ;;  %v1234_v29 = vadd.f32 %v1233_v27, %v820_v18 }
 0x160   : > { %v1194_v30 = vpop.f32.mrf.mxu0  ;;  %v1235_v31 = vpop.f32.mrf.mxu1 }
 0x162   : > { %v1195_v32 = vpop.f32.mrf.mxu0  ;;  %v1236_v33 = vpop.f32.mrf.mxu1 }
 0x163   : > { %v1795_v32 = vunpack.c.0.s8 %v1794_v21 }
 0x19c   : > { %v1683_v37 = vpop.f32.mrf.mxu0  ;;  %v1724_v38 = vpop.f32.mrf.mxu1 }
 0x19d   : > { %v1731_v39 = vadd.f32 %v1683_v37, %v1191_v24  ;;  %v1733_v40 = vadd.f32 %v1724_v38, %v1232_v25 }
 0x19e   : > { %v1685_v43 = vpop.f32.mrf.mxu0  ;;  %v1726_v44 = vpop.f32.mrf.mxu1 }
 0x19f   : > { %v1759_v45 = vsel %vm1758_vm0, %v1731_v39, 0.0  ;;  %v1821_v46 = vmul.f32 %v1731_v39, %v1731_v39  ;;  %v1773_v47 = vsel %vm1758_vm0, %v1733_v40, 0.0  ;;  %v1823_v48 = vmul.f32 %v1733_v40, %v1733_v40 }
 0x1a0   : > { %v1760_v49 = vrot.slane %v1759_v45, 4  ;;  %v1774_v50 = vrot.slane %v1773_v47, 4  ;;  %v1732_v51 = vadd.f32 %v1685_v43, %v1193_v28  ;;  %v1734_v52 = vadd.f32 %v1726_v44, %v1234_v29  ;;  %v1687_v53 = vpop.f32.mrf.mxu0  ;;  %v1728_v54 = vpop.f32.mrf.mxu1 }
 0x1a1   : > { %v1825_v55 = vsel %vm1758_vm0, %v1821_v46, 0.0  ;;  %v1839_v56 = vsel %vm1758_vm0, %v1823_v48, 0.0 }
 0x1a2   : > { %v1761_v58 = vadd.f32 %v1760_v49, %v1759_v45  ;;  %v1826_v59 = vrot.slane %v1825_v55, 4  ;;  %v1775_v61 = vadd.f32 %v1774_v50, %v1773_v47  ;;  %v1840_v62 = vrot.slane %v1839_v56, 4  ;;  %v1688_v63 = vpop.f32.mrf.mxu0  ;;  %v1729_v0 = vpop.f32.mrf.mxu1 }
 0x1a3   : > { %v1739_v1 = vcombine.low %v1731_v39, %v1732_v51  ;;  %v1766_v2 = vsel %vm1758_vm0, %v1732_v51, 0.0  ;;  %v1822_v3 = vmul.f32 %v1732_v51, %v1732_v51  ;;  %v1740_v4 = vcombine.low %v1733_v40, %v1734_v52 }
 0x1a4   : > { %v1762_v5 = vrot.slane %v1761_v58, 2  ;;  %v1827_v6 = vadd.f32 %v1826_v59, %v1825_v55  ;;  %v1767_v8 = vrot.slane %v1766_v2, 4  ;;  %v1776_v13 = vrot.slane %v1775_v61, 2 }
 0x1a5   : > { %v1747_v7 = vrot.slane %v1739_v1, %v1746_v57  ;;  %v1832_v9 = vsel %vm1758_vm0, %v1822_v3, 0.0  ;;  %v1754_v10 = vrot.slane %v1740_v4, %v1746_v57  ;;  %v1841_v14 = vadd.f32 %v1840_v62, %v1839_v56 }
 0x1a6   : > { %v1763_v11 = vadd.f32 %v1762_v5, %v1761_v58  ;;  %v1828_v12 = vrot.slane %v1827_v6, 2  ;;  %v1768_v15 = vadd.f32 %v1767_v8, %v1766_v2  ;;  %v1833_v16 = vrot.slane %v1832_v9, 4 }
 0x1a7   : > { %v1755_v17 = vcombine.low %v1747_v7, %v1754_v10  ;;  %v1780_v18 = vsel %vm1758_vm0, %v1734_v52, 0.0  ;;  %v1824_v24 = vmul.f32 %v1734_v52, %v1734_v52  ;;  %v1777_v26 = vadd.f32 %v1776_v13, %v1775_v61 }
 0x1a8   : > { %v1829_v19 = vadd.f32 %v1828_v12, %v1827_v6  ;;  %v1769_v60 = vrot.slane %v1768_v15, 2  ;;  %v1834_v22 = vadd.f32 %v1833_v16, %v1832_v9  ;;  %v1781_v23 = vrot.slane %v1780_v18, 4 }
 0x1a9   : > { %1757 = vst [vmem:[%s272_s13] sm:$0xff] %v1755_v17  ;;  %v1764_v25 = vrot.slane %v1763_v11, 1  ;;  %v1842_v27 = vrot.slane %v1841_v14, 2  ;;  %v1846_v31 = vsel %vm1758_vm0, %v1824_v24, 0.0  ;;  %v1778_v39 = vrot.slane %v1777_v26, 1 }
 0x1aa   : > { %v1770_v28 = vadd.f32 %v1769_v60, %v1768_v15  ;;  %v1835_v29 = vrot.slane %v1834_v22, 2  ;;  %v1782_v30 = vadd.f32 %v1781_v23, %v1780_v18  ;;  %v1847_v33 = vrot.slane %v1846_v31, 4 }
 0x1ab   : > { %v1830_v34 = vrot.slane %v1829_v19, 1  ;;  %v1843_v40 = vadd.f32 %v1842_v27, %v1841_v14  ;;  %v1765_v43 = vadd.f32 %v1764_v25, %v1763_v11  ;;  %v1798_v47 = vsub.s32 %v1795_v32, %v2683_v42 }
 0x1ac   : > { %v1771_v35 = vrot.slane %v1770_v28, 1  ;;  %v1836_v37 = vadd.f32 %v1835_v29, %v1834_v22  ;;  %v1783_v38 = vrot.slane %v1782_v30, 2  ;;  %v1848_v41 = vadd.f32 %v1847_v33, %v1846_v31 }
 0x1ad   : > { %v1831_v49 = vadd.f32 %v1830_v34, %v1829_v19  ;;  %v1844_v53 = vrot.slane %v1843_v40, 1  ;;  %v1779_v55 = vadd.f32 %v1778_v39, %v1777_v26 }
 0x1ae   : > { %v1772_v44 = vadd.f32 %v1771_v35, %v1770_v28  ;;  %v1837_v45 = vrot.slane %v1836_v37, 1  ;;  %v1784_v46 = vadd.f32 %v1783_v38, %v1782_v30  ;;  %v1849_v48 = vrot.slane %v1848_v41, 2 }
 0x1af   : > { %v1845_v62 = vadd.f32 %v1844_v53, %v1843_v40 }
 0x1b0   : > { %v1791_v50 = vcombine.low %v1765_v43, %v1772_v44  ;;  %v1838_v51 = vadd.f32 %v1837_v45, %v1836_v37  ;;  %v1785_v52 = vrot.slane %v1784_v46, 1  ;;  %v1850_v54 = vadd.f32 %v1849_v48, %v1848_v41 }
 0x1b2   : > { %v1857_v56 = vcombine.low %v1831_v49, %v1838_v51  ;;  %v1786_v57 = vadd.f32 %v1785_v52, %v1784_v46  ;;  %v1851_v58 = vrot.slane %v1850_v54, 1  ;;  %v1799_v59 = vrot.slane %v1791_v50, %v1798_v47 }
 0x1b4   : > { %v1792_v61 = vcombine.low %v1779_v55, %v1786_v57  ;;  %v1852_v63 = vadd.f32 %v1851_v58, %v1850_v54  ;;  %v1865_v1 = vrot.slane %v1857_v56, %v1798_v47 }
 0x1b6   : > { %v1806_v0 = vrot.slane %v1792_v61, %v1798_v47  ;;  %v1858_v42 = vcombine.low %v1845_v62, %v1852_v63 }
 0x1b8   : > { %v1807_v2 = vcombine.low %v1799_v59, %v1806_v0  ;;  %v1872_v3 = vrot.slane %v1858_v42, %v1798_v47 }
 0x1ba   : > { %v1814_v4 = vrot.slane %v1807_v2, %v1798_v47  ;;  %v1873_v5 = vcombine.low %v1865_v1, %v1872_v3 }
 0x1bc   : > { %1820 = vst.msk [vmem:[%s276_s16] sm:$0xf] %vm1818_vm1, %v1814_v4  ;;  %v1880_v6 = vrot.slane %v1873_v5, %v1798_v47 }
 0x1be   : > { %1882 = vst.msk [vmem:[%s280_s20] sm:$0xf] %vm1818_vm1, %v1880_v6 }
 0x1bf PF: > { %s17_s18 = sadd.s32 1, %s2586_s18  }
 0x1c0   : > { %p14_p1 = scmp.ge.s32.totalorder %s17_s18, 4  }
 0x1c2   :  { %16 = sbr.rel (!%p14_p1) target bundleno = 1 (0x1), region = 96 }
 0x1c7   :  { %1932 = vsyncpa [#allocation3], 1 }
 0x1c8   :  { %1934 = vsyncpa [#allocation3 + $0x1], 1 }

// kernel: resnet_forward.45
= control target key start
LH: loop header
LB: loop body
LE: loop exit
PB: predicated region body
PF: predicated region fallthrough
CT: control target
= control target key end

     0   :  { %s1192_s15 = smov 0   ;;  %s1440_s0 = inlined_call_operand.vmem [shape: bf16[2,2,256], index: 0, kind: input, shape index: {}]   ;;  %s1441_s1 = inlined_call_operand.vmem [shape: bf16[1,256,512], index: 1, kind: input, shape index: {}]   ;;  %s1442_s2 = inlined_call_operand.vmem [shape: f32[2,2,512], index: 2, kind: output, shape index: {0}]   ;;  %s1443_s3 = inlined_call_operand.vmem [shape: f32[2,1,512], index: 3, kind: output, shape index: {1}]   ;;  %s1444_s4 = inlined_call_operand.vmem [shape: f32[2,1,512], index: 4, kind: output, shape index: {2}]  }
   0x1 LB: > { %s973_s16 = sadd.s32 4294967295, %s1163_s15   ;;  %p977_p0 = scmp.ge.s32.totalorder %s1163_s15, 1  ;;  %s1163_s15 = sphi %s1192_s15, %s15_s15  }
   0x2   : > { %p166_p1 = scmp.lt.s32.totalorder %s1163_s15, 3 }
   0x4   : > { %p167_p2 = pnand %p977_p0, %p166_p1 }
   0x5   : > { %p199_p3 = scmp.lt.s32.totalorder (!%p167_p2), %s973_s16, 1 }
   0x6   : > { %170 = sbr.rel (%p167_p2) target bundleno = 301 (0x12d), region = 28 }
   0xb   : > { %v1061_v0 = vld [vmem:[%s1441_s1 + $0xe4] ss:$16 sps:$4 sm:$0xff]   ;;  %v1063_v1 = vld [vmem:[%s1441_s1 + $0xec] ss:$16 sps:$4 sm:$0xff]   ;;  %v1065_v2 = vld [vmem:[%s1441_s1 + $0xe0] ss:$16 sps:$4 sm:$0xff]   ;;  %v293_v40 = vlaneseq }
   0xc   : > { %626 = vmatprep.subr.bf16.mxu0 %v1061_v0  ;;  %v1066_v3 = vld [vmem:[%s1441_s1 + $0xe8] ss:$16 sps:$4 sm:$0xff]   ;;  %667 = vmatprep.subr.bf16.mxu1 %v1063_v1  ;;  %v1067_v4 = vld [vmem:[%s1441_s1 + $0xc4] ss:$16 sps:$4 sm:$0xff]   ;;  %v1069_v5 = vld [vmem:[%s1441_s1 + $0xcc] ss:$16 sps:$4 sm:$0xff]  }
   0xd   : > { %627 = vmatpush1.bf16.msra.mxu0 %v1065_v2  ;;  %668 = vmatpush1.bf16.msra.mxu1 %v1066_v3  ;;  %v1071_v6 = vld [vmem:[%s1441_s1 + $0xc0] ss:$16 sps:$4 sm:$0xff]   ;;  %v1072_v7 = vld [vmem:[%s1441_s1 + $0xc8] ss:$16 sps:$4 sm:$0xff]   ;;  %v1073_v8 = vld [vmem:[%s1441_s1 + $0xa4] ss:$16 sps:$4 sm:$0xff]  }
   0xe   : > { %628 = vmatprep.subr.bf16.mxu0 %v1067_v4  ;;  %669 = vmatprep.subr.bf16.mxu1 %v1069_v5  ;;  %v1075_v9 = vld [vmem:[%s1441_s1 + $0xac] ss:$16 sps:$4 sm:$0xff]   ;;  %v1077_v10 = vld [vmem:[%s1441_s1 + $0xa0] ss:$16 sps:$4 sm:$0xff]   ;;  %v1078_v11 = vld [vmem:[%s1441_s1 + $0xa8] ss:$16 sps:$4 sm:$0xff]  }
   0xf   : > { %v1079_v12 = vld [vmem:[%s1441_s1 + $0x84] ss:$16 sps:$4 sm:$0xff]   ;;  %v1081_v13 = vld [vmem:[%s1441_s1 + $0x8c] ss:$16 sps:$4 sm:$0xff]   ;;  %v1083_v14 = vld [vmem:[%s1441_s1 + $0x80] ss:$16 sps:$4 sm:$0xff]  }
  0x10   : > { %v1084_v15 = vld [vmem:[%s1441_s1 + $0x88] ss:$16 sps:$4 sm:$0xff]   ;;  %v1085_v16 = vld [vmem:[%s1441_s1 + $0x64] ss:$16 sps:$4 sm:$0xff]   ;;  %v1087_v17 = vld [vmem:[%s1441_s1 + $0x6c] ss:$16 sps:$4 sm:$0xff]  }
  0x11   : > { %629 = vmatpush1.bf16.msra.mxu0 %v1071_v6  ;;  %670 = vmatpush1.bf16.msra.mxu1 %v1072_v7  ;;  %v1089_v18 = vld [vmem:[%s1441_s1 + $0x60] ss:$16 sps:$4 sm:$0xff]   ;;  %v1090_v19 = vld [vmem:[%s1441_s1 + $0x68] ss:$16 sps:$4 sm:$0xff]   ;;  %v1091_v20 = vld [vmem:[%s1441_s1 + $0x44] ss:$16 sps:$4 sm:$0xff]  }
  0x12   : > { %630 = vmatprep.subr.bf16.mxu0 %v1073_v8  ;;  %671 = vmatprep.subr.bf16.mxu1 %v1075_v9  ;;  %v1093_v21 = vld [vmem:[%s1441_s1 + $0x4c] ss:$16 sps:$4 sm:$0xff]   ;;  %v1095_v22 = vld [vmem:[%s1441_s1 + $0x40] ss:$16 sps:$4 sm:$0xff]   ;;  %v1096_v23 = vld [vmem:[%s1441_s1 + $0x48] ss:$16 sps:$4 sm:$0xff]  }
  0x13   : > { %v1097_v24 = vld [vmem:[%s1441_s1 + $0x24] ss:$16 sps:$4 sm:$0xff]   ;;  %v1099_v25 = vld [vmem:[%s1441_s1 + $0x2c] ss:$16 sps:$4 sm:$0xff]   ;;  %v1101_v26 = vld [vmem:[%s1441_s1 + $0x20] ss:$16 sps:$4 sm:$0xff]  }
  0x14   : > { %v1102_v27 = vld [vmem:[%s1441_s1 + $0x28] ss:$16 sps:$4 sm:$0xff]   ;;  %v1103_v28 = vld [vmem:[%s1441_s1 + $0x4] ss:$16 sps:$4 sm:$0xff]   ;;  %v1105_v29 = vld [vmem:[%s1441_s1 + $0xc] ss:$16 sps:$4 sm:$0xff]  }
  0x15   : > { %631 = vmatpush1.bf16.msra.mxu0 %v1077_v10  ;;  %672 = vmatpush1.bf16.msra.mxu1 %v1078_v11  ;;  %v1107_v30 = vld [vmem:[%s1441_s1] ss:$16 sps:$4 sm:$0xff]   ;;  %v1108_v31 = vld [vmem:[%s1441_s1 + $0x8] ss:$16 sps:$4 sm:$0xff]   ;;  %v1109_v32 = vld [vmem:[%s1441_s1 + $0x1e4] ss:$16 sps:$4 sm:$0xff]  }
  0x16   : > { %632 = vmatprep.subr.bf16.mxu0 %v1079_v12  ;;  %673 = vmatprep.subr.bf16.mxu1 %v1081_v13  ;;  %v1111_v33 = vld [vmem:[%s1441_s1 + $0x1ec] ss:$16 sps:$4 sm:$0xff]   ;;  %v1113_v34 = vld [vmem:[%s1441_s1 + $0x1e0] ss:$16 sps:$4 sm:$0xff]   ;;  %v1114_v35 = vld [vmem:[%s1441_s1 + $0x1e8] ss:$16 sps:$4 sm:$0xff]  }
  0x17   : > { %v1115_v36 = vld [vmem:[%s1441_s1 + $0x1c4] ss:$16 sps:$4 sm:$0xff]   ;;  %v1117_v37 = vld [vmem:[%s1441_s1 + $0x1cc] ss:$16 sps:$4 sm:$0xff]   ;;  %s1446_s16 = smov (!%p199_p3, %s973_s16), 1  ;;  %v1334_v46 = vshrl.u32 %v293_v40, 7 }
  0x18   : > { %v1165_v38 = vmov 1966171168   ;;  %v1119_v41 = vld [vmem:[%s1441_s1 + $0x1c0] ss:$16 sps:$4 sm:$0xff]   ;;  %v1120_v42 = vld [vmem:[%s1441_s1 + $0x1c8] ss:$16 sps:$4 sm:$0xff]  }
  0x19   : > { %633 = vmatpush1.bf16.msra.mxu0 %v1083_v14  ;;  %674 = vmatpush1.bf16.msra.mxu1 %v1084_v15  ;;  %v291_v39 = vunpack.c.l.s4 %v1165_v38  ;;  %v1121_v43 = vld [vmem:[%s1441_s1 + $0x1a4] ss:$16 sps:$4 sm:$0xff]   ;;  %v1123_v44 = vld [vmem:[%s1441_s1 + $0x1ac] ss:$16 sps:$4 sm:$0xff]   ;;  %s978_s29 = sshll.u32 %s1446_s16, 1  ;;  %vm731_vm0 = vcmask 1041408  }
  0x1a   : > { %634 = vmatprep.subr.bf16.mxu0 %v1085_v16  ;;  %675 = vmatprep.subr.bf16.mxu1 %v1087_v17  ;;  %v1125_v47 = vld [vmem:[%s1441_s1 + $0x1a0] ss:$16 sps:$4 sm:$0xff]   ;;  %v1126_v48 = vld [vmem:[%s1441_s1 + $0x1a8] ss:$16 sps:$4 sm:$0xff]   ;;  %v1127_v49 = vld [vmem:[%s1441_s1 + $0x184] ss:$16 sps:$4 sm:$0xff]   ;;  %s202_s12 = scalar_lea.vmem %s1440_s0, %s978_s29 }
  0x1b   : > { %v292_v45 = vunpack.c.0.s8 %v291_v39  ;;  %v1129_v50 = vld [vmem:[%s1441_s1 + $0x18c] ss:$16 sps:$4 sm:$0xff]   ;;  %v983_v52 = vld.sshfl [vmem:[%s202_s12] sm:$0x11 pattern:$0x75316420] }
  0x1c   : > { %v1131_v53 = vld [vmem:[%s1441_s1 + $0x180] ss:$16 sps:$4 sm:$0xff]   ;;  %v1132_v54 = vld [vmem:[%s1441_s1 + $0x188] ss:$16 sps:$4 sm:$0xff]   ;;  %v289_v55 = vcombine.high %v983_v52, %v983_v52  ;;  %v1133_v56 = vld [vmem:[%s1441_s1 + $0x164] ss:$16 sps:$4 sm:$0xff]  }
  0x1d   : > { %635 = vmatpush1.bf16.msra.mxu0 %v1089_v18  ;;  %676 = vmatpush1.bf16.msra.mxu1 %v1090_v19  ;;  %v1352_v51 = vsub.s32 %v292_v45, %v1334_v46  ;;  %v1135_v57 = vld [vmem:[%s1441_s1 + $0x16c] ss:$16 sps:$4 sm:$0xff]   ;;  %v1137_v59 = vld [vmem:[%s1441_s1 + $0x160] ss:$16 sps:$4 sm:$0xff]   ;;  %v1138_v60 = vld [vmem:[%s1441_s1 + $0x168] ss:$16 sps:$4 sm:$0xff]  }
  0x1e   : > { %636 = vmatprep.subr.bf16.mxu0 %v1091_v20  ;;  %677 = vmatprep.subr.bf16.mxu1 %v1093_v21  ;;  %v1139_v61 = vld [vmem:[%s1441_s1 + $0x144] ss:$16 sps:$4 sm:$0xff]   ;;  %v1141_v62 = vld [vmem:[%s1441_s1 + $0x14c] ss:$16 sps:$4 sm:$0xff]   ;;  %v1143_v63 = vld [vmem:[%s1441_s1 + $0x140] ss:$16 sps:$4 sm:$0xff]  }
  0x1f   : > { %v303_v58 = vrot.slane %v289_v55, %v1352_v51  ;;  %v1144_v0 = vld [vmem:[%s1441_s1 + $0x148] ss:$16 sps:$4 sm:$0xff]   ;;  %v1145_v1 = vld [vmem:[%s1441_s1 + $0x124] ss:$16 sps:$4 sm:$0xff]   ;;  %v1147_v2 = vld [vmem:[%s1441_s1 + $0x12c] ss:$16 sps:$4 sm:$0xff]   ;;  %v296_v9 = vrot.slane %v983_v52, %v1352_v51 }
  0x20   : > { %v1149_v3 = vld [vmem:[%s1441_s1 + $0x120] ss:$16 sps:$4 sm:$0xff]   ;;  %v1150_v4 = vld [vmem:[%s1441_s1 + $0x128] ss:$16 sps:$4 sm:$0xff]   ;;  %v1151_v5 = vld [vmem:[%s1441_s1 + $0x104] ss:$16 sps:$4 sm:$0xff]  }
  0x21   : > { %637 = vmatpush1.bf16.msra.mxu0 %v1095_v22  ;;  %678 = vmatpush1.bf16.msra.mxu1 %v1096_v23  ;;  %v1153_v6 = vld [vmem:[%s1441_s1 + $0x10c] ss:$16 sps:$4 sm:$0xff]   ;;  %v1155_v7 = vld [vmem:[%s1441_s1 + $0x100] ss:$16 sps:$4 sm:$0xff]   ;;  %v1156_v8 = vld [vmem:[%s1441_s1 + $0x108] ss:$16 sps:$4 sm:$0xff]  }
  0x22   : > { %638 = vmatprep.subr.bf16.mxu0 %v1097_v24  ;;  %679 = vmatprep.subr.bf16.mxu1 %v1099_v25  ;;  %v1166_v10 = vmov 1983009808   ;;  %s1050_s29 = sshll.u32 %s1446_s16, 3  ;;  %s981_s7 = sshll.u32 %s1446_s16, 2  ;;  %vm791_vm1 = vcmp.lt.s32.totalorder %v293_v40, 512 }
  0x23   : > { %658 = vmatprep.mubr.bf16.mxu0 %v303_v58  ;;  %699 = vmatprep.mubr.bf16.mxu1 %v303_v58  ;;  %v715_v11 = vunpack.c.l.s4 %v1166_v10  ;;  %s207_s6 = scalar_lea.vmem %s1442_s2, %s1050_s29  ;;  %s211_s10 = scalar_lea.vmem %s1443_s3, %s981_s7 }
  0x24   : > { %s215_s12 = scalar_lea.vmem %s1444_s4, %s981_s7 }
  0x25   : > { %639 = vmatpush1.bf16.msra.mxu0 %v1101_v26  ;;  %680 = vmatpush1.bf16.msra.mxu1 %v1102_v27  ;;  %v716_v12 = vunpack.c.0.s8 %v715_v11 }
  0x26   : > { %640 = vmatprep.subr.bf16.mxu0 %v1103_v28  ;;  %681 = vmatprep.subr.bf16.mxu1 %v1105_v29 }
  0x27   : > { %v719_v15 = vsub.s32 %v716_v12, %v1334_v46 }
  0x29   : > { %641 = vmatpush1.bf16.msra.mxu0 %v1107_v30  ;;  %682 = vmatpush1.bf16.msra.mxu1 %v1108_v31 }
  0x2a   : > { %642 = vmatprep.subr.bf16.mxu0 %v1109_v32  ;;  %683 = vmatprep.subr.bf16.mxu1 %v1111_v33 }
  0x2d   : > { %643 = vmatpush2.bf16.msra.mxu0 %v1113_v34  ;;  %684 = vmatpush2.bf16.msra.mxu1 %v1114_v35 }
  0x2e   : > { %644 = vmatprep.subr.bf16.mxu0 %v1115_v36  ;;  %685 = vmatprep.subr.bf16.mxu1 %v1117_v37 }
  0x31   : > { %645 = vmatpush2.bf16.msra.mxu0 %v1119_v41  ;;  %686 = vmatpush2.bf16.msra.mxu1 %v1120_v42 }
  0x32   : > { %646 = vmatprep.subr.bf16.mxu0 %v1121_v43  ;;  %687 = vmatprep.subr.bf16.mxu1 %v1123_v44 }
  0x35   : > { %647 = vmatpush2.bf16.msra.mxu0 %v1125_v47  ;;  %688 = vmatpush2.bf16.msra.mxu1 %v1126_v48 }
  0x36   : > { %648 = vmatprep.subr.bf16.mxu0 %v1127_v49  ;;  %689 = vmatprep.subr.bf16.mxu1 %v1129_v50 }
  0x39   : > { %649 = vmatpush2.bf16.msra.mxu0 %v1131_v53  ;;  %690 = vmatpush2.bf16.msra.mxu1 %v1132_v54 }
  0x3a   : > { %650 = vmatprep.subr.bf16.mxu0 %v1133_v56  ;;  %691 = vmatprep.subr.bf16.mxu1 %v1135_v57 }
  0x3d   : > { %651 = vmatpush2.bf16.msra.mxu0 %v1137_v59  ;;  %692 = vmatpush2.bf16.msra.mxu1 %v1138_v60 }
  0x3e   : > { %652 = vmatprep.subr.bf16.mxu0 %v1139_v61  ;;  %693 = vmatprep.subr.bf16.mxu1 %v1141_v62 }
  0x41   : > { %653 = vmatpush2.bf16.msra.mxu0 %v1143_v63  ;;  %694 = vmatpush2.bf16.msra.mxu1 %v1144_v0 }
  0x42   : > { %654 = vmatprep.subr.bf16.mxu0 %v1145_v1  ;;  %695 = vmatprep.subr.bf16.mxu1 %v1147_v2 }
  0x45   : > { %655 = vmatpush2.bf16.msra.mxu0 %v1149_v3  ;;  %696 = vmatpush2.bf16.msra.mxu1 %v1150_v4 }
  0x46   : > { %656 = vmatprep.subr.bf16.mxu0 %v1151_v5  ;;  %697 = vmatprep.subr.bf16.mxu1 %v1153_v6 }
  0x49   : > { %657 = vmatpush2.bf16.msra.mxu0 %v1155_v7  ;;  %698 = vmatpush2.bf16.msra.mxu1 %v1156_v8 }
  0x4c   : > { %659 = vmatmul.mubr.bf16.vlgmr.msra.gmra.mxu0 %v296_v9  ;;  %700 = vmatmul.mubr.bf16.vlgmr.msra.gmra.mxu1 %v296_v9 }
 0x10c   : > { %v660_v13 = vpop.f32.mrf.mxu0  ;;  %v701_v14 = vpop.f32.mrf.mxu1 }
 0x10d   : > { %v732_v16 = vsel %vm731_vm0, %v660_v13, 0.0  ;;  %v794_v17 = vmul.f32 %v660_v13, %v660_v13  ;;  %v746_v18 = vsel %vm731_vm0, %v701_v14, 0.0  ;;  %v796_v19 = vmul.f32 %v701_v14, %v701_v14 }
 0x10e   : > { %v733_v20 = vrot.slane %v732_v16, 4  ;;  %v747_v21 = vrot.slane %v746_v18, 4  ;;  %v662_v22 = vpop.f32.mrf.mxu0  ;;  %v703_v23 = vpop.f32.mrf.mxu1 }
 0x10f   : > { %v798_v24 = vsel %vm731_vm0, %v794_v17, 0.0  ;;  %v812_v25 = vsel %vm731_vm0, %v796_v19, 0.0  ;;  %v712_v26 = vcombine.low %v660_v13, %v662_v22  ;;  %v739_v27 = vsel %vm731_vm0, %v662_v22, 0.0 }
 0x110   : > { %v734_v28 = vadd.f32 %v733_v20, %v732_v16  ;;  %v799_v29 = vrot.slane %v798_v24, 4  ;;  %v748_v30 = vadd.f32 %v747_v21, %v746_v18  ;;  %v813_v31 = vrot.slane %v812_v25, 4  ;;  %v664_v32 = vpop.f32.mrf.mxu0  ;;  %v705_v33 = vpop.f32.mrf.mxu1 }
 0x111   : > { %v720_v34 = vrot.slane %v712_v26, %v719_v15  ;;  %v740_v35 = vrot.slane %v739_v27, 4  ;;  %v795_v36 = vmul.f32 %v662_v22, %v662_v22  ;;  %v713_v37 = vcombine.low %v701_v14, %v703_v23 }
 0x112   : > { %v735_v38 = vrot.slane %v734_v28, 2  ;;  %v800_v39 = vadd.f32 %v799_v29, %v798_v24  ;;  %v749_v41 = vrot.slane %v748_v30, 2  ;;  %v665_v42 = vpop.f32.mrf.mxu0  ;;  %v706_v43 = vpop.f32.mrf.mxu1  ;;  %v753_v47 = vsel %vm731_vm0, %v703_v23, 0.0 }
 0x113   : > { %v741_v44 = vadd.f32 %v740_v35, %v739_v27  ;;  %v805_v45 = vsel %vm731_vm0, %v795_v36, 0.0  ;;  %v727_v46 = vrot.slane %v713_v37, %v719_v15  ;;  %v814_v50 = vadd.f32 %v813_v31, %v812_v25 }
 0x114   : > { %v736_v48 = vadd.f32 %v735_v38, %v734_v28  ;;  %v801_v49 = vrot.slane %v800_v39, 2  ;;  %v806_v53 = vrot.slane %v805_v45, 4  ;;  %v754_v55 = vrot.slane %v753_v47, 4 }
 0x115   : > { %v742_v52 = vrot.slane %v741_v44, 2  ;;  %v728_v54 = vcombine.low %v720_v34, %v727_v46  ;;  %v750_v57 = vadd.f32 %v749_v41, %v748_v30  ;;  %v797_v61 = vmul.f32 %v703_v23, %v703_v23 }
 0x116   : > { %v737_v56 = vrot.slane %v736_v48, 1  ;;  %v807_v59 = vadd.f32 %v806_v53, %v805_v45  ;;  %v755_v60 = vadd.f32 %v754_v55, %v753_v47  ;;  %v802_v62 = vadd.f32 %v801_v49, %v800_v39 }
 0x117   : > { %v743_v58 = vadd.f32 %v742_v52, %v741_v44  ;;  %730 = vst [vmem:[%s207_s6] sm:$0xff] %v728_v54  ;;  %v815_v63 = vrot.slane %v814_v50, 2  ;;  %v819_v3 = vsel %vm731_vm0, %v797_v61, 0.0  ;;  %v751_v4 = vrot.slane %v750_v57, 1 }
 0x118   : > { %v808_v1 = vrot.slane %v807_v59, 2  ;;  %v756_v2 = vrot.slane %v755_v60, 2  ;;  %v820_v5 = vrot.slane %v819_v3, 4  ;;  %v738_v6 = vadd.f32 %v737_v56, %v736_v48 }
 0x119   : > { %v744_v0 = vrot.slane %v743_v58, 1  ;;  %v803_v10 = vrot.slane %v802_v62, 1  ;;  %v816_v11 = vadd.f32 %v815_v63, %v814_v50  ;;  %v752_v17 = vadd.f32 %v751_v4, %v750_v57 }
 0x11a   : > { %v809_v8 = vadd.f32 %v808_v1, %v807_v59  ;;  %v757_v9 = vadd.f32 %v756_v2, %v755_v60  ;;  %v821_v12 = vadd.f32 %v820_v5, %v819_v3 }
 0x11b   : > { %v745_v7 = vadd.f32 %v744_v0, %v743_v58  ;;  %v804_v20 = vadd.f32 %v803_v10, %v802_v62  ;;  %v817_v21 = vrot.slane %v816_v11, 1 }
 0x11c   : > { %v810_v14 = vrot.slane %v809_v8, 1  ;;  %v758_v15 = vrot.slane %v757_v9, 1  ;;  %v822_v16 = vrot.slane %v821_v12, 2 }
 0x11d   : > { %v764_v13 = vcombine.low %v738_v6, %v745_v7  ;;  %v818_v28 = vadd.f32 %v817_v21, %v816_v11 }
 0x11e   : > { %v811_v18 = vadd.f32 %v810_v14, %v809_v8  ;;  %v759_v19 = vadd.f32 %v758_v15, %v757_v9  ;;  %v823_v22 = vadd.f32 %v822_v16, %v821_v12 }
 0x11f   : > { %v772_v23 = vrot.slane %v764_v13, %v1352_v51 }
 0x120   : > { %v765_v24 = vcombine.low %v752_v17, %v759_v19  ;;  %v830_v25 = vcombine.low %v804_v20, %v811_v18  ;;  %v824_v26 = vrot.slane %v823_v22, 1 }
 0x122   : > { %v779_v27 = vrot.slane %v765_v24, %v1352_v51  ;;  %v825_v29 = vadd.f32 %v824_v26, %v823_v22  ;;  %v838_v31 = vrot.slane %v830_v25, %v1352_v51 }
 0x124   : > { %v780_v30 = vcombine.low %v772_v23, %v779_v27  ;;  %v831_v32 = vcombine.low %v818_v28, %v825_v29 }
 0x126   : > { %v787_v33 = vrot.slane %v780_v30, %v1352_v51  ;;  %v845_v34 = vrot.slane %v831_v32, %v1352_v51 }
 0x128   : > { %793 = vst.msk [vmem:[%s211_s10] sm:$0xf] %vm791_vm1, %v787_v33  ;;  %v846_v35 = vcombine.low %v838_v31, %v845_v34 }
 0x12a   : > { %v853_v36 = vrot.slane %v846_v35, %v1352_v51 }
 0x12c   : > { %855 = vst.msk [vmem:[%s215_s12] sm:$0xf] %vm791_vm1, %v853_v36 }
 0x12d PF: > { %s15_s15 = sadd.s32 1, %s1163_s15  }
 0x12e   : > { %p12_p4 = scmp.ge.s32.totalorder %s15_s15, 4  }
 0x130   :  { %14 = sbr.rel (!%p12_p4) target bundleno = 1 (0x1), region = 82 }

// kernel: resnet_forward.46
= control target key start
LH: loop header
LB: loop body
LE: loop exit
PB: predicated region body
PF: predicated region fallthrough
CT: control target
= control target key end

     0   :  { %s407_s12 = smov 0   ;;  %s434_s0 = inlined_call_operand.vmem [shape: f32[2,2,512], index: 0, kind: input, shape index: {}]   ;;  %s435_s1 = inlined_call_operand.vmem [shape: f32[1,512], index: 1, kind: input, shape index: {}]   ;;  %s436_s2 = inlined_call_operand.vmem [shape: f32[1,512], index: 2, kind: input, shape index: {}]   ;;  %s437_s3 = inlined_call_operand.vmem [shape: bf16[2,2,512], index: 3, kind: output, shape index: {}]  }
   0x1 LB: > { %s353_s13 = sadd.s32 4294967295, %s383_s12   ;;  %p357_p0 = scmp.ge.s32.totalorder %s383_s12, 1  ;;  %s383_s12 = sphi %s407_s12, %s13_s12  }
   0x2   : > { %p137_p1 = scmp.lt.s32.totalorder %s383_s12, 3 }
   0x4   : > { %p138_p2 = pnand %p357_p0, %p137_p1 }
   0x5   : > { %p160_p3 = scmp.lt.s32.totalorder (!%p138_p2), %s353_s13, 1 }
   0x6   : > { %141 = sbr.rel (%p138_p2) target bundleno = 42 (0x2a), region = 32 }
   0xb   : > { %v172_v0 = vlaneseq  ;;  %v385_v1 = vmov 1983009808   ;;  %s439_s13 = smov (!%p160_p3, %s353_s13), 1  ;;  %v170_v4 = vld [vmem:[%s435_s1] sm:$0xf] }
   0xc   : > { %v191_v2 = vunpack.c.l.s4 %v385_v1  ;;  %v207_v10 = vld [vmem:[%s436_s2] sm:$0xf]  ;;  %s366_s18 = sshll.u32 %s439_s13, 3  ;;  %v386_v30 = vmov 1966171168   ;;  %s360_s22 = sshll.u32 %s439_s13, 2 }
   0xd   : > { %v173_v3 = vshrl.u32 %v172_v0, 7  ;;  %s164_s21 = scalar_lea.vmem %s434_s0, %s366_s18  ;;  %v277_v31 = vunpack.c.l.s4 %v386_v30  ;;  %s168_s25 = scalar_lea.vmem %s437_s3, %s360_s22 }
   0xe   : > { %v192_v5 = vunpack.c.0.s8 %v191_v2  ;;  %v169_v26 = vld [vmem:[%s164_s21] sm:$0xff] }
   0xf   : > { %v174_v6 = vsub.s32 0, %v173_v3  ;;  %v178_v7 = vsub.s32 1, %v173_v3  ;;  %v182_v8 = vsub.s32 2, %v173_v3  ;;  %v186_v9 = vsub.s32 3, %v173_v3 }
  0x10   : > { %v195_v11 = vsub.s32 %v192_v5, %v173_v3  ;;  %v278_v35 = vunpack.c.0.s8 %v277_v31 }
  0x11   : > { %v175_v12 = vrot.slane %v170_v4, %v174_v6  ;;  %v179_v13 = vrot.slane %v170_v4, %v178_v7  ;;  %v183_v14 = vrot.slane %v170_v4, %v182_v8  ;;  %v187_v15 = vrot.slane %v170_v4, %v186_v9 }
  0x12   : > { %v212_v16 = vrot.slane %v207_v10, %v174_v6  ;;  %v216_v17 = vrot.slane %v207_v10, %v178_v7  ;;  %v220_v18 = vrot.slane %v207_v10, %v182_v8  ;;  %v224_v19 = vrot.slane %v207_v10, %v186_v9 }
  0x13   : > { %v188_v20 = vcombine.low %v175_v12, %v179_v13  ;;  %v189_v21 = vcombine.low %v183_v14, %v187_v15  ;;  %v281_v40 = vsub.s32 %v278_v35, %v173_v3 }
  0x14   : > { %v225_v22 = vcombine.low %v212_v16, %v216_v17  ;;  %v226_v23 = vcombine.low %v220_v18, %v224_v19 }
  0x15   : > { %v196_v24 = vrot.slane %v188_v20, %v195_v11  ;;  %v203_v25 = vrot.slane %v189_v21, %v195_v11 }
  0x16   : > { %v233_v27 = vrot.slane %v225_v22, %v195_v11  ;;  %v240_v28 = vrot.slane %v226_v23, %v195_v11 }
  0x17   : > { %v204_v29 = vcombine.low %v196_v24, %v203_v25 }
  0x18   : > { %v241_v32 = vcombine.low %v233_v27, %v240_v28 }
  0x19   : > { %v206_v33 = vmul.f32 %v204_v29, %v169_v26 }
  0x1b   : > { %v243_v34 = vadd.f32 %v241_v32, %v206_v33 }
  0x1d   : > { %v245_v36 = vcombine.high %v243_v34, %v243_v34  ;;  %v252_v37 = vrot.slane %v243_v34, %v195_v11 }
  0x1f   : > { %v259_v38 = vrot.slane %v245_v36, %v195_v11  ;;  %v260_v39 = vcombine.high %v252_v37, %v252_v37 }
  0x21   : > { %v261_v41 = vcombine.high %v259_v38, %v259_v38  ;;  %v361_v42 = vpack.c.bf16 %v260_v39, %v252_v37 }
  0x23   : > { %v362_v43 = vpack.c.bf16 %v261_v41, %v259_v38  ;;  %v282_v44 = vrot.slane %v361_v42, %v281_v40 }
  0x25   : > { %v289_v45 = vrot.slane %v362_v43, %v281_v40 }
  0x27   : > { %v290_v46 = vcombine.low %v282_v44, %v289_v45 }
  0x29   : > { %363 = vst.sshfl [vmem:[%s168_s25] sm:$0x55 pattern:$0x73625140] %v290_v46 }
  0x2a PF: > { %s13_s12 = sadd.s32 1, %s383_s12  }
  0x2b   : > { %p10_p4 = scmp.ge.s32.totalorder %s13_s12, 4  }
  0x2d   :  { %12 = sbr.rel (!%p10_p4) target bundleno = 1 (0x1), region = 62 }

// kernel: resnet_forward.50
= control target key start
LH: loop header
LB: loop body
LE: loop exit
PB: predicated region body
PF: predicated region fallthrough
CT: control target
= control target key end

     0   :  { %s473_s15 = smov 0   ;;  %s507_s0 = inlined_call_operand.vmem [shape: f32[2,2,512], index: 0, kind: input, shape index: {}]   ;;  %s508_s1 = inlined_call_operand.vmem [shape: f32[1,512], index: 1, kind: input, shape index: {}]   ;;  %s509_s2 = inlined_call_operand.vmem [shape: f32[1,512], index: 2, kind: input, shape index: {}]   ;;  %s510_s3 = inlined_call_operand.vmem [shape: bf16[2,2,512], index: 3, kind: input, shape index: {}]   ;;  %s511_s4 = inlined_call_operand.vmem [shape: bf16[2,2,512], index: 4, kind: output, shape index: {}]  }
   0x1 LB: > { %s413_s16 = sadd.s32 4294967295, %s444_s15   ;;  %p417_p0 = scmp.ge.s32.totalorder %s444_s15, 1  ;;  %s444_s15 = sphi %s473_s15, %s14_s15  }
   0x2   : > { %p171_p1 = scmp.lt.s32.totalorder %s444_s15, 3 }
   0x4   : > { %p172_p2 = pnand %p417_p0, %p171_p1 }
   0x5   : > { %p200_p3 = scmp.lt.s32.totalorder (!%p172_p2), %s413_s16, 1 }
   0x6   : > { %175 = sbr.rel (%p172_p2) target bundleno = 46 (0x2e), region = 36 }
   0xb   : > { %v216_v0 = vlaneseq  ;;  %v446_v1 = vmov 1983009808   ;;  %s513_s16 = smov (!%p200_p3, %s413_s16), 1  ;;  %v214_v4 = vld [vmem:[%s508_s1] sm:$0xf] }
   0xc   : > { %v235_v2 = vunpack.c.l.s4 %v446_v1  ;;  %v251_v10 = vld [vmem:[%s509_s2] sm:$0xf]  ;;  %s427_s21 = sshll.u32 %s513_s16, 3  ;;  %s420_s22 = sshll.u32 %s513_s16, 2  ;;  %v447_v35 = vmov 1966171168  }
   0xd   : > { %v217_v3 = vshrl.u32 %v216_v0, 7  ;;  %s204_s25 = scalar_lea.vmem %s507_s0, %s427_s21  ;;  %s208_s28 = scalar_lea.vmem %s510_s3, %s420_s22  ;;  %v325_v36 = vunpack.c.l.s4 %v447_v35 }
   0xe   : > { %v236_v5 = vunpack.c.0.s8 %v235_v2  ;;  %v213_v26 = vld [vmem:[%s204_s25] sm:$0xff]  ;;  %s212_s5 = scalar_lea.vmem %s511_s4, %s420_s22 }
   0xf   : > { %v218_v6 = vsub.s32 0, %v217_v3  ;;  %v222_v7 = vsub.s32 1, %v217_v3  ;;  %v226_v8 = vsub.s32 2, %v217_v3  ;;  %v230_v9 = vsub.s32 3, %v217_v3  ;;  %v288_v29 = vld [vmem:[%s208_s28] sm:$0xf] }
  0x10   : > { %v239_v11 = vsub.s32 %v236_v5, %v217_v3  ;;  %v289_v33 = vunpack.c.l.bf16 %v288_v29  ;;  %v326_v39 = vunpack.c.0.s8 %v325_v36 }
  0x11   : > { %v219_v12 = vrot.slane %v214_v4, %v218_v6  ;;  %v223_v13 = vrot.slane %v214_v4, %v222_v7  ;;  %v227_v14 = vrot.slane %v214_v4, %v226_v8  ;;  %v231_v15 = vrot.slane %v214_v4, %v230_v9 }
  0x12   : > { %v256_v16 = vrot.slane %v251_v10, %v218_v6  ;;  %v260_v17 = vrot.slane %v251_v10, %v222_v7  ;;  %v264_v18 = vrot.slane %v251_v10, %v226_v8  ;;  %v268_v19 = vrot.slane %v251_v10, %v230_v9 }
  0x13   : > { %v232_v20 = vcombine.low %v219_v12, %v223_v13  ;;  %v233_v21 = vcombine.low %v227_v14, %v231_v15  ;;  %v329_v44 = vsub.s32 %v326_v39, %v217_v3 }
  0x14   : > { %v269_v22 = vcombine.low %v256_v16, %v260_v17  ;;  %v270_v23 = vcombine.low %v264_v18, %v268_v19 }
  0x15   : > { %v240_v24 = vrot.slane %v232_v20, %v239_v11  ;;  %v247_v25 = vrot.slane %v233_v21, %v239_v11 }
  0x16   : > { %v277_v27 = vrot.slane %v269_v22, %v239_v11  ;;  %v284_v28 = vrot.slane %v270_v23, %v239_v11 }
  0x17   : > { %v248_v30 = vcombine.low %v240_v24, %v247_v25 }
  0x18   : > { %v285_v31 = vcombine.low %v277_v27, %v284_v28 }
  0x19   : > { %v250_v32 = vmul.f32 %v248_v30, %v213_v26 }
  0x1b   : > { %v287_v34 = vadd.f32 %v285_v31, %v250_v32 }
  0x1d   : > { %v290_v37 = vadd.f32 %v289_v33, %v287_v34 }
  0x1f   : > { %v291_v38 = vmax.f32 %v290_v37, 0.0 }
  0x21   : > { %v293_v40 = vcombine.high %v291_v38, %v291_v38  ;;  %v300_v41 = vrot.slane %v291_v38, %v239_v11 }
  0x23   : > { %v307_v42 = vrot.slane %v293_v40, %v239_v11  ;;  %v308_v43 = vcombine.high %v300_v41, %v300_v41 }
  0x25   : > { %v309_v45 = vcombine.high %v307_v42, %v307_v42  ;;  %v422_v46 = vpack.c.bf16 %v308_v43, %v300_v41 }
  0x27   : > { %v423_v47 = vpack.c.bf16 %v309_v45, %v307_v42  ;;  %v330_v48 = vrot.slane %v422_v46, %v329_v44 }
  0x29   : > { %v337_v49 = vrot.slane %v423_v47, %v329_v44 }
  0x2b   : > { %v338_v50 = vcombine.low %v330_v48, %v337_v49 }
  0x2d   : > { %424 = vst.sshfl [vmem:[%s212_s5] sm:$0x55 pattern:$0x73625140] %v338_v50 }
  0x2e PF: > { %s14_s15 = sadd.s32 1, %s444_s15  }
  0x2f   : > { %p11_p4 = scmp.ge.s32.totalorder %s14_s15, 4  }
  0x31   :  { %13 = sbr.rel (!%p11_p4) target bundleno = 1 (0x1), region = 69 }

// kernel: resnet_forward.51
= control target key start
LH: loop header
LB: loop body
LE: loop exit
PB: predicated region body
PF: predicated region fallthrough
CT: control target
= control target key end

     0   :  { %v472_v30 = vmov 1983009808   ;;  %v25_v32 = vlaneseq  ;;  %s707_s0 = inlined_call_operand.vmem [shape: bf16[2,2,512], index: 0, kind: input, shape index: {}]   ;;  %s708_s1 = inlined_call_operand.vmem [shape: f32[512,10], index: 1, kind: input, shape index: {}]   ;;  %s709_s2 = inlined_call_operand.vmem [shape: f32[1,10], index: 2, kind: input, shape index: {}]   ;;  %s710_s3 = inlined_call_operand.hbm [shape: f32[2,10], index: 3, kind: output, shape index: {}]  }
   0x1   :  { %v160_v0 = vld [vmem:[%s708_s1 + $0xf8] sm:$0xff]  ;;  %v159_v4 = vld [vmem:[%s708_s1 + $0xf0] sm:$0xff]  ;;  %v158_v8 = vld [vmem:[%s708_s1 + $0xe8] sm:$0xff]  ;;  %v23_v31 = vunpack.c.l.s4 %v472_v30 }
   0x2   :  { %v192_v1 = vld [vmem:[%s708_s1 + $0x1f8] sm:$0xff]  ;;  %378 = vmatprep.subr.mxu0 %v160_v0  ;;  %v191_v5 = vld [vmem:[%s708_s1 + $0x1f0] sm:$0xff]  ;;  %v190_v9 = vld [vmem:[%s708_s1 + $0x1e8] sm:$0xff]  ;;  %v26_v42 = vshrl.u32 %v25_v32, 7 }
   0x3   :  { %v144_v2 = vld [vmem:[%s708_s1 + $0x78] sm:$0xff]  ;;  %413 = vmatprep.subr.mxu1 %v192_v1  ;;  %v143_v6 = vld [vmem:[%s708_s1 + $0x70] sm:$0xff]  ;;  %v142_v10 = vld [vmem:[%s708_s1 + $0x68] sm:$0xff]  ;;  %v24_v41 = vunpack.c.0.s8 %v23_v31 }
   0x4   :  { %v176_v3 = vld [vmem:[%s708_s1 + $0x178] sm:$0xff]  ;;  %379 = vmatpush3.msra.mxu0 %v144_v2  ;;  %v175_v7 = vld [vmem:[%s708_s1 + $0x170] sm:$0xff]  ;;  %v174_v11 = vld [vmem:[%s708_s1 + $0x168] sm:$0xff] }
   0x5   :  { %414 = vmatpush3.msra.mxu1 %v176_v3  ;;  %380 = vmatprep.subr.mxu0 %v159_v4  ;;  %v157_v12 = vld [vmem:[%s708_s1 + $0xe0] sm:$0xff]  ;;  %v156_v16 = vld [vmem:[%s708_s1 + $0xd8] sm:$0xff]  ;;  %v155_v20 = vld [vmem:[%s708_s1 + $0xd0] sm:$0xff]  ;;  %v27_v52 = vsub.s32 %v24_v41, %v26_v42 }
   0x6   :  { %415 = vmatprep.subr.mxu1 %v191_v5  ;;  %381 = vmatpush3.msra.mxu0 %v143_v6  ;;  %v189_v13 = vld [vmem:[%s708_s1 + $0x1e0] sm:$0xff]  ;;  %v188_v17 = vld [vmem:[%s708_s1 + $0x1d8] sm:$0xff]  ;;  %v187_v21 = vld [vmem:[%s708_s1 + $0x1d0] sm:$0xff] }
   0x7   :  { %416 = vmatpush3.msra.mxu1 %v175_v7  ;;  %382 = vmatprep.subr.mxu0 %v158_v8  ;;  %v141_v14 = vld [vmem:[%s708_s1 + $0x60] sm:$0xff]  ;;  %v140_v18 = vld [vmem:[%s708_s1 + $0x58] sm:$0xff]  ;;  %v139_v22 = vld [vmem:[%s708_s1 + $0x50] sm:$0xff] }
   0x8   :  { %417 = vmatprep.subr.mxu1 %v190_v9  ;;  %v173_v15 = vld [vmem:[%s708_s1 + $0x160] sm:$0xff]  ;;  %383 = vmatpush3.msra.mxu0 %v142_v10  ;;  %v172_v19 = vld [vmem:[%s708_s1 + $0x158] sm:$0xff]  ;;  %v171_v23 = vld [vmem:[%s708_s1 + $0x150] sm:$0xff] }
   0x9   :  { %418 = vmatpush3.msra.mxu1 %v174_v11  ;;  %384 = vmatprep.subr.mxu0 %v157_v12  ;;  %v154_v24 = vld [vmem:[%s708_s1 + $0xc8] sm:$0xff]  ;;  %v153_v28 = vld [vmem:[%s708_s1 + $0xc0] sm:$0xff]  ;;  %v152_v35 = vld [vmem:[%s708_s1 + $0xb8] sm:$0xff] }
   0xa   :  { %419 = vmatprep.subr.mxu1 %v189_v13  ;;  %385 = vmatpush3.msra.mxu0 %v141_v14  ;;  %v186_v25 = vld [vmem:[%s708_s1 + $0x1c8] sm:$0xff]  ;;  %v185_v29 = vld [vmem:[%s708_s1 + $0x1c0] sm:$0xff]  ;;  %v184_v36 = vld [vmem:[%s708_s1 + $0x1b8] sm:$0xff] }
   0xb   :  { %420 = vmatpush3.msra.mxu1 %v173_v15  ;;  %386 = vmatprep.subr.mxu0 %v156_v16  ;;  %v138_v26 = vld [vmem:[%s708_s1 + $0x48] sm:$0xff]  ;;  %v137_v33 = vld [vmem:[%s708_s1 + $0x40] sm:$0xff]  ;;  %v136_v37 = vld [vmem:[%s708_s1 + $0x38] sm:$0xff] }
   0xc   :  { %421 = vmatprep.subr.mxu1 %v188_v17  ;;  %387 = vmatpush3.msra.mxu0 %v140_v18  ;;  %v170_v27 = vld [vmem:[%s708_s1 + $0x148] sm:$0xff]  ;;  %v169_v34 = vld [vmem:[%s708_s1 + $0x140] sm:$0xff]  ;;  %v168_v38 = vld [vmem:[%s708_s1 + $0x138] sm:$0xff] }
   0xd   :  { %422 = vmatpush3.msra.mxu1 %v172_v19  ;;  %388 = vmatprep.subr.mxu0 %v155_v20  ;;  %v151_v39 = vld [vmem:[%s708_s1 + $0xb0] sm:$0xff]  ;;  %v150_v45 = vld [vmem:[%s708_s1 + $0xa8] sm:$0xff]  ;;  %v149_v49 = vld [vmem:[%s708_s1 + $0xa0] sm:$0xff] }
   0xe   :  { %423 = vmatprep.subr.mxu1 %v187_v21  ;;  %389 = vmatpush3.msra.mxu0 %v139_v22  ;;  %v183_v40 = vld [vmem:[%s708_s1 + $0x1b0] sm:$0xff]  ;;  %v182_v46 = vld [vmem:[%s708_s1 + $0x1a8] sm:$0xff]  ;;  %v181_v50 = vld [vmem:[%s708_s1 + $0x1a0] sm:$0xff] }
   0xf   :  { %424 = vmatpush3.msra.mxu1 %v171_v23  ;;  %390 = vmatprep.subr.mxu0 %v154_v24  ;;  %v135_v43 = vld [vmem:[%s708_s1 + $0x30] sm:$0xff]  ;;  %v134_v47 = vld [vmem:[%s708_s1 + $0x28] sm:$0xff]  ;;  %v133_v51 = vld [vmem:[%s708_s1 + $0x20] sm:$0xff] }
  0x10   :  { %425 = vmatprep.subr.mxu1 %v186_v25  ;;  %391 = vmatpush3.msra.mxu0 %v138_v26  ;;  %v167_v44 = vld [vmem:[%s708_s1 + $0x130] sm:$0xff]  ;;  %v166_v48 = vld [vmem:[%s708_s1 + $0x128] sm:$0xff]  ;;  %v165_v53 = vld [vmem:[%s708_s1 + $0x120] sm:$0xff] }
  0x11   :  { %426 = vmatpush3.msra.mxu1 %v170_v27  ;;  %392 = vmatprep.subr.mxu0 %v153_v28  ;;  %v375_v54 = vld [vmem:[%s707_s0] sm:$0xff]  }
  0x12   :  { %427 = vmatprep.subr.mxu1 %v185_v29  ;;  %393 = vmatpush3.msra.mxu0 %v137_v33 }
  0x13   :  { %428 = vmatpush3.msra.mxu1 %v169_v34  ;;  %394 = vmatprep.subr.mxu0 %v152_v35 }
  0x14   :  { %429 = vmatprep.subr.mxu1 %v184_v36  ;;  %395 = vmatpush3.msra.mxu0 %v136_v37 }
  0x15   :  { %430 = vmatpush3.msra.mxu1 %v168_v38  ;;  %396 = vmatprep.subr.mxu0 %v151_v39 }
  0x16   :  { %431 = vmatprep.subr.mxu1 %v183_v40  ;;  %397 = vmatpush3.msra.mxu0 %v135_v43 }
  0x17   :  { %432 = vmatpush3.msra.mxu1 %v167_v44  ;;  %398 = vmatprep.subr.mxu0 %v150_v45 }
  0x18   :  { %433 = vmatprep.subr.mxu1 %v182_v46 }
  0x19   :  { %8 = vsyncpa [#allocation3], 0  ;;  %399 = vmatpush3.msra.mxu0 %v134_v47  ;;  %434 = vmatpush3.msra.mxu1 %v166_v48  ;;  %v148_v55 = vld [vmem:[%s708_s1 + $0x98] sm:$0xff]  ;;  %v376_v57 = vunpack.c.l.bf16 %v375_v54  ;;  %v377_v58 = vunpack.c.h.bf16 %v375_v54  ;;  %vm63_vm0 = vcmask 1041408   ;;  %v147_v61 = vld [vmem:[%s708_s1 + $0x90] sm:$0xff]  ;;  %vm208_vm1 = vcmask 1041409  }
  0x1a   :  { %v180_v56 = vld [vmem:[%s708_s1 + $0x198] sm:$0xff]  ;;  %400 = vmatprep.subr.mxu0 %v149_v49  ;;  %435 = vmatprep.subr.mxu1 %v181_v50  ;;  %v179_v62 = vld [vmem:[%s708_s1 + $0x190] sm:$0xff]  ;;  %v146_v5 = vld [vmem:[%s708_s1 + $0x88] sm:$0xff]  ;;  %s473_s7 = smov [#allocation2]   ;;  %vm357_vm2 = vcmask 74752  }
  0x1b   :  { %v132_v59 = vld [vmem:[%s708_s1 + $0x18] sm:$0xff]  ;;  %401 = vmatpush3.msra.mxu0 %v133_v51  ;;  %436 = vmatpush3.msra.mxu1 %v165_v53  ;;  %v28_v63 = vrot.slane %v376_v57, %v27_v52  ;;  %v45_v0 = vrot.slane %v377_v58, %v27_v52  ;;  %v21_v1 = vcombine.high %v376_v57, %v376_v57  ;;  %v131_v2 = vld [vmem:[%s708_s1 + $0x10] sm:$0xff]  ;;  %v178_v6 = vld [vmem:[%s708_s1 + $0x188] sm:$0xff]  ;;  %s365_s0 = sshll.u32 %s473_s7, 4  ;;  %s366_s0 = int_to_ptr.vmem [resolvable:$true] %s365_s0 }
  0x1c   :  { %v164_v60 = vld [vmem:[%s708_s1 + $0x118] sm:$0xff]  ;;  %402 = vmatprep.subr.mxu0 %v148_v55  ;;  %437 = vmatprep.subr.mxu1 %v180_v56  ;;  %v163_v3 = vld [vmem:[%s708_s1 + $0x110] sm:$0xff]  ;;  %v38_v4 = vcombine.high %v377_v58, %v377_v58  ;;  %v130_v11 = vld [vmem:[%s708_s1 + $0x8] sm:$0xff]  ;;  %s450_s8 = scalar_lea.vmem %s366_s0, 32  ;;  %p455_p1 = scmp.lt.s32.totalorder %s366_s0, %s366_s0 }
  0x1d   :  { %403 = vmatpush3.msra.mxu0 %v132_v59  ;;  %438 = vmatpush3.msra.mxu1 %v164_v60  ;;  %v36_v7 = vcombine.high %v28_v63, %v28_v63  ;;  %v53_v8 = vcombine.high %v45_v0, %v45_v0  ;;  %v35_v9 = vrot.slane %v21_v1, %v27_v52  ;;  %v64_v10 = vsel %vm63_vm0, %v28_v63, 0.0  ;;  %v162_v12 = vld [vmem:[%s708_s1 + $0x108] sm:$0xff]  ;;  %v145_v16 = vld [vmem:[%s708_s1 + $0x80] sm:$0xff]  ;;  %p451_p0 = scmp.ne.s32.totalorder %s366_s0, %s450_s8  ;;  %p456_p2 = scmp.lt.s32.totalorder %s450_s8, %s450_s8 }
  0x1e   :  { %404 = vmatprep.subr.mxu0 %v147_v61  ;;  %439 = vmatprep.subr.mxu1 %v179_v62  ;;  %v52_v13 = vrot.slane %v38_v4, %v27_v52  ;;  %v65_v14 = vrot.slane %v64_v10, 4  ;;  %v92_v15 = vsel %vm63_vm0, %v45_v0, 0.0  ;;  %v177_v17 = vld [vmem:[%s708_s1 + $0x180] sm:$0xff] }
  0x1f   :  { %405 = vmatpush3.msra.mxu0 %v131_v2  ;;  %440 = vmatpush3.msra.mxu1 %v163_v3  ;;  %v71_v18 = vsel %vm63_vm0, %v36_v7, 0.0  ;;  %v99_v19 = vsel %vm63_vm0, %v53_v8, 0.0  ;;  %v37_v20 = vcombine.high %v35_v9, %v35_v9  ;;  %v93_v21 = vrot.slane %v92_v15, 4  ;;  %v129_v22 = vld [vmem:[%s708_s1] sm:$0xff]  ;;  %p457_p3 = por %p456_p2, %p455_p1 }
  0x20   :  { %406 = vmatprep.subr.mxu0 %v146_v5  ;;  %441 = vmatprep.subr.mxu1 %v178_v6  ;;  %v72_v23 = vrot.slane %v71_v18, 4  ;;  %v100_v24 = vrot.slane %v99_v19, 4  ;;  %v161_v25 = vld [vmem:[%s708_s1 + $0x100] sm:$0xff]  ;;  %v54_v26 = vcombine.high %v52_v13, %v52_v13  ;;  %v66_v27 = vadd.f32 %v65_v14, %v64_v10 }
  0x21   :  { %407 = vmatpush3.msra.mxu0 %v130_v11  ;;  %442 = vmatpush3.msra.mxu1 %v162_v12  ;;  %v85_v28 = vsel %vm63_vm0, %v37_v20, 0.0  ;;  %v94_v29 = vadd.f32 %v93_v21, %v92_v15  ;;  %v78_v30 = vsel %vm63_vm0, %v35_v9, 0.0  ;;  %v106_v31 = vsel %vm63_vm0, %v52_v13, 0.0  ;;  %p458_p4 = pnand %p457_p3, %p451_p0 }
  0x22   :  { %408 = vmatprep.subr.mxu0 %v145_v16  ;;  %443 = vmatprep.subr.mxu1 %v177_v17  ;;  %v73_v32 = vadd.f32 %v72_v23, %v71_v18  ;;  %v101_v33 = vadd.f32 %v100_v24, %v99_v19  ;;  %v86_v34 = vrot.slane %v85_v28, 4  ;;  %v113_v35 = vsel %vm63_vm0, %v54_v26, 0.0  ;;  %v373_v24 = vld [vmem:[%s709_s2] ss:$0 sm:$0xff] }
  0x23   :  { %409 = vmatpush3.msra.mxu0 %v129_v22  ;;  %444 = vmatpush3.msra.mxu1 %v161_v25  ;;  %v114_v36 = vrot.slane %v113_v35, 4  ;;  %v67_v37 = vrot.slane %v66_v27, 2  ;;  %v95_v38 = vrot.slane %v94_v29, 2  ;;  %v79_v39 = vrot.slane %v78_v30, 4 }
  0x24   :  { %v74_v40 = vrot.slane %v73_v32, 2  ;;  %v102_v41 = vrot.slane %v101_v33, 2  ;;  %v87_v42 = vadd.f32 %v86_v34, %v85_v28  ;;  %v107_v43 = vrot.slane %v106_v31, 4 }
  0x25   :  { %v115_v44 = vadd.f32 %v114_v36, %v113_v35  ;;  %v68_v45 = vadd.f32 %v67_v37, %v66_v27  ;;  %v96_v46 = vadd.f32 %v95_v38, %v94_v29  ;;  %v80_v47 = vadd.f32 %v79_v39, %v78_v30 }
  0x26   :  { %v75_v48 = vadd.f32 %v74_v40, %v73_v32  ;;  %v103_v49 = vadd.f32 %v102_v41, %v101_v33  ;;  %v88_v50 = vrot.slane %v87_v42, 2  ;;  %v108_v51 = vadd.f32 %v107_v43, %v106_v31 }
  0x27   :  { %v116_v52 = vrot.slane %v115_v44, 2  ;;  %v69_v53 = vrot.slane %v68_v45, 1  ;;  %v97_v54 = vrot.slane %v96_v46, 1  ;;  %v81_v55 = vrot.slane %v80_v47, 2 }
  0x28   :  { %v76_v56 = vrot.slane %v75_v48, 1  ;;  %v104_v57 = vrot.slane %v103_v49, 1  ;;  %v89_v58 = vadd.f32 %v88_v50, %v87_v42  ;;  %v109_v59 = vrot.slane %v108_v51, 2 }
  0x29   :  { %v117_v60 = vadd.f32 %v116_v52, %v115_v44  ;;  %v70_v61 = vadd.f32 %v69_v53, %v68_v45  ;;  %v98_v62 = vadd.f32 %v97_v54, %v96_v46  ;;  %v82_v63 = vadd.f32 %v81_v55, %v80_v47 }
  0x2a   :  { %v77_v0 = vadd.f32 %v76_v56, %v75_v48  ;;  %v105_v1 = vadd.f32 %v104_v57, %v103_v49  ;;  %v90_v2 = vrot.slane %v89_v58, 1  ;;  %v110_v3 = vadd.f32 %v109_v59, %v108_v51 }
  0x2b   :  { %v118_v4 = vrot.slane %v117_v60, 1  ;;  %v121_v5 = vmul.f32 0.5, %v70_v61  ;;  %v125_v6 = vmul.f32 0.5, %v98_v62  ;;  %v83_v7 = vrot.slane %v82_v63, 1 }
  0x2c   :  { %v122_v8 = vmul.f32 0.5, %v77_v0  ;;  %v126_v9 = vmul.f32 0.5, %v105_v1  ;;  %v91_v10 = vadd.f32 %v90_v2, %v89_v58  ;;  %v111_v11 = vrot.slane %v110_v3, 1 }
  0x2d   :  { %v119_v12 = vadd.f32 %v118_v4, %v117_v60  ;;  %v209_v13 = vsel %vm208_vm1, %v125_v6, %v121_v5  ;;  %v84_v14 = vadd.f32 %v83_v7, %v82_v63 }
  0x2e   :  { %v210_v15 = vsel %vm208_vm1, %v126_v9, %v122_v8  ;;  %v124_v16 = vmul.f32 0.5, %v91_v10  ;;  %v112_v17 = vadd.f32 %v111_v11, %v110_v3 }
  0x2f   :  { %281 = vmatprep.mubr.f32.mxu0 %v210_v15  ;;  %v128_v18 = vmul.f32 0.5, %v119_v12  ;;  %v123_v19 = vmul.f32 0.5, %v84_v14 }
  0x30   :  { %282 = vmatmul.mubr.f32.vlgmr.msra.gmra.mxu0 %v209_v13  ;;  %v127_v20 = vmul.f32 0.5, %v112_v17 }
  0x31   :  { %v212_v21 = vsel %vm208_vm1, %v128_v18, %v124_v16 }
  0x32   :  { %351 = vmatprep.mubr.f32.mxu1 %v212_v21  ;;  %v211_v22 = vsel %vm208_vm1, %v127_v20, %v123_v19 }
  0x33   :  { %352 = vmatmul.mubr.f32.vlgmr.msra.gmra.mxu1 %v211_v22 }
  0xf0   :  { %v410_v23 = vpop.f32.mrf.mxu0 }
  0xf2   :  { %v411_v25 = vpop.f32.mrf.mxu0 }
  0xf3   :  { %v445_v26 = vpop.f32.mrf.mxu1  ;;  %v412_v27 = vadd.f32 %v411_v25, %v410_v23 }
  0xf5   :  { %v284_v28 = vadd.f32 %v412_v27, %v373_v24  ;;  %v446_v29 = vpop.f32.mrf.mxu1 }
  0xf6   :  { %v447_v30 = vadd.f32 %v446_v29, %v445_v26 }
  0xf8   :  { %v354_v31 = vadd.f32 %v447_v30, %v284_v28 }
  0xfa   :  { %358 = vst.msk [vmem:[#allocation2] sm:$0x3] %vm357_vm2, %v354_v31 }
  0xfb   :  { %461 = shalt.err (!%p458_p4)
}
  0xfc   :  { %368 = dma.vmem_to_hbm [thread:$0]  %s366_s0, 32, %s710_s3, [#allocation3]  }
  0xfd   :  { %470 = dma.done.wait [#allocation3], 32  }
  0xfe   :  { %471 = vsyncadd [#allocation3], 4294967264 }
  0xff   :  { %372 = vsyncpa [#allocation3], 1 }

// kernel: resnet_forward.49
= control target key start
LH: loop header
LB: loop body
LE: loop exit
PB: predicated region body
PF: predicated region fallthrough
CT: control target
= control target key end

     0   :  { %s4666_s15 = smov 0   ;;  %s5954_s0 = inlined_call_operand.vmem [shape: bf16[2,4,512], index: 0, kind: input, shape index: {}]   ;;  %s5955_s1 = inlined_call_operand.vmem [shape: bf16[3,512,512], index: 1, kind: input, shape index: {}]   ;;  %s5956_s2 = inlined_call_operand.vmem [shape: f32[2,2,512], index: 2, kind: output, shape index: {0}]   ;;  %s5957_s3 = inlined_call_operand.vmem [shape: f32[2,1,512], index: 3, kind: output, shape index: {1}]   ;;  %s5958_s4 = inlined_call_operand.vmem [shape: f32[2,1,512], index: 4, kind: output, shape index: {2}]  }
   0x1 LB: > { %s3387_s16 = sadd.s32 4294967295, %s4637_s15   ;;  %p3391_p0 = scmp.ge.s32.totalorder %s4637_s15, 1  ;;  %s4637_s15 = sphi %s4666_s15, %s15_s15  }
   0x2   : > { %p167_p1 = scmp.lt.s32.totalorder %s4637_s15, 3 }
   0x4   : > { %p168_p2 = pnand %p3391_p0, %p167_p1 }
   0x5   : > { %p201_p3 = scmp.lt.s32.totalorder (!%p168_p2), %s3387_s16, 1 }
   0x6   : > { %171 = sbr.rel (%p168_p2) target bundleno = 620 (0x26c), region = 28 }
   0xb   : > { %v4052_v0 = vld [vmem:[%s5955_s1 + $0x4e4] ss:$16 sps:$4 sm:$0xff]   ;;  %v4056_v2 = vld [vmem:[%s5955_s1 + $0x4e0] ss:$16 sps:$4 sm:$0xff]   ;;  %v4639_v36 = vmov 1983009808   ;;  %v483_v38 = vlaneseq }
   0xc   : > { %v4054_v1 = vld [vmem:[%s5955_s1 + $0x6e4] ss:$16 sps:$4 sm:$0xff]   ;;  %1168 = vmatprep.subr.bf16.mxu0 %v4052_v0  ;;  %v4057_v3 = vld [vmem:[%s5955_s1 + $0x6e0] ss:$16 sps:$4 sm:$0xff]   ;;  %v481_v37 = vunpack.c.l.s4 %v4639_v36  ;;  %s5960_s16 = smov (!%p201_p3, %s3387_s16), 1  ;;  %vm3145_vm0 = vcmask 1041408  }
   0xd   : > { %1209 = vmatprep.subr.bf16.mxu1 %v4054_v1  ;;  %v4058_v4 = vld [vmem:[%s5955_s1 + $0x4c4] ss:$16 sps:$4 sm:$0xff]   ;;  %1169 = vmatpush1.bf16.msra.mxu0 %v4056_v2  ;;  %v4062_v6 = vld [vmem:[%s5955_s1 + $0x4c0] ss:$16 sps:$4 sm:$0xff]   ;;  %v4798_v43 = vshrl.u32 %v483_v38, 7  ;;  %s4040_s27 = sshll.u32 %s5960_s16, 3 }
   0xe   : > { %1210 = vmatpush1.bf16.msra.mxu1 %v4057_v3  ;;  %v4060_v5 = vld [vmem:[%s5955_s1 + $0x6c4] ss:$16 sps:$4 sm:$0xff]   ;;  %1170 = vmatprep.subr.bf16.mxu0 %v4058_v4  ;;  %v4063_v7 = vld [vmem:[%s5955_s1 + $0x6c0] ss:$16 sps:$4 sm:$0xff]   ;;  %v482_v42 = vunpack.c.0.s8 %v481_v37  ;;  %s4821_s10 = scalar_lea.vmem %s5954_s0, %s4040_s27  ;;  %v4163_v36 = vld [vmem:[%s5955_s1 + $0x4ac] ss:$16 sps:$4 sm:$0xff]   ;;  %s210_s23 = scalar_lea.vmem %s5956_s2, %s4040_s27 }
   0xf   : > { %1211 = vmatprep.subr.bf16.mxu1 %v4060_v5  ;;  %v4064_v8 = vld [vmem:[%s5955_s1 + $0x4a4] ss:$16 sps:$4 sm:$0xff]   ;;  %v4068_v10 = vld [vmem:[%s5955_s1 + $0x4a0] ss:$16 sps:$4 sm:$0xff]   ;;  %v4166_v37 = vld [vmem:[%s5955_s1 + $0x6ac] ss:$16 sps:$4 sm:$0xff]  }
  0x10   : > { %v4066_v9 = vld [vmem:[%s5955_s1 + $0x6a4] ss:$16 sps:$4 sm:$0xff]   ;;  %v4069_v11 = vld [vmem:[%s5955_s1 + $0x6a0] ss:$16 sps:$4 sm:$0xff]   ;;  %v4824_v49 = vsub.s32 %v482_v42, %v4798_v43  ;;  %v4172_v42 = vld [vmem:[%s5955_s1 + $0x68c] ss:$16 sps:$4 sm:$0xff]  }
  0x11   : > { %1171 = vmatpush1.bf16.msra.mxu0 %v4062_v6  ;;  %v4070_v12 = vld [vmem:[%s5955_s1 + $0x484] ss:$16 sps:$4 sm:$0xff]   ;;  %v4074_v14 = vld [vmem:[%s5955_s1 + $0x480] ss:$16 sps:$4 sm:$0xff]   ;;  %s3396_s27 = sshll.u32 %s5960_s16, 2  ;;  %vm3205_vm1 = vcmp.lt.s32.totalorder %v483_v38, 512 }
  0x12   : > { %1212 = vmatpush1.bf16.msra.mxu1 %v4063_v7  ;;  %1172 = vmatprep.subr.bf16.mxu0 %v4064_v8  ;;  %v4072_v13 = vld [vmem:[%s5955_s1 + $0x684] ss:$16 sps:$4 sm:$0xff]   ;;  %v4075_v15 = vld [vmem:[%s5955_s1 + $0x680] ss:$16 sps:$4 sm:$0xff]   ;;  %s214_s26 = scalar_lea.vmem %s5957_s3, %s3396_s27  ;;  %s218_s30 = scalar_lea.vmem %s5958_s4, %s3396_s27 }
  0x13   : > { %1213 = vmatprep.subr.bf16.mxu1 %v4066_v9  ;;  %v4076_v16 = vld [vmem:[%s5955_s1 + $0x464] ss:$16 sps:$4 sm:$0xff]   ;;  %v4080_v18 = vld [vmem:[%s5955_s1 + $0x460] ss:$16 sps:$4 sm:$0xff]  }
  0x14   : > { %v4078_v17 = vld [vmem:[%s5955_s1 + $0x664] ss:$16 sps:$4 sm:$0xff]   ;;  %v4081_v19 = vld [vmem:[%s5955_s1 + $0x660] ss:$16 sps:$4 sm:$0xff]  }
  0x15   : > { %1173 = vmatpush1.bf16.msra.mxu0 %v4068_v10  ;;  %v4082_v20 = vld [vmem:[%s5955_s1 + $0x444] ss:$16 sps:$4 sm:$0xff]   ;;  %v4086_v22 = vld [vmem:[%s5955_s1 + $0x440] ss:$16 sps:$4 sm:$0xff]  }
  0x16   : > { %1214 = vmatpush1.bf16.msra.mxu1 %v4069_v11  ;;  %1174 = vmatprep.subr.bf16.mxu0 %v4070_v12  ;;  %v4084_v21 = vld [vmem:[%s5955_s1 + $0x644] ss:$16 sps:$4 sm:$0xff]   ;;  %v4087_v23 = vld [vmem:[%s5955_s1 + $0x640] ss:$16 sps:$4 sm:$0xff]  }
  0x17   : > { %1215 = vmatprep.subr.bf16.mxu1 %v4072_v13  ;;  %v4088_v24 = vld [vmem:[%s5955_s1 + $0x424] ss:$16 sps:$4 sm:$0xff]   ;;  %v4092_v26 = vld [vmem:[%s5955_s1 + $0x420] ss:$16 sps:$4 sm:$0xff]  }
  0x18   : > { %v4090_v25 = vld [vmem:[%s5955_s1 + $0x624] ss:$16 sps:$4 sm:$0xff]   ;;  %v4093_v27 = vld [vmem:[%s5955_s1 + $0x620] ss:$16 sps:$4 sm:$0xff]  }
  0x19   : > { %1175 = vmatpush1.bf16.msra.mxu0 %v4074_v14  ;;  %v4094_v28 = vld [vmem:[%s5955_s1 + $0x404] ss:$16 sps:$4 sm:$0xff]   ;;  %v4098_v30 = vld [vmem:[%s5955_s1 + $0x400] ss:$16 sps:$4 sm:$0xff]  }
  0x1a   : > { %1216 = vmatpush1.bf16.msra.mxu1 %v4075_v15  ;;  %1176 = vmatprep.subr.bf16.mxu0 %v4076_v16  ;;  %v4096_v29 = vld [vmem:[%s5955_s1 + $0x604] ss:$16 sps:$4 sm:$0xff]   ;;  %v4099_v31 = vld [vmem:[%s5955_s1 + $0x600] ss:$16 sps:$4 sm:$0xff]  }
  0x1b   : > { %1217 = vmatprep.subr.bf16.mxu1 %v4078_v17  ;;  %v4100_v32 = vld [vmem:[%s5955_s1 + $0x5e4] ss:$16 sps:$4 sm:$0xff]   ;;  %v4104_v34 = vld [vmem:[%s5955_s1 + $0x5e0] ss:$16 sps:$4 sm:$0xff]  }
  0x1c   : > { %v4102_v33 = vld [vmem:[%s5955_s1 + $0x7e4] ss:$16 sps:$4 sm:$0xff]   ;;  %v4105_v35 = vld [vmem:[%s5955_s1 + $0x7e0] ss:$16 sps:$4 sm:$0xff]  }
  0x1d   : > { %1177 = vmatpush1.bf16.msra.mxu0 %v4080_v18  ;;  %v4106_v39 = vld [vmem:[%s5955_s1 + $0x5c4] ss:$16 sps:$4 sm:$0xff]   ;;  %v4110_v41 = vld [vmem:[%s5955_s1 + $0x5c0] ss:$16 sps:$4 sm:$0xff]  }
  0x1e   : > { %1218 = vmatpush1.bf16.msra.mxu1 %v4081_v19  ;;  %1178 = vmatprep.subr.bf16.mxu0 %v4082_v20  ;;  %v4108_v40 = vld [vmem:[%s5955_s1 + $0x7c4] ss:$16 sps:$4 sm:$0xff]   ;;  %v4111_v44 = vld [vmem:[%s5955_s1 + $0x7c0] ss:$16 sps:$4 sm:$0xff]  }
  0x1f   : > { %1219 = vmatprep.subr.bf16.mxu1 %v4084_v21  ;;  %v4112_v45 = vld [vmem:[%s5955_s1 + $0x5a4] ss:$16 sps:$4 sm:$0xff]   ;;  %v4116_v47 = vld [vmem:[%s5955_s1 + $0x5a0] ss:$16 sps:$4 sm:$0xff]  }
  0x20   : > { %v4114_v46 = vld [vmem:[%s5955_s1 + $0x7a4] ss:$16 sps:$4 sm:$0xff]   ;;  %v4117_v48 = vld [vmem:[%s5955_s1 + $0x7a0] ss:$16 sps:$4 sm:$0xff]  }
  0x21   : > { %1179 = vmatpush1.bf16.msra.mxu0 %v4086_v22  ;;  %v4118_v50 = vld [vmem:[%s5955_s1 + $0x584] ss:$16 sps:$4 sm:$0xff]   ;;  %v4122_v53 = vld [vmem:[%s5955_s1 + $0x580] ss:$16 sps:$4 sm:$0xff]  }
  0x22   : > { %1220 = vmatpush1.bf16.msra.mxu1 %v4087_v23  ;;  %1180 = vmatprep.subr.bf16.mxu0 %v4088_v24  ;;  %v4120_v51 = vld [vmem:[%s5955_s1 + $0x784] ss:$16 sps:$4 sm:$0xff]   ;;  %v4123_v56 = vld [vmem:[%s5955_s1 + $0x780] ss:$16 sps:$4 sm:$0xff]  }
  0x23   : > { %1221 = vmatprep.subr.bf16.mxu1 %v4090_v25  ;;  %v348_v52 = vld [vmem:[%s4821_s10] sm:$0xff] }
  0x24   : > { %v486_v54 = vrot.slane %v348_v52, %v4824_v49  ;;  %v479_v55 = vcombine.high %v348_v52, %v348_v52  ;;  %v4124_v57 = vld [vmem:[%s5955_s1 + $0x564] ss:$16 sps:$4 sm:$0xff]   ;;  %v4128_v61 = vld [vmem:[%s5955_s1 + $0x560] ss:$16 sps:$4 sm:$0xff]   ;;  %v4184_v52 = vld [vmem:[%s5955_s1 + $0x64c] ss:$16 sps:$4 sm:$0xff]  }
  0x25   : > { %1181 = vmatpush1.bf16.msra.mxu0 %v4092_v26  ;;  %v4126_v58 = vld [vmem:[%s5955_s1 + $0x764] ss:$16 sps:$4 sm:$0xff]   ;;  %v4129_v62 = vld [vmem:[%s5955_s1 + $0x760] ss:$16 sps:$4 sm:$0xff]   ;;  %v4151_v26 = vld [vmem:[%s5955_s1 + $0x4ec] ss:$16 sps:$4 sm:$0xff]  }
  0x26   : > { %1222 = vmatpush1.bf16.msra.mxu1 %v4093_v27  ;;  %1182 = vmatprep.subr.bf16.mxu0 %v4094_v28  ;;  %v494_v59 = vcombine.high %v486_v54, %v486_v54  ;;  %v493_v60 = vrot.slane %v479_v55, %v4824_v49  ;;  %v4130_v2 = vld [vmem:[%s5955_s1 + $0x544] ss:$16 sps:$4 sm:$0xff]   ;;  %v4134_v7 = vld [vmem:[%s5955_s1 + $0x540] ss:$16 sps:$4 sm:$0xff]   ;;  %v499_v16 = vshll.u32 %v486_v54, 16  ;;  %v497_v22 = vshrl.u32 %v486_v54, 16 }
  0x27   : > { %1223 = vmatprep.subr.bf16.mxu1 %v4096_v29  ;;  %v4132_v3 = vld [vmem:[%s5955_s1 + $0x744] ss:$16 sps:$4 sm:$0xff]   ;;  %v4135_v8 = vld [vmem:[%s5955_s1 + $0x740] ss:$16 sps:$4 sm:$0xff]   ;;  %v4154_v27 = vld [vmem:[%s5955_s1 + $0x6ec] ss:$16 sps:$4 sm:$0xff]  }
  0x28   : > { %v504_v63 = vshrl.u32 %v494_v59, 16  ;;  %v506_v0 = vshll.u32 %v494_v59, 16  ;;  %v495_v1 = vcombine.high %v493_v60, %v493_v60  ;;  %v4136_v11 = vld [vmem:[%s5955_s1 + $0x524] ss:$16 sps:$4 sm:$0xff]   ;;  %v4140_v14 = vld [vmem:[%s5955_s1 + $0x520] ss:$16 sps:$4 sm:$0xff]  }
  0x29   : > { %1183 = vmatpush1.bf16.msra.mxu0 %v4098_v30  ;;  %v4138_v12 = vld [vmem:[%s5955_s1 + $0x724] ss:$16 sps:$4 sm:$0xff]   ;;  %v4141_v15 = vld [vmem:[%s5955_s1 + $0x720] ss:$16 sps:$4 sm:$0xff]   ;;  %v513_v17 = vshll.u32 %v493_v60, 16  ;;  %v501_v23 = vrot.slane %v499_v16, 1 }
  0x2a   : > { %1224 = vmatpush1.bf16.msra.mxu1 %v4099_v31  ;;  %1184 = vmatprep.subr.bf16.mxu0 %v4100_v32  ;;  %v508_v4 = vrot.slane %v506_v0, 1  ;;  %v518_v5 = vshrl.u32 %v495_v1, 16  ;;  %v520_v6 = vshll.u32 %v495_v1, 16  ;;  %v4142_v18 = vld [vmem:[%s5955_s1 + $0x504] ss:$16 sps:$4 sm:$0xff]   ;;  %v511_v24 = vshrl.u32 %v493_v60, 16 }
  0x2b   : > { %1225 = vmatprep.subr.bf16.mxu1 %v4102_v33  ;;  %v4144_v19 = vld [vmem:[%s5955_s1 + $0x704] ss:$16 sps:$4 sm:$0xff]   ;;  %v4146_v20 = vld [vmem:[%s5955_s1 + $0x500] ss:$16 sps:$4 sm:$0xff]   ;;  %v515_v25 = vrot.slane %v513_v17, 1  ;;  %v4895_v28 = vor.u32 %v501_v23, %v497_v22 }
  0x2c   : > { %v509_v9 = vor.u32 %v508_v4, %v504_v63  ;;  %v522_v10 = vrot.slane %v520_v6, 1  ;;  %v4147_v21 = vld [vmem:[%s5955_s1 + $0x700] ss:$16 sps:$4 sm:$0xff]   ;;  %v4149_v30 = vld [vmem:[%s5955_s1 + $0x4e8] ss:$16 sps:$4 sm:$0xff]  }
  0x2d   : > { %1185 = vmatpush2.bf16.msra.mxu0 %v4104_v34  ;;  %v4897_v29 = vor.u32 %v515_v25, %v511_v24  ;;  %v4152_v31 = vld [vmem:[%s5955_s1 + $0x6e8] ss:$16 sps:$4 sm:$0xff]   ;;  %v4157_v32 = vld [vmem:[%s5955_s1 + $0x4cc] ss:$16 sps:$4 sm:$0xff]  }
  0x2e   : > { %1226 = vmatpush2.bf16.msra.mxu1 %v4105_v35  ;;  %1186 = vmatprep.subr.bf16.mxu0 %v4106_v39  ;;  %v523_v13 = vor.u32 %v522_v10, %v518_v5  ;;  %v4160_v33 = vld [vmem:[%s5955_s1 + $0x6cc] ss:$16 sps:$4 sm:$0xff]   ;;  %v4155_v34 = vld [vmem:[%s5955_s1 + $0x4c8] ss:$16 sps:$4 sm:$0xff]  }
  0x2f   : > { %1227 = vmatprep.subr.bf16.mxu1 %v4108_v40  ;;  %1200 = vmatprep.mubr.bf16.mxu0 %v509_v9  ;;  %v4158_v35 = vld [vmem:[%s5955_s1 + $0x6c8] ss:$16 sps:$4 sm:$0xff]   ;;  %v4187_v55 = vld [vmem:[%s5955_s1 + $0x42c] ss:$16 sps:$4 sm:$0xff]  }
  0x30   : > { %1241 = vmatprep.mubr.bf16.mxu1 %v523_v13  ;;  %v4161_v39 = vld [vmem:[%s5955_s1 + $0x4a8] ss:$16 sps:$4 sm:$0xff]   ;;  %v4193_v59 = vld [vmem:[%s5955_s1 + $0x40c] ss:$16 sps:$4 sm:$0xff]  }
  0x31   : > { %1187 = vmatpush2.bf16.msra.mxu0 %v4110_v41  ;;  %v4164_v40 = vld [vmem:[%s5955_s1 + $0x6a8] ss:$16 sps:$4 sm:$0xff]   ;;  %v4169_v41 = vld [vmem:[%s5955_s1 + $0x48c] ss:$16 sps:$4 sm:$0xff]  }
  0x32   : > { %1228 = vmatpush2.bf16.msra.mxu1 %v4111_v44  ;;  %1188 = vmatprep.subr.bf16.mxu0 %v4112_v45  ;;  %v4167_v44 = vld [vmem:[%s5955_s1 + $0x488] ss:$16 sps:$4 sm:$0xff]   ;;  %v4196_v60 = vld [vmem:[%s5955_s1 + $0x60c] ss:$16 sps:$4 sm:$0xff]  }
  0x33   : > { %1229 = vmatprep.subr.bf16.mxu1 %v4114_v46  ;;  %v4170_v45 = vld [vmem:[%s5955_s1 + $0x688] ss:$16 sps:$4 sm:$0xff]   ;;  %v4175_v46 = vld [vmem:[%s5955_s1 + $0x46c] ss:$16 sps:$4 sm:$0xff]  }
  0x34   : > { %v4182_v54 = vld [vmem:[%s5955_s1 + $0x648] ss:$16 sps:$4 sm:$0xff]   ;;  %v4199_v63 = vld [vmem:[%s5955_s1 + $0x5ec] ss:$16 sps:$4 sm:$0xff]  }
  0x35   : > { %1189 = vmatpush2.bf16.msra.mxu0 %v4116_v47  ;;  %v4178_v47 = vld [vmem:[%s5955_s1 + $0x66c] ss:$16 sps:$4 sm:$0xff]   ;;  %v4197_v1 = vld [vmem:[%s5955_s1 + $0x5e8] ss:$16 sps:$4 sm:$0xff]  }
  0x36   : > { %1230 = vmatpush2.bf16.msra.mxu1 %v4117_v48  ;;  %1190 = vmatprep.subr.bf16.mxu0 %v4118_v50  ;;  %v4173_v48 = vld [vmem:[%s5955_s1 + $0x468] ss:$16 sps:$4 sm:$0xff]   ;;  %v4202_v0 = vld [vmem:[%s5955_s1 + $0x7ec] ss:$16 sps:$4 sm:$0xff]  }
  0x37   : > { %1231 = vmatprep.subr.bf16.mxu1 %v4120_v51  ;;  %v4176_v50 = vld [vmem:[%s5955_s1 + $0x668] ss:$16 sps:$4 sm:$0xff]   ;;  %v4181_v51 = vld [vmem:[%s5955_s1 + $0x44c] ss:$16 sps:$4 sm:$0xff]  }
  0x38   : > { %v4208_v4 = vld [vmem:[%s5955_s1 + $0x7cc] ss:$16 sps:$4 sm:$0xff]   ;;  %v4203_v5 = vld [vmem:[%s5955_s1 + $0x5c8] ss:$16 sps:$4 sm:$0xff]  }
  0x39   : > { %1191 = vmatpush2.bf16.msra.mxu0 %v4122_v53  ;;  %v4179_v53 = vld [vmem:[%s5955_s1 + $0x448] ss:$16 sps:$4 sm:$0xff]   ;;  %v4226_v16 = vld [vmem:[%s5955_s1 + $0x76c] ss:$16 sps:$4 sm:$0xff]  }
  0x3a   : > { %1232 = vmatpush2.bf16.msra.mxu1 %v4123_v56  ;;  %1192 = vmatprep.subr.bf16.mxu0 %v4124_v57  ;;  %v4190_v56 = vld [vmem:[%s5955_s1 + $0x62c] ss:$16 sps:$4 sm:$0xff]   ;;  %v4185_v57 = vld [vmem:[%s5955_s1 + $0x428] ss:$16 sps:$4 sm:$0xff]  }
  0x3b   : > { %1233 = vmatprep.subr.bf16.mxu1 %v4126_v58  ;;  %v4188_v58 = vld [vmem:[%s5955_s1 + $0x628] ss:$16 sps:$4 sm:$0xff]   ;;  %v4235_v23 = vld [vmem:[%s5955_s1 + $0x52c] ss:$16 sps:$4 sm:$0xff]  }
  0x3c   : > { %v4206_v6 = vld [vmem:[%s5955_s1 + $0x7c8] ss:$16 sps:$4 sm:$0xff]   ;;  %v4238_v24 = vld [vmem:[%s5955_s1 + $0x72c] ss:$16 sps:$4 sm:$0xff]  }
  0x3d   : > { %1193 = vmatpush2.bf16.msra.mxu0 %v4128_v61  ;;  %v4191_v61 = vld [vmem:[%s5955_s1 + $0x408] ss:$16 sps:$4 sm:$0xff]  }
  0x3e   : > { %1234 = vmatpush2.bf16.msra.mxu1 %v4129_v62  ;;  %1194 = vmatprep.subr.bf16.mxu0 %v4130_v2  ;;  %v4194_v62 = vld [vmem:[%s5955_s1 + $0x608] ss:$16 sps:$4 sm:$0xff]  }
  0x3f   : > { %1235 = vmatprep.subr.bf16.mxu1 %v4132_v3  ;;  %v4200_v2 = vld [vmem:[%s5955_s1 + $0x7e8] ss:$16 sps:$4 sm:$0xff]   ;;  %v4205_v3 = vld [vmem:[%s5955_s1 + $0x5cc] ss:$16 sps:$4 sm:$0xff]  }
  0x40   : > { %v4212_v10 = vld [vmem:[%s5955_s1 + $0x7a8] ss:$16 sps:$4 sm:$0xff]  }
  0x41   : > { %1195 = vmatpush2.bf16.msra.mxu0 %v4134_v7  ;;  %v4211_v7 = vld [vmem:[%s5955_s1 + $0x5ac] ss:$16 sps:$4 sm:$0xff]   ;;  %v4221_v17 = vld [vmem:[%s5955_s1 + $0x568] ss:$16 sps:$4 sm:$0xff]  }
  0x42   : > { %1236 = vmatpush2.bf16.msra.mxu1 %v4135_v8  ;;  %1196 = vmatprep.subr.bf16.mxu0 %v4136_v11  ;;  %v4214_v8 = vld [vmem:[%s5955_s1 + $0x7ac] ss:$16 sps:$4 sm:$0xff]   ;;  %v4230_v22 = vld [vmem:[%s5955_s1 + $0x748] ss:$16 sps:$4 sm:$0xff]  }
  0x43   : > { %1237 = vmatprep.subr.bf16.mxu1 %v4138_v12  ;;  %v4217_v11 = vld [vmem:[%s5955_s1 + $0x58c] ss:$16 sps:$4 sm:$0xff]   ;;  %v4233_v25 = vld [vmem:[%s5955_s1 + $0x528] ss:$16 sps:$4 sm:$0xff]  }
  0x44   : > { %v4220_v12 = vld [vmem:[%s5955_s1 + $0x78c] ss:$16 sps:$4 sm:$0xff]  }
  0x45   : > { %1197 = vmatpush2.bf16.msra.mxu0 %v4140_v14  ;;  %v4218_v14 = vld [vmem:[%s5955_s1 + $0x788] ss:$16 sps:$4 sm:$0xff]  }
  0x46   : > { %1238 = vmatpush2.bf16.msra.mxu1 %v4141_v15  ;;  %1198 = vmatprep.subr.bf16.mxu0 %v4142_v18  ;;  %v4223_v15 = vld [vmem:[%s5955_s1 + $0x56c] ss:$16 sps:$4 sm:$0xff]   ;;  %v4224_v18 = vld [vmem:[%s5955_s1 + $0x768] ss:$16 sps:$4 sm:$0xff]  }
  0x47   : > { %1239 = vmatprep.subr.bf16.mxu1 %v4144_v19  ;;  %v4229_v19 = vld [vmem:[%s5955_s1 + $0x54c] ss:$16 sps:$4 sm:$0xff]  }
  0x49   : > { %1199 = vmatpush2.bf16.msra.mxu0 %v4146_v20  ;;  %v4232_v20 = vld [vmem:[%s5955_s1 + $0x74c] ss:$16 sps:$4 sm:$0xff]  }
  0x4a   : > { %1240 = vmatpush2.bf16.msra.mxu1 %v4147_v21  ;;  %1250 = vmatprep.subr.bf16.mxu0 %v4151_v26  ;;  %v4227_v21 = vld [vmem:[%s5955_s1 + $0x548] ss:$16 sps:$4 sm:$0xff]  }
  0x4b   : > { %1291 = vmatprep.subr.bf16.mxu1 %v4154_v27  ;;  %v4236_v26 = vld [vmem:[%s5955_s1 + $0x728] ss:$16 sps:$4 sm:$0xff]   ;;  %v4241_v27 = vld [vmem:[%s5955_s1 + $0x50c] ss:$16 sps:$4 sm:$0xff]  }
  0x4c   : > { %1201 = vmatmul.mubr.bf16.vlgmr.msra.gmra.mxu0 %v4895_v28 }
  0x4d   : > { %1242 = vmatmul.mubr.bf16.vlgmr.msra.gmra.mxu1 %v4897_v29  ;;  %1251 = vmatpush1.bf16.msra.mxu0 %v4149_v30  ;;  %v4244_v30 = vld [vmem:[%s5955_s1 + $0x70c] ss:$16 sps:$4 sm:$0xff]  }
  0x4e   : > { %1292 = vmatpush1.bf16.msra.mxu1 %v4152_v31  ;;  %1252 = vmatprep.subr.bf16.mxu0 %v4157_v32  ;;  %v4239_v31 = vld [vmem:[%s5955_s1 + $0x508] ss:$16 sps:$4 sm:$0xff]  }
  0x4f   : > { %1293 = vmatprep.subr.bf16.mxu1 %v4160_v33  ;;  %1282 = vmatprep.mubr.bf16.mxu0 %v509_v9  ;;  %v4209_v9 = vld [vmem:[%s5955_s1 + $0x5a8] ss:$16 sps:$4 sm:$0xff]   ;;  %v4247_v33 = vld [vmem:[%s5955_s1 + $0xe4] ss:$16 sps:$4 sm:$0xff]  }
  0x50   : > { %1323 = vmatprep.mubr.bf16.mxu1 %v523_v13  ;;  %v4215_v13 = vld [vmem:[%s5955_s1 + $0x588] ss:$16 sps:$4 sm:$0xff]  }
  0x51   : > { %1253 = vmatpush1.bf16.msra.mxu0 %v4155_v34  ;;  %v4242_v32 = vld [vmem:[%s5955_s1 + $0x708] ss:$16 sps:$4 sm:$0xff]   ;;  %v4250_v34 = vld [vmem:[%s5955_s1 + $0x2e4] ss:$16 sps:$4 sm:$0xff]  }
  0x52   : > { %1294 = vmatpush1.bf16.msra.mxu1 %v4158_v35  ;;  %1254 = vmatprep.subr.bf16.mxu0 %v4163_v36  ;;  %v4245_v35 = vld [vmem:[%s5955_s1 + $0xe0] ss:$16 sps:$4 sm:$0xff]  }
  0x53   : > { %1295 = vmatprep.subr.bf16.mxu1 %v4166_v37  ;;  %v4248_v36 = vld [vmem:[%s5955_s1 + $0x2e0] ss:$16 sps:$4 sm:$0xff]   ;;  %v4253_v37 = vld [vmem:[%s5955_s1 + $0xc4] ss:$16 sps:$4 sm:$0xff]  }
  0x55   : > { %1255 = vmatpush1.bf16.msra.mxu0 %v4161_v39  ;;  %v4256_v39 = vld [vmem:[%s5955_s1 + $0x2c4] ss:$16 sps:$4 sm:$0xff]  }
  0x56   : > { %1296 = vmatpush1.bf16.msra.mxu1 %v4164_v40  ;;  %1256 = vmatprep.subr.bf16.mxu0 %v4169_v41  ;;  %v219_v40 = vld [vmem:[%s4821_s10] sm:$0x55] }
  0x57   : > { %1297 = vmatprep.subr.bf16.mxu1 %v4172_v42  ;;  %v5107_v41 = vrot.slane %v219_v40, %v4824_v49  ;;  %v1333_v42 = vcombine.high %v219_v40, %v219_v40  ;;  %v4340_v40 = vld [vmem:[%s5955_s1 + $0x304] ss:$16 sps:$4 sm:$0xff]  }
  0x59   : > { %1257 = vmatpush1.bf16.msra.mxu0 %v4167_v44  ;;  %v4251_v44 = vld [vmem:[%s5955_s1 + $0xc0] ss:$16 sps:$4 sm:$0xff]  }
  0x5a   : > { %1298 = vmatpush1.bf16.msra.mxu1 %v4170_v45  ;;  %1258 = vmatprep.subr.bf16.mxu0 %v4175_v46  ;;  %v4254_v45 = vld [vmem:[%s5955_s1 + $0x2c0] ss:$16 sps:$4 sm:$0xff]   ;;  %v5119_v46 = vcombine.high %v5107_v41, %v5107_v41 }
  0x5b   : > { %1299 = vmatprep.subr.bf16.mxu1 %v4178_v47  ;;  %v5122_v47 = vrot.slane %v1333_v42, %v4824_v49  ;;  %v4335_v42 = vld [vmem:[%s5955_s1 + $0x100] ss:$16 sps:$4 sm:$0xff]  }
  0x5d   : > { %1259 = vmatpush1.bf16.msra.mxu0 %v4173_v48  ;;  %v5133_v48 = vcombine.high %v5122_v47, %v5122_v47 }
  0x5e   : > { %1300 = vmatpush1.bf16.msra.mxu1 %v4176_v50  ;;  %1260 = vmatprep.subr.bf16.mxu0 %v4181_v51  ;;  %v4257_v50 = vld [vmem:[%s5955_s1 + $0xa0] ss:$16 sps:$4 sm:$0xff]  }
  0x5f   : > { %1301 = vmatprep.subr.bf16.mxu1 %v4184_v52  ;;  %v4260_v51 = vld [vmem:[%s5955_s1 + $0x2a0] ss:$16 sps:$4 sm:$0xff]   ;;  %v4265_v52 = vld [vmem:[%s5955_s1 + $0x84] ss:$16 sps:$4 sm:$0xff]  }
  0x61   : > { %1261 = vmatpush1.bf16.msra.mxu0 %v4179_v53  ;;  %v4268_v53 = vld [vmem:[%s5955_s1 + $0x284] ss:$16 sps:$4 sm:$0xff]  }
  0x62   : > { %1302 = vmatpush1.bf16.msra.mxu1 %v4182_v54  ;;  %1262 = vmatprep.subr.bf16.mxu0 %v4187_v55  ;;  %v4263_v54 = vld [vmem:[%s5955_s1 + $0x80] ss:$16 sps:$4 sm:$0xff]  }
  0x63   : > { %1303 = vmatprep.subr.bf16.mxu1 %v4190_v56  ;;  %v4266_v55 = vld [vmem:[%s5955_s1 + $0x280] ss:$16 sps:$4 sm:$0xff]   ;;  %v4271_v56 = vld [vmem:[%s5955_s1 + $0x64] ss:$16 sps:$4 sm:$0xff]  }
  0x65   : > { %1263 = vmatpush1.bf16.msra.mxu0 %v4185_v57  ;;  %v4274_v57 = vld [vmem:[%s5955_s1 + $0x264] ss:$16 sps:$4 sm:$0xff]  }
  0x66   : > { %1304 = vmatpush1.bf16.msra.mxu1 %v4188_v58  ;;  %1264 = vmatprep.subr.bf16.mxu0 %v4193_v59  ;;  %v4269_v58 = vld [vmem:[%s5955_s1 + $0x60] ss:$16 sps:$4 sm:$0xff]  }
  0x67   : > { %1305 = vmatprep.subr.bf16.mxu1 %v4196_v60  ;;  %v4272_v59 = vld [vmem:[%s5955_s1 + $0x260] ss:$16 sps:$4 sm:$0xff]   ;;  %v4277_v60 = vld [vmem:[%s5955_s1 + $0x44] ss:$16 sps:$4 sm:$0xff]  }
  0x69   : > { %1265 = vmatpush1.bf16.msra.mxu0 %v4191_v61  ;;  %v4280_v61 = vld [vmem:[%s5955_s1 + $0x244] ss:$16 sps:$4 sm:$0xff]  }
  0x6a   : > { %1306 = vmatpush1.bf16.msra.mxu1 %v4194_v62  ;;  %1266 = vmatprep.subr.bf16.mxu0 %v4199_v63  ;;  %v4275_v62 = vld [vmem:[%s5955_s1 + $0x40] ss:$16 sps:$4 sm:$0xff]  }
  0x6b   : > { %1307 = vmatprep.subr.bf16.mxu1 %v4202_v0  ;;  %v4278_v63 = vld [vmem:[%s5955_s1 + $0x240] ss:$16 sps:$4 sm:$0xff]   ;;  %v4283_v0 = vld [vmem:[%s5955_s1 + $0x24] ss:$16 sps:$4 sm:$0xff]  }
  0x6d   : > { %1267 = vmatpush2.bf16.msra.mxu0 %v4197_v1  ;;  %v4286_v1 = vld [vmem:[%s5955_s1 + $0x224] ss:$16 sps:$4 sm:$0xff]  }
  0x6e   : > { %1308 = vmatpush2.bf16.msra.mxu1 %v4200_v2  ;;  %1268 = vmatprep.subr.bf16.mxu0 %v4205_v3  ;;  %v4281_v2 = vld [vmem:[%s5955_s1 + $0x20] ss:$16 sps:$4 sm:$0xff]  }
  0x6f   : > { %1309 = vmatprep.subr.bf16.mxu1 %v4208_v4  ;;  %v4284_v3 = vld [vmem:[%s5955_s1 + $0x220] ss:$16 sps:$4 sm:$0xff]   ;;  %v4289_v4 = vld [vmem:[%s5955_s1 + $0x4] ss:$16 sps:$4 sm:$0xff]  }
  0x71   : > { %1269 = vmatpush2.bf16.msra.mxu0 %v4203_v5  ;;  %v4292_v5 = vld [vmem:[%s5955_s1 + $0x204] ss:$16 sps:$4 sm:$0xff]  }
  0x72   : > { %1310 = vmatpush2.bf16.msra.mxu1 %v4206_v6  ;;  %1270 = vmatprep.subr.bf16.mxu0 %v4211_v7  ;;  %v4287_v6 = vld [vmem:[%s5955_s1] ss:$16 sps:$4 sm:$0xff]  }
  0x73   : > { %1311 = vmatprep.subr.bf16.mxu1 %v4214_v8  ;;  %v4290_v7 = vld [vmem:[%s5955_s1 + $0x200] ss:$16 sps:$4 sm:$0xff]   ;;  %v4295_v8 = vld [vmem:[%s5955_s1 + $0x1e4] ss:$16 sps:$4 sm:$0xff]  }
  0x75   : > { %1271 = vmatpush2.bf16.msra.mxu0 %v4209_v9  ;;  %v4298_v9 = vld [vmem:[%s5955_s1 + $0x3e4] ss:$16 sps:$4 sm:$0xff]  }
  0x76   : > { %1312 = vmatpush2.bf16.msra.mxu1 %v4212_v10  ;;  %1272 = vmatprep.subr.bf16.mxu0 %v4217_v11  ;;  %v4293_v10 = vld [vmem:[%s5955_s1 + $0x1e0] ss:$16 sps:$4 sm:$0xff]  }
  0x77   : > { %1313 = vmatprep.subr.bf16.mxu1 %v4220_v12  ;;  %v4296_v11 = vld [vmem:[%s5955_s1 + $0x3e0] ss:$16 sps:$4 sm:$0xff]   ;;  %v4301_v12 = vld [vmem:[%s5955_s1 + $0x1c4] ss:$16 sps:$4 sm:$0xff]  }
  0x79   : > { %1273 = vmatpush2.bf16.msra.mxu0 %v4215_v13  ;;  %v4304_v13 = vld [vmem:[%s5955_s1 + $0x3c4] ss:$16 sps:$4 sm:$0xff]  }
  0x7a   : > { %1314 = vmatpush2.bf16.msra.mxu1 %v4218_v14  ;;  %1274 = vmatprep.subr.bf16.mxu0 %v4223_v15  ;;  %v4299_v14 = vld [vmem:[%s5955_s1 + $0x1c0] ss:$16 sps:$4 sm:$0xff]  }
  0x7b   : > { %1315 = vmatprep.subr.bf16.mxu1 %v4226_v16  ;;  %v4302_v15 = vld [vmem:[%s5955_s1 + $0x3c0] ss:$16 sps:$4 sm:$0xff]   ;;  %v4307_v16 = vld [vmem:[%s5955_s1 + $0x1a4] ss:$16 sps:$4 sm:$0xff]  }
  0x7d   : > { %1275 = vmatpush2.bf16.msra.mxu0 %v4221_v17  ;;  %v4310_v17 = vld [vmem:[%s5955_s1 + $0x3a4] ss:$16 sps:$4 sm:$0xff]  }
  0x7e   : > { %1316 = vmatpush2.bf16.msra.mxu1 %v4224_v18  ;;  %1276 = vmatprep.subr.bf16.mxu0 %v4229_v19  ;;  %v4305_v18 = vld [vmem:[%s5955_s1 + $0x1a0] ss:$16 sps:$4 sm:$0xff]  }
  0x7f   : > { %1317 = vmatprep.subr.bf16.mxu1 %v4232_v20  ;;  %v4308_v19 = vld [vmem:[%s5955_s1 + $0x3a0] ss:$16 sps:$4 sm:$0xff]   ;;  %v4313_v20 = vld [vmem:[%s5955_s1 + $0x184] ss:$16 sps:$4 sm:$0xff]  }
  0x81   : > { %1277 = vmatpush2.bf16.msra.mxu0 %v4227_v21  ;;  %v4316_v21 = vld [vmem:[%s5955_s1 + $0x384] ss:$16 sps:$4 sm:$0xff]  }
  0x82   : > { %1318 = vmatpush2.bf16.msra.mxu1 %v4230_v22  ;;  %1278 = vmatprep.subr.bf16.mxu0 %v4235_v23  ;;  %v4311_v22 = vld [vmem:[%s5955_s1 + $0x180] ss:$16 sps:$4 sm:$0xff]  }
  0x83   : > { %1319 = vmatprep.subr.bf16.mxu1 %v4238_v24  ;;  %v4314_v23 = vld [vmem:[%s5955_s1 + $0x380] ss:$16 sps:$4 sm:$0xff]   ;;  %v4319_v24 = vld [vmem:[%s5955_s1 + $0x164] ss:$16 sps:$4 sm:$0xff]  }
  0x85   : > { %1279 = vmatpush2.bf16.msra.mxu0 %v4233_v25  ;;  %v4322_v25 = vld [vmem:[%s5955_s1 + $0x364] ss:$16 sps:$4 sm:$0xff]  }
  0x86   : > { %1320 = vmatpush2.bf16.msra.mxu1 %v4236_v26  ;;  %1280 = vmatprep.subr.bf16.mxu0 %v4241_v27  ;;  %v4317_v26 = vld [vmem:[%s5955_s1 + $0x160] ss:$16 sps:$4 sm:$0xff]  }
  0x87   : > { %1321 = vmatprep.subr.bf16.mxu1 %v4244_v30  ;;  %v4320_v27 = vld [vmem:[%s5955_s1 + $0x360] ss:$16 sps:$4 sm:$0xff]   ;;  %v4325_v30 = vld [vmem:[%s5955_s1 + $0x144] ss:$16 sps:$4 sm:$0xff]  }
  0x89   : > { %1281 = vmatpush2.bf16.msra.mxu0 %v4239_v31  ;;  %v4328_v31 = vld [vmem:[%s5955_s1 + $0x344] ss:$16 sps:$4 sm:$0xff]  }
  0x8a   : > { %1322 = vmatpush2.bf16.msra.mxu1 %v4242_v32  ;;  %1994 = vmatprep.subr.bf16.mxu0 %v4247_v33  ;;  %v4323_v32 = vld [vmem:[%s5955_s1 + $0x140] ss:$16 sps:$4 sm:$0xff]  }
  0x8b   : > { %2035 = vmatprep.subr.bf16.mxu1 %v4250_v34  ;;  %v4326_v33 = vld [vmem:[%s5955_s1 + $0x340] ss:$16 sps:$4 sm:$0xff]   ;;  %v4331_v34 = vld [vmem:[%s5955_s1 + $0x124] ss:$16 sps:$4 sm:$0xff]  }
  0x8c   : > { %1283 = vmatmul.mubr.bf16.vlgmr.msra.gmra.mxu0 %v4895_v28  ;;  %v4259_v28 = vld [vmem:[%s5955_s1 + $0xa4] ss:$16 sps:$4 sm:$0xff]  }
  0x8d   : > { %1324 = vmatmul.mubr.bf16.vlgmr.msra.gmra.mxu1 %v4897_v29  ;;  %1995 = vmatpush1.bf16.msra.mxu0 %v4245_v35  ;;  %v4262_v29 = vld [vmem:[%s5955_s1 + $0x2a4] ss:$16 sps:$4 sm:$0xff]  }
  0x8e   : > { %2036 = vmatpush1.bf16.msra.mxu1 %v4248_v36  ;;  %1996 = vmatprep.subr.bf16.mxu0 %v4253_v37  ;;  %v4334_v35 = vld [vmem:[%s5955_s1 + $0x324] ss:$16 sps:$4 sm:$0xff]   ;;  %v4329_v36 = vld [vmem:[%s5955_s1 + $0x120] ss:$16 sps:$4 sm:$0xff]  }
  0x8f   : > { %2037 = vmatprep.subr.bf16.mxu1 %v4256_v39  ;;  %2026 = vmatprep.mubr.bf16.mxu0 %v5119_v46  ;;  %v4332_v37 = vld [vmem:[%s5955_s1 + $0x320] ss:$16 sps:$4 sm:$0xff]   ;;  %v4337_v39 = vld [vmem:[%s5955_s1 + $0x104] ss:$16 sps:$4 sm:$0xff]  }
  0x90   : > { %2067 = vmatprep.mubr.bf16.mxu1 %v5133_v48 }
  0x91   : > { %1997 = vmatpush1.bf16.msra.mxu0 %v4251_v44  ;;  %v4338_v44 = vld [vmem:[%s5955_s1 + $0x300] ss:$16 sps:$4 sm:$0xff]  }
  0x92   : > { %2038 = vmatpush1.bf16.msra.mxu1 %v4254_v45  ;;  %1998 = vmatprep.subr.bf16.mxu0 %v4259_v28  ;;  %v4344_v45 = vld [vmem:[%s5955_s1 + $0xec] ss:$16 sps:$4 sm:$0xff]  }
  0x93   : > { %2039 = vmatprep.subr.bf16.mxu1 %v4262_v29  ;;  %v4347_v28 = vld [vmem:[%s5955_s1 + $0x2ec] ss:$16 sps:$4 sm:$0xff]   ;;  %v4342_v29 = vld [vmem:[%s5955_s1 + $0xe8] ss:$16 sps:$4 sm:$0xff]  }
  0x95   : > { %1999 = vmatpush1.bf16.msra.mxu0 %v4257_v50  ;;  %v4345_v50 = vld [vmem:[%s5955_s1 + $0x2e8] ss:$16 sps:$4 sm:$0xff]  }
  0x96   : > { %2040 = vmatpush1.bf16.msra.mxu1 %v4260_v51  ;;  %2000 = vmatprep.subr.bf16.mxu0 %v4265_v52  ;;  %v4350_v51 = vld [vmem:[%s5955_s1 + $0xcc] ss:$16 sps:$4 sm:$0xff]  }
  0x97   : > { %2041 = vmatprep.subr.bf16.mxu1 %v4268_v53  ;;  %v4353_v52 = vld [vmem:[%s5955_s1 + $0x2cc] ss:$16 sps:$4 sm:$0xff]   ;;  %v4348_v53 = vld [vmem:[%s5955_s1 + $0xc8] ss:$16 sps:$4 sm:$0xff]  }
  0x99   : > { %2001 = vmatpush1.bf16.msra.mxu0 %v4263_v54  ;;  %v4351_v54 = vld [vmem:[%s5955_s1 + $0x2c8] ss:$16 sps:$4 sm:$0xff]  }
  0x9a   : > { %2042 = vmatpush1.bf16.msra.mxu1 %v4266_v55  ;;  %2002 = vmatprep.subr.bf16.mxu0 %v4271_v56  ;;  %v4356_v55 = vld [vmem:[%s5955_s1 + $0xac] ss:$16 sps:$4 sm:$0xff]  }
  0x9b   : > { %2043 = vmatprep.subr.bf16.mxu1 %v4274_v57  ;;  %v4359_v56 = vld [vmem:[%s5955_s1 + $0x2ac] ss:$16 sps:$4 sm:$0xff]   ;;  %v4354_v57 = vld [vmem:[%s5955_s1 + $0xa8] ss:$16 sps:$4 sm:$0xff]  }
  0x9d   : > { %2003 = vmatpush1.bf16.msra.mxu0 %v4269_v58  ;;  %v4357_v58 = vld [vmem:[%s5955_s1 + $0x2a8] ss:$16 sps:$4 sm:$0xff]  }
  0x9e   : > { %2044 = vmatpush1.bf16.msra.mxu1 %v4272_v59  ;;  %2004 = vmatprep.subr.bf16.mxu0 %v4277_v60  ;;  %v4362_v59 = vld [vmem:[%s5955_s1 + $0x8c] ss:$16 sps:$4 sm:$0xff]   ;;  %v4363_v60 = vld [vmem:[%s5955_s1 + $0x288] ss:$16 sps:$4 sm:$0xff]  }
  0x9f   : > { %2045 = vmatprep.subr.bf16.mxu1 %v4280_v61  ;;  %v4368_v61 = vld [vmem:[%s5955_s1 + $0x6c] ss:$16 sps:$4 sm:$0xff]  }
  0xa1   : > { %2005 = vmatpush1.bf16.msra.mxu0 %v4275_v62  ;;  %v4371_v62 = vld [vmem:[%s5955_s1 + $0x26c] ss:$16 sps:$4 sm:$0xff]  }
  0xa2   : > { %2046 = vmatpush1.bf16.msra.mxu1 %v4278_v63  ;;  %2006 = vmatprep.subr.bf16.mxu0 %v4283_v0  ;;  %v4366_v63 = vld [vmem:[%s5955_s1 + $0x68] ss:$16 sps:$4 sm:$0xff]  }
  0xa3   : > { %2047 = vmatprep.subr.bf16.mxu1 %v4286_v1  ;;  %v4369_v0 = vld [vmem:[%s5955_s1 + $0x268] ss:$16 sps:$4 sm:$0xff]   ;;  %v4374_v1 = vld [vmem:[%s5955_s1 + $0x4c] ss:$16 sps:$4 sm:$0xff]  }
  0xa5   : > { %2007 = vmatpush1.bf16.msra.mxu0 %v4281_v2  ;;  %v4377_v2 = vld [vmem:[%s5955_s1 + $0x24c] ss:$16 sps:$4 sm:$0xff]  }
  0xa6   : > { %2048 = vmatpush1.bf16.msra.mxu1 %v4284_v3  ;;  %2008 = vmatprep.subr.bf16.mxu0 %v4289_v4  ;;  %v4372_v3 = vld [vmem:[%s5955_s1 + $0x48] ss:$16 sps:$4 sm:$0xff]  }
  0xa7   : > { %2049 = vmatprep.subr.bf16.mxu1 %v4292_v5  ;;  %v4375_v4 = vld [vmem:[%s5955_s1 + $0x248] ss:$16 sps:$4 sm:$0xff]   ;;  %v4380_v5 = vld [vmem:[%s5955_s1 + $0x2c] ss:$16 sps:$4 sm:$0xff]  }
  0xa9   : > { %2009 = vmatpush1.bf16.msra.mxu0 %v4287_v6  ;;  %v4383_v6 = vld [vmem:[%s5955_s1 + $0x22c] ss:$16 sps:$4 sm:$0xff]  }
  0xaa   : > { %2050 = vmatpush1.bf16.msra.mxu1 %v4290_v7  ;;  %2010 = vmatprep.subr.bf16.mxu0 %v4295_v8  ;;  %v4378_v7 = vld [vmem:[%s5955_s1 + $0x28] ss:$16 sps:$4 sm:$0xff]  }
  0xab   : > { %2051 = vmatprep.subr.bf16.mxu1 %v4298_v9  ;;  %v4381_v8 = vld [vmem:[%s5955_s1 + $0x228] ss:$16 sps:$4 sm:$0xff]   ;;  %v4386_v9 = vld [vmem:[%s5955_s1 + $0xc] ss:$16 sps:$4 sm:$0xff]  }
  0xad   : > { %2011 = vmatpush2.bf16.msra.mxu0 %v4293_v10  ;;  %v4389_v10 = vld [vmem:[%s5955_s1 + $0x20c] ss:$16 sps:$4 sm:$0xff]  }
  0xae   : > { %2052 = vmatpush2.bf16.msra.mxu1 %v4296_v11  ;;  %2012 = vmatprep.subr.bf16.mxu0 %v4301_v12  ;;  %v4384_v11 = vld [vmem:[%s5955_s1 + $0x8] ss:$16 sps:$4 sm:$0xff]  }
  0xaf   : > { %2053 = vmatprep.subr.bf16.mxu1 %v4304_v13  ;;  %v4387_v12 = vld [vmem:[%s5955_s1 + $0x208] ss:$16 sps:$4 sm:$0xff]   ;;  %v4392_v13 = vld [vmem:[%s5955_s1 + $0x1ec] ss:$16 sps:$4 sm:$0xff]  }
  0xb1   : > { %2013 = vmatpush2.bf16.msra.mxu0 %v4299_v14  ;;  %v4395_v14 = vld [vmem:[%s5955_s1 + $0x3ec] ss:$16 sps:$4 sm:$0xff]  }
  0xb2   : > { %2054 = vmatpush2.bf16.msra.mxu1 %v4302_v15  ;;  %2014 = vmatprep.subr.bf16.mxu0 %v4307_v16  ;;  %v4390_v15 = vld [vmem:[%s5955_s1 + $0x1e8] ss:$16 sps:$4 sm:$0xff]  }
  0xb3   : > { %2055 = vmatprep.subr.bf16.mxu1 %v4310_v17  ;;  %v4393_v16 = vld [vmem:[%s5955_s1 + $0x3e8] ss:$16 sps:$4 sm:$0xff]   ;;  %v4398_v17 = vld [vmem:[%s5955_s1 + $0x1cc] ss:$16 sps:$4 sm:$0xff]  }
  0xb5   : > { %2015 = vmatpush2.bf16.msra.mxu0 %v4305_v18  ;;  %v4401_v18 = vld [vmem:[%s5955_s1 + $0x3cc] ss:$16 sps:$4 sm:$0xff]  }
  0xb6   : > { %2056 = vmatpush2.bf16.msra.mxu1 %v4308_v19  ;;  %2016 = vmatprep.subr.bf16.mxu0 %v4313_v20  ;;  %v4396_v19 = vld [vmem:[%s5955_s1 + $0x1c8] ss:$16 sps:$4 sm:$0xff]  }
  0xb7   : > { %2057 = vmatprep.subr.bf16.mxu1 %v4316_v21  ;;  %v4399_v20 = vld [vmem:[%s5955_s1 + $0x3c8] ss:$16 sps:$4 sm:$0xff]   ;;  %v4404_v21 = vld [vmem:[%s5955_s1 + $0x1ac] ss:$16 sps:$4 sm:$0xff]  }
  0xb9   : > { %2017 = vmatpush2.bf16.msra.mxu0 %v4311_v22  ;;  %v4407_v22 = vld [vmem:[%s5955_s1 + $0x3ac] ss:$16 sps:$4 sm:$0xff]  }
  0xba   : > { %2058 = vmatpush2.bf16.msra.mxu1 %v4314_v23  ;;  %2018 = vmatprep.subr.bf16.mxu0 %v4319_v24  ;;  %v4402_v23 = vld [vmem:[%s5955_s1 + $0x1a8] ss:$16 sps:$4 sm:$0xff]  }
  0xbb   : > { %2059 = vmatprep.subr.bf16.mxu1 %v4322_v25  ;;  %v4405_v24 = vld [vmem:[%s5955_s1 + $0x3a8] ss:$16 sps:$4 sm:$0xff]   ;;  %v4410_v25 = vld [vmem:[%s5955_s1 + $0x18c] ss:$16 sps:$4 sm:$0xff]  }
  0xbd   : > { %2019 = vmatpush2.bf16.msra.mxu0 %v4317_v26  ;;  %v4413_v26 = vld [vmem:[%s5955_s1 + $0x38c] ss:$16 sps:$4 sm:$0xff]  }
  0xbe   : > { %2060 = vmatpush2.bf16.msra.mxu1 %v4320_v27  ;;  %2020 = vmatprep.subr.bf16.mxu0 %v4325_v30  ;;  %v4408_v27 = vld [vmem:[%s5955_s1 + $0x188] ss:$16 sps:$4 sm:$0xff]  }
  0xbf   : > { %2061 = vmatprep.subr.bf16.mxu1 %v4328_v31  ;;  %v4411_v30 = vld [vmem:[%s5955_s1 + $0x388] ss:$16 sps:$4 sm:$0xff]   ;;  %v4416_v31 = vld [vmem:[%s5955_s1 + $0x16c] ss:$16 sps:$4 sm:$0xff]  }
  0xc1   : > { %2021 = vmatpush2.bf16.msra.mxu0 %v4323_v32  ;;  %v4419_v32 = vld [vmem:[%s5955_s1 + $0x36c] ss:$16 sps:$4 sm:$0xff]  }
  0xc2   : > { %2062 = vmatpush2.bf16.msra.mxu1 %v4326_v33  ;;  %2022 = vmatprep.subr.bf16.mxu0 %v4331_v34  ;;  %v4414_v33 = vld [vmem:[%s5955_s1 + $0x168] ss:$16 sps:$4 sm:$0xff]  }
  0xc3   : > { %2063 = vmatprep.subr.bf16.mxu1 %v4334_v35  ;;  %v4417_v34 = vld [vmem:[%s5955_s1 + $0x368] ss:$16 sps:$4 sm:$0xff]   ;;  %v4422_v35 = vld [vmem:[%s5955_s1 + $0x14c] ss:$16 sps:$4 sm:$0xff]  }
  0xc5   : > { %2023 = vmatpush2.bf16.msra.mxu0 %v4329_v36  ;;  %v4425_v36 = vld [vmem:[%s5955_s1 + $0x34c] ss:$16 sps:$4 sm:$0xff]  }
  0xc6   : > { %2064 = vmatpush2.bf16.msra.mxu1 %v4332_v37  ;;  %2024 = vmatprep.subr.bf16.mxu0 %v4337_v39  ;;  %v4420_v37 = vld [vmem:[%s5955_s1 + $0x148] ss:$16 sps:$4 sm:$0xff]   ;;  %v2158_v39 = vld [vmem:[%s4821_s10] sm:$0xaa] }
  0xc7   : > { %2065 = vmatprep.subr.bf16.mxu1 %v4340_v40  ;;  %v4423_v40 = vld [vmem:[%s5955_s1 + $0x348] ss:$16 sps:$4 sm:$0xff]  }
  0xc9   : > { %2025 = vmatpush2.bf16.msra.mxu0 %v4335_v42  ;;  %v4428_v42 = vld [vmem:[%s5955_s1 + $0x12c] ss:$16 sps:$4 sm:$0xff]  }
  0xca   : > { %2066 = vmatpush2.bf16.msra.mxu1 %v4338_v44  ;;  %2076 = vmatprep.subr.bf16.mxu0 %v4344_v45  ;;  %v4431_v44 = vld [vmem:[%s5955_s1 + $0x32c] ss:$16 sps:$4 sm:$0xff]   ;;  %v2289_v45 = vcombine.high %v2158_v39, %v2158_v39 }
  0xcb   : > { %2117 = vmatprep.subr.bf16.mxu1 %v4347_v28  ;;  %v4426_v28 = vld [vmem:[%s5955_s1 + $0x128] ss:$16 sps:$4 sm:$0xff]  }
  0xcc   : > { %2027 = vmatmul.mubr.bf16.vlgmr.msra.gmra.mxu0 %v5107_v41 }
  0xcd   : > { %2068 = vmatmul.mubr.bf16.vlgmr.msra.gmra.mxu1 %v5122_v47  ;;  %2077 = vmatpush1.bf16.msra.mxu0 %v4342_v29  ;;  %v4429_v29 = vld [vmem:[%s5955_s1 + $0x328] ss:$16 sps:$4 sm:$0xff]  }
  0xce   : > { %2118 = vmatpush1.bf16.msra.mxu1 %v4345_v50  ;;  %2078 = vmatprep.subr.bf16.mxu0 %v4350_v51  ;;  %v4434_v50 = vld [vmem:[%s5955_s1 + $0x10c] ss:$16 sps:$4 sm:$0xff]  }
  0xcf   : > { %2119 = vmatprep.subr.bf16.mxu1 %v4353_v52  ;;  %2108 = vmatprep.mubr.bf16.mxu0 %v5119_v46  ;;  %v4365_v46 = vld [vmem:[%s5955_s1 + $0x28c] ss:$16 sps:$4 sm:$0xff]   ;;  %v5490_v52 = vrot.slane %v2158_v39, %v4824_v49  ;;  %v4486_v39 = vld [vmem:[%s5955_s1 + $0x9e0] ss:$16 sps:$4 sm:$0xff]  }
  0xd0   : > { %2149 = vmatprep.mubr.bf16.mxu1 %v5133_v48  ;;  %v4360_v48 = vld [vmem:[%s5955_s1 + $0x88] ss:$16 sps:$4 sm:$0xff]   ;;  %v4437_v51 = vld [vmem:[%s5955_s1 + $0x30c] ss:$16 sps:$4 sm:$0xff]  }
  0xd1   : > { %2079 = vmatpush1.bf16.msra.mxu0 %v4348_v53  ;;  %v5493_v53 = vrot.slane %v2289_v45, %v4824_v49  ;;  %v4492_v45 = vld [vmem:[%s5955_s1 + $0x9c0] ss:$16 sps:$4 sm:$0xff]  }
  0xd2   : > { %2120 = vmatpush1.bf16.msra.mxu1 %v4351_v54  ;;  %2080 = vmatprep.subr.bf16.mxu0 %v4356_v55  ;;  %v4432_v54 = vld [vmem:[%s5955_s1 + $0x108] ss:$16 sps:$4 sm:$0xff]  }
  0xd3   : > { %2121 = vmatprep.subr.bf16.mxu1 %v4359_v56  ;;  %v4435_v55 = vld [vmem:[%s5955_s1 + $0x308] ss:$16 sps:$4 sm:$0xff]   ;;  %v4440_v56 = vld [vmem:[%s5955_s1 + $0x8e4] ss:$16 sps:$4 sm:$0xff]  }
  0xd5   : > { %2081 = vmatpush1.bf16.msra.mxu0 %v4354_v57  ;;  %v4443_v57 = vld [vmem:[%s5955_s1 + $0xae4] ss:$16 sps:$4 sm:$0xff]  }
  0xd6   : > { %2122 = vmatpush1.bf16.msra.mxu1 %v4357_v58  ;;  %2082 = vmatprep.subr.bf16.mxu0 %v4362_v59  ;;  %v2304_v58 = vcombine.high %v5490_v52, %v5490_v52  ;;  %v2305_v59 = vcombine.high %v5493_v53, %v5493_v53 }
  0xd7   : > { %2123 = vmatprep.subr.bf16.mxu1 %v4365_v46  ;;  %v4438_v46 = vld [vmem:[%s5955_s1 + $0x8e0] ss:$16 sps:$4 sm:$0xff]  }
  0xd9   : > { %2083 = vmatpush1.bf16.msra.mxu0 %v4360_v48  ;;  %v4441_v48 = vld [vmem:[%s5955_s1 + $0xae0] ss:$16 sps:$4 sm:$0xff]  }
  0xda   : > { %2124 = vmatpush1.bf16.msra.mxu1 %v4363_v60  ;;  %2084 = vmatprep.subr.bf16.mxu0 %v4368_v61  ;;  %v4446_v60 = vld [vmem:[%s5955_s1 + $0x8c4] ss:$16 sps:$4 sm:$0xff]  }
  0xdb   : > { %2125 = vmatprep.subr.bf16.mxu1 %v4371_v62  ;;  %v4449_v61 = vld [vmem:[%s5955_s1 + $0xac4] ss:$16 sps:$4 sm:$0xff]   ;;  %v5523_v62 = vrot.slane %v2304_v58, 1  ;;  %v4507_v58 = vld [vmem:[%s5955_s1 + $0xb80] ss:$16 sps:$4 sm:$0xff]  }
  0xdd   : > { %2085 = vmatpush1.bf16.msra.mxu0 %v4366_v63  ;;  %v5525_v63 = vrot.slane %v2305_v59, 1  ;;  %v4512_v59 = vld [vmem:[%s5955_s1 + $0x964] ss:$16 sps:$4 sm:$0xff]  }
  0xde   : > { %2126 = vmatpush1.bf16.msra.mxu1 %v4369_v0  ;;  %2086 = vmatprep.subr.bf16.mxu0 %v4374_v1 }
  0xdf   : > { %2127 = vmatprep.subr.bf16.mxu1 %v4377_v2 }
  0xe1   : > { %2087 = vmatpush1.bf16.msra.mxu0 %v4372_v3  ;;  %v4444_v3 = vld [vmem:[%s5955_s1 + $0x8c0] ss:$16 sps:$4 sm:$0xff]  }
  0xe2   : > { %2128 = vmatpush1.bf16.msra.mxu1 %v4375_v4  ;;  %2088 = vmatprep.subr.bf16.mxu0 %v4380_v5  ;;  %v4447_v4 = vld [vmem:[%s5955_s1 + $0xac0] ss:$16 sps:$4 sm:$0xff]  }
  0xe3   : > { %2129 = vmatprep.subr.bf16.mxu1 %v4383_v6 }
  0xe5   : > { %2089 = vmatpush1.bf16.msra.mxu0 %v4378_v7 }
  0xe6   : > { %2130 = vmatpush1.bf16.msra.mxu1 %v4381_v8  ;;  %2090 = vmatprep.subr.bf16.mxu0 %v4386_v9 }
  0xe7   : > { %2131 = vmatprep.subr.bf16.mxu1 %v4389_v10  ;;  %v4450_v10 = vld [vmem:[%s5955_s1 + $0x8a0] ss:$16 sps:$4 sm:$0xff]  }
  0xe9   : > { %2091 = vmatpush1.bf16.msra.mxu0 %v4384_v11  ;;  %v4453_v11 = vld [vmem:[%s5955_s1 + $0xaa0] ss:$16 sps:$4 sm:$0xff]  }
  0xea   : > { %2132 = vmatpush1.bf16.msra.mxu1 %v4387_v12  ;;  %2092 = vmatprep.subr.bf16.mxu0 %v4392_v13 }
  0xeb   : > { %2133 = vmatprep.subr.bf16.mxu1 %v4395_v14  ;;  %v4458_v14 = vld [vmem:[%s5955_s1 + $0x884] ss:$16 sps:$4 sm:$0xff]  }
  0xed   : > { %2093 = vmatpush2.bf16.msra.mxu0 %v4390_v15  ;;  %v4461_v15 = vld [vmem:[%s5955_s1 + $0xa84] ss:$16 sps:$4 sm:$0xff]  }
  0xee   : > { %2134 = vmatpush2.bf16.msra.mxu1 %v4393_v16  ;;  %2094 = vmatprep.subr.bf16.mxu0 %v4398_v17  ;;  %v4456_v16 = vld [vmem:[%s5955_s1 + $0x880] ss:$16 sps:$4 sm:$0xff]  }
  0xef   : > { %2135 = vmatprep.subr.bf16.mxu1 %v4401_v18  ;;  %v4459_v17 = vld [vmem:[%s5955_s1 + $0xa80] ss:$16 sps:$4 sm:$0xff]   ;;  %v4464_v18 = vld [vmem:[%s5955_s1 + $0x864] ss:$16 sps:$4 sm:$0xff]  }
  0xf1   : > { %2095 = vmatpush2.bf16.msra.mxu0 %v4396_v19  ;;  %v4467_v19 = vld [vmem:[%s5955_s1 + $0xa64] ss:$16 sps:$4 sm:$0xff]  }
  0xf2   : > { %2136 = vmatpush2.bf16.msra.mxu1 %v4399_v20  ;;  %2096 = vmatprep.subr.bf16.mxu0 %v4404_v21  ;;  %v4462_v20 = vld [vmem:[%s5955_s1 + $0x860] ss:$16 sps:$4 sm:$0xff]  }
  0xf3   : > { %2137 = vmatprep.subr.bf16.mxu1 %v4407_v22  ;;  %v4465_v21 = vld [vmem:[%s5955_s1 + $0xa60] ss:$16 sps:$4 sm:$0xff]   ;;  %v4470_v22 = vld [vmem:[%s5955_s1 + $0x844] ss:$16 sps:$4 sm:$0xff]  }
  0xf5   : > { %2097 = vmatpush2.bf16.msra.mxu0 %v4402_v23  ;;  %v4473_v23 = vld [vmem:[%s5955_s1 + $0xa44] ss:$16 sps:$4 sm:$0xff]  }
  0xf6   : > { %2138 = vmatpush2.bf16.msra.mxu1 %v4405_v24  ;;  %2098 = vmatprep.subr.bf16.mxu0 %v4410_v25  ;;  %v4468_v24 = vld [vmem:[%s5955_s1 + $0x840] ss:$16 sps:$4 sm:$0xff]  }
  0xf7   : > { %2139 = vmatprep.subr.bf16.mxu1 %v4413_v26  ;;  %v4471_v25 = vld [vmem:[%s5955_s1 + $0xa40] ss:$16 sps:$4 sm:$0xff]   ;;  %v4476_v26 = vld [vmem:[%s5955_s1 + $0x824] ss:$16 sps:$4 sm:$0xff]  }
  0xf9   : > { %2099 = vmatpush2.bf16.msra.mxu0 %v4408_v27  ;;  %v4479_v27 = vld [vmem:[%s5955_s1 + $0xa24] ss:$16 sps:$4 sm:$0xff]  }
  0xfa   : > { %2140 = vmatpush2.bf16.msra.mxu1 %v4411_v30  ;;  %2100 = vmatprep.subr.bf16.mxu0 %v4416_v31  ;;  %v4474_v30 = vld [vmem:[%s5955_s1 + $0x820] ss:$16 sps:$4 sm:$0xff]  }
  0xfb   : > { %2141 = vmatprep.subr.bf16.mxu1 %v4419_v32  ;;  %v4477_v31 = vld [vmem:[%s5955_s1 + $0xa20] ss:$16 sps:$4 sm:$0xff]   ;;  %v4482_v32 = vld [vmem:[%s5955_s1 + $0x804] ss:$16 sps:$4 sm:$0xff]  }
  0xfd   : > { %2101 = vmatpush2.bf16.msra.mxu0 %v4414_v33  ;;  %v4485_v33 = vld [vmem:[%s5955_s1 + $0xa04] ss:$16 sps:$4 sm:$0xff]  }
  0xfe   : > { %2142 = vmatpush2.bf16.msra.mxu1 %v4417_v34  ;;  %2102 = vmatprep.subr.bf16.mxu0 %v4422_v35  ;;  %v4480_v34 = vld [vmem:[%s5955_s1 + $0x800] ss:$16 sps:$4 sm:$0xff]  }
  0xff   : > { %2143 = vmatprep.subr.bf16.mxu1 %v4425_v36  ;;  %v4483_v35 = vld [vmem:[%s5955_s1 + $0xa00] ss:$16 sps:$4 sm:$0xff]   ;;  %v4488_v36 = vld [vmem:[%s5955_s1 + $0x9e4] ss:$16 sps:$4 sm:$0xff]  }
 0x101   : > { %2103 = vmatpush2.bf16.msra.mxu0 %v4420_v37  ;;  %v4491_v37 = vld [vmem:[%s5955_s1 + $0xbe4] ss:$16 sps:$4 sm:$0xff]  }
 0x102   : > { %2144 = vmatpush2.bf16.msra.mxu1 %v4423_v40  ;;  %2104 = vmatprep.subr.bf16.mxu0 %v4428_v42  ;;  %v4489_v40 = vld [vmem:[%s5955_s1 + $0xbe0] ss:$16 sps:$4 sm:$0xff]   ;;  %v4494_v42 = vld [vmem:[%s5955_s1 + $0x9c4] ss:$16 sps:$4 sm:$0xff]  }
 0x103   : > { %2145 = vmatprep.subr.bf16.mxu1 %v4431_v44  ;;  %v4497_v44 = vld [vmem:[%s5955_s1 + $0xbc4] ss:$16 sps:$4 sm:$0xff]  }
 0x105   : > { %2105 = vmatpush2.bf16.msra.mxu0 %v4426_v28  ;;  %v4495_v28 = vld [vmem:[%s5955_s1 + $0xbc0] ss:$16 sps:$4 sm:$0xff]  }
 0x106   : > { %2146 = vmatpush2.bf16.msra.mxu1 %v4429_v29  ;;  %2106 = vmatprep.subr.bf16.mxu0 %v4434_v50  ;;  %v4500_v29 = vld [vmem:[%s5955_s1 + $0x9a4] ss:$16 sps:$4 sm:$0xff]  }
 0x107   : > { %2147 = vmatprep.subr.bf16.mxu1 %v4437_v51  ;;  %v4503_v50 = vld [vmem:[%s5955_s1 + $0xba4] ss:$16 sps:$4 sm:$0xff]   ;;  %v4498_v51 = vld [vmem:[%s5955_s1 + $0x9a0] ss:$16 sps:$4 sm:$0xff]  }
 0x109   : > { %2107 = vmatpush2.bf16.msra.mxu0 %v4432_v54  ;;  %v4501_v54 = vld [vmem:[%s5955_s1 + $0xba0] ss:$16 sps:$4 sm:$0xff]  }
 0x10a   : > { %2148 = vmatpush2.bf16.msra.mxu1 %v4435_v55  ;;  %2954 = vmatprep.subr.bf16.mxu0 %v4440_v56  ;;  %v4506_v55 = vld [vmem:[%s5955_s1 + $0x984] ss:$16 sps:$4 sm:$0xff]  }
 0x10b   : > { %2995 = vmatprep.subr.bf16.mxu1 %v4443_v57  ;;  %v4509_v56 = vld [vmem:[%s5955_s1 + $0xb84] ss:$16 sps:$4 sm:$0xff]   ;;  %v4504_v57 = vld [vmem:[%s5955_s1 + $0x980] ss:$16 sps:$4 sm:$0xff]  }
 0x10c   : > { %v1202_v0 = vpop.f32.mrf.mxu0  ;;  %2109 = vmatmul.mubr.bf16.vlgmr.msra.gmra.mxu0 %v5107_v41  ;;  %v4452_v41 = vld [vmem:[%s5955_s1 + $0x8a4] ss:$16 sps:$4 sm:$0xff]  }
 0x10d   : > { %v1243_v1 = vpop.f32.mrf.mxu1  ;;  %2150 = vmatmul.mubr.bf16.vlgmr.msra.gmra.mxu1 %v5122_v47  ;;  %2955 = vmatpush1.bf16.msra.mxu0 %v4438_v46  ;;  %v4455_v47 = vld [vmem:[%s5955_s1 + $0xaa4] ss:$16 sps:$4 sm:$0xff]  }
 0x10e   : > { %v5529_v2 = vadd.f32 %v1243_v1, %v1202_v0  ;;  %2996 = vmatpush1.bf16.msra.mxu1 %v4441_v48  ;;  %v1204_v5 = vpop.f32.mrf.mxu0  ;;  %2956 = vmatprep.subr.bf16.mxu0 %v4446_v60  ;;  %v4515_v46 = vld [vmem:[%s5955_s1 + $0xb64] ss:$16 sps:$4 sm:$0xff]   ;;  %v4510_v48 = vld [vmem:[%s5955_s1 + $0x960] ss:$16 sps:$4 sm:$0xff]  }
 0x10f   : > { %v1245_v6 = vpop.f32.mrf.mxu1  ;;  %2997 = vmatprep.subr.bf16.mxu1 %v4449_v61  ;;  %2986 = vmatprep.mubr.bf16.mxu0 %v5523_v62  ;;  %v4513_v60 = vld [vmem:[%s5955_s1 + $0xb60] ss:$16 sps:$4 sm:$0xff]   ;;  %v4518_v61 = vld [vmem:[%s5955_s1 + $0x944] ss:$16 sps:$4 sm:$0xff]  }
 0x110   : > { %v5543_v7 = vadd.f32 %v1245_v6, %v1204_v5  ;;  %3027 = vmatprep.mubr.bf16.mxu1 %v5525_v63  ;;  %v1206_v8 = vpop.f32.mrf.mxu0  ;;  %v4521_v0 = vld [vmem:[%s5955_s1 + $0xb44] ss:$16 sps:$4 sm:$0xff]   ;;  %v4516_v1 = vld [vmem:[%s5955_s1 + $0x940] ss:$16 sps:$4 sm:$0xff]  }
 0x111   : > { %v1247_v9 = vpop.f32.mrf.mxu1  ;;  %2957 = vmatpush1.bf16.msra.mxu0 %v4444_v3  ;;  %v4519_v3 = vld [vmem:[%s5955_s1 + $0xb40] ss:$16 sps:$4 sm:$0xff]   ;;  %v4527_v5 = vld [vmem:[%s5955_s1 + $0xb24] ss:$16 sps:$4 sm:$0xff]  }
 0x112   : > { %2998 = vmatpush1.bf16.msra.mxu1 %v4447_v4  ;;  %v1207_v12 = vpop.f32.mrf.mxu0  ;;  %2958 = vmatprep.subr.bf16.mxu0 %v4452_v41  ;;  %v4524_v4 = vld [vmem:[%s5955_s1 + $0x924] ss:$16 sps:$4 sm:$0xff]   ;;  %v4522_v6 = vld [vmem:[%s5955_s1 + $0x920] ss:$16 sps:$4 sm:$0xff]  }
 0x113   : > { %v1248_v13 = vpop.f32.mrf.mxu1  ;;  %2999 = vmatprep.subr.bf16.mxu1 %v4455_v47  ;;  %v4525_v41 = vld [vmem:[%s5955_s1 + $0xb20] ss:$16 sps:$4 sm:$0xff]   ;;  %v4530_v47 = vld [vmem:[%s5955_s1 + $0x904] ss:$16 sps:$4 sm:$0xff]   ;;  %v4540_v12 = vld [vmem:[%s5955_s1 + $0xaec] ss:$16 sps:$4 sm:$0xff]  }
 0x114   : > { %v4533_v8 = vld [vmem:[%s5955_s1 + $0xb04] ss:$16 sps:$4 sm:$0xff]   ;;  %v4528_v9 = vld [vmem:[%s5955_s1 + $0x900] ss:$16 sps:$4 sm:$0xff]   ;;  %v2306_v13 = vrot.slane %v5490_v52, 1 }
 0x115   : > { %2959 = vmatpush1.bf16.msra.mxu0 %v4450_v10  ;;  %v4531_v10 = vld [vmem:[%s5955_s1 + $0xb00] ss:$16 sps:$4 sm:$0xff]  }
 0x116   : > { %3000 = vmatpush1.bf16.msra.mxu1 %v4453_v11  ;;  %2960 = vmatprep.subr.bf16.mxu0 %v4458_v14  ;;  %v4537_v11 = vld [vmem:[%s5955_s1 + $0x8ec] ss:$16 sps:$4 sm:$0xff]   ;;  %v2308_v14 = vrot.slane %v5493_v53, 1 }
 0x117   : > { %3001 = vmatprep.subr.bf16.mxu1 %v4461_v15  ;;  %v4535_v15 = vld [vmem:[%s5955_s1 + $0x8e8] ss:$16 sps:$4 sm:$0xff]  }
 0x119   : > { %2961 = vmatpush1.bf16.msra.mxu0 %v4456_v16  ;;  %v4538_v16 = vld [vmem:[%s5955_s1 + $0xae8] ss:$16 sps:$4 sm:$0xff]  }
 0x11a   : > { %3002 = vmatpush1.bf16.msra.mxu1 %v4459_v17  ;;  %2962 = vmatprep.subr.bf16.mxu0 %v4464_v18  ;;  %v4543_v17 = vld [vmem:[%s5955_s1 + $0x8cc] ss:$16 sps:$4 sm:$0xff]  }
 0x11b   : > { %3003 = vmatprep.subr.bf16.mxu1 %v4467_v19  ;;  %v4546_v18 = vld [vmem:[%s5955_s1 + $0xacc] ss:$16 sps:$4 sm:$0xff]  }
 0x11d   : > { %2963 = vmatpush1.bf16.msra.mxu0 %v4462_v20 }
 0x11e   : > { %3004 = vmatpush1.bf16.msra.mxu1 %v4465_v21  ;;  %2964 = vmatprep.subr.bf16.mxu0 %v4470_v22  ;;  %v4541_v22 = vld [vmem:[%s5955_s1 + $0x8c8] ss:$16 sps:$4 sm:$0xff]  }
 0x11f   : > { %3005 = vmatprep.subr.bf16.mxu1 %v4473_v23  ;;  %v4544_v23 = vld [vmem:[%s5955_s1 + $0xac8] ss:$16 sps:$4 sm:$0xff]  }
 0x121   : > { %2965 = vmatpush1.bf16.msra.mxu0 %v4468_v24 }
 0x122   : > { %3006 = vmatpush1.bf16.msra.mxu1 %v4471_v25  ;;  %2966 = vmatprep.subr.bf16.mxu0 %v4476_v26  ;;  %v4549_v26 = vld [vmem:[%s5955_s1 + $0x8ac] ss:$16 sps:$4 sm:$0xff]  }
 0x123   : > { %3007 = vmatprep.subr.bf16.mxu1 %v4479_v27  ;;  %v4552_v27 = vld [vmem:[%s5955_s1 + $0xaac] ss:$16 sps:$4 sm:$0xff]  }
 0x125   : > { %2967 = vmatpush1.bf16.msra.mxu0 %v4474_v30 }
 0x126   : > { %3008 = vmatpush1.bf16.msra.mxu1 %v4477_v31  ;;  %2968 = vmatprep.subr.bf16.mxu0 %v4482_v32 }
 0x127   : > { %3009 = vmatprep.subr.bf16.mxu1 %v4485_v33  ;;  %v4547_v33 = vld [vmem:[%s5955_s1 + $0x8a8] ss:$16 sps:$4 sm:$0xff]  }
 0x129   : > { %2969 = vmatpush1.bf16.msra.mxu0 %v4480_v34  ;;  %v4550_v34 = vld [vmem:[%s5955_s1 + $0xaa8] ss:$16 sps:$4 sm:$0xff]  }
 0x12a   : > { %3010 = vmatpush1.bf16.msra.mxu1 %v4483_v35  ;;  %2970 = vmatprep.subr.bf16.mxu0 %v4488_v36 }
 0x12b   : > { %3011 = vmatprep.subr.bf16.mxu1 %v4491_v37  ;;  %v4553_v37 = vld [vmem:[%s5955_s1 + $0x888] ss:$16 sps:$4 sm:$0xff]  }
 0x12d   : > { %2971 = vmatpush2.bf16.msra.mxu0 %v4486_v39  ;;  %v4556_v39 = vld [vmem:[%s5955_s1 + $0xa88] ss:$16 sps:$4 sm:$0xff]  }
 0x12e   : > { %3012 = vmatpush2.bf16.msra.mxu1 %v4489_v40  ;;  %2972 = vmatprep.subr.bf16.mxu0 %v4494_v42  ;;  %v4561_v40 = vld [vmem:[%s5955_s1 + $0x86c] ss:$16 sps:$4 sm:$0xff]  }
 0x12f   : > { %3013 = vmatprep.subr.bf16.mxu1 %v4497_v44  ;;  %v4564_v42 = vld [vmem:[%s5955_s1 + $0xa6c] ss:$16 sps:$4 sm:$0xff]   ;;  %v4559_v44 = vld [vmem:[%s5955_s1 + $0x868] ss:$16 sps:$4 sm:$0xff]  }
 0x131   : > { %2973 = vmatpush2.bf16.msra.mxu0 %v4492_v45  ;;  %v4562_v45 = vld [vmem:[%s5955_s1 + $0xa68] ss:$16 sps:$4 sm:$0xff]  }
 0x132   : > { %3014 = vmatpush2.bf16.msra.mxu1 %v4495_v28  ;;  %2974 = vmatprep.subr.bf16.mxu0 %v4500_v29  ;;  %v4567_v28 = vld [vmem:[%s5955_s1 + $0x84c] ss:$16 sps:$4 sm:$0xff]  }
 0x133   : > { %3015 = vmatprep.subr.bf16.mxu1 %v4503_v50  ;;  %v4570_v29 = vld [vmem:[%s5955_s1 + $0xa4c] ss:$16 sps:$4 sm:$0xff]   ;;  %v4565_v50 = vld [vmem:[%s5955_s1 + $0x848] ss:$16 sps:$4 sm:$0xff]  }
 0x135   : > { %2975 = vmatpush2.bf16.msra.mxu0 %v4498_v51  ;;  %v4568_v51 = vld [vmem:[%s5955_s1 + $0xa48] ss:$16 sps:$4 sm:$0xff]  }
 0x136   : > { %3016 = vmatpush2.bf16.msra.mxu1 %v4501_v54  ;;  %2976 = vmatprep.subr.bf16.mxu0 %v4506_v55  ;;  %v4573_v54 = vld [vmem:[%s5955_s1 + $0x82c] ss:$16 sps:$4 sm:$0xff]  }
 0x137   : > { %3017 = vmatprep.subr.bf16.mxu1 %v4509_v56  ;;  %v4576_v55 = vld [vmem:[%s5955_s1 + $0xa2c] ss:$16 sps:$4 sm:$0xff]   ;;  %v4571_v56 = vld [vmem:[%s5955_s1 + $0x828] ss:$16 sps:$4 sm:$0xff]  }
 0x139   : > { %2977 = vmatpush2.bf16.msra.mxu0 %v4504_v57  ;;  %v4574_v57 = vld [vmem:[%s5955_s1 + $0xa28] ss:$16 sps:$4 sm:$0xff]  }
 0x13a   : > { %3018 = vmatpush2.bf16.msra.mxu1 %v4507_v58  ;;  %2978 = vmatprep.subr.bf16.mxu0 %v4512_v59  ;;  %v4579_v58 = vld [vmem:[%s5955_s1 + $0x80c] ss:$16 sps:$4 sm:$0xff]  }
 0x13b   : > { %3019 = vmatprep.subr.bf16.mxu1 %v4515_v46  ;;  %v4582_v59 = vld [vmem:[%s5955_s1 + $0xa0c] ss:$16 sps:$4 sm:$0xff]   ;;  %v4577_v46 = vld [vmem:[%s5955_s1 + $0x808] ss:$16 sps:$4 sm:$0xff]  }
 0x13d   : > { %2979 = vmatpush2.bf16.msra.mxu0 %v4510_v48  ;;  %v4580_v48 = vld [vmem:[%s5955_s1 + $0xa08] ss:$16 sps:$4 sm:$0xff]  }
 0x13e   : > { %3020 = vmatpush2.bf16.msra.mxu1 %v4513_v60  ;;  %2980 = vmatprep.subr.bf16.mxu0 %v4518_v61  ;;  %v4585_v60 = vld [vmem:[%s5955_s1 + $0x9ec] ss:$16 sps:$4 sm:$0xff]  }
 0x13f   : > { %3021 = vmatprep.subr.bf16.mxu1 %v4521_v0  ;;  %v4588_v61 = vld [vmem:[%s5955_s1 + $0xbec] ss:$16 sps:$4 sm:$0xff]   ;;  %v4583_v0 = vld [vmem:[%s5955_s1 + $0x9e8] ss:$16 sps:$4 sm:$0xff]  }
 0x141   : > { %2981 = vmatpush2.bf16.msra.mxu0 %v4516_v1  ;;  %v4586_v1 = vld [vmem:[%s5955_s1 + $0xbe8] ss:$16 sps:$4 sm:$0xff]  }
 0x142   : > { %3022 = vmatpush2.bf16.msra.mxu1 %v4519_v3  ;;  %2982 = vmatprep.subr.bf16.mxu0 %v4524_v4  ;;  %v4591_v3 = vld [vmem:[%s5955_s1 + $0x9cc] ss:$16 sps:$4 sm:$0xff]  }
 0x143   : > { %3023 = vmatprep.subr.bf16.mxu1 %v4527_v5  ;;  %v4594_v4 = vld [vmem:[%s5955_s1 + $0xbcc] ss:$16 sps:$4 sm:$0xff]   ;;  %v4589_v5 = vld [vmem:[%s5955_s1 + $0x9c8] ss:$16 sps:$4 sm:$0xff]  }
 0x145   : > { %2983 = vmatpush2.bf16.msra.mxu0 %v4522_v6  ;;  %v4592_v6 = vld [vmem:[%s5955_s1 + $0xbc8] ss:$16 sps:$4 sm:$0xff]  }
 0x146   : > { %3024 = vmatpush2.bf16.msra.mxu1 %v4525_v41  ;;  %2984 = vmatprep.subr.bf16.mxu0 %v4530_v47  ;;  %v4597_v41 = vld [vmem:[%s5955_s1 + $0x9ac] ss:$16 sps:$4 sm:$0xff]  }
 0x147   : > { %3025 = vmatprep.subr.bf16.mxu1 %v4533_v8  ;;  %v4600_v47 = vld [vmem:[%s5955_s1 + $0xbac] ss:$16 sps:$4 sm:$0xff]   ;;  %v4595_v8 = vld [vmem:[%s5955_s1 + $0x9a8] ss:$16 sps:$4 sm:$0xff]  }
 0x149   : > { %2985 = vmatpush2.bf16.msra.mxu0 %v4528_v9  ;;  %v4598_v9 = vld [vmem:[%s5955_s1 + $0xba8] ss:$16 sps:$4 sm:$0xff]  }
 0x14a   : > { %3026 = vmatpush2.bf16.msra.mxu1 %v4531_v10  ;;  %3036 = vmatprep.subr.bf16.mxu0 %v4537_v11  ;;  %v4603_v10 = vld [vmem:[%s5955_s1 + $0x98c] ss:$16 sps:$4 sm:$0xff]  }
 0x14b   : > { %3077 = vmatprep.subr.bf16.mxu1 %v4540_v12  ;;  %v4606_v11 = vld [vmem:[%s5955_s1 + $0xb8c] ss:$16 sps:$4 sm:$0xff]   ;;  %v4601_v12 = vld [vmem:[%s5955_s1 + $0x988] ss:$16 sps:$4 sm:$0xff]  }
 0x14c   : > { %v1284_v19 = vpop.f32.mrf.mxu0  ;;  %2987 = vmatmul.mubr.bf16.vlgmr.msra.gmra.mxu0 %v2306_v13 }
 0x14d   : > { %v1325_v20 = vpop.f32.mrf.mxu1  ;;  %3028 = vmatmul.mubr.bf16.vlgmr.msra.gmra.mxu1 %v2308_v14  ;;  %3037 = vmatpush1.bf16.msra.mxu0 %v4535_v15  ;;  %v4604_v15 = vld [vmem:[%s5955_s1 + $0xb88] ss:$16 sps:$4 sm:$0xff]  }
 0x14e   : > { %v5733_v21 = vadd.f32 %v1325_v20, %v1284_v19  ;;  %3078 = vmatpush1.bf16.msra.mxu1 %v4538_v16  ;;  %v1286_v24 = vpop.f32.mrf.mxu0  ;;  %3038 = vmatprep.subr.bf16.mxu0 %v4543_v17  ;;  %v4609_v16 = vld [vmem:[%s5955_s1 + $0x96c] ss:$16 sps:$4 sm:$0xff]   ;;  %v4610_v19 = vld [vmem:[%s5955_s1 + $0xb68] ss:$16 sps:$4 sm:$0xff]  }
 0x14f   : > { %v1327_v25 = vpop.f32.mrf.mxu1  ;;  %3079 = vmatprep.subr.bf16.mxu1 %v4546_v18  ;;  %3068 = vmatprep.mubr.bf16.mxu0 %v5523_v62  ;;  %v4555_v62 = vld [vmem:[%s5955_s1 + $0x88c] ss:$16 sps:$4 sm:$0xff]   ;;  %v4607_v18 = vld [vmem:[%s5955_s1 + $0x968] ss:$16 sps:$4 sm:$0xff]  }
 0x150   : > { %v5747_v30 = vadd.f32 %v1327_v25, %v1286_v24  ;;  %3109 = vmatprep.mubr.bf16.mxu1 %v5525_v63  ;;  %v1288_v31 = vpop.f32.mrf.mxu0  ;;  %v4558_v63 = vld [vmem:[%s5955_s1 + $0xa8c] ss:$16 sps:$4 sm:$0xff]   ;;  %v4616_v24 = vld [vmem:[%s5955_s1 + $0xb48] ss:$16 sps:$4 sm:$0xff]  }
 0x151   : > { %v1329_v32 = vpop.f32.mrf.mxu1  ;;  %3039 = vmatpush1.bf16.msra.mxu0 %v4541_v22  ;;  %v4612_v17 = vld [vmem:[%s5955_s1 + $0xb6c] ss:$16 sps:$4 sm:$0xff]   ;;  %v4622_v31 = vld [vmem:[%s5955_s1 + $0xb28] ss:$16 sps:$4 sm:$0xff]  }
 0x152   : > { %3080 = vmatpush1.bf16.msra.mxu1 %v4544_v23  ;;  %v1289_v35 = vpop.f32.mrf.mxu0  ;;  %3040 = vmatprep.subr.bf16.mxu0 %v4549_v26  ;;  %v4615_v20 = vld [vmem:[%s5955_s1 + $0x94c] ss:$16 sps:$4 sm:$0xff]   ;;  %v4613_v23 = vld [vmem:[%s5955_s1 + $0x948] ss:$16 sps:$4 sm:$0xff]  }
 0x153   : > { %v1330_v36 = vpop.f32.mrf.mxu1  ;;  %3081 = vmatprep.subr.bf16.mxu1 %v4552_v27  ;;  %v4618_v22 = vld [vmem:[%s5955_s1 + $0xb4c] ss:$16 sps:$4 sm:$0xff]   ;;  %v4619_v27 = vld [vmem:[%s5955_s1 + $0x928] ss:$16 sps:$4 sm:$0xff]  }
 0x154   : > { %v4621_v25 = vld [vmem:[%s5955_s1 + $0x92c] ss:$16 sps:$4 sm:$0xff]   ;;  %v4628_v35 = vld [vmem:[%s5955_s1 + $0xb08] ss:$16 sps:$4 sm:$0xff]  }
 0x155   : > { %3041 = vmatpush1.bf16.msra.mxu0 %v4547_v33  ;;  %v4624_v26 = vld [vmem:[%s5955_s1 + $0xb2c] ss:$16 sps:$4 sm:$0xff]  }
 0x156   : > { %3082 = vmatpush1.bf16.msra.mxu1 %v4550_v34  ;;  %3042 = vmatprep.subr.bf16.mxu0 %v4555_v62  ;;  %v4627_v32 = vld [vmem:[%s5955_s1 + $0x90c] ss:$16 sps:$4 sm:$0xff]   ;;  %v4625_v34 = vld [vmem:[%s5955_s1 + $0x908] ss:$16 sps:$4 sm:$0xff]  }
 0x157   : > { %3083 = vmatprep.subr.bf16.mxu1 %v4558_v63  ;;  %v4630_v33 = vld [vmem:[%s5955_s1 + $0xb0c] ss:$16 sps:$4 sm:$0xff]  }
 0x159   : > { %3043 = vmatpush1.bf16.msra.mxu0 %v4553_v37 }
 0x15a   : > { %3084 = vmatpush1.bf16.msra.mxu1 %v4556_v39  ;;  %3044 = vmatprep.subr.bf16.mxu0 %v4561_v40 }
 0x15b   : > { %3085 = vmatprep.subr.bf16.mxu1 %v4564_v42 }
 0x15d   : > { %3045 = vmatpush1.bf16.msra.mxu0 %v4559_v44 }
 0x15e   : > { %3086 = vmatpush1.bf16.msra.mxu1 %v4562_v45  ;;  %3046 = vmatprep.subr.bf16.mxu0 %v4567_v28 }
 0x15f   : > { %3087 = vmatprep.subr.bf16.mxu1 %v4570_v29 }
 0x161   : > { %3047 = vmatpush1.bf16.msra.mxu0 %v4565_v50 }
 0x162   : > { %3088 = vmatpush1.bf16.msra.mxu1 %v4568_v51  ;;  %3048 = vmatprep.subr.bf16.mxu0 %v4573_v54 }
 0x163   : > { %3089 = vmatprep.subr.bf16.mxu1 %v4576_v55 }
 0x165   : > { %3049 = vmatpush1.bf16.msra.mxu0 %v4571_v56 }
 0x166   : > { %3090 = vmatpush1.bf16.msra.mxu1 %v4574_v57  ;;  %3050 = vmatprep.subr.bf16.mxu0 %v4579_v58 }
 0x167   : > { %3091 = vmatprep.subr.bf16.mxu1 %v4582_v59 }
 0x169   : > { %3051 = vmatpush1.bf16.msra.mxu0 %v4577_v46 }
 0x16a   : > { %3092 = vmatpush1.bf16.msra.mxu1 %v4580_v48  ;;  %3052 = vmatprep.subr.bf16.mxu0 %v4585_v60 }
 0x16b   : > { %3093 = vmatprep.subr.bf16.mxu1 %v4588_v61 }
 0x16d   : > { %3053 = vmatpush2.bf16.msra.mxu0 %v4583_v0 }
 0x16e   : > { %3094 = vmatpush2.bf16.msra.mxu1 %v4586_v1  ;;  %3054 = vmatprep.subr.bf16.mxu0 %v4591_v3 }
 0x16f   : > { %3095 = vmatprep.subr.bf16.mxu1 %v4594_v4 }
 0x171   : > { %3055 = vmatpush2.bf16.msra.mxu0 %v4589_v5 }
 0x172   : > { %3096 = vmatpush2.bf16.msra.mxu1 %v4592_v6  ;;  %3056 = vmatprep.subr.bf16.mxu0 %v4597_v41 }
 0x173   : > { %3097 = vmatprep.subr.bf16.mxu1 %v4600_v47 }
 0x175   : > { %3057 = vmatpush2.bf16.msra.mxu0 %v4595_v8 }
 0x176   : > { %3098 = vmatpush2.bf16.msra.mxu1 %v4598_v9  ;;  %3058 = vmatprep.subr.bf16.mxu0 %v4603_v10 }
 0x177   : > { %3099 = vmatprep.subr.bf16.mxu1 %v4606_v11 }
 0x179   : > { %3059 = vmatpush2.bf16.msra.mxu0 %v4601_v12 }
 0x17a   : > { %3100 = vmatpush2.bf16.msra.mxu1 %v4604_v15  ;;  %3060 = vmatprep.subr.bf16.mxu0 %v4609_v16 }
 0x17b   : > { %3101 = vmatprep.subr.bf16.mxu1 %v4612_v17 }
 0x17d   : > { %3061 = vmatpush2.bf16.msra.mxu0 %v4607_v18 }
 0x17e   : > { %3102 = vmatpush2.bf16.msra.mxu1 %v4610_v19  ;;  %3062 = vmatprep.subr.bf16.mxu0 %v4615_v20 }
 0x17f   : > { %3103 = vmatprep.subr.bf16.mxu1 %v4618_v22 }
 0x181   : > { %3063 = vmatpush2.bf16.msra.mxu0 %v4613_v23 }
 0x182   : > { %3104 = vmatpush2.bf16.msra.mxu1 %v4616_v24  ;;  %3064 = vmatprep.subr.bf16.mxu0 %v4621_v25 }
 0x183   : > { %3105 = vmatprep.subr.bf16.mxu1 %v4624_v26 }
 0x185   : > { %3065 = vmatpush2.bf16.msra.mxu0 %v4619_v27 }
 0x186   : > { %3106 = vmatpush2.bf16.msra.mxu1 %v4622_v31  ;;  %3066 = vmatprep.subr.bf16.mxu0 %v4627_v32 }
 0x187   : > { %3107 = vmatprep.subr.bf16.mxu1 %v4630_v33 }
 0x189   : > { %3067 = vmatpush2.bf16.msra.mxu0 %v4625_v34 }
 0x18a   : > { %3108 = vmatpush2.bf16.msra.mxu1 %v4628_v35 }
 0x18c   : > { %v2028_v36 = vpop.f32.mrf.mxu0  ;;  %3069 = vmatmul.mubr.bf16.vlgmr.msra.gmra.mxu0 %v2306_v13 }
 0x18d   : > { %v2069_v62 = vpop.f32.mrf.mxu1  ;;  %3110 = vmatmul.mubr.bf16.vlgmr.msra.gmra.mxu1 %v2308_v14  ;;  %v2029_v63 = vadd.f32 %v2028_v36, %v5529_v2 }
 0x18e   : > { %v2030_v37 = vpop.f32.mrf.mxu0 }
 0x18f   : > { %v2071_v39 = vpop.f32.mrf.mxu1  ;;  %v2070_v40 = vadd.f32 %v2069_v62, %v2029_v63  ;;  %v2031_v42 = vadd.f32 %v2030_v37, %v5543_v7 }
 0x190   : > { %v2032_v44 = vpop.f32.mrf.mxu0 }
 0x191   : > { %v2073_v45 = vpop.f32.mrf.mxu1  ;;  %v2072_v28 = vadd.f32 %v2071_v39, %v2031_v42 }
 0x192   : > { %v2033_v29 = vpop.f32.mrf.mxu0 }
 0x193   : > { %v2074_v50 = vpop.f32.mrf.mxu1 }
 0x1cc   : > { %v2110_v51 = vpop.f32.mrf.mxu0 }
 0x1cd   : > { %v2151_v54 = vpop.f32.mrf.mxu1  ;;  %v2111_v52 = vadd.f32 %v2110_v51, %v5733_v21 }
 0x1ce   : > { %v2112_v13 = vpop.f32.mrf.mxu0 }
 0x1cf   : > { %v2153_v55 = vpop.f32.mrf.mxu1  ;;  %v2152_v53 = vadd.f32 %v2151_v54, %v2111_v52  ;;  %v2113_v14 = vadd.f32 %v2112_v13, %v5747_v30 }
 0x1d0   : > { %v2114_v2 = vpop.f32.mrf.mxu0 }
 0x1d1   : > { %v2155_v56 = vpop.f32.mrf.mxu1  ;;  %v2154_v57 = vadd.f32 %v2153_v55, %v2113_v14 }
 0x1d2   : > { %v2115_v58 = vpop.f32.mrf.mxu0 }
 0x1d3   : > { %v2156_v59 = vpop.f32.mrf.mxu1 }
 0x20c   : > { %v2988_v7 = vpop.f32.mrf.mxu0 }
 0x20d   : > { %v3029_v46 = vpop.f32.mrf.mxu1 }
 0x20e   : > { %v3030_v48 = vadd.f32 %v3029_v46, %v2988_v7  ;;  %v2990_v60 = vpop.f32.mrf.mxu0 }
 0x20f   : > { %v3031_v61 = vpop.f32.mrf.mxu1 }
 0x210   : > { %v5921_v0 = vadd.f32 %v3030_v48, %v2070_v40  ;;  %v3032_v1 = vadd.f32 %v3031_v61, %v2990_v60  ;;  %v2992_v21 = vpop.f32.mrf.mxu0 }
 0x211   : > { %v3033_v3 = vpop.f32.mrf.mxu1 }
 0x212   : > { %v3146_v4 = vsel %vm3145_vm0, %v5921_v0, 0.0  ;;  %v3208_v30 = vmul.f32 %v5921_v0, %v5921_v0  ;;  %v3119_v5 = vadd.f32 %v3032_v1, %v2072_v28  ;;  %v2993_v41 = vpop.f32.mrf.mxu0  ;;  %v4640_v3 = vmov 1966171168  }
 0x213   : > { %v3147_v6 = vrot.slane %v3146_v4, 4  ;;  %v3034_v47 = vpop.f32.mrf.mxu1 }
 0x214   : > { %v3212_v8 = vsel %vm3145_vm0, %v3208_v30, 0.0  ;;  %v3126_v9 = vcombine.low %v5921_v0, %v3119_v5  ;;  %v3153_v10 = vsel %vm3145_vm0, %v3119_v5, 0.0  ;;  %v3209_v11 = vmul.f32 %v3119_v5, %v3119_v5 }
 0x215   : > { %v3148_v12 = vadd.f32 %v3147_v6, %v3146_v4  ;;  %v3213_v15 = vrot.slane %v3212_v8, 4  ;;  %v3154_v16 = vrot.slane %v3153_v10, 4  ;;  %v3181_v4 = vunpack.c.l.s4 %v4640_v3 }
 0x216   : > { %v3219_v17 = vsel %vm3145_vm0, %v3209_v11, 0.0  ;;  %v3134_v21 = vrot.slane %v3126_v9, %v4824_v49 }
 0x217   : > { %v3149_v18 = vrot.slane %v3148_v12, 2  ;;  %v3214_v19 = vadd.f32 %v3213_v15, %v3212_v8  ;;  %v3155_v20 = vadd.f32 %v3154_v16, %v3153_v10  ;;  %v3220_v22 = vrot.slane %v3219_v17, 4 }
 0x218   : > { %v3182_v15 = vunpack.c.0.s8 %v3181_v4 }
 0x219   : > { %v3150_v23 = vadd.f32 %v3149_v18, %v3148_v12  ;;  %v3215_v24 = vrot.slane %v3214_v19, 2  ;;  %v3156_v25 = vrot.slane %v3155_v20, 2  ;;  %v3221_v26 = vadd.f32 %v3220_v22, %v3219_v17 }
 0x21b   : > { %v3151_v27 = vrot.slane %v3150_v23, 1  ;;  %v3216_v31 = vadd.f32 %v3215_v24, %v3214_v19  ;;  %v3157_v32 = vadd.f32 %v3156_v25, %v3155_v20  ;;  %v3222_v33 = vrot.slane %v3221_v26, 2 }
 0x21d   : > { %v3217_v34 = vrot.slane %v3216_v31, 1  ;;  %v3158_v35 = vrot.slane %v3157_v32, 1  ;;  %v3223_v36 = vadd.f32 %v3222_v33, %v3221_v26  ;;  %v3152_v62 = vadd.f32 %v3151_v27, %v3150_v23 }
 0x21e   : > { %v3185_v23 = vsub.s32 %v3182_v15, %v4798_v43 }
 0x21f   : > { %v3159_v63 = vadd.f32 %v3158_v35, %v3157_v32  ;;  %v3224_v37 = vrot.slane %v3223_v36, 1  ;;  %v3218_v39 = vadd.f32 %v3217_v34, %v3216_v31 }
 0x221   : > { %v3178_v40 = vcombine.low %v3152_v62, %v3159_v63  ;;  %v3225_v42 = vadd.f32 %v3224_v37, %v3223_v36 }
 0x223   : > { %v3244_v44 = vcombine.low %v3218_v39, %v3225_v42  ;;  %v3186_v33 = vrot.slane %v3178_v40, %v3185_v23 }
 0x225   : > { %v3252_v36 = vrot.slane %v3244_v44, %v3185_v23 }
 0x24c   : > { %v3070_v45 = vpop.f32.mrf.mxu0 }
 0x24d   : > { %v3111_v28 = vpop.f32.mrf.mxu1 }
 0x24e   : > { %v3112_v29 = vadd.f32 %v3111_v28, %v3070_v45  ;;  %v3072_v50 = vpop.f32.mrf.mxu0 }
 0x24f   : > { %v3113_v51 = vpop.f32.mrf.mxu1 }
 0x250   : > { %v3120_v54 = vadd.f32 %v3112_v29, %v2152_v53  ;;  %v3114_v52 = vadd.f32 %v3113_v51, %v3072_v50  ;;  %v3074_v13 = vpop.f32.mrf.mxu0 }
 0x251   : > { %v3115_v55 = vpop.f32.mrf.mxu1 }
 0x252   : > { %v3160_v14 = vsel %vm3145_vm0, %v3120_v54, 0.0  ;;  %v3210_v2 = vmul.f32 %v3120_v54, %v3120_v54  ;;  %v3121_v56 = vadd.f32 %v3114_v52, %v2154_v57  ;;  %v3075_v59 = vpop.f32.mrf.mxu0 }
 0x253   : > { %v3161_v58 = vrot.slane %v3160_v14, 4  ;;  %v3116_v7 = vpop.f32.mrf.mxu1 }
 0x254   : > { %v3226_v46 = vsel %vm3145_vm0, %v3210_v2, 0.0  ;;  %v3127_v48 = vcombine.low %v3120_v54, %v3121_v56  ;;  %v3167_v60 = vsel %vm3145_vm0, %v3121_v56, 0.0  ;;  %v3211_v61 = vmul.f32 %v3121_v56, %v3121_v56 }
 0x255   : > { %v3162_v0 = vadd.f32 %v3161_v58, %v3160_v14  ;;  %v3227_v1 = vrot.slane %v3226_v46, 4  ;;  %v3168_v53 = vrot.slane %v3167_v60, 4 }
 0x256   : > { %v3141_v30 = vrot.slane %v3127_v48, %v4824_v49  ;;  %v3233_v57 = vsel %vm3145_vm0, %v3211_v61, 0.0 }
 0x257   : > { %v3163_v5 = vrot.slane %v3162_v0, 2  ;;  %v3228_v6 = vadd.f32 %v3227_v1, %v3226_v46  ;;  %v3169_v41 = vadd.f32 %v3168_v53, %v3167_v60  ;;  %v3234_v47 = vrot.slane %v3233_v57, 4 }
 0x258   : > { %v3142_v8 = vcombine.low %v3134_v21, %v3141_v30 }
 0x259   : > { %v3164_v10 = vadd.f32 %v3163_v5, %v3162_v0  ;;  %v3229_v11 = vrot.slane %v3228_v6, 2  ;;  %v3170_v12 = vrot.slane %v3169_v41, 2  ;;  %v3235_v9 = vadd.f32 %v3234_v47, %v3233_v57 }
 0x25a   : > { %3144 = vst [vmem:[%s210_s23] sm:$0xff] %v3142_v8 }
 0x25b   : > { %v3165_v49 = vrot.slane %v3164_v10, 1  ;;  %v3230_v16 = vadd.f32 %v3229_v11, %v3228_v6  ;;  %v3171_v17 = vadd.f32 %v3170_v12, %v3169_v41  ;;  %v3236_v18 = vrot.slane %v3235_v9, 2 }
 0x25d   : > { %v3231_v19 = vrot.slane %v3230_v16, 1  ;;  %v3172_v20 = vrot.slane %v3171_v17, 1  ;;  %v3237_v22 = vadd.f32 %v3236_v18, %v3235_v9  ;;  %v3166_v24 = vadd.f32 %v3165_v49, %v3164_v10 }
 0x25f   : > { %v3173_v25 = vadd.f32 %v3172_v20, %v3171_v17  ;;  %v3238_v26 = vrot.slane %v3237_v22, 1  ;;  %v3232_v27 = vadd.f32 %v3231_v19, %v3230_v16 }
 0x261   : > { %v3179_v31 = vcombine.low %v3166_v24, %v3173_v25  ;;  %v3239_v32 = vadd.f32 %v3238_v26, %v3237_v22 }
 0x263   : > { %v3193_v34 = vrot.slane %v3179_v31, %v3185_v23  ;;  %v3245_v35 = vcombine.low %v3232_v27, %v3239_v32 }
 0x265   : > { %v3194_v62 = vcombine.low %v3186_v33, %v3193_v34  ;;  %v3259_v63 = vrot.slane %v3245_v35, %v3185_v23 }
 0x267   : > { %v3201_v43 = vrot.slane %v3194_v62, %v3185_v23  ;;  %v3260_v37 = vcombine.low %v3252_v36, %v3259_v63 }
 0x269   : > { %3207 = vst.msk [vmem:[%s214_s26] sm:$0xf] %vm3205_vm1, %v3201_v43  ;;  %v3267_v39 = vrot.slane %v3260_v37, %v3185_v23 }
 0x26b   : > { %3269 = vst.msk [vmem:[%s218_s30] sm:$0xf] %vm3205_vm1, %v3267_v39 }
 0x26c PF: > { %s15_s15 = sadd.s32 1, %s4637_s15  }
 0x26d   : > { %p12_p4 = scmp.ge.s32.totalorder %s15_s15, 4  }
 0x26f   :  { %14 = sbr.rel (!%p12_p4) target bundleno = 1 (0x1), region = 84 }

</bundles_post_ra>
